<compile_context>
chip_gen: v5e
topology: v5e:2x2
jax: 0.10.0
libtpu: 0.0.40
codegen_flags: <defaults>
</compile_context>

<pallas_src>
import numpy as np
import jax
import jax.numpy as jnp
from jax.experimental import pallas as pl
from jax.experimental.pallas import tpu as pltpu

LATENT = 8        # hparams.latent_size (small, synthetic)
N_OUT = 100       # 1*10*10 flattened output
N_OUT_PAD = 128   # lane-dense padded output width


# ----------------------------------------------------------------------------
# Parameter setup (glue, plain numpy/JAX) — deterministic init.
# ----------------------------------------------------------------------------
def _uniform(key, shape, bound):
    return jax.random.uniform(key, shape, jnp.float32, -bound, bound)


def build_convT_matrix(weight, bias, H_in, W_in, stride, padding):
    """Lower a PyTorch ConvTranspose2d to y_flat = x_flat @ M + c (exact)."""
    C_in, C_out, kH, kW = weight.shape
    H_out = (H_in - 1) * stride - 2 * padding + kH
    W_out = (W_in - 1) * stride - 2 * padding + kW
    M = np.zeros((C_in * H_in * W_in, C_out * H_out * W_out), np.float32)
    for ci in range(C_in):
        for hi in range(H_in):
            for wi in range(W_in):
                row = ci * H_in * W_in + hi * W_in + wi
                for co in range(C_out):
                    for kh in range(kH):
                        ho = hi * stride - padding + kh
                        if ho < 0 or ho >= H_out:
                            continue
                        for kw in range(kW):
                            wo = wi * stride - padding + kw
                            if wo < 0 or wo >= W_out:
                                continue
                            col = co * H_out * W_out + ho * W_out + wo
                            M[row, col] += weight[ci, co, kh, kw]
    c = np.repeat(bias, H_out * W_out).astype(np.float32)
    return M, c, H_out, W_out


def _pad2(a, rows, cols):
    out = np.zeros((rows, cols), np.float32)
    out[: a.shape[0], : a.shape[1]] = a
    return out


def _rup(n, m=128):
    return -(-n // m) * m


def init_params(key):
    ks = jax.random.split(key, 12)
    # Linear(latent, 1024)
    w1 = np.asarray(_uniform(ks[0], (LATENT, 1024), 1.0 / np.sqrt(LATENT)))
    b1 = np.asarray(_uniform(ks[1], (1024,), 1.0 / np.sqrt(LATENT)))
    # Linear(1024, 512)
    w2 = np.asarray(_uniform(ks[2], (1024, 512), 1.0 / np.sqrt(1024)))
    b2 = np.asarray(_uniform(ks[3], (512,), 1.0 / np.sqrt(1024)))
    # ConvTranspose2d(32, 16, 2, 2, padding=1): weight (Cin, Cout, kH, kW)
    cw1 = np.asarray(_uniform(ks[4], (32, 16, 2, 2), 1.0 / np.sqrt(16 * 2 * 2)))
    cb1 = np.asarray(_uniform(ks[5], (16,), 1.0 / np.sqrt(16 * 2 * 2)))
    # ConvTranspose2d(16, 8, 2, 2, padding=1)
    cw2 = np.asarray(_uniform(ks[6], (16, 8, 2, 2), 1.0 / np.sqrt(8 * 2 * 2)))
    cb2 = np.asarray(_uniform(ks[7], (8,), 1.0 / np.sqrt(8 * 2 * 2)))
    # ConvTranspose2d(8, 1, 3, 1, padding=1)
    cw3 = np.asarray(_uniform(ks[8], (8, 1, 3, 3), 1.0 / np.sqrt(1 * 3 * 3)))
    cb3 = np.asarray(_uniform(ks[9], (1,), 1.0 / np.sqrt(1 * 3 * 3)))

    raw = dict(w1=w1, b1=b1, w2=w2, b2=b2,
               cw1=cw1, cb1=cb1, cw2=cw2, cb2=cb2, cw3=cw3, cb3=cb3)

    # Dense lowering of the three conv-transposes (exact).
    M1, c1, H1, W1 = build_convT_matrix(cw1, cb1, 4, 4, stride=2, padding=1)    # (512, 576)
    M2, c2, H2, W2 = build_convT_matrix(cw2, cb2, H1, W1, stride=2, padding=1)  # (576, 800)
    M3, c3, H3, W3 = build_convT_matrix(cw3, cb3, H2, W2, stride=1, padding=1)  # (800, 100)
    assert (H3, W3) == (10, 10)

    # 128-lane zero-padding: padded output lanes get zero weight + zero bias,
    # and feed zero rows of the next (padded) matrix, so values are unchanged.
    n1, n2, n3 = _rup(M1.shape[1]), _rup(M2.shape[1]), _rup(M3.shape[1])  # 640, 896, 128
    assert n3 == N_OUT_PAD
    M1p = _pad2(M1, M1.shape[0], n1)           # (512, 640)
    M2p = _pad2(M2, n1, n2)                    # (640, 896)
    M3p = _pad2(M3, n2, n3)                    # (896, 128)
    c1p = _pad2(c1[None, :], 1, n1)
    c2p = _pad2(c2[None, :], 1, n2)
    c3p = _pad2(c3[None, :], 1, n3)

    bf = jnp.bfloat16
    f32 = jnp.float32
    # Stage-1 weight kept in f32 (tiny: 8x1024) for fidelity; the large conv
    # matrices are bf16 (halved weight DMA, native MXU input).  Biases are f32
    # and added to the f32 accumulators.
    kern = (jnp.asarray(w1, f32), jnp.asarray(b1[None, :], f32),
            jnp.asarray(w2, bf), jnp.asarray(b2[None, :], f32),
            jnp.asarray(M1p, bf), jnp.asarray(c1p, f32),
            jnp.asarray(M2p, bf), jnp.asarray(c2p, f32),
            jnp.asarray(M3p, bf), jnp.asarray(c3p, f32))
    return kern, raw


# ----------------------------------------------------------------------------
# Pallas kernel: the whole forward as 5 fused matmul+bias(+ReLU) stages.
# ----------------------------------------------------------------------------
def decoder_kernel(x_ref, w1_ref, b1_ref, w2_ref, b2_ref,
                   m1_ref, c1_ref, m2_ref, c2_ref, m3_ref, c3_ref, o_ref):
    # Stage 1 in full f32 (K = 8, negligible MXU cost) for better fidelity
    # vs. the f32 PyTorch reference.
    h = jnp.dot(x_ref[...], w1_ref[...],
                preferred_element_type=jnp.float32) + b1_ref[...]
    h = jnp.maximum(h, 0.0).astype(jnp.bfloat16)

    def stage(h, w_ref, b_ref, relu=True):
        acc = jnp.dot(h, w_ref[...],
                      preferred_element_type=jnp.float32) + b_ref[...]
        if relu:
            return jnp.maximum(acc, 0.0).astype(jnp.bfloat16)
        return acc

    h = stage(h, w2_ref, b2_ref)
    h = stage(h, m1_ref, c1_ref)
    h = stage(h, m2_ref, c2_ref)
    o_ref[...] = stage(h, m3_ref, c3_ref, relu=False)   # f32, lane-dense store


# ----------------------------------------------------------------------------
# Wrapper: generation-aware tiling + pallas_call.
# ----------------------------------------------------------------------------
def _round_up(n, m):
    return -(-n // m) * m


def _chip_config():
    """Best-effort hardware probe -> (is_v7x, is_v5e, vmem_limit_bytes)."""
    vmem_cap = 128 * 1024 * 1024
    kind = ""
    try:
        vmem_cap = int(pltpu.get_tpu_info().vmem_capacity_bytes)
    except Exception:
        pass
    try:
        kind = jax.devices()[0].device_kind.lower()
    except Exception:
        pass
    is_v7x = ("v7" in kind) or (vmem_cap <= 64 * 1024 * 1024)
    is_v5e = ("v5 lite" in kind) or ("v5e" in kind) or ("v5litepod" in kind)
    # 48 MiB cap on v7x (64 MiB physical); 64 MiB elsewhere (128 MiB physical).
    vmem_limit = (48 if is_v7x else 64) * 1024 * 1024
    return is_v7x, is_v5e, vmem_limit


def _select_tb(B, is_v7x, is_v5e):
    if B < 256:
        # bf16 activations pack 16 sublanes per vreg -> round up to 16.
        return max(16, _round_up(B, 16))
    # Large batch: long MXU bursts, per-grid-step overhead amortized.
    tb = 256 if is_v5e else 1024
    tb = min(tb, _round_up(B, 256))
    if is_v7x and B > 256:
        # Keep >= 2 grid steps so the "parallel" axis shards across both TCs.
        tb = min(tb, max(256, _round_up(pl.cdiv(B, 2), 256)))
    return tb


def _build_call(kern_params, tb, B_pad, vmem_limit, single_buffer_weights):
    def wspec(shape):
        if single_buffer_weights:
            # Weights never change across grid steps: no double buffer.
            return pl.BlockSpec(shape, lambda i: (0, 0),
                                pipeline_mode=pl.Buffered(1))
        return pl.BlockSpec(shape, lambda i: (0, 0))

    in_specs = [pl.BlockSpec((tb, LATENT), lambda i: (i, 0))]
    in_specs += [wspec(w.shape) for w in kern_params]

    weight_elems = sum(int(np.prod(w.shape)) for w in kern_params[0::2])
    flops = 2 * B_pad * weight_elems
    bytes_accessed = (sum(int(w.size) * w.dtype.itemsize for w in kern_params)
                      + B_pad * LATENT * 4 + B_pad * N_OUT_PAD * 4)

    return pl.pallas_call(
        decoder_kernel,
        out_shape=jax.ShapeDtypeStruct((B_pad, N_OUT_PAD), jnp.float32),
        grid=(B_pad // tb,),
        in_specs=in_specs,
        out_specs=pl.BlockSpec((tb, N_OUT_PAD), lambda i: (i, 0)),
        compiler_params=pltpu.CompilerParams(
            dimension_semantics=("parallel",),
            vmem_limit_bytes=vmem_limit),
        cost_estimate=pl.CostEstimate(flops=flops, transcendentals=0,
                                      bytes_accessed=bytes_accessed),
    )


def decoder_forward(x, kern_params, *, tb=None):
    """x: (B, LATENT) f32 -> (B, 1, 100) f32.  tb overrides the batch tile."""
    B = x.shape[0]
    is_v7x, is_v5e, vmem_limit = _chip_config()
    if tb is None:
        tb = _select_tb(B, is_v7x, is_v5e)
    B_pad = pl.cdiv(B, tb) * tb
    xp = jnp.pad(x, ((0, B_pad - B), (0, 0))) if B_pad != B else x

    try:
        call = _build_call(kern_params, tb, B_pad, vmem_limit,
                           single_buffer_weights=True)
        out = call(xp, *kern_params)
    except Exception:
        # Fallback if this JAX build rejects pipeline_mode=pl.Buffered(1).
        call = _build_call(kern_params, tb, B_pad, vmem_limit,
                           single_buffer_weights=False)
        out = call(xp, *kern_params)

    # Drop batch padding and the 28 zero lanes, then final Reshape((1, 100)).
    return out[:B, :N_OUT].reshape(B, 1, N_OUT)


# ----------------------------------------------------------------------------
# Pure numpy reference (direct conv-transpose loops) for validation.
# ----------------------------------------------------------------------------
def convT_ref(x, weight, bias, stride, padding):
    B, C_in, H, W = x.shape
    _, C_out, kH, kW = weight.shape
    H_out = (H - 1) * stride - 2 * padding + kH
    W_out = (W - 1) * stride - 2 * padding + kW
    out = np.zeros((B, C_out, H_out, W_out), np.float32)
    out += bias[None, :, None, None]
    for hi in range(H):
        for wi in range(W):
            for kh in range(kH):
                ho = hi * stride - padding + kh
                if ho < 0 or ho >= H_out:
                    continue
                for kw in range(kW):
                    wo = wi * stride - padding + kw
                    if wo < 0 or wo >= W_out:
                        continue
                    out[:, :, ho, wo] += np.einsum(
                        'bc,cd->bd', x[:, :, hi, wi], weight[:, :, kh, kw])
    return out


def reference_forward(x, p):
    h = np.maximum(x @ p['w1'] + p['b1'], 0.0)
    h = np.maximum(h @ p['w2'] + p['b2'], 0.0)
    h = h.reshape(x.shape[0], 32, 4, 4)
    h = np.maximum(convT_ref(h, p['cw1'], p['cb1'], 2, 1), 0.0)
    h = np.maximum(convT_ref(h, p['cw2'], p['cb2'], 2, 1), 0.0)
    h = convT_ref(h, p['cw3'], p['cb3'], 1, 1)
    return h.reshape(x.shape[0], 1, 100)


if __name__ == "__main__":
    key = jax.random.PRNGKey(0)
    k_param, k_x1, k_x2 = jax.random.split(key, 3)
    kern_params, raw_params = init_params(k_param)

    # --- test 1: small batch (single grid step, latency path) ---
    B1 = 2
    x1 = jax.random.normal(k_x1, (B1, LATENT), jnp.float32)
    out1 = jax.block_until_ready(decoder_forward(x1, kern_params))
    ref1 = reference_forward(np.asarray(x1), raw_params)
    np.testing.assert_allclose(np.asarray(out1), ref1, rtol=5e-2, atol=5e-2)
    assert out1.shape == (B1, 1, 100)

    # --- test 2: batch-tiled path (B not a multiple of tb, multi-step grid,
    #             padded rows sliced off) ---
    B2 = 300
    x2 = jax.random.normal(k_x2, (B2, LATENT), jnp.float32)
    out2 = jax.block_until_ready(decoder_forward(x2, kern_params, tb=128))
    ref2 = reference_forward(np.asarray(x2), raw_params)
    np.testing.assert_allclose(np.asarray(out2), ref2, rtol=5e-2, atol=5e-2)
    assert out2.shape == (B2, 1, 100)

    # --- test 3: auto tile selection on the larger batch ---
    out3 = jax.block_until_ready(decoder_forward(x2, kern_params))
    np.testing.assert_allclose(np.asarray(out3), ref2, rtol=5e-2, atol=5e-2)

    print("KERNEL_OK")
</pallas_src>

<mosaic_0001>
module attributes {stable_mosaic.version = 11 : i64} {
  func.func @decoder_kernel(%arg0: i32, %arg1: memref<16x8xf32, #tpu.memory_space<vmem>>, %arg2: memref<8x1024xf32, #tpu.memory_space<vmem>>, %arg3: memref<1x1024xf32, #tpu.memory_space<vmem>>, %arg4: memref<1024x512xbf16, #tpu.memory_space<vmem>>, %arg5: memref<1x512xf32, #tpu.memory_space<vmem>>, %arg6: memref<512x640xbf16, #tpu.memory_space<vmem>>, %arg7: memref<1x640xf32, #tpu.memory_space<vmem>>, %arg8: memref<640x896xbf16, #tpu.memory_space<vmem>>, %arg9: memref<1x896xf32, #tpu.memory_space<vmem>>, %arg10: memref<896x128xbf16, #tpu.memory_space<vmem>>, %arg11: memref<1x128xf32, #tpu.memory_space<vmem>>, %arg12: memref<16x128xf32, #tpu.memory_space<vmem>>) attributes {dimension_semantics = [#tpu.dimension_semantics<parallel>], iteration_bounds = array<i64: 1>, scalar_prefetch = 0 : i64, scratch_operands = 0 : i64, tpu.core_type = #tpu.core_type<tc>, window_params = [{transform_indices = @transform_0, window_bounds = array<i64: 16, 8>}, {pipeline_mode = #tpu.pipeline_mode<synchronous>, transform_indices = @transform_1, window_bounds = array<i64: 8, 1024>}, {pipeline_mode = #tpu.pipeline_mode<synchronous>, transform_indices = @transform_2, window_bounds = array<i64: 1, 1024>}, {pipeline_mode = #tpu.pipeline_mode<synchronous>, transform_indices = @transform_3, window_bounds = array<i64: 1024, 512>}, {pipeline_mode = #tpu.pipeline_mode<synchronous>, transform_indices = @transform_4, window_bounds = array<i64: 1, 512>}, {pipeline_mode = #tpu.pipeline_mode<synchronous>, transform_indices = @transform_5, window_bounds = array<i64: 512, 640>}, {pipeline_mode = #tpu.pipeline_mode<synchronous>, transform_indices = @transform_6, window_bounds = array<i64: 1, 640>}, {pipeline_mode = #tpu.pipeline_mode<synchronous>, transform_indices = @transform_7, window_bounds = array<i64: 640, 896>}, {pipeline_mode = #tpu.pipeline_mode<synchronous>, transform_indices = @transform_8, window_bounds = array<i64: 1, 896>}, {pipeline_mode = #tpu.pipeline_mode<synchronous>, transform_indices = @transform_9, window_bounds = array<i64: 896, 128>}, {pipeline_mode = #tpu.pipeline_mode<synchronous>, transform_indices = @transform_10, window_bounds = array<i64: 1, 128>}, {transform_indices = @transform_11, window_bounds = array<i64: 16, 128>}]} {
    %c0 = arith.constant 0 : index
    %c0_0 = arith.constant 0 : index
    %0 = vector.load %arg1[%c0, %c0_0] : memref<16x8xf32, #tpu.memory_space<vmem>>, vector<16x8xf32>
    %c0_1 = arith.constant 0 : index
    %c0_2 = arith.constant 0 : index
    %1 = vector.load %arg2[%c0_1, %c0_2] : memref<8x1024xf32, #tpu.memory_space<vmem>>, vector<8x1024xf32>
    %cst = arith.constant dense<0.000000e+00> : vector<16x1024xf32>
    %2 = tpu.matmul %0, %1, %cst {dimension_numbers = #tpu.dot_dimension_numbers<[1], [0], [0], [1], [0, 0, 1, 1], [], []>} : vector<16x8xf32>, vector<8x1024xf32>, vector<16x1024xf32> -> vector<16x1024xf32>
    %c0_3 = arith.constant 0 : index
    %c0_4 = arith.constant 0 : index
    %3 = vector.load %arg3[%c0_3, %c0_4] : memref<1x1024xf32, #tpu.memory_space<vmem>>, vector<1x1024xf32>
    %4 = vector.broadcast %3 : vector<1x1024xf32> to vector<16x1024xf32>
    %5 = arith.addf %2, %4 : vector<16x1024xf32>
    %cst_5 = arith.constant 0.000000e+00 : f32
    %6 = vector.broadcast %cst_5 : f32 to vector<16x1024xf32>
    %7 = arith.maximumf %5, %6 : vector<16x1024xf32>
    %8 = arith.truncf %7 : vector<16x1024xf32> to vector<16x1024xbf16>
    %c0_6 = arith.constant 0 : index
    %c0_7 = arith.constant 0 : index
    %9 = vector.load %arg4[%c0_6, %c0_7] : memref<1024x512xbf16, #tpu.memory_space<vmem>>, vector<1024x512xbf16>
    %cst_8 = arith.constant dense<0.000000e+00> : vector<16x512xf32>
    %10 = tpu.matmul %8, %9, %cst_8 {dimension_numbers = #tpu.dot_dimension_numbers<[1], [0], [0], [1], [0, 0, 1, 1], [], []>} : vector<16x1024xbf16>, vector<1024x512xbf16>, vector<16x512xf32> -> vector<16x512xf32>
    %c0_9 = arith.constant 0 : index
    %c0_10 = arith.constant 0 : index
    %11 = vector.load %arg5[%c0_9, %c0_10] : memref<1x512xf32, #tpu.memory_space<vmem>>, vector<1x512xf32>
    %12 = vector.broadcast %11 : vector<1x512xf32> to vector<16x512xf32>
    %13 = arith.addf %10, %12 : vector<16x512xf32>
    %cst_11 = arith.constant 0.000000e+00 : f32
    %14 = vector.broadcast %cst_11 : f32 to vector<16x512xf32>
    %15 = arith.maximumf %13, %14 : vector<16x512xf32>
    %16 = arith.truncf %15 : vector<16x512xf32> to vector<16x512xbf16>
    %c0_12 = arith.constant 0 : index
    %c0_13 = arith.constant 0 : index
    %17 = vector.load %arg6[%c0_12, %c0_13] : memref<512x640xbf16, #tpu.memory_space<vmem>>, vector<512x640xbf16>
    %cst_14 = arith.constant dense<0.000000e+00> : vector<16x640xf32>
    %18 = tpu.matmul %16, %17, %cst_14 {dimension_numbers = #tpu.dot_dimension_numbers<[1], [0], [0], [1], [0, 0, 1, 1], [], []>} : vector<16x512xbf16>, vector<512x640xbf16>, vector<16x640xf32> -> vector<16x640xf32>
    %c0_15 = arith.constant 0 : index
    %c0_16 = arith.constant 0 : index
    %19 = vector.load %arg7[%c0_15, %c0_16] : memref<1x640xf32, #tpu.memory_space<vmem>>, vector<1x640xf32>
    %20 = vector.broadcast %19 : vector<1x640xf32> to vector<16x640xf32>
    %21 = arith.addf %18, %20 : vector<16x640xf32>
    %cst_17 = arith.constant 0.000000e+00 : f32
    %22 = vector.broadcast %cst_17 : f32 to vector<16x640xf32>
    %23 = arith.maximumf %21, %22 : vector<16x640xf32>
    %24 = arith.truncf %23 : vector<16x640xf32> to vector<16x640xbf16>
    %c0_18 = arith.constant 0 : index
    %c0_19 = arith.constant 0 : index
    %25 = vector.load %arg8[%c0_18, %c0_19] : memref<640x896xbf16, #tpu.memory_space<vmem>>, vector<640x896xbf16>
    %cst_20 = arith.constant dense<0.000000e+00> : vector<16x896xf32>
    %26 = tpu.matmul %24, %25, %cst_20 {dimension_numbers = #tpu.dot_dimension_numbers<[1], [0], [0], [1], [0, 0, 1, 1], [], []>} : vector<16x640xbf16>, vector<640x896xbf16>, vector<16x896xf32> -> vector<16x896xf32>
    %c0_21 = arith.constant 0 : index
    %c0_22 = arith.constant 0 : index
    %27 = vector.load %arg9[%c0_21, %c0_22] : memref<1x896xf32, #tpu.memory_space<vmem>>, vector<1x896xf32>
    %28 = vector.broadcast %27 : vector<1x896xf32> to vector<16x896xf32>
    %29 = arith.addf %26, %28 : vector<16x896xf32>
    %cst_23 = arith.constant 0.000000e+00 : f32
    %30 = vector.broadcast %cst_23 : f32 to vector<16x896xf32>
    %31 = arith.maximumf %29, %30 : vector<16x896xf32>
    %32 = arith.truncf %31 : vector<16x896xf32> to vector<16x896xbf16>
    %c0_24 = arith.constant 0 : index
    %c0_25 = arith.constant 0 : index
    %33 = vector.load %arg10[%c0_24, %c0_25] : memref<896x128xbf16, #tpu.memory_space<vmem>>, vector<896x128xbf16>
    %cst_26 = arith.constant dense<0.000000e+00> : vector<16x128xf32>
    %34 = tpu.matmul %32, %33, %cst_26 {dimension_numbers = #tpu.dot_dimension_numbers<[1], [0], [0], [1], [0, 0, 1, 1], [], []>} : vector<16x896xbf16>, vector<896x128xbf16>, vector<16x128xf32> -> vector<16x128xf32>
    %c0_27 = arith.constant 0 : index
    %c0_28 = arith.constant 0 : index
    %35 = vector.load %arg11[%c0_27, %c0_28] : memref<1x128xf32, #tpu.memory_space<vmem>>, vector<1x128xf32>
    %36 = vector.broadcast %35 : vector<1x128xf32> to vector<16x128xf32>
    %37 = arith.addf %34, %36 : vector<16x128xf32>
    %c0_29 = arith.constant 0 : index
    %c0_30 = arith.constant 0 : index
    %38 = vector.load %arg12[%c0_29, %c0_30] : memref<16x128xf32, #tpu.memory_space<vmem>>, vector<16x128xf32>
    tpu.vector_store %arg12[%c0_29, %c0_30], %37 {strides = array<i32>} : memref<16x128xf32, #tpu.memory_space<vmem>>, vector<16x128xf32>,
    return
  }
  func.func @transform_0(%arg0: i32) -> (i32, i32) {
    %c0_i32 = arith.constant 0 : i32
    %c0_i32_0 = arith.constant 0 : i32
    return %arg0, %c0_i32 : i32, i32
  }
  func.func @transform_1(%arg0: i32) -> (i32, i32) {
    %c0_i32 = arith.constant 0 : i32
    %c0_i32_0 = arith.constant 0 : i32
    %c0_i32_1 = arith.constant 0 : i32
    return %c0_i32, %c0_i32_0 : i32, i32
  }
  func.func @transform_2(%arg0: i32) -> (i32, i32) {
    %c0_i32 = arith.constant 0 : i32
    %c0_i32_0 = arith.constant 0 : i32
    %c0_i32_1 = arith.constant 0 : i32
    return %c0_i32, %c0_i32_0 : i32, i32
  }
  func.func @transform_3(%arg0: i32) -> (i32, i32) {
    %c0_i32 = arith.constant 0 : i32
    %c0_i32_0 = arith.constant 0 : i32
    %c0_i32_1 = arith.constant 0 : i32
    return %c0_i32, %c0_i32_0 : i32, i32
  }
  func.func @transform_4(%arg0: i32) -> (i32, i32) {
    %c0_i32 = arith.constant 0 : i32
    %c0_i32_0 = arith.constant 0 : i32
    %c0_i32_1 = arith.constant 0 : i32
    return %c0_i32, %c0_i32_0 : i32, i32
  }
  func.func @transform_5(%arg0: i32) -> (i32, i32) {
    %c0_i32 = arith.constant 0 : i32
    %c0_i32_0 = arith.constant 0 : i32
    %c0_i32_1 = arith.constant 0 : i32
    return %c0_i32, %c0_i32_0 : i32, i32
  }
  func.func @transform_6(%arg0: i32) -> (i32, i32) {
    %c0_i32 = arith.constant 0 : i32
    %c0_i32_0 = arith.constant 0 : i32
    %c0_i32_1 = arith.constant 0 : i32
    return %c0_i32, %c0_i32_0 : i32, i32
  }
  func.func @transform_7(%arg0: i32) -> (i32, i32) {
    %c0_i32 = arith.constant 0 : i32
    %c0_i32_0 = arith.constant 0 : i32
    %c0_i32_1 = arith.constant 0 : i32
    return %c0_i32, %c0_i32_0 : i32, i32
  }
  func.func @transform_8(%arg0: i32) -> (i32, i32) {
    %c0_i32 = arith.constant 0 : i32
    %c0_i32_0 = arith.constant 0 : i32
    %c0_i32_1 = arith.constant 0 : i32
    return %c0_i32, %c0_i32_0 : i32, i32
  }
  func.func @transform_9(%arg0: i32) -> (i32, i32) {
    %c0_i32 = arith.constant 0 : i32
    %c0_i32_0 = arith.constant 0 : i32
    %c0_i32_1 = arith.constant 0 : i32
    return %c0_i32, %c0_i32_0 : i32, i32
  }
  func.func @transform_10(%arg0: i32) -> (i32, i32) {
    %c0_i32 = arith.constant 0 : i32
    %c0_i32_0 = arith.constant 0 : i32
    %c0_i32_1 = arith.constant 0 : i32
    return %c0_i32, %c0_i32_0 : i32, i32
  }
  func.func @transform_11(%arg0: i32) -> (i32, i32) {
    %c0_i32 = arith.constant 0 : i32
    %c0_i32_0 = arith.constant 0 : i32
    return %arg0, %c0_i32 : i32, i32
  }
}

module attributes {stable_mosaic.version = 11 : i64} {
  func.func @decoder_kernel(%arg0: i32, %arg1: memref<16x8xf32, #tpu.memory_space<vmem>>, %arg2: memref<8x1024xf32, #tpu.memory_space<vmem>>, %arg3: memref<1x1024xf32, #tpu.memory_space<vmem>>, %arg4: memref<1024x512xbf16, #tpu.memory_space<vmem>>, %arg5: memref<1x512xf32, #tpu.memory_space<vmem>>, %arg6: memref<512x640xbf16, #tpu.memory_space<vmem>>, %arg7: memref<1x640xf32, #tpu.memory_space<vmem>>, %arg8: memref<640x896xbf16, #tpu.memory_space<vmem>>, %arg9: memref<1x896xf32, #tpu.memory_space<vmem>>, %arg10: memref<896x128xbf16, #tpu.memory_space<vmem>>, %arg11: memref<1x128xf32, #tpu.memory_space<vmem>>, %arg12: memref<16x128xf32, #tpu.memory_space<vmem>>) attributes {dimension_semantics = [#tpu.dimension_semantics<parallel>], iteration_bounds = array<i64: 1>, scalar_prefetch = 0 : i64, scratch_operands = 0 : i64, tpu.core_type = #tpu.core_type<tc>, window_params = [{transform_indices = @transform_0, window_bounds = array<i64: 16, 8>}, {pipeline_mode = #tpu.pipeline_mode<synchronous>, transform_indices = @transform_1, window_bounds = array<i64: 8, 1024>}, {pipeline_mode = #tpu.pipeline_mode<synchronous>, transform_indices = @transform_2, window_bounds = array<i64: 1, 1024>}, {pipeline_mode = #tpu.pipeline_mode<synchronous>, transform_indices = @transform_3, window_bounds = array<i64: 1024, 512>}, {pipeline_mode = #tpu.pipeline_mode<synchronous>, transform_indices = @transform_4, window_bounds = array<i64: 1, 512>}, {pipeline_mode = #tpu.pipeline_mode<synchronous>, transform_indices = @transform_5, window_bounds = array<i64: 512, 640>}, {pipeline_mode = #tpu.pipeline_mode<synchronous>, transform_indices = @transform_6, window_bounds = array<i64: 1, 640>}, {pipeline_mode = #tpu.pipeline_mode<synchronous>, transform_indices = @transform_7, window_bounds = array<i64: 640, 896>}, {pipeline_mode = #tpu.pipeline_mode<synchronous>, transform_indices = @transform_8, window_bounds = array<i64: 1, 896>}, {pipeline_mode = #tpu.pipeline_mode<synchronous>, transform_indices = @transform_9, window_bounds = array<i64: 896, 128>}, {pipeline_mode = #tpu.pipeline_mode<synchronous>, transform_indices = @transform_10, window_bounds = array<i64: 1, 128>}, {transform_indices = @transform_11, window_bounds = array<i64: 16, 128>}]} {
    %c0 = arith.constant 0 : index
    %c0_0 = arith.constant 0 : index
    %0 = vector.load %arg1[%c0, %c0_0] : memref<16x8xf32, #tpu.memory_space<vmem>>, vector<16x8xf32>
    %c0_1 = arith.constant 0 : index
    %c0_2 = arith.constant 0 : index
    %1 = vector.load %arg2[%c0_1, %c0_2] : memref<8x1024xf32, #tpu.memory_space<vmem>>, vector<8x1024xf32>
    %cst = arith.constant dense<0.000000e+00> : vector<16x1024xf32>
    %2 = tpu.matmul %0, %1, %cst {dimension_numbers = #tpu.dot_dimension_numbers<[1], [0], [0], [1], [0, 0, 1, 1], [], []>} : vector<16x8xf32>, vector<8x1024xf32>, vector<16x1024xf32> -> vector<16x1024xf32>
    %c0_3 = arith.constant 0 : index
    %c0_4 = arith.constant 0 : index
    %3 = vector.load %arg3[%c0_3, %c0_4] : memref<1x1024xf32, #tpu.memory_space<vmem>>, vector<1x1024xf32>
    %4 = vector.broadcast %3 : vector<1x1024xf32> to vector<16x1024xf32>
    %5 = arith.addf %2, %4 : vector<16x1024xf32>
    %cst_5 = arith.constant 0.000000e+00 : f32
    %6 = vector.broadcast %cst_5 : f32 to vector<16x1024xf32>
    %7 = arith.maximumf %5, %6 : vector<16x1024xf32>
    %8 = arith.truncf %7 : vector<16x1024xf32> to vector<16x1024xbf16>
    %c0_6 = arith.constant 0 : index
    %c0_7 = arith.constant 0 : index
    %9 = vector.load %arg4[%c0_6, %c0_7] : memref<1024x512xbf16, #tpu.memory_space<vmem>>, vector<1024x512xbf16>
    %cst_8 = arith.constant dense<0.000000e+00> : vector<16x512xf32>
    %10 = tpu.matmul %8, %9, %cst_8 {dimension_numbers = #tpu.dot_dimension_numbers<[1], [0], [0], [1], [0, 0, 1, 1], [], []>} : vector<16x1024xbf16>, vector<1024x512xbf16>, vector<16x512xf32> -> vector<16x512xf32>
    %c0_9 = arith.constant 0 : index
    %c0_10 = arith.constant 0 : index
    %11 = vector.load %arg5[%c0_9, %c0_10] : memref<1x512xf32, #tpu.memory_space<vmem>>, vector<1x512xf32>
    %12 = vector.broadcast %11 : vector<1x512xf32> to vector<16x512xf32>
    %13 = arith.addf %10, %12 : vector<16x512xf32>
    %cst_11 = arith.constant 0.000000e+00 : f32
    %14 = vector.broadcast %cst_11 : f32 to vector<16x512xf32>
    %15 = arith.maximumf %13, %14 : vector<16x512xf32>
    %16 = arith.truncf %15 : vector<16x512xf32> to vector<16x512xbf16>
    %c0_12 = arith.constant 0 : index
    %c0_13 = arith.constant 0 : index
    %17 = vector.load %arg6[%c0_12, %c0_13] : memref<512x640xbf16, #tpu.memory_space<vmem>>, vector<512x640xbf16>
    %cst_14 = arith.constant dense<0.000000e+00> : vector<16x640xf32>
    %18 = tpu.matmul %16, %17, %cst_14 {dimension_numbers = #tpu.dot_dimension_numbers<[1], [0], [0], [1], [0, 0, 1, 1], [], []>} : vector<16x512xbf16>, vector<512x640xbf16>, vector<16x640xf32> -> vector<16x640xf32>
    %c0_15 = arith.constant 0 : index
    %c0_16 = arith.constant 0 : index
    %19 = vector.load %arg7[%c0_15, %c0_16] : memref<1x640xf32, #tpu.memory_space<vmem>>, vector<1x640xf32>
    %20 = vector.broadcast %19 : vector<1x640xf32> to vector<16x640xf32>
    %21 = arith.addf %18, %20 : vector<16x640xf32>
    %cst_17 = arith.constant 0.000000e+00 : f32
    %22 = vector.broadcast %cst_17 : f32 to vector<16x640xf32>
    %23 = arith.maximumf %21, %22 : vector<16x640xf32>
    %24 = arith.truncf %23 : vector<16x640xf32> to vector<16x640xbf16>
    %c0_18 = arith.constant 0 : index
    %c0_19 = arith.constant 0 : index
    %25 = vector.load %arg8[%c0_18, %c0_19] : memref<640x896xbf16, #tpu.memory_space<vmem>>, vector<640x896xbf16>
    %cst_20 = arith.constant dense<0.000000e+00> : vector<16x896xf32>
    %26 = tpu.matmul %24, %25, %cst_20 {dimension_numbers = #tpu.dot_dimension_numbers<[1], [0], [0], [1], [0, 0, 1, 1], [], []>} : vector<16x640xbf16>, vector<640x896xbf16>, vector<16x896xf32> -> vector<16x896xf32>
    %c0_21 = arith.constant 0 : index
    %c0_22 = arith.constant 0 : index
    %27 = vector.load %arg9[%c0_21, %c0_22] : memref<1x896xf32, #tpu.memory_space<vmem>>, vector<1x896xf32>
    %28 = vector.broadcast %27 : vector<1x896xf32> to vector<16x896xf32>
    %29 = arith.addf %26, %28 : vector<16x896xf32>
    %cst_23 = arith.constant 0.000000e+00 : f32
    %30 = vector.broadcast %cst_23 : f32 to vector<16x896xf32>
    %31 = arith.maximumf %29, %30 : vector<16x896xf32>
    %32 = arith.truncf %31 : vector<16x896xf32> to vector<16x896xbf16>
    %c0_24 = arith.constant 0 : index
    %c0_25 = arith.constant 0 : index
    %33 = vector.load %arg10[%c0_24, %c0_25] : memref<896x128xbf16, #tpu.memory_space<vmem>>, vector<896x128xbf16>
    %cst_26 = arith.constant dense<0.000000e+00> : vector<16x128xf32>
    %34 = tpu.matmul %32, %33, %cst_26 {dimension_numbers = #tpu.dot_dimension_numbers<[1], [0], [0], [1], [0, 0, 1, 1], [], []>} : vector<16x896xbf16>, vector<896x128xbf16>, vector<16x128xf32> -> vector<16x128xf32>
    %c0_27 = arith.constant 0 : index
    %c0_28 = arith.constant 0 : index
    %35 = vector.load %arg11[%c0_27, %c0_28] : memref<1x128xf32, #tpu.memory_space<vmem>>, vector<1x128xf32>
    %36 = vector.broadcast %35 : vector<1x128xf32> to vector<16x128xf32>
    %37 = arith.addf %34, %36 : vector<16x128xf32>
    %c0_29 = arith.constant 0 : index
    %c0_30 = arith.constant 0 : index
    %38 = vector.load %arg12[%c0_29, %c0_30] : memref<16x128xf32, #tpu.memory_space<vmem>>, vector<16x128xf32>
    tpu.vector_store %arg12[%c0_29, %c0_30], %37 {strides = array<i32>} : memref<16x128xf32, #tpu.memory_space<vmem>>, vector<16x128xf32>,
    return
  }
  func.func @transform_0(%arg0: i32) -> (i32, i32) {
    %c0_i32 = arith.constant 0 : i32
    %c0_i32_0 = arith.constant 0 : i32
    return %arg0, %c0_i32 : i32, i32
  }
  func.func @transform_1(%arg0: i32) -> (i32, i32) {
    %c0_i32 = arith.constant 0 : i32
    %c0_i32_0 = arith.constant 0 : i32
    %c0_i32_1 = arith.constant 0 : i32
    return %c0_i32, %c0_i32_0 : i32, i32
  }
  func.func @transform_2(%arg0: i32) -> (i32, i32) {
    %c0_i32 = arith.constant 0 : i32
    %c0_i32_0 = arith.constant 0 : i32
    %c0_i32_1 = arith.constant 0 : i32
    return %c0_i32, %c0_i32_0 : i32, i32
  }
  func.func @transform_3(%arg0: i32) -> (i32, i32) {
    %c0_i32 = arith.constant 0 : i32
    %c0_i32_0 = arith.constant 0 : i32
    %c0_i32_1 = arith.constant 0 : i32
    return %c0_i32, %c0_i32_0 : i32, i32
  }
  func.func @transform_4(%arg0: i32) -> (i32, i32) {
    %c0_i32 = arith.constant 0 : i32
    %c0_i32_0 = arith.constant 0 : i32
    %c0_i32_1 = arith.constant 0 : i32
    return %c0_i32, %c0_i32_0 : i32, i32
  }
  func.func @transform_5(%arg0: i32) -> (i32, i32) {
    %c0_i32 = arith.constant 0 : i32
    %c0_i32_0 = arith.constant 0 : i32
    %c0_i32_1 = arith.constant 0 : i32
    return %c0_i32, %c0_i32_0 : i32, i32
  }
  func.func @transform_6(%arg0: i32) -> (i32, i32) {
    %c0_i32 = arith.constant 0 : i32
    %c0_i32_0 = arith.constant 0 : i32
    %c0_i32_1 = arith.constant 0 : i32
    return %c0_i32, %c0_i32_0 : i32, i32
  }
  func.func @transform_7(%arg0: i32) -> (i32, i32) {
    %c0_i32 = arith.constant 0 : i32
    %c0_i32_0 = arith.constant 0 : i32
    %c0_i32_1 = arith.constant 0 : i32
    return %c0_i32, %c0_i32_0 : i32, i32
  }
  func.func @transform_8(%arg0: i32) -> (i32, i32) {
    %c0_i32 = arith.constant 0 : i32
    %c0_i32_0 = arith.constant 0 : i32
    %c0_i32_1 = arith.constant 0 : i32
    return %c0_i32, %c0_i32_0 : i32, i32
  }
  func.func @transform_9(%arg0: i32) -> (i32, i32) {
    %c0_i32 = arith.constant 0 : i32
    %c0_i32_0 = arith.constant 0 : i32
    %c0_i32_1 = arith.constant 0 : i32
    return %c0_i32, %c0_i32_0 : i32, i32
  }
  func.func @transform_10(%arg0: i32) -> (i32, i32) {
    %c0_i32 = arith.constant 0 : i32
    %c0_i32_0 = arith.constant 0 : i32
    %c0_i32_1 = arith.constant 0 : i32
    return %c0_i32, %c0_i32_0 : i32, i32
  }
  func.func @transform_11(%arg0: i32) -> (i32, i32) {
    %c0_i32 = arith.constant 0 : i32
    %c0_i32_0 = arith.constant 0 : i32
    return %arg0, %c0_i32 : i32, i32
  }
}

</mosaic_0001>

<bundles_post_ra>
// kernel: tpu_custom_call.1
= control target key start
LH: loop header
LB: loop body
LE: loop exit
PB: predicated region body
PF: predicated region fallthrough
CT: control target
= control target key end

     0   :  { %16 = vsyncpa [#allocation3], 0  ;;  %s11143_s0 = inlined_call_operand.vmem [shape: f32[16,8], index: 0, kind: input, shape index: {}]   ;;  %s11144_s1 = inlined_call_operand.hbm [shape: f32[8,1024], index: 1, kind: input, shape index: {}]   ;;  %s11145_s2 = inlined_call_operand.hbm [shape: f32[1,1024], index: 2, kind: input, shape index: {}]   ;;  %s11146_s3 = inlined_call_operand.hbm [shape: bf16[1024,512], index: 3, kind: input, shape index: {}]   ;;  %s11147_s4 = inlined_call_operand.hbm [shape: f32[1,512], index: 4, kind: input, shape index: {}]   ;;  %s11148_s5 = inlined_call_operand.hbm [shape: bf16[512,640], index: 5, kind: input, shape index: {}]   ;;  %s11149_s6 = inlined_call_operand.hbm [shape: f32[1,640], index: 6, kind: input, shape index: {}]   ;;  %s11150_s7 = inlined_call_operand.hbm [shape: bf16[640,896], index: 7, kind: input, shape index: {}]   ;;  %s11151_s8 = inlined_call_operand.hbm [shape: f32[1,896], index: 8, kind: input, shape index: {}]   ;;  %s11152_s9 = inlined_call_operand.hbm [shape: bf16[896,128], index: 9, kind: input, shape index: {}]   ;;  %s11153_s10 = inlined_call_operand.hbm [shape: f32[1,128], index: 10, kind: input, shape index: {}]   ;;  %s11154_s11 = inlined_call_operand.hbm [shape: f32[16,128], index: 11, kind: output, shape index: {}]  }
   0x1   :  { %17 = vsyncpa [#allocation6], 0 }
   0x2   :  { %18 = vsyncpa [#allocation9], 0 }
   0x3   :  { %19 = vsyncpa [#allocation12], 0 }
   0x4   :  { %20 = vsyncpa [#allocation15], 0 }
   0x5   :  { %21 = vsyncpa [#allocation18], 0  ;;  %s41_s19 = sshll.u32 %s11145_s2, 4  ;;  %s42_s19 = int_to_ptr.hbm [resolvable:$true] %s41_s19 }
   0x6   :  { %22 = vsyncpa [#allocation4], 0  ;;  %s10703_s20 = smov [#allocation5]   ;;  %s65_s24 = sshll.u32 %s11147_s4, 4  ;;  %s66_s24 = int_to_ptr.hbm [resolvable:$true] %s65_s24 }
   0x7   :  { %s43_s21 = sshll.u32 %s10703_s20, 4  ;;  %s10704_s25 = smov [#allocation8]   ;;  %s44_s21 = int_to_ptr.vmem [resolvable:$true] %s43_s21 }
   0x8   :  { %46 = dma.hbm_to_vmem [thread:$0]  %s42_s19, 128, %s44_s21, [#allocation6]  }
   0x9   :  { %s67_s26 = sshll.u32 %s10704_s25, 4  ;;  %s89_s29 = sshll.u32 %s11149_s6, 4  ;;  %s68_s26 = int_to_ptr.vmem [resolvable:$true] %s67_s26  ;;  %s90_s29 = int_to_ptr.hbm [resolvable:$true] %s89_s29 }
   0xa   :  { %70 = dma.hbm_to_vmem [thread:$0]  %s66_s24, 64, %s68_s26, [#allocation9]  }
   0xb   :  { %s113_s12 = sshll.u32 %s11151_s8, 4  ;;  %s10705_s13 = smov [#allocation11]   ;;  %s114_s12 = int_to_ptr.hbm [resolvable:$true] %s113_s12 }
   0xc   :  { %s91_s14 = sshll.u32 %s10705_s13, 4  ;;  %s10706_s4 = smov [#allocation14]   ;;  %s92_s14 = int_to_ptr.vmem [resolvable:$true] %s91_s14 }
   0xd   :  { %94 = dma.hbm_to_vmem [thread:$0]  %s90_s29, 80, %s92_s14, [#allocation12]  }
   0xe   :  { %s115_s15 = sshll.u32 %s10706_s4, 4  ;;  %s30_s18 = sshll.u32 %s11144_s1, 4  ;;  %s116_s15 = int_to_ptr.vmem [resolvable:$true] %s115_s15  ;;  %s31_s18 = int_to_ptr.hbm [resolvable:$true] %s30_s18 }
   0xf   :  { %118 = dma.hbm_to_vmem [thread:$0]  %s114_s12, 112, %s116_s15, [#allocation15]  }
  0x10   :  { %s51_s20 = sshll.u32 %s11146_s3, 4  ;;  %s10707_s21 = smov [#allocation2]   ;;  %s52_s20 = int_to_ptr.hbm [resolvable:$true] %s51_s20 }
  0x11   :  { %s32_s8 = sshll.u32 %s10707_s21, 4  ;;  %s10708_s22 = smov [#allocation7]   ;;  %s33_s8 = int_to_ptr.vmem [resolvable:$true] %s32_s8 }
  0x12   :  { %35 = dma.hbm_to_vmem [thread:$0]  %s31_s18, 1024, %s33_s8, [#allocation3]  }
  0x13   :  { %s53_s23 = sshll.u32 %s10708_s22, 4  ;;  %s10709_s24 = smov 256   ;;  %s54_s23 = int_to_ptr.vmem [resolvable:$true] %s53_s23 }
  0x14   :  { %s10710_s25 = smov 16   ;;  %s75_s27 = sshll.u32 %s11148_s5, 4  ;;  %s76_s27 = int_to_ptr.hbm [resolvable:$true] %s75_s27 }
  0x15   :  { %59 = dma.hbm_to_vmem [thread:$0]  %s52_s20, 32768, %s54_s23, [#allocation6], %s10709_s24, %s10709_s24, %s10710_s25  }
  0x16   :  { %s10711_s28 = smov [#allocation10]   ;;  %s99_s30 = sshll.u32 %s11150_s7, 4  ;;  %s100_s30 = int_to_ptr.hbm [resolvable:$true] %s99_s30 }
  0x17   :  { %s77_s29 = sshll.u32 %s10711_s28, 4  ;;  %s10712_s12 = smov 320   ;;  %s78_s29 = int_to_ptr.vmem [resolvable:$true] %s77_s29 }
  0x18   :  { %s10713_s13 = smov 20   ;;  %s10714_s14 = smov [#allocation13]  }
  0x19   :  { %83 = dma.hbm_to_vmem [thread:$0]  %s76_s27, 20480, %s78_s29, [#allocation9], %s10712_s12, %s10712_s12, %s10713_s13  }
  0x1a   :  { %s101_s4 = sshll.u32 %s10714_s14, 4  ;;  %s10715_s15 = smov 448   ;;  %s102_s4 = int_to_ptr.vmem [resolvable:$true] %s101_s4 }
  0x1b   :  { %s10716_s16 = smov 28   ;;  %s123_s18 = sshll.u32 %s11152_s9, 4  ;;  %s124_s18 = int_to_ptr.hbm [resolvable:$true] %s123_s18 }
  0x1c   :  { %107 = dma.hbm_to_vmem [thread:$0]  %s100_s30, 35840, %s102_s4, [#allocation12], %s10715_s15, %s10715_s15, %s10716_s16  }
  0x1d   :  { %s10717_s6 = smov [#allocation16]   ;;  %s137_s21 = sshll.u32 %s11153_s10, 4  ;;  %s138_s21 = int_to_ptr.hbm [resolvable:$true] %s137_s21 }
  0x1e   :  { %s125_s19 = sshll.u32 %s10717_s6, 4  ;;  %s10718_s8 = smov 64   ;;  %s126_s19 = int_to_ptr.vmem [resolvable:$true] %s125_s19 }
  0x1f   :  { %s10719_s22 = smov 4   ;;  %s10720_s23 = smov [#allocation17]  }
  0x20   :  { %131 = dma.hbm_to_vmem [thread:$0]  %s124_s18, 7168, %s126_s19, [#allocation15], %s10718_s8, %s10718_s8, %s10719_s22  }
  0x21   :  { %s139_s24 = sshll.u32 %s10720_s23, 4  ;;  %s140_s24 = int_to_ptr.vmem [resolvable:$true] %s139_s24 }
  0x22   :  { %142 = dma.hbm_to_vmem [thread:$0]  %s138_s21, 16, %s140_s24, [#allocation18]  }
  0x23   :  { %10689 = dma.done.wait [#allocation3], 1024  }
  0x24   :  { %10690 = vsyncadd [#allocation3], 4294966272 }
  0x25   :  { %10691 = dma.done.wait [#allocation6], 32896  }
  0x26   :  { %10692 = vsyncadd [#allocation6], 4294934400 }
  0x27   :  { %10693 = dma.done.wait [#allocation9], 20544  }
  0x28   :  { %10694 = vsyncadd [#allocation9], 4294946752 }
  0x29   :  { %10695 = dma.done.wait [#allocation12], 35920  }
  0x2a   :  { %10696 = vsyncadd [#allocation12], 4294931376 }
  0x2b   :  { %10697 = dma.done.wait [#allocation15], 7280  }
  0x2c   :  { %10698 = vsyncadd [#allocation15], 4294960016 }
  0x2d   :  { %10699 = dma.done.wait [#allocation18], 16  }
  0x2e   :  { %10700 = vsyncadd [#allocation18], 4294967280  ;;  %vm211_vm0 = vcmask 64512   ;;  %v185_v0 = vld [vmem:[#allocation2] sm:$0xff]  ;;  %v186_v1 = vld [vmem:[#allocation2 + $0x8] sm:$0xff]  ;;  %s6608_s29 = sshll.u32 %s11154_s11, 4  ;;  %s6609_s29 = int_to_ptr.hbm [resolvable:$true] %s6608_s29 }
  0x2f   :  { %v10817_v2 = vld [vmem:[%s11143_s0] sm:$0xff]  ;;  %233 = vmatpush.msra.mxu2 %v185_v0  ;;  %256 = vmatpush.msra.mxu3 %v186_v1  ;;  %v187_v3 = vld [vmem:[#allocation2 + $0x10] sm:$0xff]  ;;  %v188_v4 = vld [vmem:[#allocation2 + $0x18] sm:$0xff]  ;;  %s10722_s3 = smov 128   ;;  %s10723_s2 = smov 8  }
  0x30   :  { %6626 = vmatmul.msk.f32.vlgmr.msra.gmra.mxu2 %vm211_vm0, %v10817_v2  ;;  %6628 = vmatmul.msk.f32.vlgmr.msra.gmra.mxu3 %vm211_vm0, %v10817_v2  ;;  %v189_v5 = vld [vmem:[#allocation2 + $0x20] sm:$0xff]  ;;  %v190_v6 = vld [vmem:[#allocation2 + $0x28] sm:$0xff]  ;;  %v191_v7 = vld [vmem:[#allocation2 + $0x30] sm:$0xff] }
  0x31   :  { %279 = vmatpush.msrb.mxu2 %v187_v3  ;;  %302 = vmatpush.msrb.mxu3 %v188_v4  ;;  %v192_v8 = vld [vmem:[#allocation2 + $0x38] sm:$0xff]  ;;  %v10830_v9 = vld [vmem:[%s11143_s0 + $0x8] sm:$0xff]  ;;  %s10721_s0 = smov [#allocation19]  }
  0x32   :  { %325 = vmatpush.msra.mxu0 %v189_v5  ;;  %348 = vmatpush.msra.mxu1 %v190_v6  ;;  %v6756_v10 = vld [vmem:[#allocation7 + $0xe0] sm:$0xf]  ;;  %v9680_v11 = vld [vmem:[#allocation7 + $0xec] sm:$0xf0]  ;;  %s6606_s1 = sshll.u32 %s10721_s0, 4  ;;  %s6607_s1 = int_to_ptr.vmem [resolvable:$true] %s6606_s1 }
  0x33   :  { %6634 = vmatmul.msk.f32.vlgmr.msra.gmra.mxu0 %vm211_vm0, %v10817_v2  ;;  %6636 = vmatmul.msk.f32.vlgmr.msra.gmra.mxu1 %vm211_vm0, %v10817_v2  ;;  %v6884_v12 = vld [vmem:[#allocation7 + $0x1e0] sm:$0xf]  ;;  %v6757_v13 = vor.u32 %v9680_v11, %v6756_v10  ;;  %v9712_v14 = vld [vmem:[#allocation7 + $0x1ec] sm:$0xf0] }
  0x34   :  { %371 = vmatpush.msra.mxu2 %v191_v7  ;;  %394 = vmatpush.msra.mxu3 %v192_v8  ;;  %v6740_v15 = vld [vmem:[#allocation7 + $0xc0] sm:$0xf]  ;;  %v6885_v16 = vor.u32 %v9712_v14, %v6884_v12  ;;  %v9676_v17 = vld [vmem:[#allocation7 + $0xcc] sm:$0xf0] }
  0x35   :  { %v6868_v18 = vld [vmem:[#allocation7 + $0x1c0] sm:$0xf]  ;;  %v9708_v19 = vld [vmem:[#allocation7 + $0x1cc] sm:$0xf0]  ;;  %1972 = vmatpush.bf16.msrb.mxu0 %v6757_v13  ;;  %v6741_v20 = vor.u32 %v9676_v17, %v6740_v15 }
  0x36   :  { %1986 = vmatpush.bf16.msrb.mxu1 %v6885_v16  ;;  %v6869_v21 = vor.u32 %v9708_v19, %v6868_v18  ;;  %v6724_v22 = vld [vmem:[#allocation7 + $0xa0] sm:$0xf]  ;;  %v9672_v23 = vld [vmem:[#allocation7 + $0xac] sm:$0xf0] }
  0x37   :  { %v6852_v24 = vld [vmem:[#allocation7 + $0x1a0] sm:$0xf]  ;;  %v9704_v25 = vld [vmem:[#allocation7 + $0x1ac] sm:$0xf0]  ;;  %v6725_v34 = vor.u32 %v9672_v23, %v6724_v22 }
  0x38   :  { %6627 = vmatmul.msk.f32.gmra.mxu2 %vm211_vm0, %v10830_v9  ;;  %6629 = vmatmul.msk.f32.gmra.mxu3 %vm211_vm0, %v10830_v9  ;;  %v7012_v26 = vld [vmem:[#allocation7 + $0x2e0] sm:$0xf]  ;;  %v9744_v27 = vld [vmem:[#allocation7 + $0x2ec] sm:$0xf0]  ;;  %v6853_v35 = vor.u32 %v9704_v25, %v6852_v24 }
  0x39   :  { %v7140_v28 = vld [vmem:[#allocation7 + $0x3e0] sm:$0xf]  ;;  %v9776_v29 = vld [vmem:[#allocation7 + $0x3ec] sm:$0xf0]  ;;  %v7013_v32 = vor.u32 %v9744_v27, %v7012_v26  ;;  %1973 = vmatpush.bf16.msrb.mxu0 %v6741_v20 }
  0x3a   :  { %v6708_v30 = vld [vmem:[#allocation7 + $0x80] sm:$0xf]  ;;  %v9668_v31 = vld [vmem:[#allocation7 + $0x8c] sm:$0xf0]  ;;  %v7141_v33 = vor.u32 %v9776_v29, %v7140_v28  ;;  %1987 = vmatpush.bf16.msrb.mxu1 %v6869_v21 }
  0x3b   :  { %6635 = vmatmul.msk.f32.gmra.mxu0 %vm211_vm0, %v10830_v9  ;;  %6637 = vmatmul.msk.f32.gmra.mxu1 %vm211_vm0, %v10830_v9  ;;  %v6836_v36 = vld [vmem:[#allocation7 + $0x180] sm:$0xf]  ;;  %v9740_v38 = vld [vmem:[#allocation7 + $0x2cc] sm:$0xf0]  ;;  %v6709_v47 = vor.u32 %v9668_v31, %v6708_v30 }
  0x3c   :  { %v6996_v37 = vld [vmem:[#allocation7 + $0x2c0] sm:$0xf]  ;;  %v9700_v39 = vld [vmem:[#allocation7 + $0x18c] sm:$0xf0] }
  0x3d   :  { %v6997_v40 = vor.u32 %v9740_v38, %v6996_v37  ;;  %v7124_v41 = vld [vmem:[#allocation7 + $0x3c0] sm:$0xf]  ;;  %v9772_v42 = vld [vmem:[#allocation7 + $0x3cc] sm:$0xf0]  ;;  %1974 = vmatpush.bf16.msrb.mxu0 %v6725_v34  ;;  %v6837_v48 = vor.u32 %v9700_v39, %v6836_v36 }
  0x3e   :  { %v7125_v43 = vor.u32 %v9772_v42, %v7124_v41  ;;  %v6980_v44 = vld [vmem:[#allocation7 + $0x2a0] sm:$0xf]  ;;  %v9736_v45 = vld [vmem:[#allocation7 + $0x2ac] sm:$0xf0]  ;;  %1988 = vmatpush.bf16.msrb.mxu1 %v6853_v35 }
  0x3f   :  { %v7108_v46 = vld [vmem:[#allocation7 + $0x3a0] sm:$0xf]  ;;  %v9664_v50 = vld [vmem:[#allocation7 + $0x6c] sm:$0xf0]  ;;  %v6981_v54 = vor.u32 %v9736_v45, %v6980_v44 }
  0x40   :  { %6630 = vmatmul.msk.f32.vlgmr.msrb.gmra.mxu2 %vm211_vm0, %v10817_v2  ;;  %6632 = vmatmul.msk.f32.vlgmr.msrb.gmra.mxu3 %vm211_vm0, %v10817_v2  ;;  %v6692_v49 = vld [vmem:[#allocation7 + $0x60] sm:$0xf]  ;;  %v9768_v51 = vld [vmem:[#allocation7 + $0x3ac] sm:$0xf0] }
  0x41   :  { %2000 = vmatpush.bf16.msrb.mxu2 %v7013_v32  ;;  %2014 = vmatpush.bf16.msrb.mxu3 %v7141_v33  ;;  %v6820_v52 = vld [vmem:[#allocation7 + $0x160] sm:$0xf]  ;;  %v9696_v53 = vld [vmem:[#allocation7 + $0x16c] sm:$0xf0]  ;;  %v7109_v55 = vor.u32 %v9768_v51, %v7108_v46  ;;  %v6693_v60 = vor.u32 %v9664_v50, %v6692_v49 }
  0x42   :  { %v6964_v56 = vld [vmem:[#allocation7 + $0x280] sm:$0xf]  ;;  %v9732_v57 = vld [vmem:[#allocation7 + $0x28c] sm:$0xf0]  ;;  %1975 = vmatpush.bf16.msrb.mxu0 %v6709_v47  ;;  %1989 = vmatpush.bf16.msrb.mxu1 %v6837_v48  ;;  %v6821_v61 = vor.u32 %v9696_v53, %v6820_v52 }
  0x43   :  { %v7092_v58 = vld [vmem:[#allocation7 + $0x380] sm:$0xf]  ;;  %v9764_v59 = vld [vmem:[#allocation7 + $0x38c] sm:$0xf0]  ;;  %v6965_v3 = vor.u32 %v9732_v57, %v6964_v56 }
  0x44   :  { %v6676_v62 = vld [vmem:[#allocation7 + $0x40] sm:$0xf]  ;;  %v9660_v63 = vld [vmem:[#allocation7 + $0x4c] sm:$0xf0]  ;;  %v7093_v4 = vor.u32 %v9764_v59, %v7092_v58 }
  0x45   :  { %2001 = vmatpush.bf16.msrb.mxu2 %v6997_v40  ;;  %2015 = vmatpush.bf16.msrb.mxu3 %v7125_v43  ;;  %v6804_v0 = vld [vmem:[#allocation7 + $0x140] sm:$0xf]  ;;  %v9692_v1 = vld [vmem:[#allocation7 + $0x14c] sm:$0xf0]  ;;  %v6677_v10 = vor.u32 %v9660_v63, %v6676_v62 }
  0x46   :  { %v6948_v5 = vld [vmem:[#allocation7 + $0x260] sm:$0xf]  ;;  %v9728_v6 = vld [vmem:[#allocation7 + $0x26c] sm:$0xf0]  ;;  %1976 = vmatpush.bf16.msrb.mxu0 %v6693_v60  ;;  %1990 = vmatpush.bf16.msrb.mxu1 %v6821_v61  ;;  %v6805_v11 = vor.u32 %v9692_v1, %v6804_v0 }
  0x47   :  { %v7076_v7 = vld [vmem:[#allocation7 + $0x360] sm:$0xf]  ;;  %v9760_v8 = vld [vmem:[#allocation7 + $0x36c] sm:$0xf0]  ;;  %v6949_v16 = vor.u32 %v9728_v6, %v6948_v5 }
  0x48   :  { %6631 = vmatmul.msk.f32.gmra.mxu2 %vm211_vm0, %v10830_v9  ;;  %6633 = vmatmul.msk.f32.gmra.mxu3 %vm211_vm0, %v10830_v9  ;;  %v6660_v12 = vld [vmem:[#allocation7 + $0x20] sm:$0xf]  ;;  %v9656_v13 = vld [vmem:[#allocation7 + $0x2c] sm:$0xf0]  ;;  %v7077_v17 = vor.u32 %v9760_v8, %v7076_v7 }
  0x49   :  { %2002 = vmatpush.bf16.msrb.mxu2 %v6981_v54  ;;  %2016 = vmatpush.bf16.msrb.mxu3 %v7109_v55  ;;  %v6788_v14 = vld [vmem:[#allocation7 + $0x120] sm:$0xf]  ;;  %v9688_v15 = vld [vmem:[#allocation7 + $0x12c] sm:$0xf0]  ;;  %v6661_v22 = vor.u32 %v9656_v13, %v6660_v12 }
  0x4a   :  { %v6932_v18 = vld [vmem:[#allocation7 + $0x240] sm:$0xf]  ;;  %v9724_v19 = vld [vmem:[#allocation7 + $0x24c] sm:$0xf0]  ;;  %1977 = vmatpush.bf16.msrb.mxu0 %v6677_v10  ;;  %1991 = vmatpush.bf16.msrb.mxu1 %v6805_v11  ;;  %v6789_v23 = vor.u32 %v9688_v15, %v6788_v14 }
  0x4b   :  { %v7060_v20 = vld [vmem:[#allocation7 + $0x340] sm:$0xf]  ;;  %v9756_v21 = vld [vmem:[#allocation7 + $0x34c] sm:$0xf0]  ;;  %v6933_v30 = vor.u32 %v9724_v19, %v6932_v18 }
  0x4c   :  { %v6644_v24 = vld [vmem:[#allocation7] sm:$0xf]  ;;  %v9652_v25 = vld [vmem:[#allocation7 + $0xc] sm:$0xf0]  ;;  %v7061_v31 = vor.u32 %v9756_v21, %v7060_v20 }
  0x4d   :  { %2003 = vmatpush.bf16.msrb.mxu2 %v6965_v3  ;;  %2017 = vmatpush.bf16.msrb.mxu3 %v7093_v4  ;;  %v6772_v26 = vld [vmem:[#allocation7 + $0x100] sm:$0xf]  ;;  %v9684_v27 = vld [vmem:[#allocation7 + $0x10c] sm:$0xf0]  ;;  %v6645_v37 = vor.u32 %v9652_v25, %v6644_v24 }
  0x4e   :  { %v7268_v28 = vld [vmem:[#allocation7 + $0x4e0] sm:$0xf]  ;;  %v9808_v29 = vld [vmem:[#allocation7 + $0x4ec] sm:$0xf0]  ;;  %1978 = vmatpush.bf16.msrb.mxu0 %v6661_v22  ;;  %1992 = vmatpush.bf16.msrb.mxu1 %v6789_v23  ;;  %v6773_v38 = vor.u32 %v9684_v27, %v6772_v26 }
  0x4f   :  { %v7396_v32 = vld [vmem:[#allocation7 + $0x5e0] sm:$0xf]  ;;  %v9840_v33 = vld [vmem:[#allocation7 + $0x5ec] sm:$0xf0]  ;;  %v7269_v39 = vor.u32 %v9808_v29, %v7268_v28 }
  0x50   :  { %6638 = vmatmul.msk.f32.vlgmr.msra.gmra.mxu2 %vm211_vm0, %v10817_v2  ;;  %6640 = vmatmul.msk.f32.vlgmr.msra.gmra.mxu3 %vm211_vm0, %v10817_v2  ;;  %v6916_v34 = vld [vmem:[#allocation7 + $0x220] sm:$0xf]  ;;  %v9720_v35 = vld [vmem:[#allocation7 + $0x22c] sm:$0xf0]  ;;  %v7397_v40 = vor.u32 %v9840_v33, %v7396_v32 }
  0x51   :  { %2004 = vmatpush.bf16.msrb.mxu2 %v6949_v16  ;;  %2018 = vmatpush.bf16.msrb.mxu3 %v7077_v17  ;;  %v7044_v36 = vld [vmem:[#allocation7 + $0x320] sm:$0xf]  ;;  %v9752_v2 = vld [vmem:[#allocation7 + $0x32c] sm:$0xf0]  ;;  %v6917_v45 = vor.u32 %v9720_v35, %v6916_v34 }
  0x52   :  { %v7252_v41 = vld [vmem:[#allocation7 + $0x4c0] sm:$0xf]  ;;  %v9804_v42 = vld [vmem:[#allocation7 + $0x4cc] sm:$0xf0]  ;;  %v7045_v46 = vor.u32 %v9752_v2, %v7044_v36  ;;  %1979 = vmatpush.bf16.msrb.mxu0 %v6645_v37  ;;  %1993 = vmatpush.bf16.msrb.mxu1 %v6773_v38 }
  0x53   :  { %v7380_v43 = vld [vmem:[#allocation7 + $0x5c0] sm:$0xf]  ;;  %v9836_v44 = vld [vmem:[#allocation7 + $0x5cc] sm:$0xf0]  ;;  %v7253_v47 = vor.u32 %v9804_v42, %v7252_v41 }
  0x54   :  { %v7381_v48 = vor.u32 %v9836_v44, %v7380_v43  ;;  %v7236_v49 = vld [vmem:[#allocation7 + $0x4a0] sm:$0xf]  ;;  %v9800_v50 = vld [vmem:[#allocation7 + $0x4ac] sm:$0xf0] }
  0x55   :  { %2005 = vmatpush.bf16.msrb.mxu2 %v6933_v30  ;;  %2019 = vmatpush.bf16.msrb.mxu3 %v7061_v31  ;;  %v7364_v51 = vld [vmem:[#allocation7 + $0x5a0] sm:$0xf]  ;;  %v9832_v52 = vld [vmem:[#allocation7 + $0x5ac] sm:$0xf0]  ;;  %v7237_v53 = vor.u32 %v9800_v50, %v7236_v49 }
  0x56   :  { %2028 = vmatpush.bf16.msra.mxu0 %v7269_v39  ;;  %2042 = vmatpush.bf16.msra.mxu1 %v7397_v40  ;;  %v7365_v54 = vor.u32 %v9832_v52, %v7364_v51  ;;  %v7220_v55 = vld [vmem:[#allocation7 + $0x480] sm:$0xf]  ;;  %v9796_v56 = vld [vmem:[#allocation7 + $0x48c] sm:$0xf0] }
  0x57   :  { %v7348_v57 = vld [vmem:[#allocation7 + $0x580] sm:$0xf]  ;;  %v7221_v58 = vor.u32 %v9796_v56, %v7220_v55  ;;  %v9716_v61 = vld [vmem:[#allocation7 + $0x20c] sm:$0xf0] }
  0x58   :  { %6639 = vmatmul.msk.f32.gmra.mxu2 %vm211_vm0, %v10830_v9  ;;  %6641 = vmatmul.msk.f32.gmra.mxu3 %vm211_vm0, %v10830_v9  ;;  %v9828_v9 = vld [vmem:[#allocation7 + $0x58c] sm:$0xf0]  ;;  %v6900_v60 = vld [vmem:[#allocation7 + $0x200] sm:$0xf] }
  0x59   :  { %2006 = vmatpush.bf16.msrb.mxu2 %v6917_v45  ;;  %2020 = vmatpush.bf16.msrb.mxu3 %v7045_v46  ;;  %v7349_v59 = vor.u32 %v9828_v9, %v7348_v57  ;;  %v7028_v62 = vld [vmem:[#allocation7 + $0x300] sm:$0xf]  ;;  %v6901_v63 = vor.u32 %v9716_v61, %v6900_v60  ;;  %v9748_v0 = vld [vmem:[#allocation7 + $0x30c] sm:$0xf0] }
  0x5a   :  { %2029 = vmatpush.bf16.msra.mxu0 %v7253_v47  ;;  %2043 = vmatpush.bf16.msra.mxu1 %v7381_v48  ;;  %v7204_v1 = vld [vmem:[#allocation7 + $0x460] sm:$0xf]  ;;  %v9792_v3 = vld [vmem:[#allocation7 + $0x46c] sm:$0xf0]  ;;  %v7029_v4 = vor.u32 %v9748_v0, %v7028_v62 }
  0x5b   :  { %v7205_v5 = vor.u32 %v9792_v3, %v7204_v1  ;;  %v7332_v6 = vld [vmem:[#allocation7 + $0x560] sm:$0xf]  ;;  %v9824_v7 = vld [vmem:[#allocation7 + $0x56c] sm:$0xf0] }
  0x5c   :  { %v7524_v8 = vld [vmem:[#allocation7 + $0x6e0] sm:$0xf]  ;;  %v7333_v10 = vor.u32 %v9824_v7, %v7332_v6  ;;  %v9872_v11 = vld [vmem:[#allocation7 + $0x6ec] sm:$0xf0] }
  0x5d   :  { %2007 = vmatpush.bf16.msrb.mxu2 %v6901_v63  ;;  %v7652_v12 = vld [vmem:[#allocation7 + $0x7e0] sm:$0xf]  ;;  %2021 = vmatpush.bf16.msrb.mxu3 %v7029_v4  ;;  %v7525_v13 = vor.u32 %v9872_v11, %v7524_v8  ;;  %v9904_v14 = vld [vmem:[#allocation7 + $0x7ec] sm:$0xf0] }
  0x5e   :  { %2030 = vmatpush.bf16.msra.mxu0 %v7237_v53  ;;  %2044 = vmatpush.bf16.msra.mxu1 %v7365_v54  ;;  %v7653_v15 = vor.u32 %v9904_v14, %v7652_v12  ;;  %v7188_v16 = vld [vmem:[#allocation7 + $0x440] sm:$0xf]  ;;  %v9788_v17 = vld [vmem:[#allocation7 + $0x44c] sm:$0xf0]  ;;  %v10856_v12 = vld [vmem:[#allocation5] sm:$0xff] }
  0x5f   :  { %v7316_v18 = vld [vmem:[#allocation7 + $0x540] sm:$0xf]  ;;  %v7189_v19 = vor.u32 %v9788_v17, %v7188_v16  ;;  %v9820_v20 = vld [vmem:[#allocation7 + $0x54c] sm:$0xf0]  ;;  %v196_v16 = vperm.slane %v10856_v12, 1 }
  0x60   :  { %v7508_v21 = vld [vmem:[#allocation7 + $0x6c0] sm:$0xf]  ;;  %v9868_v22 = vld [vmem:[#allocation7 + $0x6cc] sm:$0xf0]  ;;  %v7317_v23 = vor.u32 %v9820_v20, %v7316_v18 }
  0x61   :  { %2056 = vmatpush.bf16.msra.mxu2 %v7525_v13  ;;  %2070 = vmatpush.bf16.msra.mxu3 %v7653_v15  ;;  %v7509_v24 = vor.u32 %v9868_v22, %v7508_v21  ;;  %v7636_v25 = vld [vmem:[#allocation7 + $0x7c0] sm:$0xf]  ;;  %v9900_v26 = vld [vmem:[#allocation7 + $0x7cc] sm:$0xf0]  ;;  %v195_v15 = vperm.slane %v10856_v12, 0 }
  0x62   :  { %2031 = vmatpush.bf16.msra.mxu0 %v7221_v58  ;;  %2045 = vmatpush.bf16.msra.mxu1 %v7349_v59  ;;  %v7637_v27 = vor.u32 %v9900_v26, %v7636_v25  ;;  %v7172_v28 = vld [vmem:[#allocation7 + $0x420] sm:$0xf]  ;;  %v9784_v29 = vld [vmem:[#allocation7 + $0x42c] sm:$0xf0]  ;;  %v6758_v26 = vld [vmem:[#allocation7 + $0xf0] sm:$0xf0] }
  0x63   :  { %v7300_v30 = vld [vmem:[#allocation7 + $0x520] sm:$0xf]  ;;  %v7173_v31 = vor.u32 %v9784_v29, %v7172_v28  ;;  %v9816_v32 = vld [vmem:[#allocation7 + $0x52c] sm:$0xf0]  ;;  %v6886_v28 = vld [vmem:[#allocation7 + $0x1f0] sm:$0xf0] }
  0x64   :  { %v7492_v33 = vld [vmem:[#allocation7 + $0x6a0] sm:$0xf]  ;;  %v9864_v34 = vld [vmem:[#allocation7 + $0x6ac] sm:$0xf0]  ;;  %v7301_v35 = vor.u32 %v9816_v32, %v7300_v30 }
  0x65   :  { %2057 = vmatpush.bf16.msra.mxu2 %v7509_v24  ;;  %2071 = vmatpush.bf16.msra.mxu3 %v7637_v27  ;;  %v7493_v36 = vor.u32 %v9864_v34, %v7492_v33  ;;  %v7620_v2 = vld [vmem:[#allocation7 + $0x7a0] sm:$0xf]  ;;  %v9896_v37 = vld [vmem:[#allocation7 + $0x7ac] sm:$0xf0]  ;;  %v9710_v27 = vld [vmem:[#allocation7 + $0x1e4] sm:$0xf] }
  0x66   :  { %2032 = vmatpush.bf16.msra.mxu0 %v7205_v5  ;;  %2046 = vmatpush.bf16.msra.mxu1 %v7333_v10  ;;  %v7621_v38 = vor.u32 %v9896_v37, %v7620_v2  ;;  %v7156_v39 = vld [vmem:[#allocation7 + $0x400] sm:$0xf]  ;;  %v9780_v40 = vld [vmem:[#allocation7 + $0x40c] sm:$0xf0]  ;;  %v6889_v34 = vor.u32 %v9710_v27, %v6886_v28  ;;  %v6742_v37 = vld [vmem:[#allocation7 + $0xd0] sm:$0xf0] }
  0x67   :  { %v7284_v41 = vld [vmem:[#allocation7 + $0x500] sm:$0xf]  ;;  %v7157_v42 = vor.u32 %v9780_v40, %v7156_v39  ;;  %v9812_v43 = vld [vmem:[#allocation7 + $0x50c] sm:$0xf0]  ;;  %v6870_v39 = vld [vmem:[#allocation7 + $0x1d0] sm:$0xf0] }
  0x68   :  { %v7476_v44 = vld [vmem:[#allocation7 + $0x680] sm:$0xf]  ;;  %v9860_v45 = vld [vmem:[#allocation7 + $0x68c] sm:$0xf0]  ;;  %v7285_v46 = vor.u32 %v9812_v43, %v7284_v41  ;;  %v199_v40 = vperm.slane %v10856_v12, 4  ;;  %v200_v41 = vperm.slane %v10856_v12, 5 }
  0x69   :  { %2058 = vmatpush.bf16.msra.mxu2 %v7493_v36  ;;  %2072 = vmatpush.bf16.msra.mxu3 %v7621_v38  ;;  %v7477_v47 = vor.u32 %v9860_v45, %v7476_v44  ;;  %v7604_v48 = vld [vmem:[#allocation7 + $0x780] sm:$0xf]  ;;  %v9892_v49 = vld [vmem:[#allocation7 + $0x78c] sm:$0xf0]  ;;  %v9706_v38 = vld [vmem:[#allocation7 + $0x1c4] sm:$0xf] }
  0x6a   :  { %2033 = vmatpush.bf16.msra.mxu0 %v7189_v19  ;;  %2047 = vmatpush.bf16.msra.mxu1 %v7317_v23  ;;  %v7605_v50 = vor.u32 %v9892_v49, %v7604_v48  ;;  %v7460_v51 = vld [vmem:[#allocation7 + $0x660] sm:$0xf]  ;;  %v9856_v52 = vld [vmem:[#allocation7 + $0x66c] sm:$0xf0]  ;;  %v9678_v23 = vld [vmem:[#allocation7 + $0xe4] sm:$0xf] }
  0x6b   :  { %v7461_v53 = vor.u32 %v9856_v52, %v7460_v51  ;;  %v7588_v54 = vld [vmem:[#allocation7 + $0x760] sm:$0xf]  ;;  %v9888_v55 = vld [vmem:[#allocation7 + $0x76c] sm:$0xf0]  ;;  %v6761_v33 = vor.u32 %v9678_v23, %v6758_v26  ;;  %v9702_v48 = vld [vmem:[#allocation7 + $0x1a4] sm:$0xf] }
  0x6c   :  { %v7589_v56 = vor.u32 %v9888_v55, %v7588_v54  ;;  %v7444_v57 = vld [vmem:[#allocation7 + $0x640] sm:$0xf]  ;;  %v9852_v9 = vld [vmem:[#allocation7 + $0x64c] sm:$0xf0]  ;;  %v6854_v49 = vld [vmem:[#allocation7 + $0x1b0] sm:$0xf0] }
  0x6d   :  { %2059 = vmatpush.bf16.msra.mxu2 %v7477_v47  ;;  %2073 = vmatpush.bf16.msra.mxu3 %v7605_v50  ;;  %v7572_v58 = vld [vmem:[#allocation7 + $0x740] sm:$0xf]  ;;  %v7445_v59 = vor.u32 %v9852_v9, %v7444_v57  ;;  %v9884_v60 = vld [vmem:[#allocation7 + $0x74c] sm:$0xf0]  ;;  %v6726_v47 = vld [vmem:[#allocation7 + $0xb0] sm:$0xf0] }
  0x6e   :  { %2034 = vmatpush.bf16.msra.mxu0 %v7173_v31  ;;  %2048 = vmatpush.bf16.msra.mxu1 %v7301_v35  ;;  %v7573_v61 = vor.u32 %v9884_v60, %v7572_v58  ;;  %v7428_v62 = vld [vmem:[#allocation7 + $0x620] sm:$0xf]  ;;  %v9848_v63 = vld [vmem:[#allocation7 + $0x62c] sm:$0xf0]  ;;  %v9674_v35 = vld [vmem:[#allocation7 + $0xc4] sm:$0xf] }
  0x6f   :  { %v7556_v0 = vld [vmem:[#allocation7 + $0x720] sm:$0xf]  ;;  %v7429_v1 = vor.u32 %v9848_v63, %v7428_v62  ;;  %v9880_v3 = vld [vmem:[#allocation7 + $0x72c] sm:$0xf0]  ;;  %v6745_v45 = vor.u32 %v9674_v35, %v6742_v37  ;;  %v197_v52 = vperm.slane %v10856_v12, 2 }
  0x70   :  { %v7557_v4 = vor.u32 %v9880_v3, %v7556_v0  ;;  %v7412_v5 = vld [vmem:[#allocation7 + $0x600] sm:$0xf]  ;;  %v9844_v6 = vld [vmem:[#allocation7 + $0x60c] sm:$0xf0]  ;;  %v9666_v57 = vld [vmem:[#allocation7 + $0x84] sm:$0xf] }
  0x71   :  { %2060 = vmatpush.bf16.msra.mxu2 %v7461_v53  ;;  %2074 = vmatpush.bf16.msra.mxu3 %v7589_v56  ;;  %v7540_v7 = vld [vmem:[#allocation7 + $0x700] sm:$0xf]  ;;  %v7413_v8 = vor.u32 %v9844_v6, %v7412_v5  ;;  %v9876_v10 = vld [vmem:[#allocation7 + $0x70c] sm:$0xf0]  ;;  %v198_v53 = vperm.slane %v10856_v12, 3  ;;  %v6857_v56 = vor.u32 %v9702_v48, %v6854_v49 }
  0x72   :  { %2035 = vmatpush.bf16.msra.mxu0 %v7157_v42  ;;  %2049 = vmatpush.bf16.msra.mxu1 %v7285_v46  ;;  %v7541_v11 = vor.u32 %v9876_v10, %v7540_v7  ;;  %v9670_v42 = vld [vmem:[#allocation7 + $0xa4] sm:$0xf]  ;;  %v6873_v46 = vor.u32 %v9706_v38, %v6870_v39  ;;  %v6710_v60 = vld [vmem:[#allocation7 + $0x90] sm:$0xf0] }
  0x73   :  { %v6729_v55 = vor.u32 %v9670_v42, %v6726_v47  ;;  %v6838_v62 = vld [vmem:[#allocation7 + $0x190] sm:$0xf0]  ;;  %v9690_v37 = vld [vmem:[#allocation7 + $0x144] sm:$0xf] }
  0x74   :  { %v6806_v38 = vld [vmem:[#allocation7 + $0x150] sm:$0xf0]  ;;  %v9738_v39 = vld [vmem:[#allocation7 + $0x2c4] sm:$0xf] }
  0x75   :  { %2061 = vmatpush.bf16.msra.mxu2 %v7445_v59  ;;  %2075 = vmatpush.bf16.msra.mxu3 %v7573_v61  ;;  %v9698_v61 = vld [vmem:[#allocation7 + $0x184] sm:$0xf]  ;;  %v7126_v42 = vld [vmem:[#allocation7 + $0x3d0] sm:$0xf0]  ;;  %v6809_v48 = vor.u32 %v9690_v37, %v6806_v38 }
  0x76   :  { %v6841_v3 = vor.u32 %v9698_v61, %v6838_v62  ;;  %v9654_v49 = vld [vmem:[#allocation7 + $0x24] sm:$0xf]  ;;  %v6646_v62 = vld [vmem:[#allocation7 + $0x10] sm:$0xf0] }
  0x77   :  { %v9802_v37 = vld [vmem:[#allocation7 + $0x4c4] sm:$0xf]  ;;  %v7254_v38 = vld [vmem:[#allocation7 + $0x4d0] sm:$0xf0] }
  0x79   :  { %2062 = vmatpush.bf16.msra.mxu2 %v7429_v1  ;;  %2076 = vmatpush.bf16.msra.mxu3 %v7557_v4  ;;  %v6713_v1 = vor.u32 %v9666_v57, %v6710_v60  ;;  %v9766_v57 = vld [vmem:[#allocation7 + $0x3a4] sm:$0xf] }
  0x7d   :  { %2063 = vmatpush.bf16.msra.mxu2 %v7413_v8  ;;  %2077 = vmatpush.bf16.msra.mxu3 %v7541_v11  ;;  %v9662_v11 = vld [vmem:[#allocation7 + $0x64] sm:$0xf] }
  0xb0   :  { %v327_v19 = vpop.f32.mrf.mxu0  ;;  %v350_v20 = vpop.f32.mrf.mxu1 }
  0xb1   :  { %v328_v54 = vadd.f32 %v327_v19, %v199_v40  ;;  %v351_v9 = vadd.f32 %v350_v20, %v200_v41  ;;  %v7014_v19 = vld [vmem:[#allocation7 + $0x2f0] sm:$0xf0]  ;;  %v9774_v20 = vld [vmem:[#allocation7 + $0x3e4] sm:$0xf] }
  0xb3   :  { %v235_v13 = vpop.f32.mrf.mxu2  ;;  %v258_v14 = vpop.f32.mrf.mxu3  ;;  %v406_v4 = vmax.f32 %v328_v54, 0.0  ;;  %v407_v5 = vmax.f32 %v351_v9, 0.0  ;;  %v6790_v54 = vld [vmem:[#allocation7 + $0x130] sm:$0xf0] }
  0xb4   :  { %v236_v17 = vadd.f32 %v235_v13, %v195_v15  ;;  %v259_v18 = vadd.f32 %v258_v14, %v196_v16  ;;  %v7110_v9 = vld [vmem:[#allocation7 + $0x3b0] sm:$0xf0] }
  0xb6   :  { %v402_v29 = vmax.f32 %v236_v17, 0.0  ;;  %v403_v30 = vmax.f32 %v259_v18, 0.0  ;;  %v6822_v17 = vld [vmem:[#allocation7 + $0x170] sm:$0xf0]  ;;  %v9742_v18 = vld [vmem:[#allocation7 + $0x2e4] sm:$0xf] }
  0xb8   :  { %v330_v50 = vpop.f32.mrf.mxu0  ;;  %v353_v51 = vpop.f32.mrf.mxu1 }
  0xb9   :  { %v331_v58 = vadd.f32 %v330_v50, %v199_v40  ;;  %v354_v59 = vadd.f32 %v353_v51, %v200_v41  ;;  %v6998_v40 = vld [vmem:[#allocation7 + $0x2d0] sm:$0xf0]  ;;  %v9770_v41 = vld [vmem:[#allocation7 + $0x3c4] sm:$0xf] }
  0xba   :  { %v6662_v50 = vld [vmem:[#allocation7 + $0x30] sm:$0xf0]  ;;  %v7001_v51 = vor.u32 %v9738_v39, %v6998_v40  ;;  %v9834_v39 = vld [vmem:[#allocation7 + $0x5c4] sm:$0xf] }
  0xbb   :  { %v238_v21 = vpop.f32.mrf.mxu2  ;;  %v261_v22 = vpop.f32.mrf.mxu3  ;;  %v414_v8 = vmax.f32 %v331_v58, 0.0  ;;  %v415_v10 = vmax.f32 %v354_v59, 0.0  ;;  %v6665_v58 = vor.u32 %v9654_v49, %v6662_v50  ;;  %v9650_v59 = vld [vmem:[#allocation7 + $0x4] sm:$0xf]  ;;  %v7382_v40 = vld [vmem:[#allocation7 + $0x5d0] sm:$0xf0] }
  0xbc   :  { %v239_v24 = vadd.f32 %v238_v21, %v195_v15  ;;  %v262_v25 = vadd.f32 %v261_v22, %v196_v16  ;;  %v6694_v15 = vld [vmem:[#allocation7 + $0x70] sm:$0xf0]  ;;  %v9694_v16 = vld [vmem:[#allocation7 + $0x164] sm:$0xf] }
  0xbd   :  { %v10870_v26 = vpack.c.bf16 %v414_v8, %v406_v4  ;;  %v10872_v27 = vpack.c.bf16 %v415_v10, %v407_v5  ;;  %v9730_v4 = vld [vmem:[#allocation7 + $0x284] sm:$0xf]  ;;  %v6966_v5 = vld [vmem:[#allocation7 + $0x290] sm:$0xf0] }
  0xbe   :  { %v410_v31 = vmax.f32 %v239_v24, 0.0  ;;  %v411_v32 = vmax.f32 %v262_v25, 0.0  ;;  %v7142_v25 = vld [vmem:[#allocation7 + $0x3f0] sm:$0xf0]  ;;  %v9806_v8 = vld [vmem:[#allocation7 + $0x4e4] sm:$0xf] }
  0xbf   :  { %v7145_v35 = vor.u32 %v9774_v20, %v7142_v25  ;;  %v6950_v25 = vld [vmem:[#allocation7 + $0x270] sm:$0xf0]  ;;  %v9754_v49 = vld [vmem:[#allocation7 + $0x344] sm:$0xf] }
  0xc0   :  { %v10860_v36 = vpack.c.bf16 %v410_v31, %v402_v29  ;;  %v10862_v2 = vpack.c.bf16 %v411_v32, %v403_v30  ;;  %v6697_v30 = vor.u32 %v9662_v11, %v6694_v15  ;;  %v6825_v31 = vor.u32 %v9694_v16, %v6822_v17  ;;  %v9658_v32 = vld [vmem:[#allocation7 + $0x44] sm:$0xf]  ;;  %v7270_v15 = vld [vmem:[#allocation7 + $0x4f0] sm:$0xf0] }
  0xc1   :  { %v9838_v16 = vld [vmem:[#allocation7 + $0x5e4] sm:$0xf]  ;;  %v7398_v17 = vld [vmem:[#allocation7 + $0x5f0] sm:$0xf0] }
  0xc2   :  { %1980 = vmatmul.bf16.vlgmr.msrb.gmra.mxu0 %v10860_v36  ;;  %1994 = vmatmul.bf16.vlgmr.msrb.gmra.mxu1 %v10862_v2  ;;  %v7062_v50 = vld [vmem:[#allocation7 + $0x350] sm:$0xf0] }
  0xc3   :  { %2084 = vmatpush.bf16.msrb.mxu0 %v6761_v33  ;;  %2098 = vmatpush.bf16.msrb.mxu1 %v6889_v34  ;;  %v281_v43 = vpop.f32.mrf.mxu2  ;;  %v304_v44 = vpop.f32.mrf.mxu3  ;;  %v6678_v33 = vld [vmem:[#allocation7 + $0x50] sm:$0xf0]  ;;  %v7017_v34 = vor.u32 %v9742_v18, %v7014_v19 }
  0xc4   :  { %v282_v63 = vadd.f32 %v281_v43, %v197_v52  ;;  %v305_v0 = vadd.f32 %v304_v44, %v198_v53  ;;  %v6681_v47 = vor.u32 %v9658_v32, %v6678_v33  ;;  %v7273_v33 = vor.u32 %v9806_v8, %v7270_v15  ;;  %v7334_v15 = vld [vmem:[#allocation7 + $0x570] sm:$0xf0] }
  0xc6   :  { %v404_v21 = vmax.f32 %v282_v63, 0.0  ;;  %v405_v22 = vmax.f32 %v305_v0, 0.0  ;;  %v9682_v63 = vld [vmem:[#allocation7 + $0x104] sm:$0xf]  ;;  %v6774_v0 = vld [vmem:[#allocation7 + $0x110] sm:$0xf0] }
  0xc7   :  { %2085 = vmatpush.bf16.msrb.mxu0 %v6745_v45  ;;  %2099 = vmatpush.bf16.msrb.mxu1 %v6873_v46  ;;  %v201_v45 = vperm.slane %v10856_v12, 6  ;;  %v202_v46 = vperm.slane %v10856_v12, 7 }
  0xcb   :  { %2086 = vmatpush.bf16.msrb.mxu0 %v6729_v55  ;;  %2100 = vmatpush.bf16.msrb.mxu1 %v6857_v56  ;;  %v284_v6 = vpop.f32.mrf.mxu2  ;;  %v307_v7 = vpop.f32.mrf.mxu3  ;;  %v9734_v55 = vld [vmem:[#allocation7 + $0x2a4] sm:$0xf]  ;;  %v6982_v56 = vld [vmem:[#allocation7 + $0x2b0] sm:$0xf0] }
  0xcc   :  { %v285_v13 = vadd.f32 %v284_v6, %v197_v52  ;;  %v308_v14 = vadd.f32 %v307_v7, %v198_v53  ;;  %v7129_v52 = vor.u32 %v9770_v41, %v7126_v42  ;;  %v9686_v53 = vld [vmem:[#allocation7 + $0x124] sm:$0xf]  ;;  %v7094_v7 = vld [vmem:[#allocation7 + $0x390] sm:$0xf0] }
  0xcd   :  { %v6793_v12 = vor.u32 %v9686_v53, %v6790_v54  ;;  %v9762_v6 = vld [vmem:[#allocation7 + $0x384] sm:$0xf]  ;;  %v7366_v54 = vld [vmem:[#allocation7 + $0x5b0] sm:$0xf0] }
  0xce   :  { %v412_v23 = vmax.f32 %v285_v13, 0.0  ;;  %v413_v24 = vmax.f32 %v308_v14, 0.0  ;;  %v6649_v13 = vor.u32 %v9650_v59, %v6646_v62  ;;  %v6777_v14 = vor.u32 %v9682_v63, %v6774_v0  ;;  %v9830_v53 = vld [vmem:[#allocation7 + $0x5a4] sm:$0xf]  ;;  %v7222_v62 = vld [vmem:[#allocation7 + $0x490] sm:$0xf0] }
  0xcf   :  { %2087 = vmatpush.bf16.msrb.mxu0 %v6713_v1  ;;  %2101 = vmatpush.bf16.msrb.mxu1 %v6841_v3  ;;  %v6985_v1 = vor.u32 %v9734_v55, %v6982_v56  ;;  %v7113_v3 = vor.u32 %v9766_v57, %v7110_v9  ;;  %v7065_v56 = vor.u32 %v9754_v49, %v7062_v50  ;;  %v9718_v57 = vld [vmem:[#allocation7 + $0x224] sm:$0xf]  ;;  %v6918_v9 = vld [vmem:[#allocation7 + $0x230] sm:$0xf0] }
  0xd0   :  { %v10874_v28 = vpack.c.bf16 %v412_v23, %v404_v21  ;;  %v10876_v29 = vpack.c.bf16 %v413_v24, %v405_v22  ;;  %v6969_v22 = vor.u32 %v9730_v4, %v6966_v5  ;;  %v7097_v23 = vor.u32 %v9762_v6, %v7094_v7  ;;  %v9726_v24 = vld [vmem:[#allocation7 + $0x264] sm:$0xf]  ;;  %v7350_v0 = vld [vmem:[#allocation7 + $0x590] sm:$0xf0] }
  0xd1   :  { %v7369_v59 = vor.u32 %v9830_v53, %v7366_v54  ;;  %v9826_v63 = vld [vmem:[#allocation7 + $0x584] sm:$0xf]  ;;  %v6902_v5 = vld [vmem:[#allocation7 + $0x210] sm:$0xf0] }
  0xd2   :  { %2008 = vmatmul.bf16.vlgmr.msrb.gmra.mxu2 %v10874_v28  ;;  %2022 = vmatmul.bf16.vlgmr.msrb.gmra.mxu3 %v10876_v29  ;;  %v9714_v4 = vld [vmem:[#allocation7 + $0x204] sm:$0xf]  ;;  %v7353_v8 = vor.u32 %v9826_v63, %v7350_v0  ;;  %v7494_v50 = vld [vmem:[#allocation7 + $0x6b0] sm:$0xf0]  ;;  %v6764_v63 = vld [vmem:[#allocation7 + $0xe8] sm:$0xf] }
  0xd3   :  { %2036 = vmatmul.bf16.vlgmr.msra.gmra.mxu0 %v10870_v26  ;;  %2050 = vmatmul.bf16.vlgmr.msra.gmra.mxu1 %v10872_v27  ;;  %v373_v43 = vpop.f32.mrf.mxu2  ;;  %v396_v44 = vpop.f32.mrf.mxu3  ;;  %v9746_v6 = vld [vmem:[#allocation7 + $0x304] sm:$0xf]  ;;  %v9681_v0 = vld [vmem:[#allocation7 + $0xf4] sm:$0xf0] }
  0xd4   :  { %2088 = vmatpush.bf16.msrb.mxu0 %v6697_v30  ;;  %2102 = vmatpush.bf16.msrb.mxu1 %v6825_v31  ;;  %v374_v60 = vadd.f32 %v373_v43, %v201_v45  ;;  %v397_v61 = vadd.f32 %v396_v44, %v202_v46  ;;  %v9758_v30 = vld [vmem:[#allocation7 + $0x364] sm:$0xf]  ;;  %v6953_v43 = vor.u32 %v9726_v24, %v6950_v25  ;;  %v7190_v25 = vld [vmem:[#allocation7 + $0x450] sm:$0xf0] }
  0xd5   :  { %2112 = vmatpush.bf16.msrb.mxu2 %v7017_v34  ;;  %2126 = vmatpush.bf16.msrb.mxu3 %v7145_v35  ;;  %v7401_v34 = vor.u32 %v9838_v16, %v7398_v17  ;;  %v7078_v35 = vld [vmem:[#allocation7 + $0x370] sm:$0xf0]  ;;  %v9870_v16 = vld [vmem:[#allocation7 + $0x6e4] sm:$0xf] }
  0xd6   :  { %v408_v18 = vmax.f32 %v374_v60, 0.0  ;;  %v409_v19 = vmax.f32 %v397_v61, 0.0  ;;  %v7081_v44 = vor.u32 %v9758_v30, %v7078_v35  ;;  %v9750_v60 = vld [vmem:[#allocation7 + $0x324] sm:$0xf]  ;;  %v7046_v61 = vld [vmem:[#allocation7 + $0x330] sm:$0xf0] }
  0xd7   :  { %v7526_v17 = vld [vmem:[#allocation7 + $0x6f0] sm:$0xf0]  ;;  %v9786_v24 = vld [vmem:[#allocation7 + $0x444] sm:$0xf] }
  0xd8   :  { %2089 = vmatpush.bf16.msrb.mxu0 %v6681_v47  ;;  %2103 = vmatpush.bf16.msrb.mxu1 %v6809_v48  ;;  %v7257_v47 = vor.u32 %v9802_v37, %v7254_v38  ;;  %v7385_v48 = vor.u32 %v9834_v39, %v7382_v40  ;;  %v7529_v30 = vor.u32 %v9870_v16, %v7526_v17  ;;  %v7510_v35 = vld [vmem:[#allocation7 + $0x6d0] sm:$0xf0]  ;;  %v9898_v37 = vld [vmem:[#allocation7 + $0x7c4] sm:$0xf]  ;;  %v6748_v16 = vld [vmem:[#allocation7 + $0xc8] sm:$0xf] }
  0xd9   :  { %2113 = vmatpush.bf16.msrb.mxu2 %v7001_v51  ;;  %2127 = vmatpush.bf16.msrb.mxu3 %v7129_v52  ;;  %v9798_v51 = vld [vmem:[#allocation7 + $0x4a4] sm:$0xf]  ;;  %v7238_v52 = vld [vmem:[#allocation7 + $0x4b0] sm:$0xf0]  ;;  %v7193_v39 = vor.u32 %v9786_v24, %v7190_v25  ;;  %v9677_v17 = vld [vmem:[#allocation7 + $0xd4] sm:$0xf0] }
  0xda   :  { %v7638_v38 = vld [vmem:[#allocation7 + $0x7d0] sm:$0xf0]  ;;  %v9862_v49 = vld [vmem:[#allocation7 + $0x6a4] sm:$0xf]  ;;  %v6749_v24 = vor.u32 %v9677_v17, %v6748_v16  ;;  %v7132_v16 = vld [vmem:[#allocation7 + $0x3c8] sm:$0xf] }
  0xdb   :  { %v376_v10 = vpop.f32.mrf.mxu2  ;;  %v399_v11 = vpop.f32.mrf.mxu3  ;;  %v9773_v17 = vld [vmem:[#allocation7 + $0x3d4] sm:$0xf0] }
  0xdc   :  { %2090 = vmatpush.bf16.msrb.mxu0 %v6665_v58  ;;  %2104 = vmatpush.bf16.msrb.mxu1 %v6793_v12  ;;  %v377_v20 = vadd.f32 %v376_v10, %v201_v45  ;;  %v400_v21 = vadd.f32 %v399_v11, %v202_v46  ;;  %v9722_v45 = vld [vmem:[#allocation7 + $0x244] sm:$0xf]  ;;  %v6934_v46 = vld [vmem:[#allocation7 + $0x250] sm:$0xf0]  ;;  %v7241_v58 = vor.u32 %v9798_v51, %v7238_v52 }
  0xdd   :  { %2114 = vmatpush.bf16.msrb.mxu2 %v6985_v1  ;;  %2128 = vmatpush.bf16.msrb.mxu3 %v7113_v3  ;;  %v6937_v55 = vor.u32 %v9722_v45, %v6934_v46  ;;  %v9794_v12 = vld [vmem:[#allocation7 + $0x484] sm:$0xf]  ;;  %v6921_v1 = vor.u32 %v9718_v57, %v6918_v9  ;;  %v7049_v3 = vor.u32 %v9750_v60, %v7046_v61  ;;  %v7030_v10 = vld [vmem:[#allocation7 + $0x310] sm:$0xf0] }
  0xde   :  { %v416_v31 = vmax.f32 %v377_v20, 0.0  ;;  %v417_v32 = vmax.f32 %v400_v21, 0.0  ;;  %v7225_v7 = vor.u32 %v9794_v12, %v7222_v62  ;;  %v9790_v11 = vld [vmem:[#allocation7 + $0x464] sm:$0xf]  ;;  %v6905_v20 = vor.u32 %v9714_v4, %v6902_v5  ;;  %v7622_v52 = vld [vmem:[#allocation7 + $0x7b0] sm:$0xf0] }
  0xdf   :  { %v7033_v21 = vor.u32 %v9746_v6, %v7030_v10  ;;  %v7641_v46 = vor.u32 %v9898_v37, %v7638_v38  ;;  %v9894_v51 = vld [vmem:[#allocation7 + $0x7a4] sm:$0xf]  ;;  %v7497_v9 = vor.u32 %v9862_v49, %v7494_v50  ;;  %v7478_v61 = vld [vmem:[#allocation7 + $0x690] sm:$0xf0]  ;;  %v6844_v49 = vld [vmem:[#allocation7 + $0x188] sm:$0xf] }
  0xe0   :  { %v10884_v41 = vpack.c.bf16 %v416_v31, %v408_v18  ;;  %v10886_v42 = vpack.c.bf16 %v417_v32, %v409_v19  ;;  %2091 = vmatpush.bf16.msrb.mxu0 %v6649_v13  ;;  %2105 = vmatpush.bf16.msrb.mxu1 %v6777_v14  ;;  %v7206_v13 = vld [vmem:[#allocation7 + $0x470] sm:$0xf0]  ;;  %v9822_v14 = vld [vmem:[#allocation7 + $0x564] sm:$0xf]  ;;  %v9701_v50 = vld [vmem:[#allocation7 + $0x194] sm:$0xf0] }
  0xe1   :  { %2115 = vmatpush.bf16.msrb.mxu2 %v6969_v22  ;;  %2129 = vmatpush.bf16.msrb.mxu3 %v7097_v23  ;;  %v9902_v18 = vld [vmem:[#allocation7 + $0x7e4] sm:$0xf]  ;;  %v7654_v19 = vld [vmem:[#allocation7 + $0x7f0] sm:$0xf0]  ;;  %v7209_v22 = vor.u32 %v9790_v11, %v7206_v13  ;;  %v7337_v23 = vor.u32 %v9822_v14, %v7334_v15  ;;  %v6765_v11 = vor.u32 %v9681_v0, %v6764_v63  ;;  %v7148_v63 = vld [vmem:[#allocation7 + $0x3e8] sm:$0xf] }
  0xe2   :  { %2064 = vmatmul.bf16.vlgmr.msra.gmra.mxu2 %v10884_v41  ;;  %2078 = vmatmul.bf16.vlgmr.msra.gmra.mxu3 %v10886_v42  ;;  %v7657_v31 = vor.u32 %v9902_v18, %v7654_v19  ;;  %v9818_v32 = vld [vmem:[#allocation7 + $0x544] sm:$0xf]  ;;  %v7606_v62 = vld [vmem:[#allocation7 + $0x790] sm:$0xf0]  ;;  %v6876_v18 = vld [vmem:[#allocation7 + $0x1c8] sm:$0xf] }
  0xe3   :  { %2092 = vmatmul.bf16.vlgmr.msrb.gmra.mxu0 %v10860_v36  ;;  %2106 = vmatmul.bf16.vlgmr.msrb.gmra.mxu1 %v10862_v2  ;;  %v9810_v57 = vld [vmem:[#allocation7 + $0x504] sm:$0xf]  ;;  %v7462_v10 = vld [vmem:[#allocation7 + $0x670] sm:$0xf0]  ;;  %v9709_v19 = vld [vmem:[#allocation7 + $0x1d4] sm:$0xf0] }
  0xe4   :  { %2140 = vmatpush.bf16.msra.mxu0 %v7273_v33  ;;  %2154 = vmatpush.bf16.msra.mxu1 %v7401_v34  ;;  %v7318_v33 = vld [vmem:[#allocation7 + $0x550] sm:$0xf0]  ;;  %v9866_v34 = vld [vmem:[#allocation7 + $0x6c4] sm:$0xf]  ;;  %v6877_v25 = vor.u32 %v9709_v19, %v6876_v18  ;;  %v9777_v0 = vld [vmem:[#allocation7 + $0x3f4] sm:$0xf0] }
  0xe5   :  { %2116 = vmatpush.bf16.msrb.mxu2 %v6953_v43  ;;  %2130 = vmatpush.bf16.msrb.mxu3 %v7081_v44  ;;  %v7321_v40 = vor.u32 %v9818_v32, %v7318_v33  ;;  %v9782_v43 = vld [vmem:[#allocation7 + $0x424] sm:$0xf]  ;;  %v7174_v44 = vld [vmem:[#allocation7 + $0x430] sm:$0xf0]  ;;  %v7513_v45 = vor.u32 %v9866_v34, %v7510_v35  ;;  %v6732_v32 = vld [vmem:[#allocation7 + $0xa8] sm:$0xf] }
  0xe6   :  { %v7177_v53 = vor.u32 %v9782_v43, %v7174_v44  ;;  %v9858_v60 = vld [vmem:[#allocation7 + $0x684] sm:$0xf]  ;;  %v7590_v15 = vld [vmem:[#allocation7 + $0x770] sm:$0xf0]  ;;  %v9673_v33 = vld [vmem:[#allocation7 + $0xb4] sm:$0xf0] }
  0xe7   :  { %v9890_v12 = vld [vmem:[#allocation7 + $0x784] sm:$0xf]  ;;  %v7481_v6 = vor.u32 %v9858_v60, %v7478_v61  ;;  %v6860_v34 = vld [vmem:[#allocation7 + $0x1a8] sm:$0xf]  ;;  %v9705_v35 = vld [vmem:[#allocation7 + $0x1b4] sm:$0xf0]  ;;  %v6733_v43 = vor.u32 %v9673_v33, %v6732_v32 }
  0xe8   :  { %2141 = vmatpush.bf16.msra.mxu0 %v7257_v47  ;;  %2155 = vmatpush.bf16.msra.mxu1 %v7385_v48  ;;  %v9814_v47 = vld [vmem:[#allocation7 + $0x524] sm:$0xf]  ;;  %v7302_v48 = vld [vmem:[#allocation7 + $0x530] sm:$0xf0]  ;;  %v6861_v44 = vor.u32 %v9705_v35, %v6860_v34  ;;  %v6828_v60 = vld [vmem:[#allocation7 + $0x168] sm:$0xf] }
  0xe9   :  { %2117 = vmatpush.bf16.msrb.mxu2 %v6937_v55  ;;  %2131 = vmatpush.bf16.msrb.mxu3 %v7065_v56  ;;  %v7305_v54 = vor.u32 %v9814_v47, %v7302_v48  ;;  %v9778_v55 = vld [vmem:[#allocation7 + $0x404] sm:$0xf]  ;;  %v7158_v56 = vld [vmem:[#allocation7 + $0x410] sm:$0xf0]  ;;  %v6716_v47 = vld [vmem:[#allocation7 + $0x88] sm:$0xf] }
  0xea   :  { %v7161_v4 = vor.u32 %v9778_v55, %v7158_v56  ;;  %v9886_v14 = vld [vmem:[#allocation7 + $0x764] sm:$0xf]  ;;  %v9669_v48 = vld [vmem:[#allocation7 + $0x94] sm:$0xf0]  ;;  %v7116_v32 = vld [vmem:[#allocation7 + $0x3a8] sm:$0xf] }
  0xeb   :  { %v9874_v55 = vld [vmem:[#allocation7 + $0x704] sm:$0xf]  ;;  %v6717_v56 = vor.u32 %v9669_v48, %v6716_v47  ;;  %v9697_v61 = vld [vmem:[#allocation7 + $0x174] sm:$0xf0]  ;;  %v7100_v47 = vld [vmem:[#allocation7 + $0x388] sm:$0xf] }
  0xec   :  { %2142 = vmatpush.bf16.msra.mxu0 %v7241_v58  ;;  %2156 = vmatpush.bf16.msra.mxu1 %v7369_v59  ;;  %v7625_v58 = vor.u32 %v9894_v51, %v7622_v52  ;;  %v7286_v59 = vld [vmem:[#allocation7 + $0x510] sm:$0xf0]  ;;  %v9769_v33 = vld [vmem:[#allocation7 + $0x3b4] sm:$0xf0] }
  0xed   :  { %2118 = vmatpush.bf16.msrb.mxu2 %v6921_v1  ;;  %2132 = vmatpush.bf16.msrb.mxu3 %v7049_v3  ;;  %v6892_v1 = vld [vmem:[#allocation7 + $0x1e8] sm:$0xf]  ;;  %v9713_v3 = vld [vmem:[#allocation7 + $0x1f4] sm:$0xf0]  ;;  %v7289_v5 = vor.u32 %v9810_v57, %v7286_v59  ;;  %v6845_v57 = vor.u32 %v9701_v50, %v6844_v49 }
  0xee   :  { %v6893_v13 = vor.u32 %v9713_v3, %v6892_v1  ;;  %v9665_v59 = vld [vmem:[#allocation7 + $0x74] sm:$0xf0]  ;;  %v7276_v49 = vld [vmem:[#allocation7 + $0x4e8] sm:$0xf] }
  0xef   :  { %v9765_v48 = vld [vmem:[#allocation7 + $0x394] sm:$0xf0] }
  0xf0   :  { %2143 = vmatpush.bf16.msra.mxu0 %v7225_v7  ;;  %2157 = vmatpush.bf16.msra.mxu1 %v7353_v8  ;;  %v7609_v7 = vor.u32 %v9890_v12, %v7606_v62  ;;  %v9854_v8 = vld [vmem:[#allocation7 + $0x664] sm:$0xf]  ;;  %v7020_v12 = vld [vmem:[#allocation7 + $0x2e8] sm:$0xf]  ;;  %v9745_v62 = vld [vmem:[#allocation7 + $0x2f4] sm:$0xf0] }
  0xf1   :  { %2119 = vmatpush.bf16.msrb.mxu2 %v6905_v20  ;;  %2133 = vmatpush.bf16.msrb.mxu3 %v7033_v21  ;;  %v7465_v20 = vor.u32 %v9854_v8, %v7462_v10  ;;  %v7593_v21 = vor.u32 %v9886_v14, %v7590_v15  ;;  %v7021_v8 = vor.u32 %v9745_v62, %v7020_v12  ;;  %v7004_v14 = vld [vmem:[#allocation7 + $0x2c8] sm:$0xf]  ;;  %v9741_v15 = vld [vmem:[#allocation7 + $0x2d4] sm:$0xf0] }
  0xf2   :  { %v7149_v10 = vor.u32 %v9777_v0, %v7148_v63  ;;  %v9809_v50 = vld [vmem:[#allocation7 + $0x4f4] sm:$0xf0]  ;;  %v7260_v12 = vld [vmem:[#allocation7 + $0x4c8] sm:$0xf] }
  0xf3   :  { %v9805_v62 = vld [vmem:[#allocation7 + $0x4d4] sm:$0xf0]  ;;  %v7388_v63 = vld [vmem:[#allocation7 + $0x5c8] sm:$0xf] }
  0xf4   :  { %2144 = vmatpush.bf16.msra.mxu0 %v7209_v22  ;;  %2158 = vmatpush.bf16.msra.mxu1 %v7337_v23  ;;  %v9850_v22 = vld [vmem:[#allocation7 + $0x644] sm:$0xf]  ;;  %v7446_v23 = vld [vmem:[#allocation7 + $0x650] sm:$0xf0]  ;;  %v9837_v0 = vld [vmem:[#allocation7 + $0x5d4] sm:$0xf0] }
  0xf5   :  { %2168 = vmatpush.bf16.msra.mxu2 %v7529_v30  ;;  %2182 = vmatpush.bf16.msra.mxu3 %v7657_v31  ;;  %v9882_v30 = vld [vmem:[#allocation7 + $0x744] sm:$0xf]  ;;  %v7574_v31 = vld [vmem:[#allocation7 + $0x750] sm:$0xf0]  ;;  %v7449_v37 = vor.u32 %v9850_v22, %v7446_v23  ;;  %v7005_v22 = vor.u32 %v9741_v15, %v7004_v14  ;;  %v7133_v23 = vor.u32 %v9773_v17, %v7132_v16  ;;  %v7372_v14 = vld [vmem:[#allocation7 + $0x5a8] sm:$0xf] }
  0xf6   :  { %2120 = vmatmul.bf16.vlgmr.msrb.gmra.mxu2 %v10874_v28  ;;  %2134 = vmatmul.bf16.vlgmr.msrb.gmra.mxu3 %v10876_v29  ;;  %v7577_v38 = vor.u32 %v9882_v30, %v7574_v31  ;;  %v6988_v30 = vld [vmem:[#allocation7 + $0x2a8] sm:$0xf]  ;;  %v9737_v31 = vld [vmem:[#allocation7 + $0x2b4] sm:$0xf0] }
  0xf7   :  { %v9833_v15 = vld [vmem:[#allocation7 + $0x5b4] sm:$0xf0] }
  0xf8   :  { %2145 = vmatpush.bf16.msra.mxu0 %v7193_v39  ;;  %2159 = vmatpush.bf16.msra.mxu1 %v7321_v40  ;;  %v9846_v39 = vld [vmem:[#allocation7 + $0x624] sm:$0xf]  ;;  %v7430_v40 = vld [vmem:[#allocation7 + $0x630] sm:$0xf0] }
  0xf9   :  { %2169 = vmatpush.bf16.msra.mxu2 %v7513_v45  ;;  %2183 = vmatpush.bf16.msra.mxu3 %v7641_v46  ;;  %v9878_v45 = vld [vmem:[#allocation7 + $0x724] sm:$0xf]  ;;  %v7558_v46 = vld [vmem:[#allocation7 + $0x730] sm:$0xf0]  ;;  %v7433_v51 = vor.u32 %v9846_v39, %v7430_v40  ;;  %v6780_v39 = vld [vmem:[#allocation7 + $0x108] sm:$0xf]  ;;  %v6989_v40 = vor.u32 %v9737_v31, %v6988_v30 }
  0xfa   :  { %v7561_v52 = vor.u32 %v9878_v45, %v7558_v46  ;;  %v6972_v45 = vld [vmem:[#allocation7 + $0x288] sm:$0xf]  ;;  %v9733_v46 = vld [vmem:[#allocation7 + $0x294] sm:$0xf0] }
  0xfb   :  { %v7356_v30 = vld [vmem:[#allocation7 + $0x588] sm:$0xf]  ;;  %v9829_v31 = vld [vmem:[#allocation7 + $0x594] sm:$0xf0] }
  0xfc   :  { %2146 = vmatpush.bf16.msra.mxu0 %v7177_v53  ;;  %2160 = vmatpush.bf16.msra.mxu1 %v7305_v54  ;;  %v9842_v53 = vld [vmem:[#allocation7 + $0x604] sm:$0xf]  ;;  %v7414_v54 = vld [vmem:[#allocation7 + $0x610] sm:$0xf0] }
  0xfd   :  { %2170 = vmatpush.bf16.msra.mxu2 %v7497_v9  ;;  %2184 = vmatpush.bf16.msra.mxu3 %v7625_v58  ;;  %v7542_v9 = vld [vmem:[#allocation7 + $0x710] sm:$0xf0]  ;;  %v6700_v58 = vld [vmem:[#allocation7 + $0x68] sm:$0xf]  ;;  %v7417_v1 = vor.u32 %v9842_v53, %v7414_v54 }
  0xfe   :  { %v7545_v3 = vor.u32 %v9874_v55, %v7542_v9  ;;  %v6973_v55 = vor.u32 %v9733_v46, %v6972_v45  ;;  %v9729_v9 = vld [vmem:[#allocation7 + $0x274] sm:$0xf0]  ;;  %v7340_v45 = vld [vmem:[#allocation7 + $0x568] sm:$0xf] }
  0xff   :  { %v9825_v46 = vld [vmem:[#allocation7 + $0x574] sm:$0xf0] }
 0x100   :  { %2147 = vmatpush.bf16.msra.mxu0 %v7161_v4  ;;  %2161 = vmatpush.bf16.msra.mxu1 %v7289_v5  ;;  %v6701_v4 = vor.u32 %v9665_v59, %v6700_v58  ;;  %v6829_v5 = vor.u32 %v9697_v61, %v6828_v60  ;;  %v7277_v58 = vor.u32 %v9809_v50, %v7276_v49  ;;  %v7084_v60 = vld [vmem:[#allocation7 + $0x368] sm:$0xf]  ;;  %v9761_v61 = vld [vmem:[#allocation7 + $0x374] sm:$0xf0] }
 0x101   :  { %2171 = vmatpush.bf16.msra.mxu2 %v7481_v6  ;;  %2185 = vmatpush.bf16.msra.mxu3 %v7609_v7  ;;  %v6684_v6 = vld [vmem:[#allocation7 + $0x48] sm:$0xf]  ;;  %v9661_v7 = vld [vmem:[#allocation7 + $0x54] sm:$0xf0] }
 0x102   :  { %v6685_v18 = vor.u32 %v9661_v7, %v6684_v6  ;;  %v7261_v6 = vor.u32 %v9805_v62, %v7260_v12  ;;  %v7389_v7 = vor.u32 %v9837_v0, %v7388_v63  ;;  %v7660_v49 = vld [vmem:[#allocation7 + $0x7e8] sm:$0xf]  ;;  %v9905_v50 = vld [vmem:[#allocation7 + $0x7f4] sm:$0xf0] }
 0x103   :  { %2148 = vmatmul.bf16.vlgmr.msra.gmra.mxu0 %v10870_v26  ;;  %2162 = vmatmul.bf16.vlgmr.msra.gmra.mxu1 %v10872_v27  ;;  %v7644_v12 = vld [vmem:[#allocation7 + $0x7c8] sm:$0xf]  ;;  %v9901_v62 = vld [vmem:[#allocation7 + $0x7d4] sm:$0xf0] }
 0x104   :  { %2196 = vmatpush.bf16.msrb.mxu0 %v6765_v11  ;;  %2210 = vmatpush.bf16.msrb.mxu1 %v6893_v13  ;;  %v6812_v11 = vld [vmem:[#allocation7 + $0x148] sm:$0xf]  ;;  %v9693_v13 = vld [vmem:[#allocation7 + $0x154] sm:$0xf0] }
 0x105   :  { %2172 = vmatpush.bf16.msra.mxu2 %v7465_v20  ;;  %2186 = vmatpush.bf16.msra.mxu3 %v7593_v21  ;;  %v6813_v19 = vor.u32 %v9693_v13, %v6812_v11  ;;  %v6668_v20 = vld [vmem:[#allocation7 + $0x28] sm:$0xf]  ;;  %v9657_v21 = vld [vmem:[#allocation7 + $0x34] sm:$0xf0] }
 0x106   :  { %v6669_v34 = vor.u32 %v9657_v21, %v6668_v20  ;;  %v7244_v11 = vld [vmem:[#allocation7 + $0x4a8] sm:$0xf]  ;;  %v9801_v13 = vld [vmem:[#allocation7 + $0x4b4] sm:$0xf0]  ;;  %v7373_v21 = vor.u32 %v9833_v15, %v7372_v14 }
 0x107   :  { %v7245_v20 = vor.u32 %v9801_v13, %v7244_v11  ;;  %v7628_v11 = vld [vmem:[#allocation7 + $0x7a8] sm:$0xf]  ;;  %v9897_v13 = vld [vmem:[#allocation7 + $0x7b4] sm:$0xf0] }
 0x108   :  { %2197 = vmatpush.bf16.msrb.mxu0 %v6749_v24  ;;  %2211 = vmatpush.bf16.msrb.mxu1 %v6877_v25  ;;  %v6796_v24 = vld [vmem:[#allocation7 + $0x128] sm:$0xf]  ;;  %v9689_v25 = vld [vmem:[#allocation7 + $0x134] sm:$0xf0] }
 0x109   :  { %2173 = vmatpush.bf16.msra.mxu2 %v7449_v37  ;;  %2187 = vmatpush.bf16.msra.mxu3 %v7577_v38  ;;  %v6797_v35 = vor.u32 %v9689_v25, %v6796_v24  ;;  %v6652_v37 = vld [vmem:[#allocation7 + $0x8] sm:$0xf]  ;;  %v9653_v38 = vld [vmem:[#allocation7 + $0x14] sm:$0xf0] }
 0x10a   :  { %v6653_v53 = vor.u32 %v9653_v38, %v6652_v37  ;;  %v7228_v24 = vld [vmem:[#allocation7 + $0x488] sm:$0xf]  ;;  %v9797_v25 = vld [vmem:[#allocation7 + $0x494] sm:$0xf0] }
 0x10b   :  { %v7036_v37 = vld [vmem:[#allocation7 + $0x308] sm:$0xf]  ;;  %v7229_v38 = vor.u32 %v9797_v25, %v7228_v24  ;;  %v9893_v25 = vld [vmem:[#allocation7 + $0x794] sm:$0xf0] }
 0x10c   :  { %2198 = vmatpush.bf16.msrb.mxu0 %v6733_v43  ;;  %2212 = vmatpush.bf16.msrb.mxu1 %v6861_v44  ;;  %v7117_v43 = vor.u32 %v9769_v33, %v7116_v32  ;;  %v9685_v44 = vld [vmem:[#allocation7 + $0x114] sm:$0xf0]  ;;  %v7612_v24 = vld [vmem:[#allocation7 + $0x788] sm:$0xf] }
 0x10d   :  { %2174 = vmatpush.bf16.msra.mxu2 %v7433_v51  ;;  %2188 = vmatpush.bf16.msra.mxu3 %v7561_v52  ;;  %v7404_v51 = vld [vmem:[#allocation7 + $0x5e8] sm:$0xf]  ;;  %v9841_v52 = vld [vmem:[#allocation7 + $0x5f4] sm:$0xf0]  ;;  %v6781_v54 = vor.u32 %v9685_v44, %v6780_v39  ;;  %v7357_v39 = vor.u32 %v9829_v31, %v7356_v30  ;;  %v9679_v30 = vld [vmem:[#allocation7 + $0xec] sm:$0xf] }
 0x10e   :  { %v7405_v59 = vor.u32 %v9841_v52, %v7404_v51  ;;  %v9793_v44 = vld [vmem:[#allocation7 + $0x474] sm:$0xf0]  ;;  %v6766_v31 = vld [vmem:[#allocation7 + $0xf8] sm:$0xf0] }
 0x110   :  { %2199 = vmatpush.bf16.msrb.mxu0 %v6717_v56  ;;  %2213 = vmatpush.bf16.msrb.mxu1 %v6845_v57  ;;  %v7101_v56 = vor.u32 %v9765_v48, %v7100_v47  ;;  %v6956_v57 = vld [vmem:[#allocation7 + $0x268] sm:$0xf]  ;;  %v9873_v48 = vld [vmem:[#allocation7 + $0x6f4] sm:$0xf0] }
 0x111   :  { %2175 = vmatpush.bf16.msra.mxu2 %v7417_v1  ;;  %2189 = vmatpush.bf16.msra.mxu3 %v7545_v3  ;;  %v6957_v1 = vor.u32 %v9729_v9, %v6956_v57  ;;  %v7085_v3 = vor.u32 %v9761_v61, %v7084_v60  ;;  %v7532_v47 = vld [vmem:[#allocation7 + $0x6e8] sm:$0xf]  ;;  %v7661_v9 = vor.u32 %v9905_v50, %v7660_v49  ;;  %v9869_v61 = vld [vmem:[#allocation7 + $0x6d4] sm:$0xf0]  ;;  %v9707_v49 = vld [vmem:[#allocation7 + $0x1cc] sm:$0xf] }
 0x112   :  { %v7533_v57 = vor.u32 %v9873_v48, %v7532_v47  ;;  %v7516_v60 = vld [vmem:[#allocation7 + $0x6c8] sm:$0xf]  ;;  %v9675_v47 = vld [vmem:[#allocation7 + $0xcc] sm:$0xf]  ;;  %v6750_v48 = vld [vmem:[#allocation7 + $0xd8] sm:$0xf0] }
 0x113   :  { %v6878_v50 = vld [vmem:[#allocation7 + $0x1d8] sm:$0xf0] }
 0x114   :  { %2200 = vmatpush.bf16.msrb.mxu0 %v6701_v4  ;;  %2214 = vmatpush.bf16.msrb.mxu1 %v6829_v5  ;;  %v6940_v4 = vld [vmem:[#allocation7 + $0x248] sm:$0xf]  ;;  %v9725_v5 = vld [vmem:[#allocation7 + $0x254] sm:$0xf0] }
 0x115   :  { %2224 = vmatpush.bf16.msrb.mxu2 %v7021_v8  ;;  %2238 = vmatpush.bf16.msrb.mxu3 %v7149_v10  ;;  %v7068_v8 = vld [vmem:[#allocation7 + $0x348] sm:$0xf]  ;;  %v9757_v10 = vld [vmem:[#allocation7 + $0x354] sm:$0xf0]  ;;  %v6941_v16 = vor.u32 %v9725_v5, %v6940_v4  ;;  %v7517_v4 = vor.u32 %v9869_v61, %v7516_v60  ;;  %v7645_v5 = vor.u32 %v9901_v62, %v7644_v12  ;;  %v9703_v60 = vld [vmem:[#allocation7 + $0x1ac] sm:$0xf] }
 0x116   :  { %2176 = vmatmul.bf16.vlgmr.msra.gmra.mxu2 %v10884_v41  ;;  %2190 = vmatmul.bf16.vlgmr.msra.gmra.mxu3 %v10886_v42  ;;  %v7069_v17 = vor.u32 %v9757_v10, %v7068_v8  ;;  %v7500_v8 = vld [vmem:[#allocation7 + $0x6a8] sm:$0xf]  ;;  %v9865_v10 = vld [vmem:[#allocation7 + $0x6b4] sm:$0xf0]  ;;  %v6862_v61 = vld [vmem:[#allocation7 + $0x1b8] sm:$0xf0] }
 0x118   :  { %2201 = vmatpush.bf16.msrb.mxu0 %v6685_v18  ;;  %2215 = vmatpush.bf16.msrb.mxu1 %v6813_v19  ;;  %v6924_v18 = vld [vmem:[#allocation7 + $0x228] sm:$0xf]  ;;  %v9721_v19 = vld [vmem:[#allocation7 + $0x234] sm:$0xf0] }
 0x119   :  { %2225 = vmatpush.bf16.msrb.mxu2 %v7005_v22  ;;  %2239 = vmatpush.bf16.msrb.mxu3 %v7133_v23  ;;  %v7052_v22 = vld [vmem:[#allocation7 + $0x328] sm:$0xf]  ;;  %v9753_v23 = vld [vmem:[#allocation7 + $0x334] sm:$0xf0]  ;;  %v6925_v32 = vor.u32 %v9721_v19, %v6924_v18  ;;  %v7501_v19 = vor.u32 %v9865_v10, %v7500_v8  ;;  %v9699_v8 = vld [vmem:[#allocation7 + $0x18c] sm:$0xf] }
 0x11a   :  { %v7053_v33 = vor.u32 %v9753_v23, %v7052_v22  ;;  %v7292_v18 = vld [vmem:[#allocation7 + $0x508] sm:$0xf]  ;;  %v9861_v23 = vld [vmem:[#allocation7 + $0x694] sm:$0xf0]  ;;  %v6846_v10 = vld [vmem:[#allocation7 + $0x198] sm:$0xf0] }
 0x11b   :  { %v7484_v22 = vld [vmem:[#allocation7 + $0x688] sm:$0xf] }
 0x11c   :  { %2202 = vmatpush.bf16.msrb.mxu0 %v6669_v34  ;;  %2216 = vmatpush.bf16.msrb.mxu1 %v6797_v35  ;;  %v6908_v34 = vld [vmem:[#allocation7 + $0x208] sm:$0xf]  ;;  %v9717_v35 = vld [vmem:[#allocation7 + $0x214] sm:$0xf0] }
 0x11d   :  { %2226 = vmatpush.bf16.msrb.mxu2 %v6989_v40  ;;  %2240 = vmatpush.bf16.msrb.mxu3 %v7117_v43  ;;  %v9749_v40 = vld [vmem:[#allocation7 + $0x314] sm:$0xf0]  ;;  %v7212_v43 = vld [vmem:[#allocation7 + $0x468] sm:$0xf]  ;;  %v6909_v51 = vor.u32 %v9717_v35, %v6908_v34 }
 0x11e   :  { %v7037_v52 = vor.u32 %v9749_v40, %v7036_v37  ;;  %v7485_v37 = vor.u32 %v9861_v23, %v7484_v22  ;;  %v9857_v40 = vld [vmem:[#allocation7 + $0x674] sm:$0xf0]  ;;  %v9695_v22 = vld [vmem:[#allocation7 + $0x16c] sm:$0xf]  ;;  %v6830_v23 = vld [vmem:[#allocation7 + $0x178] sm:$0xf0] }
 0x120   :  { %2203 = vmatpush.bf16.msrb.mxu0 %v6653_v53  ;;  %2217 = vmatpush.bf16.msrb.mxu1 %v6781_v54  ;;  %v7213_v53 = vor.u32 %v9793_v44, %v7212_v43  ;;  %v7341_v54 = vor.u32 %v9825_v46, %v7340_v45  ;;  %v6769_v43 = vor.u32 %v9679_v30, %v6766_v31  ;;  %v7596_v45 = vld [vmem:[#allocation7 + $0x768] sm:$0xf]  ;;  %v9889_v46 = vld [vmem:[#allocation7 + $0x774] sm:$0xf0]  ;;  %v9775_v30 = vld [vmem:[#allocation7 + $0x3ec] sm:$0xf] }
 0x121   :  { %2227 = vmatpush.bf16.msrb.mxu2 %v6973_v55  ;;  %2241 = vmatpush.bf16.msrb.mxu3 %v7101_v56  ;;  %v7196_v55 = vld [vmem:[#allocation7 + $0x448] sm:$0xf]  ;;  %v9789_v56 = vld [vmem:[#allocation7 + $0x454] sm:$0xf0]  ;;  %v7150_v31 = vld [vmem:[#allocation7 + $0x3f8] sm:$0xf0] }
 0x122   :  { %v7197_v63 = vor.u32 %v9789_v56, %v7196_v55  ;;  %v6753_v55 = vor.u32 %v9675_v47, %v6750_v48  ;;  %v6881_v56 = vor.u32 %v9707_v49, %v6878_v50  ;;  %v9771_v47 = vld [vmem:[#allocation7 + $0x3cc] sm:$0xf]  ;;  %v7134_v48 = vld [vmem:[#allocation7 + $0x3d8] sm:$0xf0] }
 0x123   :  { %2204 = vmatmul.bf16.vlgmr.msrb.gmra.mxu0 %v10860_v36  ;;  %2218 = vmatmul.bf16.vlgmr.msrb.gmra.mxu1 %v10862_v2 }
 0x124   :  { %2252 = vmatpush.bf16.msra.mxu0 %v7277_v58  ;;  %2266 = vmatpush.bf16.msra.mxu1 %v7405_v59  ;;  %v7324_v58 = vld [vmem:[#allocation7 + $0x548] sm:$0xf]  ;;  %v9821_v59 = vld [vmem:[#allocation7 + $0x554] sm:$0xf0] }
 0x125   :  { %2228 = vmatpush.bf16.msrb.mxu2 %v6957_v1  ;;  %2242 = vmatpush.bf16.msrb.mxu3 %v7085_v3  ;;  %v7325_v0 = vor.u32 %v9821_v59, %v7324_v58  ;;  %v7180_v1 = vld [vmem:[#allocation7 + $0x428] sm:$0xf]  ;;  %v9785_v3 = vld [vmem:[#allocation7 + $0x434] sm:$0xf0]  ;;  %v9671_v58 = vld [vmem:[#allocation7 + $0xac] sm:$0xf] }
 0x126   :  { %v7181_v14 = vor.u32 %v9785_v3, %v7180_v1  ;;  %v6734_v59 = vld [vmem:[#allocation7 + $0xb8] sm:$0xf0]  ;;  %v6865_v3 = vor.u32 %v9703_v60, %v6862_v61 }
 0x127   :  { %v6737_v1 = vor.u32 %v9671_v58, %v6734_v59  ;;  %v9767_v58 = vld [vmem:[#allocation7 + $0x3ac] sm:$0xf]  ;;  %v7118_v59 = vld [vmem:[#allocation7 + $0x3b8] sm:$0xf0] }
 0x128   :  { %2253 = vmatpush.bf16.msra.mxu0 %v7261_v6  ;;  %2267 = vmatpush.bf16.msra.mxu1 %v7389_v7  ;;  %v7308_v6 = vld [vmem:[#allocation7 + $0x528] sm:$0xf]  ;;  %v9817_v7 = vld [vmem:[#allocation7 + $0x534] sm:$0xf0] }
 0x129   :  { %2229 = vmatpush.bf16.msrb.mxu2 %v6941_v16  ;;  %2243 = vmatpush.bf16.msrb.mxu3 %v7069_v17  ;;  %v7309_v15 = vor.u32 %v9817_v7, %v7308_v6  ;;  %v7164_v16 = vld [vmem:[#allocation7 + $0x408] sm:$0xf]  ;;  %v9781_v17 = vld [vmem:[#allocation7 + $0x414] sm:$0xf0]  ;;  %v9667_v6 = vld [vmem:[#allocation7 + $0x8c] sm:$0xf] }
 0x12a   :  { %v7165_v34 = vor.u32 %v9781_v17, %v7164_v16  ;;  %v6718_v7 = vld [vmem:[#allocation7 + $0x98] sm:$0xf0]  ;;  %v7548_v16 = vld [vmem:[#allocation7 + $0x708] sm:$0xf] }
 0x12b   :  { %v6721_v17 = vor.u32 %v9667_v6, %v6718_v7  ;;  %v6974_v6 = vld [vmem:[#allocation7 + $0x298] sm:$0xf0]  ;;  %v9763_v7 = vld [vmem:[#allocation7 + $0x38c] sm:$0xf] }
 0x12c   :  { %2254 = vmatpush.bf16.msra.mxu0 %v7245_v20  ;;  %2268 = vmatpush.bf16.msra.mxu1 %v7373_v21  ;;  %v7629_v20 = vor.u32 %v9897_v13, %v7628_v11  ;;  %v9813_v21 = vld [vmem:[#allocation7 + $0x514] sm:$0xf0] }
 0x12d   :  { %2230 = vmatpush.bf16.msrb.mxu2 %v6925_v32  ;;  %2244 = vmatpush.bf16.msrb.mxu3 %v7053_v33  ;;  %v9711_v32 = vld [vmem:[#allocation7 + $0x1ec] sm:$0xf]  ;;  %v6894_v33 = vld [vmem:[#allocation7 + $0x1f8] sm:$0xf0]  ;;  %v7293_v35 = vor.u32 %v9813_v21, %v7292_v18  ;;  %v6849_v18 = vor.u32 %v9699_v8, %v6846_v10 }
 0x12e   :  { %v6897_v44 = vor.u32 %v9711_v32, %v6894_v33  ;;  %v6702_v21 = vld [vmem:[#allocation7 + $0x78] sm:$0xf0]  ;;  %v9807_v10 = vld [vmem:[#allocation7 + $0x4ec] sm:$0xf] }
 0x12f   :  { %v7102_v8 = vld [vmem:[#allocation7 + $0x398] sm:$0xf0] }
 0x130   :  { %2255 = vmatpush.bf16.msra.mxu0 %v7229_v38  ;;  %2269 = vmatpush.bf16.msra.mxu1 %v7357_v39  ;;  %v7613_v38 = vor.u32 %v9893_v25, %v7612_v24  ;;  %v7468_v39 = vld [vmem:[#allocation7 + $0x668] sm:$0xf]  ;;  %v9743_v24 = vld [vmem:[#allocation7 + $0x2ec] sm:$0xf]  ;;  %v7022_v25 = vld [vmem:[#allocation7 + $0x2f8] sm:$0xf0] }
 0x131   :  { %2231 = vmatpush.bf16.msrb.mxu2 %v6909_v51  ;;  %2245 = vmatpush.bf16.msrb.mxu3 %v7037_v52  ;;  %v7469_v51 = vor.u32 %v9857_v40, %v7468_v39  ;;  %v7597_v52 = vor.u32 %v9889_v46, %v7596_v45  ;;  %v7025_v39 = vor.u32 %v9743_v24, %v7022_v25  ;;  %v9739_v45 = vld [vmem:[#allocation7 + $0x2cc] sm:$0xf]  ;;  %v7006_v46 = vld [vmem:[#allocation7 + $0x2d8] sm:$0xf0] }
 0x132   :  { %v7153_v40 = vor.u32 %v9775_v30, %v7150_v31  ;;  %v7086_v24 = vld [vmem:[#allocation7 + $0x378] sm:$0xf0]  ;;  %v9803_v25 = vld [vmem:[#allocation7 + $0x4cc] sm:$0xf] }
 0x133   :  { %v7262_v31 = vld [vmem:[#allocation7 + $0x4d8] sm:$0xf0] }
 0x134   :  { %2256 = vmatpush.bf16.msra.mxu0 %v7213_v53  ;;  %2270 = vmatpush.bf16.msra.mxu1 %v7341_v54  ;;  %v7452_v53 = vld [vmem:[#allocation7 + $0x648] sm:$0xf]  ;;  %v9853_v54 = vld [vmem:[#allocation7 + $0x654] sm:$0xf0] }
 0x135   :  { %2280 = vmatpush.bf16.msra.mxu2 %v7533_v57  ;;  %2294 = vmatpush.bf16.msra.mxu3 %v7661_v9  ;;  %v7580_v57 = vld [vmem:[#allocation7 + $0x748] sm:$0xf]  ;;  %v9885_v9 = vld [vmem:[#allocation7 + $0x754] sm:$0xf0]  ;;  %v7453_v12 = vor.u32 %v9853_v54, %v7452_v53  ;;  %v7009_v53 = vor.u32 %v9739_v45, %v7006_v46  ;;  %v7137_v54 = vor.u32 %v9771_v47, %v7134_v48  ;;  %v7070_v45 = vld [vmem:[#allocation7 + $0x358] sm:$0xf0] }
 0x136   :  { %2232 = vmatmul.bf16.vlgmr.msrb.gmra.mxu2 %v10874_v28  ;;  %2246 = vmatmul.bf16.vlgmr.msrb.gmra.mxu3 %v10876_v29  ;;  %v7581_v62 = vor.u32 %v9885_v9, %v7580_v57  ;;  %v9735_v57 = vld [vmem:[#allocation7 + $0x2ac] sm:$0xf]  ;;  %v6990_v9 = vld [vmem:[#allocation7 + $0x2b8] sm:$0xf0] }
 0x137   :  { %v9799_v46 = vld [vmem:[#allocation7 + $0x4ac] sm:$0xf] }
 0x138   :  { %2257 = vmatpush.bf16.msra.mxu0 %v7197_v63  ;;  %2271 = vmatpush.bf16.msra.mxu1 %v7325_v0  ;;  %v7436_v63 = vld [vmem:[#allocation7 + $0x628] sm:$0xf]  ;;  %v9849_v0 = vld [vmem:[#allocation7 + $0x634] sm:$0xf0] }
 0x139   :  { %2281 = vmatpush.bf16.msra.mxu2 %v7517_v4  ;;  %2295 = vmatpush.bf16.msra.mxu3 %v7645_v5  ;;  %v7564_v4 = vld [vmem:[#allocation7 + $0x728] sm:$0xf]  ;;  %v9881_v5 = vld [vmem:[#allocation7 + $0x734] sm:$0xf0]  ;;  %v7437_v11 = vor.u32 %v9849_v0, %v7436_v63  ;;  %v6654_v63 = vld [vmem:[#allocation7 + $0x18] sm:$0xf0] }
 0x13a   :  { %v7565_v13 = vor.u32 %v9881_v5, %v7564_v4  ;;  %v9683_v0 = vld [vmem:[#allocation7 + $0x10c] sm:$0xf]  ;;  %v6782_v4 = vld [vmem:[#allocation7 + $0x118] sm:$0xf0] }
 0x13b   :  { %v9731_v5 = vld [vmem:[#allocation7 + $0x28c] sm:$0xf] }
 0x13c   :  { %2258 = vmatpush.bf16.msra.mxu0 %v7181_v14  ;;  %2272 = vmatpush.bf16.msra.mxu1 %v7309_v15  ;;  %v7420_v14 = vld [vmem:[#allocation7 + $0x608] sm:$0xf]  ;;  %v9845_v15 = vld [vmem:[#allocation7 + $0x614] sm:$0xf0] }
 0x13d   :  { %2282 = vmatpush.bf16.msra.mxu2 %v7501_v19  ;;  %2296 = vmatpush.bf16.msra.mxu3 %v7629_v20  ;;  %v9877_v19 = vld [vmem:[#allocation7 + $0x714] sm:$0xf0]  ;;  %v9663_v20 = vld [vmem:[#allocation7 + $0x6c] sm:$0xf]  ;;  %v7421_v32 = vor.u32 %v9845_v15, %v7420_v14  ;;  %v7406_v14 = vld [vmem:[#allocation7 + $0x5f8] sm:$0xf0] }
 0x13e   :  { %v7549_v33 = vor.u32 %v9877_v19, %v7548_v16  ;;  %v6785_v16 = vor.u32 %v9683_v0, %v6782_v4  ;;  %v9727_v19 = vld [vmem:[#allocation7 + $0x26c] sm:$0xf] }
 0x13f   :  { %v10906_v60 = vpop.f32.mrf.mxu0  ;;  %v10908_v30 = vpop.f32.mrf.mxu1  ;;  %v9715_v0 = vld [vmem:[#allocation7 + $0x20c] sm:$0xf] }
 0x140   :  { %2259 = vmatpush.bf16.msra.mxu0 %v7165_v34  ;;  %2273 = vmatpush.bf16.msra.mxu1 %v7293_v35  ;;  %v6705_v34 = vor.u32 %v9663_v20, %v6702_v21  ;;  %v6833_v35 = vor.u32 %v9695_v22, %v6830_v23  ;;  %v6958_v20 = vld [vmem:[#allocation7 + $0x278] sm:$0xf0]  ;;  %v9759_v23 = vld [vmem:[#allocation7 + $0x36c] sm:$0xf] }
 0x141   :  { %2283 = vmatpush.bf16.msra.mxu2 %v7485_v37  ;;  %2297 = vmatpush.bf16.msra.mxu3 %v7613_v38  ;;  %v9659_v37 = vld [vmem:[#allocation7 + $0x4c] sm:$0xf]  ;;  %v6686_v38 = vld [vmem:[#allocation7 + $0x58] sm:$0xf0] }
 0x142   :  { %v6689_v49 = vor.u32 %v9659_v37, %v6686_v38  ;;  %v9723_v37 = vld [vmem:[#allocation7 + $0x24c] sm:$0xf]  ;;  %v6942_v38 = vld [vmem:[#allocation7 + $0x258] sm:$0xf0] }
 0x143   :  { %2260 = vmatmul.bf16.vlgmr.msra.gmra.mxu0 %v10870_v26  ;;  %2274 = vmatmul.bf16.vlgmr.msra.gmra.mxu1 %v10872_v27 }
 0x144   :  { %2308 = vmatpush.bf16.msrb.mxu0 %v6769_v43  ;;  %2322 = vmatpush.bf16.msrb.mxu1 %v6897_v44  ;;  %v9691_v43 = vld [vmem:[#allocation7 + $0x14c] sm:$0xf]  ;;  %v6814_v44 = vld [vmem:[#allocation7 + $0x158] sm:$0xf0] }
 0x145   :  { %2284 = vmatpush.bf16.msra.mxu2 %v7469_v51  ;;  %2298 = vmatpush.bf16.msra.mxu3 %v7597_v52  ;;  %v6817_v50 = vor.u32 %v9691_v43, %v6814_v44  ;;  %v9655_v51 = vld [vmem:[#allocation7 + $0x2c] sm:$0xf]  ;;  %v6670_v52 = vld [vmem:[#allocation7 + $0x38] sm:$0xf0] }
 0x146   :  { %v6673_v61 = vor.u32 %v9655_v51, %v6670_v52  ;;  %v9755_v44 = vld [vmem:[#allocation7 + $0x34c] sm:$0xf]  ;;  %v7374_v51 = vld [vmem:[#allocation7 + $0x5b8] sm:$0xf0]  ;;  %v6945_v52 = vor.u32 %v9723_v37, %v6942_v38 }
 0x147   :  { %v7518_v37 = vld [vmem:[#allocation7 + $0x6d8] sm:$0xf0]  ;;  %v9899_v38 = vld [vmem:[#allocation7 + $0x7cc] sm:$0xf] }
 0x148   :  { %2309 = vmatpush.bf16.msrb.mxu0 %v6753_v55  ;;  %2323 = vmatpush.bf16.msrb.mxu1 %v6881_v56  ;;  %v9687_v55 = vld [vmem:[#allocation7 + $0x12c] sm:$0xf]  ;;  %v6798_v56 = vld [vmem:[#allocation7 + $0x138] sm:$0xf0] }
 0x149   :  { %2285 = vmatpush.bf16.msra.mxu2 %v7453_v12  ;;  %2299 = vmatpush.bf16.msra.mxu3 %v7581_v62  ;;  %v6801_v12 = vor.u32 %v9687_v55, %v6798_v56  ;;  %v9651_v62 = vld [vmem:[#allocation7 + $0xc] sm:$0xf]  ;;  %v6926_v55 = vld [vmem:[#allocation7 + $0x238] sm:$0xf0] }
 0x14a   :  { %v6657_v15 = vor.u32 %v9651_v62, %v6654_v63 }
 0x14c   :  { %2310 = vmatpush.bf16.msrb.mxu0 %v6737_v1  ;;  %2324 = vmatpush.bf16.msrb.mxu1 %v6865_v3  ;;  %v6993_v1 = vor.u32 %v9735_v57, %v6990_v9  ;;  %v7121_v3 = vor.u32 %v9767_v58, %v7118_v59  ;;  %v9751_v9 = vld [vmem:[#allocation7 + $0x32c] sm:$0xf]  ;;  %v7054_v58 = vld [vmem:[#allocation7 + $0x338] sm:$0xf0] }
 0x14d   :  { %2286 = vmatpush.bf16.msra.mxu2 %v7437_v11  ;;  %2300 = vmatpush.bf16.msra.mxu3 %v7565_v13  ;;  %v7278_v11 = vld [vmem:[#allocation7 + $0x4f8] sm:$0xf0]  ;;  %v9839_v13 = vld [vmem:[#allocation7 + $0x5ec] sm:$0xf]  ;;  %v7057_v63 = vor.u32 %v9751_v9, %v7054_v58  ;;  %v10930_v9 = vld [vmem:[#allocation8] sm:$0xf] }
 0x14e   :  { %v7281_v21 = vor.u32 %v9807_v10, %v7278_v11  ;;  %v7409_v22 = vor.u32 %v9839_v13, %v7406_v14  ;;  %v9795_v59 = vld [vmem:[#allocation7 + $0x48c] sm:$0xf]  ;;  %v7342_v11 = vld [vmem:[#allocation7 + $0x578] sm:$0xf0] }
 0x14f   :  { %v9823_v10 = vld [vmem:[#allocation7 + $0x56c] sm:$0xf] }
 0x150   :  { %2311 = vmatpush.bf16.msrb.mxu0 %v6721_v17  ;;  %2325 = vmatpush.bf16.msrb.mxu1 %v6849_v18  ;;  %v6977_v17 = vor.u32 %v9731_v5, %v6974_v6  ;;  %v7105_v18 = vor.u32 %v9763_v7, %v7102_v8  ;;  %v7038_v6 = vld [vmem:[#allocation7 + $0x318] sm:$0xf0]  ;;  %v9791_v7 = vld [vmem:[#allocation7 + $0x46c] sm:$0xf] }
 0x151   :  { %2287 = vmatpush.bf16.msra.mxu2 %v7421_v32  ;;  %2301 = vmatpush.bf16.msra.mxu3 %v7549_v33  ;;  %v9835_v32 = vld [vmem:[#allocation7 + $0x5cc] sm:$0xf]  ;;  %v7390_v33 = vld [vmem:[#allocation7 + $0x5d8] sm:$0xf0] }
 0x152   :  { %v7393_v43 = vor.u32 %v9835_v32, %v7390_v33  ;;  %v7214_v8 = vld [vmem:[#allocation7 + $0x478] sm:$0xf0]  ;;  %v9871_v13 = vld [vmem:[#allocation7 + $0x6ec] sm:$0xf] }
 0x153   :  { %v9819_v33 = vld [vmem:[#allocation7 + $0x54c] sm:$0xf] }
 0x154   :  { %2312 = vmatpush.bf16.msrb.mxu0 %v6705_v34  ;;  %2326 = vmatpush.bf16.msrb.mxu1 %v6833_v35  ;;  %v6961_v34 = vor.u32 %v9727_v19, %v6958_v20  ;;  %v7089_v35 = vor.u32 %v9759_v23, %v7086_v24  ;;  %v7345_v23 = vor.u32 %v9823_v10, %v7342_v11  ;;  %v9787_v24 = vld [vmem:[#allocation7 + $0x44c] sm:$0xf]  ;;  %v7968_v10 = vld [vmem:[#allocation10 + $0x258] sm:$0xf]  ;;  %v9983_v11 = vld [vmem:[#allocation10 + $0x268] sm:$0xf0] }
 0x155   :  { %2336 = vmatpush.bf16.msrb.mxu2 %v7025_v39  ;;  %2350 = vmatpush.bf16.msrb.mxu3 %v7153_v40  ;;  %v10910_v39 = vpop.f32.mrf.mxu0  ;;  %v7265_v40 = vor.u32 %v9803_v25, %v7262_v31  ;;  %v10912_v47 = vpop.f32.mrf.mxu2  ;;  %v7198_v25 = vld [vmem:[#allocation7 + $0x458] sm:$0xf0] }
 0x156   :  { %2288 = vmatmul.bf16.vlgmr.msra.gmra.mxu2 %v10884_v41  ;;  %2302 = vmatmul.bf16.vlgmr.msra.gmra.mxu3 %v10886_v42  ;;  %v10914_v48 = vpop.f32.mrf.mxu3 }
 0x158   :  { %2313 = vmatpush.bf16.msrb.mxu0 %v6689_v49  ;;  %2327 = vmatpush.bf16.msrb.mxu1 %v6817_v50  ;;  %v7246_v49 = vld [vmem:[#allocation7 + $0x4b8] sm:$0xf0]  ;;  %v9831_v50 = vld [vmem:[#allocation7 + $0x5ac] sm:$0xf] }
 0x159   :  { %2337 = vmatpush.bf16.msrb.mxu2 %v7009_v53  ;;  %2351 = vmatpush.bf16.msrb.mxu3 %v7137_v54  ;;  %v7073_v53 = vor.u32 %v9755_v44, %v7070_v45  ;;  %v9719_v54 = vld [vmem:[#allocation7 + $0x22c] sm:$0xf]  ;;  %v7249_v56 = vor.u32 %v9799_v46, %v7246_v49  ;;  %v7377_v57 = vor.u32 %v9831_v50, %v7374_v51  ;;  %v7182_v46 = vld [vmem:[#allocation7 + $0x438] sm:$0xf0] }
 0x15a   :  { %v6929_v62 = vor.u32 %v9719_v54, %v6926_v55  ;;  %v9783_v45 = vld [vmem:[#allocation7 + $0x42c] sm:$0xf]  ;;  %v7502_v55 = vld [vmem:[#allocation7 + $0x6b8] sm:$0xf0] }
 0x15b   :  { %v9863_v54 = vld [vmem:[#allocation7 + $0x6ac] sm:$0xf] }
 0x15c   :  { %2314 = vmatpush.bf16.msrb.mxu0 %v6673_v61  ;;  %2328 = vmatpush.bf16.msrb.mxu1 %v6801_v12  ;;  %v7230_v61 = vld [vmem:[#allocation7 + $0x498] sm:$0xf0] }
 0x15d   :  { %2338 = vmatpush.bf16.msrb.mxu2 %v6993_v1  ;;  %2352 = vmatpush.bf16.msrb.mxu3 %v7121_v3  ;;  %v7358_v12 = vld [vmem:[#allocation7 + $0x598] sm:$0xf0]  ;;  %v9747_v3 = vld [vmem:[#allocation7 + $0x30c] sm:$0xf]  ;;  %v7233_v4 = vor.u32 %v9795_v59, %v7230_v61  ;;  %v10920_v14 = vpop.f32.mrf.mxu0  ;;  %v7185_v59 = vor.u32 %v9783_v45, %v7182_v46 }
 0x15e   :  { %v6910_v1 = vld [vmem:[#allocation7 + $0x218] sm:$0xf0]  ;;  %v10924_v19 = vpop.f32.mrf.mxu3  ;;  %v9851_v45 = vld [vmem:[#allocation7 + $0x64c] sm:$0xf] }
 0x15f   :  { %v6913_v20 = vor.u32 %v9715_v0, %v6910_v1  ;;  %v7294_v1 = vld [vmem:[#allocation7 + $0x518] sm:$0xf0] }
 0x160   :  { %2315 = vmatpush.bf16.msrb.mxu0 %v6657_v15  ;;  %2329 = vmatpush.bf16.msrb.mxu1 %v6785_v16  ;;  %v7534_v15 = vld [vmem:[#allocation7 + $0x6f8] sm:$0xf0]  ;;  %v9903_v16 = vld [vmem:[#allocation7 + $0x7ec] sm:$0xf] }
 0x161   :  { %2339 = vmatpush.bf16.msrb.mxu2 %v6977_v17  ;;  %2353 = vmatpush.bf16.msrb.mxu3 %v7105_v18  ;;  %v7662_v17 = vld [vmem:[#allocation7 + $0x7f8] sm:$0xf0]  ;;  %v10922_v18 = vpop.f32.mrf.mxu2  ;;  %v7537_v31 = vor.u32 %v9871_v13, %v7534_v15  ;;  %v684_v13 = vperm.slane %v10930_v9, 0 }
 0x162   :  { %v7665_v32 = vor.u32 %v9903_v16, %v7662_v17  ;;  %v7454_v46 = vld [vmem:[#allocation7 + $0x658] sm:$0xf0] }
 0x163   :  { %2316 = vmatmul.bf16.vlgmr.msrb.gmra.mxu0 %v10860_v36  ;;  %2330 = vmatmul.bf16.vlgmr.msrb.gmra.mxu1 %v10862_v2  ;;  %v9827_v36 = vld [vmem:[#allocation7 + $0x58c] sm:$0xf]  ;;  %v10918_v2 = vpop.f32.mrf.mxu1 }
 0x164   :  { %2364 = vmatpush.bf16.msra.mxu0 %v7281_v21  ;;  %2378 = vmatpush.bf16.msra.mxu1 %v7409_v22  ;;  %v7361_v5 = vor.u32 %v9827_v36, %v7358_v12  ;;  %v7041_v21 = vor.u32 %v9747_v3, %v7038_v6  ;;  %v7217_v22 = vor.u32 %v9791_v7, %v7214_v8  ;;  %v9779_v36 = vld [vmem:[#allocation7 + $0x40c] sm:$0xf]  ;;  %v7166_v12 = vld [vmem:[#allocation7 + $0x418] sm:$0xf0]  ;;  %v9943_v8 = vld [vmem:[#allocation10 + $0x128] sm:$0xf0] }
 0x165   :  { %2340 = vmatpush.bf16.msrb.mxu2 %v6961_v34  ;;  %2354 = vmatpush.bf16.msrb.mxu3 %v7089_v35  ;;  %v7326_v34 = vld [vmem:[#allocation7 + $0x558] sm:$0xf0]  ;;  %v9867_v35 = vld [vmem:[#allocation7 + $0x6cc] sm:$0xf]  ;;  %v10932_v58 = vpop.f32.mrf.mxu0  ;;  %v7169_v15 = vor.u32 %v9779_v36, %v7166_v12 }
 0x166   :  { %v7329_v44 = vor.u32 %v9819_v33, %v7326_v34  ;;  %v7521_v50 = vor.u32 %v9867_v35, %v7518_v37  ;;  %v10936_v0 = vpop.f32.mrf.mxu3  ;;  %v9859_v3 = vld [vmem:[#allocation7 + $0x68c] sm:$0xf]  ;;  %v7614_v6 = vld [vmem:[#allocation7 + $0x798] sm:$0xf0]  ;;  %v1984_v33 = vadd.f32 %v10910_v39, %v684_v13  ;;  %v9938_v35 = vld [vmem:[#allocation10 + $0x100] sm:$0xf0] }
 0x167   :  { %v7808_v7 = vld [vmem:[#allocation10 + $0x118] sm:$0xf]  ;;  %v7948_v37 = vld [vmem:[#allocation10 + $0x230] sm:$0xf] }
 0x168   :  { %2365 = vmatpush.bf16.msra.mxu0 %v7265_v40  ;;  %2379 = vmatpush.bf16.msra.mxu1 %v7393_v43  ;;  %v7646_v40 = vld [vmem:[#allocation7 + $0x7d8] sm:$0xf0]  ;;  %v7201_v43 = vor.u32 %v9787_v24, %v7198_v25  ;;  %v7969_v24 = vor.u32 %v9983_v11, %v7968_v10  ;;  %v9887_v25 = vld [vmem:[#allocation7 + $0x76c] sm:$0xf] }
 0x169   :  { %2341 = vmatpush.bf16.msrb.mxu2 %v6945_v52  ;;  %2355 = vmatpush.bf16.msrb.mxu3 %v7073_v53  ;;  %v7649_v51 = vor.u32 %v9899_v38, %v7646_v40  ;;  %v9815_v52 = vld [vmem:[#allocation7 + $0x52c] sm:$0xf]  ;;  %v7310_v53 = vld [vmem:[#allocation7 + $0x538] sm:$0xf0]  ;;  %v9978_v38 = vld [vmem:[#allocation10 + $0x240] sm:$0xf0]  ;;  %v1982_v40 = vadd.f32 %v10906_v60, %v684_v13 }
 0x16a   :  { %v7313_v61 = vor.u32 %v9815_v52, %v7310_v53  ;;  %v9883_v52 = vld [vmem:[#allocation7 + $0x74c] sm:$0xf]  ;;  %v7582_v53 = vld [vmem:[#allocation7 + $0x758] sm:$0xf0] }
 0x16b   :  { %v10926_v49 = vpop.f32.mrf.mxu1  ;;  %v1996_v36 = vadd.f32 %v10908_v30, %v1982_v40  ;;  %v9968_v30 = vld [vmem:[#allocation10 + $0x1f0] sm:$0xf0]  ;;  %v9843_v13 = vld [vmem:[#allocation7 + $0x60c] sm:$0xf] }
 0x16c   :  { %2366 = vmatpush.bf16.msra.mxu0 %v7249_v56  ;;  %2380 = vmatpush.bf16.msra.mxu1 %v7377_v57  ;;  %v9895_v56 = vld [vmem:[#allocation7 + $0x7ac] sm:$0xf]  ;;  %v7630_v57 = vld [vmem:[#allocation7 + $0x7b8] sm:$0xf0] }
 0x16d   :  { %2342 = vmatpush.bf16.msrb.mxu2 %v6929_v62  ;;  %2356 = vmatpush.bf16.msrb.mxu3 %v7057_v63  ;;  %v9811_v62 = vld [vmem:[#allocation7 + $0x50c] sm:$0xf]  ;;  %v10934_v63 = vpop.f32.mrf.mxu2 }
 0x16e   :  { %v7297_v16 = vor.u32 %v9811_v62, %v7294_v1  ;;  %v7457_v62 = vor.u32 %v9851_v45, %v7454_v46  ;;  %v9918_v45 = vld [vmem:[#allocation10 + $0x60] sm:$0xf0]  ;;  %v7868_v46 = vld [vmem:[#allocation10 + $0x190] sm:$0xf] }
 0x170   :  { %2367 = vmatpush.bf16.msra.mxu0 %v7233_v4  ;;  %2381 = vmatpush.bf16.msra.mxu1 %v7361_v5  ;;  %v7486_v4 = vld [vmem:[#allocation7 + $0x698] sm:$0xf0]  ;;  %v9891_v5 = vld [vmem:[#allocation7 + $0x78c] sm:$0xf] }
 0x171   :  { %2343 = vmatpush.bf16.msrb.mxu2 %v6913_v20  ;;  %2357 = vmatpush.bf16.msrb.mxu3 %v7041_v21  ;;  %v7489_v17 = vor.u32 %v9859_v3, %v7486_v4  ;;  %v7617_v20 = vor.u32 %v9891_v5, %v7614_v6  ;;  %v9855_v21 = vld [vmem:[#allocation7 + $0x66c] sm:$0xf]  ;;  %v7566_v4 = vld [vmem:[#allocation7 + $0x738] sm:$0xf0]  ;;  %v2010_v5 = vadd.f32 %v10912_v47, %v1996_v36  ;;  %v9928_v6 = vld [vmem:[#allocation10 + $0xb0] sm:$0xf0] }
 0x173   :  { %v10940_v34 = vpop.f32.mrf.mxu1  ;;  %v2024_v47 = vadd.f32 %v10914_v48, %v2010_v5  ;;  %v7708_v48 = vld [vmem:[#allocation10 + $0x50] sm:$0xf] }
 0x174   :  { %2368 = vmatpush.bf16.msra.mxu0 %v7217_v22  ;;  %2382 = vmatpush.bf16.msra.mxu1 %v7345_v23  ;;  %v7470_v22 = vld [vmem:[#allocation7 + $0x678] sm:$0xf0]  ;;  %v7809_v23 = vor.u32 %v9943_v8, %v7808_v7  ;;  %v7908_v7 = vld [vmem:[#allocation10 + $0x1e0] sm:$0xf] }
 0x175   :  { %2392 = vmatpush.bf16.msra.mxu2 %v7537_v31  ;;  %2406 = vmatpush.bf16.msra.mxu3 %v7665_v32  ;;  %v7598_v31 = vld [vmem:[#allocation7 + $0x778] sm:$0xf0]  ;;  %v7788_v32 = vld [vmem:[#allocation10 + $0xf0] sm:$0xf]  ;;  %v10946_v60 = vpop.f32.mrf.mxu2 }
 0x176   :  { %2344 = vmatmul.bf16.vlgmr.msrb.gmra.mxu2 %v10874_v28  ;;  %2358 = vmatmul.bf16.vlgmr.msrb.gmra.mxu3 %v10876_v29  ;;  %v7505_v28 = vor.u32 %v9863_v54, %v7502_v55  ;;  %v7633_v29 = vor.u32 %v9895_v56, %v7630_v57  ;;  %v7789_v39 = vor.u32 %v9938_v35, %v7788_v32  ;;  %v7768_v54 = vld [vmem:[#allocation10 + $0xc8] sm:$0xf]  ;;  %v10948_v56 = vpop.f32.mrf.mxu3  ;;  %v9933_v57 = vld [vmem:[#allocation10 + $0xd8] sm:$0xf0]  ;;  %v685_v32 = vperm.slane %v10930_v9, 1 }
 0x177   :  { %v1998_v55 = vadd.f32 %v10918_v2, %v1984_v33  ;;  %v9847_v2 = vld [vmem:[#allocation7 + $0x62c] sm:$0xf]  ;;  %v7769_v1 = vor.u32 %v9933_v57, %v7768_v54  ;;  %v7709_v54 = vor.u32 %v9918_v45, %v7708_v48 }
 0x178   :  { %2369 = vmatpush.bf16.msra.mxu0 %v7201_v43  ;;  %2383 = vmatpush.bf16.msra.mxu1 %v7329_v44  ;;  %v7473_v43 = vor.u32 %v9855_v21, %v7470_v22  ;;  %v7601_v44 = vor.u32 %v9887_v25, %v7598_v31  ;;  %v7550_v21 = vld [vmem:[#allocation7 + $0x718] sm:$0xf0]  ;;  %v9963_v25 = vld [vmem:[#allocation10 + $0x1c8] sm:$0xf0]  ;;  %v7688_v57 = vld [vmem:[#allocation10 + $0x28] sm:$0xf] }
 0x179   :  { %2393 = vmatpush.bf16.msra.mxu2 %v7521_v50  ;;  %2407 = vmatpush.bf16.msra.mxu3 %v7649_v51  ;;  %v10943_v50 = vpop.f32.mrf.mxu0  ;;  %v7949_v51 = vor.u32 %v9978_v38, %v7948_v37  ;;  %v2012_v12 = vadd.f32 %v10922_v18, %v1998_v55  ;;  %v7728_v22 = vld [vmem:[#allocation10 + $0x78] sm:$0xf] }
 0x17b   :  { %v2026_v18 = vadd.f32 %v10924_v19, %v2012_v12  ;;  %v2107_v8 = vpop.f32.mrf.mxu1  ;;  %v9913_v12 = vld [vmem:[#allocation10 + $0x38] sm:$0xf0] }
 0x17c   :  { %2370 = vmatpush.bf16.msra.mxu0 %v7185_v59  ;;  %2384 = vmatpush.bf16.msra.mxu1 %v7313_v61  ;;  %v7928_v59 = vld [vmem:[#allocation10 + $0x208] sm:$0xf]  ;;  %v9973_v61 = vld [vmem:[#allocation10 + $0x218] sm:$0xf0] }
 0x17d   :  { %2394 = vmatpush.bf16.msra.mxu2 %v7505_v28  ;;  %2408 = vmatpush.bf16.msra.mxu3 %v7633_v29  ;;  %v7585_v28 = vor.u32 %v9883_v52, %v7582_v53  ;;  %v7438_v29 = vld [vmem:[#allocation7 + $0x638] sm:$0xf0]  ;;  %v7929_v3 = vor.u32 %v9973_v61, %v7928_v59  ;;  %v2040_v31 = vadd.f32 %v10932_v58, %v2026_v18  ;;  %v2121_v33 = vpop.f32.mrf.mxu2  ;;  %v10023_v53 = vld [vmem:[#allocation10 + $0x3a8] sm:$0xf0] }
 0x17e   :  { %v7441_v10 = vor.u32 %v9847_v2, %v7438_v29  ;;  %v10959_v35 = vpop.f32.mrf.mxu3  ;;  %v2094_v58 = vadd.f32 %v10943_v50, %v685_v32  ;;  %v8128_v52 = vld [vmem:[#allocation10 + $0x398] sm:$0xf]  ;;  %v9953_v50 = vld [vmem:[#allocation10 + $0x178] sm:$0xf0] }
 0x17f   :  { %v8129_v59 = vor.u32 %v10023_v53, %v8128_v52  ;;  %v9971_v52 = vld [vmem:[#allocation10 + $0x20c] sm:$0xf] }
 0x180   :  { %2371 = vmatpush.bf16.msra.mxu0 %v7169_v15  ;;  %2385 = vmatpush.bf16.msra.mxu1 %v7297_v16  ;;  %v7422_v15 = vld [vmem:[#allocation7 + $0x618] sm:$0xf0] }
 0x181   :  { %2395 = vmatpush.bf16.msra.mxu2 %v7489_v17  ;;  %2409 = vmatpush.bf16.msra.mxu3 %v7617_v20  ;;  %v7909_v17 = vor.u32 %v9968_v30, %v7908_v7  ;;  %v9875_v20 = vld [vmem:[#allocation7 + $0x70c] sm:$0xf]  ;;  %v2095_v19 = vpop.f32.mrf.mxu0  ;;  %v7425_v37 = vor.u32 %v9843_v13, %v7422_v15  ;;  %v7828_v7 = vld [vmem:[#allocation10 + $0x140] sm:$0xf]  ;;  %v9941_v30 = vld [vmem:[#allocation10 + $0x11c] sm:$0xf] }
 0x182   :  { %v7553_v38 = vor.u32 %v9875_v20, %v7550_v21  ;;  %v2096_v29 = vadd.f32 %v2095_v19, %v685_v32  ;;  %v8088_v15 = vld [vmem:[#allocation10 + $0x348] sm:$0xf]  ;;  %v9976_v32 = vld [vmem:[#allocation10 + $0x234] sm:$0xf] }
 0x183   :  { %2372 = vmatmul.bf16.vlgmr.msra.gmra.mxu0 %v10870_v26  ;;  %2386 = vmatmul.bf16.vlgmr.msra.gmra.mxu1 %v10872_v27  ;;  %v9879_v26 = vld [vmem:[#allocation7 + $0x72c] sm:$0xf]  ;;  %v7748_v27 = vld [vmem:[#allocation10 + $0xa0] sm:$0xf] }
 0x184   :  { %3468 = vmatpush.bf16.msrb.mxu0 %v7809_v23  ;;  %3482 = vmatpush.bf16.msrb.mxu1 %v7969_v24  ;;  %v7569_v11 = vor.u32 %v9879_v26, %v7566_v4  ;;  %v7749_v16 = vor.u32 %v9928_v6, %v7748_v27  ;;  %v9923_v23 = vld [vmem:[#allocation10 + $0x88] sm:$0xf0]  ;;  %v7888_v24 = vld [vmem:[#allocation10 + $0x1b8] sm:$0xf]  ;;  %v9908_v4 = vld [vmem:[#allocation10 + $0x10] sm:$0xf0] }
 0x185   :  { %2396 = vmatpush.bf16.msra.mxu2 %v7473_v43  ;;  %2410 = vmatpush.bf16.msra.mxu3 %v7601_v44  ;;  %v7729_v40 = vor.u32 %v9923_v23, %v7728_v22  ;;  %v7889_v43 = vor.u32 %v9963_v25, %v7888_v24  ;;  %v2038_v44 = vadd.f32 %v10920_v14, %v2024_v47  ;;  %v2109_v14 = vpop.f32.mrf.mxu1  ;;  %v2123_v6 = vpop.f32.mrf.mxu2  ;;  %v9936_v24 = vld [vmem:[#allocation10 + $0xf4] sm:$0xf] }
 0x186   :  { %v2110_v13 = vadd.f32 %v2109_v14, %v2096_v29 }
 0x187   :  { %v2052_v61 = vadd.f32 %v10926_v49, %v2038_v44  ;;  %v7689_v49 = vor.u32 %v9913_v12, %v7688_v57  ;;  %v10003_v57 = vld [vmem:[#allocation10 + $0x308] sm:$0xf0] }
 0x188   :  { %3469 = vmatpush.bf16.msrb.mxu0 %v7789_v39  ;;  %3483 = vmatpush.bf16.msrb.mxu1 %v7949_v51  ;;  %v9958_v39 = vld [vmem:[#allocation10 + $0x1a0] sm:$0xf0]  ;;  %v2054_v51 = vadd.f32 %v10940_v34, %v2040_v31  ;;  %v2108_v34 = vadd.f32 %v2107_v8, %v2094_v58  ;;  %v9981_v8 = vld [vmem:[#allocation10 + $0x25c] sm:$0xf]  ;;  %v2124_v19 = vadd.f32 %v2123_v6, %v2110_v13  ;;  %v7790_v31 = vld [vmem:[#allocation10 + $0x104] sm:$0xf0] }
 0x189   :  { %2397 = vmatpush.bf16.msra.mxu2 %v7457_v62  ;;  %2411 = vmatpush.bf16.msra.mxu3 %v7585_v28  ;;  %v7869_v55 = vor.u32 %v9958_v39, %v7868_v46  ;;  %v7848_v62 = vld [vmem:[#allocation10 + $0x168] sm:$0xf]  ;;  %v2149_v28 = vpop.f32.mrf.mxu0  ;;  %v2066_v2 = vadd.f32 %v10934_v63, %v2052_v61  ;;  %v7810_v63 = vld [vmem:[#allocation10 + $0x12c] sm:$0xf0]  ;;  %v9931_v58 = vld [vmem:[#allocation10 + $0xcc] sm:$0xf] }
 0x18a   :  { %v2068_v36 = vadd.f32 %v10946_v60, %v2054_v51  ;;  %v7849_v26 = vor.u32 %v9953_v50, %v7848_v62  ;;  %v7668_v60 = vld [vmem:[#allocation10] sm:$0xf]  ;;  %v2122_v18 = vadd.f32 %v2121_v33, %v2108_v34  ;;  %v7813_v47 = vor.u32 %v9941_v30, %v7810_v63  ;;  %v9926_v62 = vld [vmem:[#allocation10 + $0xa4] sm:$0xf]  ;;  %v7730_v6 = vld [vmem:[#allocation10 + $0x8c] sm:$0xf0] }
 0x18b   :  { %v7770_v51 = vld [vmem:[#allocation10 + $0xdc] sm:$0xf0]  ;;  %v9966_v34 = vld [vmem:[#allocation10 + $0x1e4] sm:$0xf]  ;;  %v7890_v30 = vld [vmem:[#allocation10 + $0x1cc] sm:$0xf0] }
 0x18c   :  { %3470 = vmatpush.bf16.msrb.mxu0 %v7769_v1  ;;  %3484 = vmatpush.bf16.msrb.mxu1 %v7929_v3  ;;  %v8108_v1 = vld [vmem:[#allocation10 + $0x370] sm:$0xf]  ;;  %v10018_v3 = vld [vmem:[#allocation10 + $0x380] sm:$0xf0]  ;;  %v2082_v5 = vadd.f32 %v10948_v56, %v2068_v36  ;;  %v2136_v25 = vadd.f32 %v10959_v35, %v2122_v18  ;;  %v7793_v35 = vor.u32 %v9936_v24, %v7790_v31  ;;  %v8008_v18 = vld [vmem:[#allocation10 + $0x2a8] sm:$0xf] }
 0x18d   :  { %2398 = vmatpush.bf16.msra.mxu2 %v7441_v10  ;;  %2412 = vmatpush.bf16.msra.mxu3 %v7569_v11  ;;  %v8109_v27 = vor.u32 %v10018_v3, %v8108_v1  ;;  %v7970_v10 = vld [vmem:[#allocation10 + $0x26c] sm:$0xf0]  ;;  %v2080_v11 = vadd.f32 %v10936_v0, %v2066_v2  ;;  %v2163_v22 = vpop.f32.mrf.mxu1  ;;  %v7950_v0 = vld [vmem:[#allocation10 + $0x244] sm:$0xf0]  ;;  %v7773_v36 = vor.u32 %v9931_v58, %v7770_v51  ;;  %v7910_v2 = vld [vmem:[#allocation10 + $0x1f4] sm:$0xf0] }
 0x18e   :  { %v2424_v21 = vmax.f32 %v2082_v5, 0.0  ;;  %v7973_v23 = vor.u32 %v9981_v8, %v7970_v10  ;;  %v7953_v39 = vor.u32 %v9976_v32, %v7950_v0  ;;  %v8028_v1 = vld [vmem:[#allocation10 + $0x2d0] sm:$0xf]  ;;  %v9998_v3 = vld [vmem:[#allocation10 + $0x2e0] sm:$0xf0] }
 0x18f   :  { %v2420_v33 = vmax.f32 %v2080_v11, 0.0  ;;  %v9921_v5 = vld [vmem:[#allocation10 + $0x7c] sm:$0xf]  ;;  %v9911_v32 = vld [vmem:[#allocation10 + $0x2c] sm:$0xf] }
 0x190   :  { %3471 = vmatpush.bf16.msrb.mxu0 %v7749_v16  ;;  %3485 = vmatpush.bf16.msrb.mxu1 %v7909_v17  ;;  %v10013_v16 = vld [vmem:[#allocation10 + $0x358] sm:$0xf0]  ;;  %v7669_v17 = vor.u32 %v9908_v4, %v7668_v60  ;;  %v7733_v13 = vor.u32 %v9921_v5, %v7730_v6  ;;  %v7670_v58 = vld [vmem:[#allocation10 + $0x14] sm:$0xf0]  ;;  %v9934_v5 = vld [vmem:[#allocation10 + $0xe0] sm:$0xf0] }
 0x191   :  { %2399 = vmatpush.bf16.msra.mxu2 %v7425_v37  ;;  %2413 = vmatpush.bf16.msra.mxu3 %v7553_v38  ;;  %v8089_v56 = vor.u32 %v10013_v16, %v8088_v15  ;;  %v8068_v37 = vld [vmem:[#allocation10 + $0x320] sm:$0xf]  ;;  %v10008_v38 = vld [vmem:[#allocation10 + $0x330] sm:$0xf0]  ;;  %v10972_v44 = vpack.c.bf16 %v2424_v21, %v2420_v33  ;;  %v9993_v63 = vld [vmem:[#allocation10 + $0x2b8] sm:$0xf0] }
 0x192   :  { %v8069_v48 = vor.u32 %v10008_v38, %v8068_v37  ;;  %v8009_v10 = vor.u32 %v9993_v63, %v8008_v18  ;;  %v9916_v16 = vld [vmem:[#allocation10 + $0x54] sm:$0xf]  ;;  %v10021_v0 = vld [vmem:[#allocation10 + $0x39c] sm:$0xf]  ;;  %v8130_v33 = vld [vmem:[#allocation10 + $0x3ac] sm:$0xf0] }
 0x193   :  { %v9956_v21 = vld [vmem:[#allocation10 + $0x194] sm:$0xf]  ;;  %v7690_v37 = vld [vmem:[#allocation10 + $0x3c] sm:$0xf0]  ;;  %v9951_v38 = vld [vmem:[#allocation10 + $0x16c] sm:$0xf] }
 0x194   :  { %3472 = vmatpush.bf16.msrb.mxu0 %v7729_v40  ;;  %3486 = vmatpush.bf16.msrb.mxu1 %v7889_v43  ;;  %v2150_v40 = vadd.f32 %v2149_v28, %v2136_v25  ;;  %v2151_v43 = vpop.f32.mrf.mxu0  ;;  %v7750_v28 = vld [vmem:[#allocation10 + $0xb4] sm:$0xf0]  ;;  %v7936_v6 = vld [vmem:[#allocation10 + $0x210] sm:$0xf] }
 0x195   :  { %2400 = vmatmul.bf16.vlgmr.msra.gmra.mxu2 %v10884_v41  ;;  %2414 = vmatmul.bf16.vlgmr.msra.gmra.mxu3 %v10886_v42  ;;  %v2137_v41 = vpop.f32.mrf.mxu3  ;;  %v9948_v42 = vld [vmem:[#allocation10 + $0x150] sm:$0xf0]  ;;  %v2165_v29 = vpop.f32.mrf.mxu1  ;;  %v7753_v4 = vor.u32 %v9926_v62, %v7750_v28 }
 0x196   :  { %3496 = vmatpush.bf16.msrb.mxu2 %v8129_v59  ;;  %v7829_v20 = vor.u32 %v9948_v42, %v7828_v7  ;;  %v2138_v53 = vadd.f32 %v2137_v41, %v2124_v19  ;;  %v2164_v61 = vadd.f32 %v2163_v22, %v2150_v40  ;;  %v9961_v41 = vld [vmem:[#allocation10 + $0x1bc] sm:$0xf]  ;;  %v7870_v22 = vld [vmem:[#allocation10 + $0x1a4] sm:$0xf0]  ;;  %v7850_v40 = vld [vmem:[#allocation10 + $0x17c] sm:$0xf0] }
 0x197   :  { %v7893_v15 = vor.u32 %v9961_v41, %v7890_v30  ;;  %v7873_v31 = vor.u32 %v9956_v21, %v7870_v22  ;;  %v9974_v41 = vld [vmem:[#allocation10 + $0x220] sm:$0xf0]  ;;  %v8050_v30 = vld [vmem:[#allocation10 + $0x30c] sm:$0xf0]  ;;  %v7736_v22 = vld [vmem:[#allocation10 + $0x80] sm:$0xf] }
 0x198   :  { %3473 = vmatpush.bf16.msrb.mxu0 %v7709_v54  ;;  %3487 = vmatpush.bf16.msrb.mxu1 %v7869_v55  ;;  %v7930_v54 = vld [vmem:[#allocation10 + $0x21c] sm:$0xf0]  ;;  %v8048_v55 = vld [vmem:[#allocation10 + $0x2f8] sm:$0xf]  ;;  %v2152_v14 = vadd.f32 %v2151_v43, %v2138_v53  ;;  %v8133_v43 = vor.u32 %v10021_v0, %v8130_v33 }
 0x199   :  { %v2177_v45 = vpop.f32.mrf.mxu2  ;;  %v8049_v59 = vor.u32 %v10003_v57, %v8048_v55  ;;  %v7933_v12 = vor.u32 %v9971_v52, %v7930_v54  ;;  %v9946_v52 = vld [vmem:[#allocation10 + $0x144] sm:$0xf]  ;;  %v7830_v53 = vld [vmem:[#allocation10 + $0x154] sm:$0xf0]  ;;  %v7816_v54 = vld [vmem:[#allocation10 + $0x120] sm:$0xf] }
 0x19a   :  { %3497 = vmatpush.bf16.msrb.mxu2 %v8109_v27  ;;  %v2178_v50 = vadd.f32 %v2177_v45, %v2164_v61  ;;  %v7913_v27 = vor.u32 %v9966_v34, %v7910_v2  ;;  %v8110_v45 = vld [vmem:[#allocation10 + $0x384] sm:$0xf0]  ;;  %v9944_v55 = vld [vmem:[#allocation10 + $0x130] sm:$0xf0]  ;;  %v7976_v57 = vld [vmem:[#allocation10 + $0x260] sm:$0xf] }
 0x19b   :  { %v10011_v61 = vld [vmem:[#allocation10 + $0x34c] sm:$0xf]  ;;  %v7796_v34 = vld [vmem:[#allocation10 + $0xf8] sm:$0xf] }
 0x19c   :  { %3474 = vmatpush.bf16.msrb.mxu0 %v7689_v49  ;;  %3488 = vmatpush.bf16.msrb.mxu1 %v7849_v26  ;;  %v2166_v49 = vadd.f32 %v2165_v29, %v2152_v14  ;;  %v8029_v26 = vor.u32 %v9998_v3, %v8028_v1  ;;  %v8090_v14 = vld [vmem:[#allocation10 + $0x35c] sm:$0xf0]  ;;  %v9939_v2 = vld [vmem:[#allocation10 + $0x108] sm:$0xf0]  ;;  %v7956_v29 = vld [vmem:[#allocation10 + $0x238] sm:$0xf] }
 0x19d   :  { %v2191_v46 = vpop.f32.mrf.mxu3  ;;  %v8093_v62 = vor.u32 %v10011_v61, %v8090_v14  ;;  %v9979_v1 = vld [vmem:[#allocation10 + $0x248] sm:$0xf0]  ;;  %v10006_v3 = vld [vmem:[#allocation10 + $0x324] sm:$0xf]  ;;  %v7856_v14 = vld [vmem:[#allocation10 + $0x170] sm:$0xf] }
 0x19e   :  { %3498 = vmatpush.bf16.msrb.mxu2 %v8089_v56  ;;  %v2192_v7 = vadd.f32 %v2191_v46, %v2178_v50  ;;  %v7693_v46 = vor.u32 %v9911_v32, %v7690_v37  ;;  %v7817_v50 = vor.u32 %v9944_v55, %v7816_v54  ;;  %v8010_v32 = vld [vmem:[#allocation10 + $0x2bc] sm:$0xf0]  ;;  %v7696_v55 = vld [vmem:[#allocation10 + $0x30] sm:$0xf]  ;;  %v9914_v61 = vld [vmem:[#allocation10 + $0x40] sm:$0xf0] }
 0x1a0   :  { %3475 = vmatpush.bf16.msrb.mxu0 %v7669_v17  ;;  %3489 = vmatpush.bf16.msrb.mxu1 %v7829_v20  ;;  %v7710_v17 = vld [vmem:[#allocation10 + $0x64] sm:$0xf0]  ;;  %v2421_v20 = vmax.f32 %v2192_v7, 0.0  ;;  %v2205_v7 = vpop.f32.mrf.mxu0 }
 0x1a1   :  { %v2179_v60 = vpop.f32.mrf.mxu2  ;;  %v7713_v19 = vor.u32 %v9916_v16, %v7710_v17  ;;  %v9996_v16 = vld [vmem:[#allocation10 + $0x2d4] sm:$0xf]  ;;  %v8030_v17 = vld [vmem:[#allocation10 + $0x2e4] sm:$0xf0] }
 0x1a2   :  { %3499 = vmatpush.bf16.msrb.mxu2 %v8069_v48  ;;  %v2180_v42 = vadd.f32 %v2179_v60, %v2166_v49  ;;  %v10016_v48 = vld [vmem:[#allocation10 + $0x374] sm:$0xf]  ;;  %v8070_v49 = vld [vmem:[#allocation10 + $0x334] sm:$0xf0]  ;;  %v7797_v60 = vor.u32 %v9939_v2, %v7796_v34  ;;  %v7697_v2 = vor.u32 %v9914_v61, %v7696_v55  ;;  %v7758_v61 = vld [vmem:[#allocation10 + $0xbc] sm:$0xf0] }
 0x1a3   :  { %3476 = vmatmul.bf16.vlgmr.msrb.gmra.mxu0 %v10972_v44  ;;  %v8113_v51 = vor.u32 %v10016_v48, %v8110_v45  ;;  %v9919_v45 = vld [vmem:[#allocation10 + $0x68] sm:$0xf0] }
 0x1a4   :  { %3524 = vmatpush.bf16.msra.mxu0 %v7813_v47  ;;  %3538 = vmatpush.bf16.msra.mxu1 %v7973_v23  ;;  %v7988_v47 = vld [vmem:[#allocation10 + $0x280] sm:$0xf]  ;;  %v9988_v23 = vld [vmem:[#allocation10 + $0x290] sm:$0xf0] }
 0x1a5   :  { %v2193_v8 = vpop.f32.mrf.mxu3  ;;  %v7989_v25 = vor.u32 %v9988_v23, %v7988_v47  ;;  %v2219_v47 = vpop.f32.mrf.mxu1  ;;  %v9924_v23 = vld [vmem:[#allocation10 + $0x90] sm:$0xf0] }
 0x1a6   :  { %3500 = vmatpush.bf16.msrb.mxu2 %v8049_v59  ;;  %v2194_v11 = vadd.f32 %v2193_v8, %v2180_v42  ;;  %v9984_v59 = vld [vmem:[#allocation10 + $0x270] sm:$0xf0]  ;;  %v10001_v42 = vld [vmem:[#allocation10 + $0x2fc] sm:$0xf]  ;;  %v7937_v8 = vor.u32 %v9974_v41, %v7936_v6  ;;  %v7737_v37 = vor.u32 %v9924_v23, %v7736_v22  ;;  %v7818_v6 = vld [vmem:[#allocation10 + $0x134] sm:$0xf0] }
 0x1a7   :  { %v7977_v28 = vor.u32 %v9984_v59, %v7976_v57  ;;  %v8053_v18 = vor.u32 %v10001_v42, %v8050_v30  ;;  %v8288_v57 = vld [vmem:[#allocation10 + $0x4d8] sm:$0xf]  ;;  %v10063_v59 = vld [vmem:[#allocation10 + $0x4e8] sm:$0xf0]  ;;  %v9982_v41 = vld [vmem:[#allocation10 + $0x264] sm:$0xf] }
 0x1a8   :  { %3525 = vmatpush.bf16.msra.mxu0 %v7793_v35  ;;  %3539 = vmatpush.bf16.msra.mxu1 %v7953_v39  ;;  %v2425_v56 = vmax.f32 %v2194_v11, 0.0  ;;  %v7853_v35 = vor.u32 %v9951_v38, %v7850_v40  ;;  %v9906_v39 = vld [vmem:[#allocation10 + $0x4] sm:$0xf]  ;;  %v9929_v11 = vld [vmem:[#allocation10 + $0xb8] sm:$0xf0]  ;;  %v2207_v33 = vpop.f32.mrf.mxu0 }
 0x1a9   :  { %v7716_v40 = vld [vmem:[#allocation10 + $0x58] sm:$0xf]  ;;  %v7958_v22 = vld [vmem:[#allocation10 + $0x24c] sm:$0xf0] }
 0x1aa   :  { %3501 = vmatpush.bf16.msrb.mxu2 %v8029_v26  ;;  %v10975_v24 = vpack.c.bf16 %v2425_v56, %v2421_v20  ;;  %v8073_v26 = vor.u32 %v10006_v3, %v8070_v49  ;;  %v8033_v20 = vor.u32 %v9996_v16, %v8030_v17  ;;  %v9909_v3 = vld [vmem:[#allocation10 + $0x18] sm:$0xf0] }
 0x1ab   :  { %v9937_v17 = vld [vmem:[#allocation10 + $0xfc] sm:$0xf] }
 0x1ac   :  { %3526 = vmatpush.bf16.msra.mxu0 %v7773_v36  ;;  %3540 = vmatpush.bf16.msra.mxu1 %v7933_v12  ;;  %v7673_v36 = vor.u32 %v9906_v39, %v7670_v58  ;;  %v7833_v12 = vor.u32 %v9946_v52, %v7830_v53  ;;  %v686_v39 = vperm.slane %v10930_v9, 2  ;;  %v9986_v58 = vld [vmem:[#allocation10 + $0x284] sm:$0xf]  ;;  %v7717_v53 = vor.u32 %v9919_v45, %v7716_v40  ;;  %v8268_v9 = vld [vmem:[#allocation10 + $0x4b0] sm:$0xf] }
 0x1ad   :  { %3490 = vmatmul.bf16.vlgmr.msrb.gmra.mxu1 %v10975_v24  ;;  %v9972_v45 = vld [vmem:[#allocation10 + $0x214] sm:$0xf] }
 0x1ae   :  { %3502 = vmatpush.bf16.msrb.mxu2 %v8009_v10  ;;  %v7756_v10 = vld [vmem:[#allocation10 + $0xa8] sm:$0xf] }
 0x1af   :  { %v7757_v56 = vor.u32 %v9929_v11, %v7756_v10 }
 0x1b0   :  { %3527 = vmatpush.bf16.msra.mxu0 %v7753_v4  ;;  %3541 = vmatpush.bf16.msra.mxu1 %v7913_v27  ;;  %v7957_v4 = vor.u32 %v9979_v1, %v7956_v29  ;;  %v7776_v27 = vld [vmem:[#allocation10 + $0xd0] sm:$0xf]  ;;  %v7676_v1 = vld [vmem:[#allocation10 + $0x8] sm:$0xf] }
 0x1b1   :  { %v7777_v63 = vor.u32 %v9934_v5, %v7776_v27  ;;  %v2208_v5 = vadd.f32 %v2207_v33, %v686_v39  ;;  %v9932_v33 = vld [vmem:[#allocation10 + $0xd4] sm:$0xf] }
 0x1b2   :  { %3503 = vmatpush.bf16.msrb.mxu2 %v7989_v25  ;;  %v7896_v25 = vld [vmem:[#allocation10 + $0x1c0] sm:$0xf] }
 0x1b4   :  { %3528 = vmatpush.bf16.msra.mxu0 %v7733_v13  ;;  %3542 = vmatpush.bf16.msra.mxu1 %v7893_v15  ;;  %v7916_v13 = vld [vmem:[#allocation10 + $0x1e8] sm:$0xf]  ;;  %v9969_v15 = vld [vmem:[#allocation10 + $0x1f8] sm:$0xf0] }
 0x1b5   :  { %v7917_v21 = vor.u32 %v9969_v15, %v7916_v13 }
 0x1b6   :  { %3552 = vmatpush.bf16.msra.mxu2 %v8133_v43 }
 0x1b8   :  { %3529 = vmatpush.bf16.msra.mxu0 %v7713_v19  ;;  %3543 = vmatpush.bf16.msra.mxu1 %v7873_v31  ;;  %v9964_v19 = vld [vmem:[#allocation10 + $0x1d0] sm:$0xf0]  ;;  %v9991_v31 = vld [vmem:[#allocation10 + $0x2ac] sm:$0xf] }
 0x1b9   :  { %v8013_v0 = vor.u32 %v9991_v31, %v8010_v32  ;;  %v7897_v38 = vor.u32 %v9964_v19, %v7896_v25  ;;  %v2233_v43 = vpop.f32.mrf.mxu2  ;;  %v2247_v48 = vpop.f32.mrf.mxu3  ;;  %v8228_v19 = vld [vmem:[#allocation10 + $0x460] sm:$0xf]  ;;  %v10048_v31 = vld [vmem:[#allocation10 + $0x470] sm:$0xf0] }
 0x1ba   :  { %3553 = vmatpush.bf16.msra.mxu2 %v8113_v51  ;;  %v7990_v51 = vld [vmem:[#allocation10 + $0x294] sm:$0xf0] }
 0x1bb   :  { %v7993_v52 = vor.u32 %v9986_v58, %v7990_v51  ;;  %v8208_v58 = vld [vmem:[#allocation10 + $0x438] sm:$0xf]  ;;  %v10043_v51 = vld [vmem:[#allocation10 + $0x448] sm:$0xf0] }
 0x1bc   :  { %3530 = vmatpush.bf16.msra.mxu0 %v7693_v46  ;;  %3544 = vmatpush.bf16.msra.mxu1 %v7853_v35  ;;  %v7876_v46 = vld [vmem:[#allocation10 + $0x198] sm:$0xf]  ;;  %v9959_v35 = vld [vmem:[#allocation10 + $0x1a8] sm:$0xf0]  ;;  %v8209_v55 = vor.u32 %v10043_v51, %v8208_v58  ;;  %v10056_v58 = vld [vmem:[#allocation10 + $0x4b4] sm:$0xf] }
 0x1bd   :  { %v7877_v54 = vor.u32 %v9959_v35, %v7876_v46  ;;  %v7938_v46 = vld [vmem:[#allocation10 + $0x224] sm:$0xf0] }
 0x1be   :  { %3554 = vmatpush.bf16.msra.mxu2 %v8093_v62  ;;  %v2206_v62 = vadd.f32 %v2205_v7, %v686_v39  ;;  %v7978_v7 = vld [vmem:[#allocation10 + $0x274] sm:$0xf0] }
 0x1bf   :  { %v7981_v16 = vor.u32 %v9982_v41, %v7978_v7 }
 0x1c0   :  { %3531 = vmatpush.bf16.msra.mxu0 %v7673_v36  ;;  %3545 = vmatpush.bf16.msra.mxu1 %v7833_v12  ;;  %v9954_v36 = vld [vmem:[#allocation10 + $0x180] sm:$0xf0]  ;;  %v8289_v12 = vor.u32 %v10063_v59, %v8288_v57  ;;  %v2261_v34 = vpop.f32.mrf.mxu0  ;;  %v2220_v27 = vadd.f32 %v2219_v47, %v2206_v62  ;;  %v8188_v62 = vld [vmem:[#allocation10 + $0x410] sm:$0xf] }
 0x1c1   :  { %v7857_v29 = vor.u32 %v9954_v36, %v7856_v14  ;;  %v2235_v42 = vpop.f32.mrf.mxu2  ;;  %v2249_v30 = vpop.f32.mrf.mxu3  ;;  %v9967_v14 = vld [vmem:[#allocation10 + $0x1ec] sm:$0xf]  ;;  %v7918_v36 = vld [vmem:[#allocation10 + $0x1fc] sm:$0xf0] }
 0x1c2   :  { %3555 = vmatpush.bf16.msra.mxu2 %v8073_v26  ;;  %3510 = vmatpush.bf16.msrb.mxu3 %v8289_v12  ;;  %v7836_v26 = vld [vmem:[#allocation10 + $0x148] sm:$0xf]  ;;  %v2234_v10 = vadd.f32 %v2233_v43, %v2220_v27 }
 0x1c3   :  { %3532 = vmatmul.bf16.vlgmr.msra.gmra.mxu0 %v10972_v44  ;;  %3546 = vmatmul.bf16.vlgmr.msra.gmra.mxu1 %v10975_v24  ;;  %v7778_v43 = vld [vmem:[#allocation10 + $0xe4] sm:$0xf0] }
 0x1c4   :  { %3580 = vmatpush.bf16.msrb.mxu0 %v7817_v50  ;;  %3594 = vmatpush.bf16.msrb.mxu1 %v7977_v28  ;;  %v2221_v50 = vpop.f32.mrf.mxu1  ;;  %v10058_v28 = vld [vmem:[#allocation10 + $0x4c0] sm:$0xf0]  ;;  %v2248_v23 = vadd.f32 %v2247_v48, %v2234_v10  ;;  %v9957_v10 = vld [vmem:[#allocation10 + $0x19c] sm:$0xf] }
 0x1c5   :  { %v8269_v49 = vor.u32 %v10058_v28, %v8268_v9 }
 0x1c6   :  { %3556 = vmatpush.bf16.msra.mxu2 %v8053_v18  ;;  %v7677_v18 = vor.u32 %v9909_v3, %v7676_v1  ;;  %v7738_v3 = vld [vmem:[#allocation10 + $0x94] sm:$0xf0] }
 0x1c7   :  { %3511 = vmatpush.bf16.msrb.mxu3 %v8269_v49  ;;  %v9962_v49 = vld [vmem:[#allocation10 + $0x1c4] sm:$0xf] }
 0x1c8   :  { %3581 = vmatpush.bf16.msrb.mxu0 %v7797_v60  ;;  %3595 = vmatpush.bf16.msrb.mxu1 %v7957_v4  ;;  %v9949_v60 = vld [vmem:[#allocation10 + $0x158] sm:$0xf0]  ;;  %v9942_v4 = vld [vmem:[#allocation10 + $0x124] sm:$0xf]  ;;  %v2263_v40 = vpop.f32.mrf.mxu0 }
 0x1c9   :  { %v7837_v11 = vor.u32 %v9949_v60, %v7836_v26  ;;  %v7821_v15 = vor.u32 %v9942_v4, %v7818_v6  ;;  %v7898_v26 = vld [vmem:[#allocation10 + $0x1d4] sm:$0xf0]  ;;  %v10033_v6 = vld [vmem:[#allocation10 + $0x3f8] sm:$0xf0] }
 0x1ca   :  { %3557 = vmatpush.bf16.msra.mxu2 %v8033_v20  ;;  %v2222_v20 = vadd.f32 %v2221_v50, %v2208_v5  ;;  %v10038_v50 = vld [vmem:[#allocation10 + $0x420] sm:$0xf0]  ;;  %v8168_v5 = vld [vmem:[#allocation10 + $0x3e8] sm:$0xf] }
 0x1cc   :  { %3582 = vmatpush.bf16.msrb.mxu0 %v7777_v63  ;;  %3596 = vmatpush.bf16.msrb.mxu1 %v7937_v8  ;;  %v8248_v63 = vld [vmem:[#allocation10 + $0x488] sm:$0xf]  ;;  %v10053_v8 = vld [vmem:[#allocation10 + $0x498] sm:$0xf0]  ;;  %v2275_v47 = vpop.f32.mrf.mxu1  ;;  %v2236_v25 = vadd.f32 %v2235_v42, %v2222_v20  ;;  %v7901_v42 = vor.u32 %v9962_v49, %v7898_v26  ;;  %v8148_v20 = vld [vmem:[#allocation10 + $0x3c0] sm:$0xf] }
 0x1cd   :  { %v8249_v13 = vor.u32 %v10053_v8, %v8248_v63  ;;  %v7718_v8 = vld [vmem:[#allocation10 + $0x6c] sm:$0xf0]  ;;  %v9940_v49 = vld [vmem:[#allocation10 + $0x110] sm:$0xf0] }
 0x1ce   :  { %3558 = vmatpush.bf16.msra.mxu2 %v8013_v0  ;;  %v2250_v39 = vadd.f32 %v2249_v30, %v2236_v25  ;;  %v9917_v30 = vld [vmem:[#allocation10 + $0x5c] sm:$0xf] }
 0x1cf   :  { %3512 = vmatpush.bf16.msrb.mxu3 %v8249_v13  ;;  %v8136_v13 = vld [vmem:[#allocation10 + $0x3a0] sm:$0xf] }
 0x1d0   :  { %3583 = vmatpush.bf16.msrb.mxu0 %v7757_v56  ;;  %3597 = vmatpush.bf16.msrb.mxu1 %v7917_v21  ;;  %v7798_v56 = vld [vmem:[#allocation10 + $0x10c] sm:$0xf0]  ;;  %v9977_v21 = vld [vmem:[#allocation10 + $0x23c] sm:$0xf]  ;;  %v2264_v59 = vadd.f32 %v2263_v40, %v2250_v39  ;;  %v9947_v39 = vld [vmem:[#allocation10 + $0x14c] sm:$0xf] }
 0x1d1   :  { %v7801_v32 = vor.u32 %v9937_v17, %v7798_v56  ;;  %v7961_v0 = vor.u32 %v9977_v21, %v7958_v22  ;;  %v10028_v56 = vld [vmem:[#allocation10 + $0x3d0] sm:$0xf0]  ;;  %v7721_v21 = vor.u32 %v9917_v30, %v7718_v8  ;;  %v8290_v40 = vld [vmem:[#allocation10 + $0x4ec] sm:$0xf0] }
 0x1d2   :  { %3559 = vmatpush.bf16.msra.mxu2 %v7993_v52  ;;  %v7781_v52 = vor.u32 %v9932_v33, %v7778_v43  ;;  %v8149_v25 = vor.u32 %v10028_v56, %v8148_v20  ;;  %v8116_v33 = vld [vmem:[#allocation10 + $0x378] sm:$0xf]  ;;  %v9907_v43 = vld [vmem:[#allocation10 + $0xc] sm:$0xf]  ;;  %v10004_v30 = vld [vmem:[#allocation10 + $0x310] sm:$0xf0] }
 0x1d3   :  { %v8036_v56 = vld [vmem:[#allocation10 + $0x2d8] sm:$0xf] }
 0x1d4   :  { %3584 = vmatpush.bf16.msrb.mxu0 %v7737_v37  ;;  %3598 = vmatpush.bf16.msrb.mxu1 %v7897_v38  ;;  %v8229_v37 = vor.u32 %v10048_v31, %v8228_v19  ;;  %v2262_v38 = vadd.f32 %v2261_v34, %v2248_v23  ;;  %v2277_v9 = vpop.f32.mrf.mxu1  ;;  %v7921_v34 = vor.u32 %v9967_v14, %v7918_v36  ;;  %v7698_v23 = vld [vmem:[#allocation10 + $0x44] sm:$0xf0]  ;;  %v9985_v36 = vld [vmem:[#allocation10 + $0x278] sm:$0xf0] }
 0x1d5   :  { %v2278_v1 = vadd.f32 %v2277_v9, %v2264_v59  ;;  %v9945_v59 = vld [vmem:[#allocation10 + $0x138] sm:$0xf0]  ;;  %v7984_v14 = vld [vmem:[#allocation10 + $0x268] sm:$0xf]  ;;  %v8250_v9 = vld [vmem:[#allocation10 + $0x49c] sm:$0xf0] }
 0x1d6   :  { %3513 = vmatpush.bf16.msrb.mxu3 %v8229_v37  ;;  %v2276_v57 = vadd.f32 %v2275_v47, %v2262_v38  ;;  %v9912_v47 = vld [vmem:[#allocation10 + $0x34] sm:$0xf]  ;;  %v10019_v37 = vld [vmem:[#allocation10 + $0x388] sm:$0xf0]  ;;  %v10061_v38 = vld [vmem:[#allocation10 + $0x4dc] sm:$0xf] }
 0x1d7   :  { %v8117_v51 = vor.u32 %v10019_v37, %v8116_v33  ;;  %v8190_v33 = vld [vmem:[#allocation10 + $0x424] sm:$0xf0] }
 0x1d8   :  { %3585 = vmatpush.bf16.msrb.mxu0 %v7717_v53  ;;  %3599 = vmatpush.bf16.msrb.mxu1 %v7877_v54  ;;  %v7941_v53 = vor.u32 %v9972_v45, %v7938_v46  ;;  %v9927_v54 = vld [vmem:[#allocation10 + $0xac] sm:$0xf]  ;;  %v8293_v45 = vor.u32 %v10061_v38, %v8290_v40  ;;  %v7701_v46 = vor.u32 %v9912_v47, %v7698_v23  ;;  %v7764_v47 = vld [vmem:[#allocation10 + $0xb0] sm:$0xf]  ;;  %v9930_v23 = vld [vmem:[#allocation10 + $0xc0] sm:$0xf0] }
 0x1d9   :  { %v2289_v48 = vpop.f32.mrf.mxu2  ;;  %v2303_v35 = vpop.f32.mrf.mxu3  ;;  %v7761_v28 = vor.u32 %v9927_v54, %v7758_v61  ;;  %v8270_v54 = vld [vmem:[#allocation10 + $0x4c4] sm:$0xf0]  ;;  %v7765_v38 = vor.u32 %v9930_v23, %v7764_v47  ;;  %v8016_v40 = vld [vmem:[#allocation10 + $0x2b0] sm:$0xf]  ;;  %v10012_v47 = vld [vmem:[#allocation10 + $0x354] sm:$0xf] }
 0x1da   :  { %v2290_v12 = vadd.f32 %v2289_v48, %v2276_v57  ;;  %3514 = vmatpush.bf16.msrb.mxu3 %v8209_v55  ;;  %v10014_v55 = vld [vmem:[#allocation10 + $0x360] sm:$0xf0]  ;;  %v7824_v57 = vld [vmem:[#allocation10 + $0x128] sm:$0xf]  ;;  %v8273_v61 = vor.u32 %v10056_v58, %v8270_v54  ;;  %v9965_v58 = vld [vmem:[#allocation10 + $0x1d8] sm:$0xf0] }
 0x1db   :  { %v8098_v23 = vld [vmem:[#allocation10 + $0x364] sm:$0xf0] }
 0x1dc   :  { %3586 = vmatpush.bf16.msrb.mxu0 %v7697_v2  ;;  %3600 = vmatpush.bf16.msrb.mxu1 %v7857_v29  ;;  %v9922_v2 = vld [vmem:[#allocation10 + $0x84] sm:$0xf]  ;;  %v8189_v29 = vor.u32 %v10038_v50, %v8188_v62  ;;  %v2304_v4 = vadd.f32 %v2303_v35, %v2290_v12  ;;  %v7678_v35 = vld [vmem:[#allocation10 + $0x1c] sm:$0xf0]  ;;  %v10051_v50 = vld [vmem:[#allocation10 + $0x48c] sm:$0xf] }
 0x1dd   :  { %v7741_v7 = vor.u32 %v9922_v2, %v7738_v3  ;;  %v7681_v12 = vor.u32 %v9907_v43, %v7678_v35  ;;  %v8076_v2 = vld [vmem:[#allocation10 + $0x328] sm:$0xf]  ;;  %v7804_v3 = vld [vmem:[#allocation10 + $0x100] sm:$0xf]  ;;  %v8253_v26 = vor.u32 %v10051_v50, %v8250_v9  ;;  %v9960_v9 = vld [vmem:[#allocation10 + $0x1b0] sm:$0xf0] }
 0x1de   :  { %3515 = vmatpush.bf16.msrb.mxu3 %v8189_v29  ;;  %v7985_v29 = vor.u32 %v9985_v36, %v7984_v14  ;;  %v7724_v14 = vld [vmem:[#allocation10 + $0x60] sm:$0xf]  ;;  %v9920_v36 = vld [vmem:[#allocation10 + $0x70] sm:$0xf0] }
 0x1e0   :  { %3587 = vmatpush.bf16.msrb.mxu0 %v7677_v18  ;;  %3601 = vmatpush.bf16.msrb.mxu1 %v7837_v11  ;;  %v8169_v18 = vor.u32 %v10033_v6, %v8168_v5  ;;  %v7878_v11 = vld [vmem:[#allocation10 + $0x1ac] sm:$0xf0]  ;;  %v8230_v5 = vld [vmem:[#allocation10 + $0x474] sm:$0xf0] }
 0x1e1   :  { %v2291_v60 = vpop.f32.mrf.mxu2  ;;  %v2305_v41 = vpop.f32.mrf.mxu3  ;;  %v7881_v22 = vor.u32 %v9957_v10, %v7878_v11  ;;  %v7944_v10 = vld [vmem:[#allocation10 + $0x218] sm:$0xf]  ;;  %v9975_v11 = vld [vmem:[#allocation10 + $0x228] sm:$0xf0] }
 0x1e2   :  { %v2292_v27 = vadd.f32 %v2291_v60, %v2278_v1  ;;  %3516 = vmatpush.bf16.msrb.mxu3 %v8169_v18  ;;  %v10009_v1 = vld [vmem:[#allocation10 + $0x338] sm:$0xf0]  ;;  %v7964_v60 = vld [vmem:[#allocation10 + $0x240] sm:$0xf]  ;;  %v7784_v18 = vld [vmem:[#allocation10 + $0xd8] sm:$0xf] }
 0x1e3   :  { %3588 = vmatmul.bf16.vlgmr.msrb.gmra.mxu0 %v10972_v44  ;;  %3602 = vmatmul.bf16.vlgmr.msrb.gmra.mxu1 %v10975_v24  ;;  %v8077_v6 = vor.u32 %v10009_v1, %v8076_v2  ;;  %v10026_v1 = vld [vmem:[#allocation10 + $0x3c4] sm:$0xf] }
 0x1e4   :  { %3636 = vmatpush.bf16.msra.mxu0 %v7821_v15  ;;  %3650 = vmatpush.bf16.msra.mxu1 %v7981_v16  ;;  %v2306_v63 = vadd.f32 %v2305_v41, %v2292_v27  ;;  %v10024_v15 = vld [vmem:[#allocation10 + $0x3b0] sm:$0xf0]  ;;  %v2422_v16 = vmax.f32 %v2304_v4, 0.0  ;;  %v10046_v27 = vld [vmem:[#allocation10 + $0x464] sm:$0xf]  ;;  %v7805_v41 = vor.u32 %v9940_v49, %v7804_v3 }
 0x1e5   :  { %v8137_v31 = vor.u32 %v10024_v15, %v8136_v13  ;;  %v9980_v4 = vld [vmem:[#allocation10 + $0x250] sm:$0xf0]  ;;  %v8233_v8 = vor.u32 %v10046_v27, %v8230_v5  ;;  %v10041_v13 = vld [vmem:[#allocation10 + $0x43c] sm:$0xf]  ;;  %v8210_v15 = vld [vmem:[#allocation10 + $0x44c] sm:$0xf0] }
 0x1e6   :  { %v2426_v17 = vmax.f32 %v2306_v63, 0.0  ;;  %3517 = vmatpush.bf16.msrb.mxu3 %v8149_v25  ;;  %v9935_v63 = vld [vmem:[#allocation10 + $0xe8] sm:$0xf0]  ;;  %v8213_v25 = vor.u32 %v10041_v13, %v8210_v15  ;;  %v8150_v3 = vld [vmem:[#allocation10 + $0x3d4] sm:$0xf0] }
 0x1e7   :  { %v7785_v20 = vor.u32 %v9935_v63, %v7784_v18  ;;  %v10424_v49 = vld [vmem:[#allocation8] sm:$0xf]  ;;  %v8118_v18 = vld [vmem:[#allocation10 + $0x38c] sm:$0xf0]  ;;  %v8153_v63 = vor.u32 %v10026_v1, %v8150_v3  ;;  %v9987_v3 = vld [vmem:[#allocation10 + $0x28c] sm:$0xf] }
 0x1e8   :  { %3637 = vmatpush.bf16.msra.mxu0 %v7801_v32  ;;  %3651 = vmatpush.bf16.msra.mxu1 %v7961_v0  ;;  %v10983_v19 = vpack.c.bf16 %v2426_v17, %v2422_v16  ;;  %v9952_v32 = vld [vmem:[#allocation10 + $0x174] sm:$0xf]  ;;  %v7858_v0 = vld [vmem:[#allocation10 + $0x184] sm:$0xf0]  ;;  %v10988_v16 = vpop.f32.mrf.mxu0 }
 0x1e9   :  { %v7861_v48 = vor.u32 %v9952_v32, %v7858_v0  ;;  %v9970_v32 = vld [vmem:[#allocation10 + $0x200] sm:$0xf0]  ;;  %v10036_v0 = vld [vmem:[#allocation10 + $0x414] sm:$0xf] }
 0x1ea   :  { %3504 = vmatmul.bf16.vlgmr.msrb.gmra.mxu2 %v10983_v19  ;;  %3566 = vmatpush.bf16.msra.mxu3 %v8293_v45  ;;  %v9994_v45 = vld [vmem:[#allocation10 + $0x2c0] sm:$0xf0]  ;;  %v8193_v35 = vor.u32 %v10036_v0, %v8190_v33 }
 0x1eb   :  { %3608 = vmatpush.bf16.msrb.mxu2 %v8137_v31  ;;  %v7924_v31 = vld [vmem:[#allocation10 + $0x1f0] sm:$0xf]  ;;  %v8017_v54 = vor.u32 %v9994_v45, %v8016_v40  ;;  %v10007_v40 = vld [vmem:[#allocation10 + $0x32c] sm:$0xf] }
 0x1ec   :  { %3638 = vmatpush.bf16.msra.mxu0 %v7781_v52  ;;  %3652 = vmatpush.bf16.msra.mxu1 %v7941_v53  ;;  %v7838_v52 = vld [vmem:[#allocation10 + $0x15c] sm:$0xf0]  ;;  %v8096_v53 = vld [vmem:[#allocation10 + $0x350] sm:$0xf]  ;;  %v7925_v43 = vor.u32 %v9970_v32, %v7924_v31 }
 0x1ed   :  { %v7841_v62 = vor.u32 %v9947_v39, %v7838_v52  ;;  %v7904_v39 = vld [vmem:[#allocation10 + $0x1c8] sm:$0xf]  ;;  %v10031_v52 = vld [vmem:[#allocation10 + $0x3ec] sm:$0xf] }
 0x1ee   :  { %3567 = vmatpush.bf16.msra.mxu3 %v8273_v61  ;;  %v7905_v61 = vor.u32 %v9965_v58, %v7904_v39  ;;  %v10002_v58 = vld [vmem:[#allocation10 + $0x304] sm:$0xf] }
 0x1ef   :  { %3609 = vmatpush.bf16.msrb.mxu2 %v8117_v51  ;;  %v2331_v51 = vpop.f32.mrf.mxu1 }
 0x1f0   :  { %3639 = vmatpush.bf16.msra.mxu0 %v7761_v28  ;;  %3653 = vmatpush.bf16.msra.mxu1 %v7921_v34  ;;  %v8097_v28 = vor.u32 %v10014_v55, %v8096_v53  ;;  %v7825_v34 = vor.u32 %v9945_v59, %v7824_v57  ;;  %v8170_v53 = vld [vmem:[#allocation10 + $0x3fc] sm:$0xf0]  ;;  %v7996_v57 = vld [vmem:[#allocation10 + $0x288] sm:$0xf]  ;;  %v9989_v59 = vld [vmem:[#allocation10 + $0x298] sm:$0xf0]  ;;  %v2319_v50 = vpop.f32.mrf.mxu0 }
 0x1f2   :  { %3568 = vmatpush.bf16.msra.mxu3 %v8253_v26  ;;  %v687_v26 = vperm.slane %v10424_v49, 3  ;;  %v7998_v49 = vld [vmem:[#allocation10 + $0x29c] sm:$0xf0] }
 0x1f3   :  { %3610 = vmatpush.bf16.msrb.mxu2 %v8097_v28  ;;  %v10022_v28 = vld [vmem:[#allocation10 + $0x3a4] sm:$0xf] }
 0x1f4   :  { %3640 = vmatpush.bf16.msra.mxu0 %v7741_v7  ;;  %3654 = vmatpush.bf16.msra.mxu1 %v7901_v42  ;;  %v8056_v7 = vld [vmem:[#allocation10 + $0x300] sm:$0xf]  ;;  %v7965_v42 = vor.u32 %v9980_v4, %v7964_v60  ;;  %v7997_v60 = vor.u32 %v9989_v59, %v7996_v57  ;;  %v7725_v4 = vor.u32 %v9920_v36, %v7724_v14  ;;  %v8038_v14 = vld [vmem:[#allocation10 + $0x2ec] sm:$0xf0] }
 0x1f5   :  { %v8057_v17 = vor.u32 %v10004_v30, %v8056_v7  ;;  %v7864_v7 = vld [vmem:[#allocation10 + $0x178] sm:$0xf]  ;;  %v10017_v30 = vld [vmem:[#allocation10 + $0x37c] sm:$0xf] }
 0x1f6   :  { %3569 = vmatpush.bf16.msra.mxu3 %v8233_v8  ;;  %v2318_v8 = vadd.f32 %v10988_v16, %v687_v26  ;;  %v8121_v15 = vor.u32 %v10017_v30, %v8118_v18  ;;  %v2320_v16 = vadd.f32 %v2319_v50, %v687_v26 }
 0x1f7   :  { %3611 = vmatpush.bf16.msrb.mxu2 %v8077_v6  ;;  %v7704_v6 = vld [vmem:[#allocation10 + $0x38] sm:$0xf] }
 0x1f8   :  { %3641 = vmatpush.bf16.msra.mxu0 %v7721_v21  ;;  %3655 = vmatpush.bf16.msra.mxu1 %v7881_v22  ;;  %v7945_v21 = vor.u32 %v9975_v11, %v7944_v10  ;;  %v9999_v22 = vld [vmem:[#allocation10 + $0x2e8] sm:$0xf0]  ;;  %v2333_v11 = vpop.f32.mrf.mxu1 }
 0x1f9   :  { %v8037_v37 = vor.u32 %v9999_v22, %v8036_v56  ;;  %v2345_v2 = vpop.f32.mrf.mxu2  ;;  %v7844_v56 = vld [vmem:[#allocation10 + $0x150] sm:$0xf]  ;;  %v9950_v22 = vld [vmem:[#allocation10 + $0x160] sm:$0xf0]  ;;  %v2334_v45 = vadd.f32 %v2333_v11, %v2320_v16  ;;  %v8276_v11 = vld [vmem:[#allocation10 + $0x4b8] sm:$0xf] }
 0x1fa   :  { %3560 = vmatmul.bf16.vlgmr.msra.gmra.mxu2 %v10983_v19  ;;  %3570 = vmatpush.bf16.msra.mxu3 %v8213_v25  ;;  %v2332_v25 = vadd.f32 %v2331_v51, %v2318_v8  ;;  %v7845_v33 = vor.u32 %v9950_v22, %v7844_v56  ;;  %v8058_v51 = vld [vmem:[#allocation10 + $0x314] sm:$0xf0]  ;;  %v10020_v8 = vld [vmem:[#allocation10 + $0x390] sm:$0xf0]  ;;  %v10015_v56 = vld [vmem:[#allocation10 + $0x368] sm:$0xf0] }
 0x1fb   :  { %3612 = vmatpush.bf16.msrb.mxu2 %v8057_v17  ;;  %v7684_v17 = vld [vmem:[#allocation10 + $0x10] sm:$0xf]  ;;  %v8061_v57 = vor.u32 %v10002_v58, %v8058_v51  ;;  %v10054_v22 = vld [vmem:[#allocation10 + $0x4a0] sm:$0xf0]  ;;  %v10039_v58 = vld [vmem:[#allocation10 + $0x428] sm:$0xf0] }
 0x1fc   :  { %3642 = vmatpush.bf16.msra.mxu0 %v7701_v46  ;;  %3656 = vmatpush.bf16.msra.mxu1 %v7861_v48  ;;  %v7744_v46 = vld [vmem:[#allocation10 + $0x88] sm:$0xf]  ;;  %v9925_v48 = vld [vmem:[#allocation10 + $0x98] sm:$0xf0]  ;;  %v10010_v16 = vld [vmem:[#allocation10 + $0x340] sm:$0xf0] }
 0x1fd   :  { %v7745_v55 = vor.u32 %v9925_v48, %v7744_v46 }
 0x1fe   :  { %3571 = vmatpush.bf16.msra.mxu3 %v8193_v35 }
 0x1ff   :  { %3613 = vmatpush.bf16.msrb.mxu2 %v8037_v37  ;;  %v8101_v37 = vor.u32 %v10012_v47, %v8098_v23 }
 0x200   :  { %3643 = vmatpush.bf16.msra.mxu0 %v7681_v12  ;;  %3657 = vmatpush.bf16.msra.mxu1 %v7841_v62  ;;  %v7884_v12 = vld [vmem:[#allocation10 + $0x1a0] sm:$0xf]  ;;  %v8173_v62 = vor.u32 %v10031_v52, %v8170_v53  ;;  %v2387_v46 = vpop.f32.mrf.mxu1 }
 0x201   :  { %v7885_v27 = vor.u32 %v9960_v9, %v7884_v12  ;;  %v2347_v32 = vpop.f32.mrf.mxu2  ;;  %v9992_v9 = vld [vmem:[#allocation10 + $0x2b4] sm:$0xf] }
 0x202   :  { %3572 = vmatpush.bf16.msra.mxu3 %v8173_v62  ;;  %v2348_v39 = vadd.f32 %v2347_v32, %v2334_v45  ;;  %v10049_v32 = vld [vmem:[#allocation10 + $0x478] sm:$0xf0] }
 0x203   :  { %3644 = vmatmul.bf16.vlgmr.msra.gmra.mxu0 %v10972_v44  ;;  %3658 = vmatmul.bf16.vlgmr.msra.gmra.mxu1 %v10975_v24 }
 0x204   :  { %3692 = vmatpush.bf16.msrb.mxu0 %v7825_v34  ;;  %3706 = vmatpush.bf16.msrb.mxu1 %v7985_v29  ;;  %v8138_v34 = vld [vmem:[#allocation10 + $0x3b4] sm:$0xf0]  ;;  %v2359_v29 = vpop.f32.mrf.mxu3 }
 0x205   :  { %3614 = vmatpush.bf16.msrb.mxu2 %v8017_v54  ;;  %v8141_v5 = vor.u32 %v10022_v28, %v8138_v34  ;;  %v8018_v28 = vld [vmem:[#allocation10 + $0x2c4] sm:$0xf0] }
 0x206   :  { %3573 = vmatpush.bf16.msra.mxu3 %v8153_v63  ;;  %v8124_v63 = vld [vmem:[#allocation10 + $0x380] sm:$0xf] }
 0x208   :  { %3693 = vmatpush.bf16.msrb.mxu0 %v7805_v41  ;;  %3707 = vmatpush.bf16.msrb.mxu1 %v7965_v42  ;;  %v9915_v41 = vld [vmem:[#allocation10 + $0x48] sm:$0xf0]  ;;  %v2389_v34 = vpop.f32.mrf.mxu1 }
 0x209   :  { %v9955_v42 = vld [vmem:[#allocation10 + $0x188] sm:$0xf0]  ;;  %3615 = vmatpush.bf16.msrb.mxu2 %v7997_v60  ;;  %v7705_v10 = vor.u32 %v9915_v41, %v7704_v6  ;;  %v8144_v60 = vld [vmem:[#allocation10 + $0x3a8] sm:$0xf]  ;;  %v10064_v6 = vld [vmem:[#allocation10 + $0x4f0] sm:$0xf0]  ;;  %v8001_v41 = vor.u32 %v9987_v3, %v7998_v49 }
 0x20a   :  { %v7865_v13 = vor.u32 %v9955_v42, %v7864_v7  ;;  %v8258_v3 = vld [vmem:[#allocation10 + $0x4a4] sm:$0xf0] }
 0x20c   :  { %3694 = vmatpush.bf16.msrb.mxu0 %v7785_v20  ;;  %3708 = vmatpush.bf16.msrb.mxu1 %v7945_v21  ;;  %v9910_v20 = vld [vmem:[#allocation10 + $0x20] sm:$0xf0]  ;;  %v2373_v21 = vpop.f32.mrf.mxu0  ;;  %v2361_v0 = vpop.f32.mrf.mxu3 }
 0x20d   :  { %3664 = vmatpush.bf16.msra.mxu2 %v8141_v5  ;;  %v7685_v31 = vor.u32 %v9910_v20, %v7684_v17  ;;  %v2362_v59 = vadd.f32 %v2361_v0, %v2348_v39  ;;  %v8296_v5 = vld [vmem:[#allocation10 + $0x4e0] sm:$0xf]  ;;  %v8104_v20 = vld [vmem:[#allocation10 + $0x358] sm:$0xf] }
 0x20e   :  { %3616 = vmatmul.bf16.vlgmr.msrb.gmra.mxu2 %v10983_v19  ;;  %v8297_v18 = vor.u32 %v10064_v6, %v8296_v5  ;;  %v8105_v47 = vor.u32 %v10015_v56, %v8104_v20  ;;  %v8196_v39 = vld [vmem:[#allocation10 + $0x418] sm:$0xf]  ;;  %v8284_v20 = vld [vmem:[#allocation10 + $0x4c0] sm:$0xf]  ;;  %v10060_v56 = vld [vmem:[#allocation10 + $0x4d0] sm:$0xf0] }
 0x20f   :  { %v8218_v5 = vld [vmem:[#allocation10 + $0x454] sm:$0xf0] }
 0x210   :  { %3695 = vmatpush.bf16.msrb.mxu0 %v7765_v38  ;;  %3709 = vmatpush.bf16.msrb.mxu1 %v7925_v43  ;;  %v2346_v38 = vadd.f32 %v2345_v2, %v2332_v25  ;;  %v8078_v43 = vld [vmem:[#allocation10 + $0x33c] sm:$0xf0]  ;;  %v8084_v25 = vld [vmem:[#allocation10 + $0x330] sm:$0xf] }
 0x211   :  { %3665 = vmatpush.bf16.msra.mxu2 %v8121_v15  ;;  %v8081_v48 = vor.u32 %v10007_v40, %v8078_v43  ;;  %v8125_v15 = vor.u32 %v10020_v8, %v8124_v63  ;;  %v8085_v0 = vor.u32 %v10010_v16, %v8084_v25  ;;  %v8216_v40 = vld [vmem:[#allocation10 + $0x440] sm:$0xf]  ;;  %v10044_v43 = vld [vmem:[#allocation10 + $0x450] sm:$0xf0]  ;;  %v10027_v63 = vld [vmem:[#allocation10 + $0x3cc] sm:$0xf] }
 0x212   :  { %v2360_v35 = vadd.f32 %v2359_v29, %v2346_v38  ;;  %v8021_v29 = vor.u32 %v9992_v9, %v8018_v28  ;;  %v10005_v38 = vld [vmem:[#allocation10 + $0x318] sm:$0xf0]  ;;  %v8298_v9 = vld [vmem:[#allocation10 + $0x4f4] sm:$0xf0]  ;;  %v8158_v8 = vld [vmem:[#allocation10 + $0x3dc] sm:$0xf0] }
 0x213   :  { %v8244_v25 = vld [vmem:[#allocation10 + $0x470] sm:$0xf]  ;;  %v10050_v16 = vld [vmem:[#allocation10 + $0x480] sm:$0xf0] }
 0x214   :  { %3696 = vmatpush.bf16.msrb.mxu0 %v7745_v55  ;;  %3710 = vmatpush.bf16.msrb.mxu1 %v7905_v61  ;;  %v2374_v52 = vadd.f32 %v2373_v21, %v2360_v35  ;;  %v2375_v53 = vpop.f32.mrf.mxu0  ;;  %v9997_v61 = vld [vmem:[#allocation10 + $0x2dc] sm:$0xf]  ;;  %v8256_v21 = vld [vmem:[#allocation10 + $0x490] sm:$0xf]  ;;  %v10000_v35 = vld [vmem:[#allocation10 + $0x2f0] sm:$0xf0] }
 0x215   :  { %3666 = vmatpush.bf16.msra.mxu2 %v8101_v37  ;;  %v2376_v12 = vadd.f32 %v2375_v53, %v2362_v59  ;;  %v8041_v62 = vor.u32 %v9997_v61, %v8038_v14  ;;  %v8257_v23 = vor.u32 %v10054_v22, %v8256_v21  ;;  %v8064_v37 = vld [vmem:[#allocation10 + $0x308] sm:$0xf]  ;;  %v8024_v53 = vld [vmem:[#allocation10 + $0x2b8] sm:$0xf]  ;;  %v8004_v14 = vld [vmem:[#allocation10 + $0x290] sm:$0xf]  ;;  %v8285_v21 = vor.u32 %v10060_v56, %v8284_v20 }
 0x216   :  { %v2388_v36 = vadd.f32 %v2387_v46, %v2374_v52  ;;  %v8065_v45 = vor.u32 %v10005_v38, %v8064_v37  ;;  %v8217_v46 = vor.u32 %v10044_v43, %v8216_v40  ;;  %v8197_v52 = vor.u32 %v10039_v58, %v8196_v39  ;;  %v8264_v22 = vld [vmem:[#allocation10 + $0x498] sm:$0xf]  ;;  %v8204_v37 = vld [vmem:[#allocation10 + $0x420] sm:$0xf]  ;;  %v10040_v38 = vld [vmem:[#allocation10 + $0x430] sm:$0xf0] }
 0x217   :  { %v8205_v40 = vor.u32 %v10040_v38, %v8204_v37  ;;  %v8184_v43 = vld [vmem:[#allocation10 + $0x3f8] sm:$0xf]  ;;  %v8504_v39 = vld [vmem:[#allocation13 + $0x188] sm:$0xf]  ;;  %v10118_v58 = vld [vmem:[#allocation13 + $0x1a0] sm:$0xf0] }
 0x218   :  { %3697 = vmatpush.bf16.msrb.mxu0 %v7725_v4  ;;  %3711 = vmatpush.bf16.msrb.mxu1 %v7885_v27  ;;  %v2401_v54 = vpop.f32.mrf.mxu2  ;;  %v2415_v55 = vpop.f32.mrf.mxu3  ;;  %v10025_v4 = vld [vmem:[#allocation10 + $0x3b8] sm:$0xf0]  ;;  %v10083_v20 = vld [vmem:[#allocation13 + $0x88] sm:$0xf0] }
 0x219   :  { %3667 = vmatpush.bf16.msra.mxu2 %v8081_v48  ;;  %v2402_v50 = vadd.f32 %v2401_v54, %v2388_v36  ;;  %v8145_v30 = vor.u32 %v10025_v4, %v8144_v60  ;;  %v8044_v48 = vld [vmem:[#allocation10 + $0x2e0] sm:$0xf]  ;;  %v9995_v54 = vld [vmem:[#allocation10 + $0x2c8] sm:$0xf0]  ;;  %v9990_v36 = vld [vmem:[#allocation10 + $0x2a0] sm:$0xf0] }
 0x21a   :  { %v8045_v51 = vor.u32 %v10000_v35, %v8044_v48  ;;  %v8025_v59 = vor.u32 %v9995_v54, %v8024_v53  ;;  %v8005_v28 = vor.u32 %v9990_v36, %v8004_v14  ;;  %v8238_v60 = vld [vmem:[#allocation10 + $0x47c] sm:$0xf0]  ;;  %v8164_v48 = vld [vmem:[#allocation10 + $0x3d0] sm:$0xf]  ;;  %v10030_v35 = vld [vmem:[#allocation10 + $0x3e0] sm:$0xf0] }
 0x21b   :  { %v8728_v53 = vld [vmem:[#allocation13 + $0x348] sm:$0xf]  ;;  %v10174_v54 = vld [vmem:[#allocation13 + $0x360] sm:$0xf0]  ;;  %v10195_v37 = vld [vmem:[#allocation13 + $0x408] sm:$0xf0] }
 0x21c   :  { %3698 = vmatpush.bf16.msrb.mxu0 %v7705_v10  ;;  %3712 = vmatpush.bf16.msrb.mxu1 %v7865_v13  ;;  %v10059_v13 = vld [vmem:[#allocation10 + $0x4c8] sm:$0xf0] }
 0x21d   :  { %3668 = vmatpush.bf16.msra.mxu2 %v8061_v57  ;;  %v8277_v17 = vor.u32 %v10059_v13, %v8276_v11  ;;  %v10034_v57 = vld [vmem:[#allocation10 + $0x400] sm:$0xf0]  ;;  %v8304_v11 = vld [vmem:[#allocation10 + $0x4e8] sm:$0xf]  ;;  %v10065_v13 = vld [vmem:[#allocation10 + $0x4f8] sm:$0xf0] }
 0x21e   :  { %v10230_v36 = vld [vmem:[#allocation13 + $0x520] sm:$0xf0] }
 0x220   :  { %3699 = vmatpush.bf16.msrb.mxu0 %v7685_v31  ;;  %3713 = vmatpush.bf16.msrb.mxu1 %v7845_v33  ;;  %v2403_v2 = vpop.f32.mrf.mxu2  ;;  %v2417_v26 = vpop.f32.mrf.mxu3  ;;  %v8236_v31 = vld [vmem:[#allocation10 + $0x468] sm:$0xf] }
 0x221   :  { %3669 = vmatpush.bf16.msra.mxu2 %v8041_v62  ;;  %v8237_v33 = vor.u32 %v10049_v32, %v8236_v31  ;;  %v10029_v62 = vld [vmem:[#allocation10 + $0x3d8] sm:$0xf0]  ;;  %v8245_v31 = vor.u32 %v10050_v16, %v8244_v25  ;;  %v8224_v32 = vld [vmem:[#allocation10 + $0x448] sm:$0xf]  ;;  %v10139_v25 = vld [vmem:[#allocation13 + $0x248] sm:$0xf0] }
 0x223   :  { %3700 = vmatmul.bf16.vlgmr.msrb.gmra.mxu0 %v10972_v44  ;;  %3714 = vmatmul.bf16.vlgmr.msrb.gmra.mxu1 %v10975_v24  ;;  %v2390_v44 = vadd.f32 %v2389_v34, %v2376_v12  ;;  %v2416_v24 = vadd.f32 %v2415_v55, %v2402_v50  ;;  %v8176_v55 = vld [vmem:[#allocation10 + $0x3f0] sm:$0xf]  ;;  %v8156_v12 = vld [vmem:[#allocation10 + $0x3c8] sm:$0xf]  ;;  %v10062_v50 = vld [vmem:[#allocation10 + $0x4e4] sm:$0xf] }
 0x224   :  { %v8177_v61 = vor.u32 %v10034_v57, %v8176_v55  ;;  %v8157_v34 = vor.u32 %v10029_v62, %v8156_v12  ;;  %v8729_v55 = vor.u32 %v10174_v54, %v8728_v53  ;;  %v8476_v57 = vld [vmem:[#allocation13 + $0x150] sm:$0xf]  ;;  %v10167_v62 = vld [vmem:[#allocation13 + $0x328] sm:$0xf0]  ;;  %v10125_v53 = vld [vmem:[#allocation13 + $0x1d8] sm:$0xf0] }
 0x225   :  { %v2404_v1 = vadd.f32 %v2403_v2, %v2390_v44  ;;  %3670 = vmatpush.bf16.msra.mxu2 %v8021_v29  ;;  %v2423_v7 = vmax.f32 %v2416_v24, 0.0  ;;  %v8301_v44 = vor.u32 %v10062_v50, %v8298_v9  ;;  %v10057_v2 = vld [vmem:[#allocation10 + $0x4bc] sm:$0xf]  ;;  %v8278_v29 = vld [vmem:[#allocation10 + $0x4cc] sm:$0xf0] }
 0x226   :  { %v8281_v24 = vor.u32 %v10057_v2, %v8278_v29  ;;  %v8700_v12 = vld [vmem:[#allocation13 + $0x310] sm:$0xf]  ;;  %5553 = vmatpush.bf16.msra.mxu1 %v8729_v55  ;;  %v10223_v29 = vld [vmem:[#allocation13 + $0x4e8] sm:$0xf0] }
 0x227   :  { %v2418_v27 = vadd.f32 %v2417_v26, %v2404_v1  ;;  %v10052_v1 = vld [vmem:[#allocation10 + $0x494] sm:$0xf]  ;;  %v10047_v26 = vld [vmem:[#allocation10 + $0x46c] sm:$0xf]  ;;  %v8701_v9 = vor.u32 %v10167_v62, %v8700_v12  ;;  %v11004_v12 = vpop.f32.mrf.mxu0 }
 0x228   :  { %v8261_v49 = vor.u32 %v10052_v1, %v8258_v3  ;;  %v8241_v4 = vor.u32 %v10047_v26, %v8238_v60  ;;  %v10160_v1 = vld [vmem:[#allocation13 + $0x2f0] sm:$0xf0]  ;;  %v10097_v26 = vld [vmem:[#allocation13 + $0xf8] sm:$0xf0]  ;;  %v8896_v60 = vld [vmem:[#allocation13 + $0x498] sm:$0xf] }
 0x229   :  { %v2427_v42 = vmax.f32 %v2418_v27, 0.0  ;;  %3671 = vmatpush.bf16.msra.mxu2 %v8001_v41  ;;  %v10042_v27 = vld [vmem:[#allocation10 + $0x444] sm:$0xf]  ;;  %v10037_v41 = vld [vmem:[#allocation10 + $0x41c] sm:$0xf] }
 0x22a   :  { %v8221_v6 = vor.u32 %v10042_v27, %v8218_v5  ;;  %5554 = vmatpush.bf16.msra.mxu1 %v8701_v9  ;;  %v10115_v55 = vld [vmem:[#allocation13 + $0x18c] sm:$0xf] }
 0x22b   :  { %v10995_v10 = vpack.c.bf16 %v2427_v42, %v2423_v7  ;;  %v8198_v7 = vld [vmem:[#allocation10 + $0x42c] sm:$0xf0] }
 0x22c   :  { %3672 = vmatmul.bf16.vlgmr.msra.gmra.mxu2 %v10983_v19  ;;  %v8201_v42 = vor.u32 %v10037_v41, %v8198_v7  ;;  %v10153_v41 = vld [vmem:[#allocation13 + $0x2b8] sm:$0xf0]  ;;  %v10171_v9 = vld [vmem:[#allocation13 + $0x34c] sm:$0xf] }
 0x22d   :  { %3518 = vmatmul.bf16.vlgmr.msrb.gmra.mxu3 %v10995_v10  ;;  %3720 = vmatpush.bf16.msrb.mxu2 %v8145_v30  ;;  %v10032_v30 = vld [vmem:[#allocation10 + $0x3f4] sm:$0xf] }
 0x22e   :  { %3622 = vmatpush.bf16.msrb.mxu3 %v8297_v18 }
 0x231   :  { %3721 = vmatpush.bf16.msrb.mxu2 %v8125_v15  ;;  %v8161_v15 = vor.u32 %v10027_v63, %v8158_v8  ;;  %v8868_v63 = vld [vmem:[#allocation13 + $0x460] sm:$0xf]  ;;  %v10209_v8 = vld [vmem:[#allocation13 + $0x478] sm:$0xf0] }
 0x232   :  { %3623 = vmatpush.bf16.msrb.mxu3 %v8277_v17  ;;  %v8305_v17 = vor.u32 %v10065_v13, %v8304_v11  ;;  %v8616_v11 = vld [vmem:[#allocation13 + $0x268] sm:$0xf]  ;;  %v10146_v13 = vld [vmem:[#allocation13 + $0x280] sm:$0xf0] }
 0x235   :  { %3722 = vmatpush.bf16.msrb.mxu2 %v8105_v47  ;;  %v10055_v47 = vld [vmem:[#allocation10 + $0x4a8] sm:$0xf0] }
 0x236   :  { %3624 = vmatpush.bf16.msrb.mxu3 %v8257_v23  ;;  %v8265_v23 = vor.u32 %v10055_v47, %v8264_v22  ;;  %v10202_v22 = vld [vmem:[#allocation13 + $0x440] sm:$0xf0]  ;;  %v8588_v47 = vld [vmem:[#allocation13 + $0x230] sm:$0xf] }
 0x237   :  { %v8589_v16 = vor.u32 %v10139_v25, %v8588_v47  ;;  %v10150_v47 = vld [vmem:[#allocation13 + $0x2a4] sm:$0xf] }
 0x239   :  { %3723 = vmatpush.bf16.msrb.mxu2 %v8085_v0  ;;  %v10045_v0 = vld [vmem:[#allocation10 + $0x458] sm:$0xf0] }
 0x23a   :  { %3625 = vmatpush.bf16.msrb.mxu3 %v8237_v33  ;;  %v8225_v33 = vor.u32 %v10045_v0, %v8224_v32  ;;  %v10076_v32 = vld [vmem:[#allocation13 + $0x50] sm:$0xf0] }
 0x23d   :  { %3574 = vmatmul.bf16.vlgmr.msra.gmra.mxu3 %v10995_v10  ;;  %3724 = vmatpush.bf16.msrb.mxu2 %v8065_v45  ;;  %v10035_v45 = vld [vmem:[#allocation10 + $0x408] sm:$0xf0] }
 0x23e   :  { %3626 = vmatpush.bf16.msrb.mxu3 %v8217_v46  ;;  %v8185_v46 = vor.u32 %v10035_v45, %v8184_v43  ;;  %v10132_v43 = vld [vmem:[#allocation13 + $0x210] sm:$0xf0] }
 0x241   :  { %3725 = vmatpush.bf16.msrb.mxu2 %v8045_v51  ;;  %v8505_v51 = vor.u32 %v10118_v58, %v8504_v39  ;;  %v8784_v39 = vld [vmem:[#allocation13 + $0x3b8] sm:$0xf]  ;;  %v10188_v58 = vld [vmem:[#allocation13 + $0x3d0] sm:$0xf0] }
 0x242   :  { %3627 = vmatpush.bf16.msrb.mxu3 %v8197_v52  ;;  %v8165_v52 = vor.u32 %v10030_v35, %v8164_v48  ;;  %v10069_v48 = vld [vmem:[#allocation13 + $0x18] sm:$0xf0] }
 0x243   :  { %5539 = vmatpush.bf16.msra.mxu0 %v8505_v51  ;;  %v8785_v51 = vor.u32 %v10188_v58, %v8784_v39  ;;  %v10080_v58 = vld [vmem:[#allocation13 + $0x74] sm:$0xf] }
 0x245   :  { %3726 = vmatpush.bf16.msrb.mxu2 %v8025_v59  ;;  %v10111_v59 = vld [vmem:[#allocation13 + $0x168] sm:$0xf0] }
 0x246   :  { %3628 = vmatpush.bf16.msrb.mxu3 %v8177_v61  ;;  %v8952_v61 = vld [vmem:[#allocation13 + $0x508] sm:$0xf]  ;;  %v8477_v14 = vor.u32 %v10111_v59, %v8476_v57 }
 0x247   :  { %v8953_v50 = vor.u32 %v10230_v36, %v8952_v61  ;;  %v8506_v57 = vld [vmem:[#allocation13 + $0x1a4] sm:$0xf0]  ;;  %v8756_v61 = vld [vmem:[#allocation13 + $0x380] sm:$0xf] }
 0x248   :  { %5540 = vmatpush.bf16.msra.mxu0 %v8477_v14  ;;  %v8509_v59 = vor.u32 %v10115_v55, %v8506_v57  ;;  %v10181_v14 = vld [vmem:[#allocation13 + $0x398] sm:$0xf0]  ;;  %v9176_v36 = vld [vmem:[#allocation13 + $0x6c8] sm:$0xf]  ;;  %v9036_v55 = vld [vmem:[#allocation13 + $0x5b0] sm:$0xf] }
 0x249   :  { %3727 = vmatpush.bf16.msrb.mxu2 %v8005_v28  ;;  %v8448_v28 = vld [vmem:[#allocation13 + $0x118] sm:$0xf]  ;;  %v8757_v62 = vor.u32 %v10181_v14, %v8756_v61  ;;  %v10251_v57 = vld [vmem:[#allocation13 + $0x5c8] sm:$0xf0]  ;;  %v10136_v61 = vld [vmem:[#allocation13 + $0x234] sm:$0xf] }
 0x24a   :  { %3629 = vmatpush.bf16.msrb.mxu3 %v8157_v34  ;;  %v10104_v34 = vld [vmem:[#allocation13 + $0x130] sm:$0xf0]  ;;  %v8590_v14 = vld [vmem:[#allocation13 + $0x24c] sm:$0xf0] }
 0x24b   :  { %v8449_v2 = vor.u32 %v10104_v34, %v8448_v28  ;;  %v8730_v28 = vld [vmem:[#allocation13 + $0x364] sm:$0xf0] }
 0x24c   :  { %3728 = vmatmul.bf16.vlgmr.msrb.gmra.mxu2 %v10983_v19  ;;  %v8178_v19 = vld [vmem:[#allocation10 + $0x404] sm:$0xf0] }
 0x24d   :  { %3630 = vmatmul.bf16.vlgmr.msrb.gmra.mxu3 %v10995_v10  ;;  %v8181_v18 = vor.u32 %v10032_v30, %v8178_v19  ;;  %5567 = vmatpush.bf16.msra.mxu2 %v8953_v50  ;;  %v8392_v30 = vld [vmem:[#allocation13 + $0xa8] sm:$0xf]  ;;  %v10090_v19 = vld [vmem:[#allocation13 + $0xc0] sm:$0xf0] }
 0x24e   :  { %3678 = vmatpush.bf16.msra.mxu3 %v8301_v44  ;;  %v8924_v44 = vld [vmem:[#allocation13 + $0x4d0] sm:$0xf]  ;;  %5541 = vmatpush.bf16.msra.mxu0 %v8449_v2  ;;  %v10286_v50 = vld [vmem:[#allocation13 + $0x6e0] sm:$0xf0] }
 0x24f   :  { %v8925_v3 = vor.u32 %v10223_v29, %v8924_v44  ;;  %v9177_v34 = vor.u32 %v10286_v50, %v9176_v36  ;;  %v8733_v44 = vor.u32 %v10171_v9, %v8730_v28  ;;  %v10108_v29 = vld [vmem:[#allocation13 + $0x154] sm:$0xf]  ;;  %v10073_v9 = vld [vmem:[#allocation13 + $0x3c] sm:$0xf]  ;;  %v8338_v28 = vld [vmem:[#allocation13 + $0x54] sm:$0xf0] }
 0x251   :  { %5568 = vmatpush.bf16.msra.mxu2 %v8925_v3  ;;  %v9148_v3 = vld [vmem:[#allocation13 + $0x690] sm:$0xf] }
 0x252   :  { %3679 = vmatpush.bf16.msra.mxu3 %v8281_v24  ;;  %v8672_v24 = vld [vmem:[#allocation13 + $0x2d8] sm:$0xf] }
 0x253   :  { %v8673_v27 = vor.u32 %v10160_v1, %v8672_v24  ;;  %v8478_v24 = vld [vmem:[#allocation13 + $0x16c] sm:$0xf0] }
 0x254   :  { %v8481_v1 = vor.u32 %v10108_v29, %v8478_v24  ;;  %v8341_v29 = vor.u32 %v10073_v9, %v8338_v28  ;;  %v9008_v24 = vld [vmem:[#allocation13 + $0x578] sm:$0xf]  ;;  %v10339_v9 = vld [vmem:[#allocation13 + $0x88c] sm:$0xf]  ;;  %v9402_v28 = vld [vmem:[#allocation13 + $0x8a4] sm:$0xf0] }
 0x255   :  { %5555 = vmatpush.bf16.msra.mxu1 %v8673_v27  ;;  %v8702_v27 = vld [vmem:[#allocation13 + $0x32c] sm:$0xf0] }
 0x256   :  { %3680 = vmatpush.bf16.msra.mxu3 %v8261_v49  ;;  %v8420_v49 = vld [vmem:[#allocation13 + $0xe0] sm:$0xf] }
 0x257   :  { %v8421_v5 = vor.u32 %v10097_v26, %v8420_v49  ;;  %v10279_v49 = vld [vmem:[#allocation13 + $0x6a8] sm:$0xf0]  ;;  %v10164_v26 = vld [vmem:[#allocation13 + $0x314] sm:$0xf] }
 0x259   :  { %5542 = vmatpush.bf16.msra.mxu0 %v8421_v5  ;;  %v8705_v5 = vor.u32 %v10164_v26, %v8702_v27 }
 0x25a   :  { %3681 = vmatpush.bf16.msra.mxu3 %v8241_v4  ;;  %v10216_v4 = vld [vmem:[#allocation13 + $0x4b0] sm:$0xf0] }
 0x25b   :  { %v8897_v7 = vor.u32 %v10216_v4, %v8896_v60  ;;  %v3491_v60 = vpop.f32.mrf.mxu1  ;;  %v9149_v4 = vor.u32 %v10279_v49, %v9148_v3 }
 0x25d   :  { %5569 = vmatpush.bf16.msra.mxu2 %v8897_v7 }
 0x25e   :  { %3682 = vmatpush.bf16.msra.mxu3 %v8221_v6  ;;  %v8644_v6 = vld [vmem:[#allocation13 + $0x2a0] sm:$0xf] }
 0x262   :  { %3683 = vmatpush.bf16.msra.mxu3 %v8201_v42  ;;  %v8645_v42 = vor.u32 %v10153_v41, %v8644_v6  ;;  %v10101_v6 = vld [vmem:[#allocation13 + $0x11c] sm:$0xf]  ;;  %v8450_v41 = vld [vmem:[#allocation13 + $0x134] sm:$0xf0] }
 0x263   :  { %v8453_v7 = vor.u32 %v10101_v6, %v8450_v41  ;;  %v10066_v6 = vld [vmem:[#allocation13 + $0x4] sm:$0xf]  ;;  %v8310_v41 = vld [vmem:[#allocation13 + $0x1c] sm:$0xf0] }
 0x264   :  { %5556 = vmatpush.bf16.msra.mxu1 %v8645_v42  ;;  %v9120_v42 = vld [vmem:[#allocation13 + $0x658] sm:$0xf] }
 0x266   :  { %3684 = vmatpush.bf16.msra.mxu3 %v8181_v18  ;;  %v8393_v18 = vor.u32 %v10090_v19, %v8392_v30  ;;  %v10272_v30 = vld [vmem:[#allocation13 + $0x670] sm:$0xf0] }
 0x267   :  { %v9121_v19 = vor.u32 %v10272_v30, %v9120_v42  ;;  %v8313_v30 = vor.u32 %v10066_v6, %v8310_v41  ;;  %v9374_v6 = vld [vmem:[#allocation13 + $0x86c] sm:$0xf0] }
 0x268   :  { %5543 = vmatpush.bf16.msra.mxu0 %v8393_v18  ;;  %v10157_v18 = vld [vmem:[#allocation13 + $0x2dc] sm:$0xf] }
 0x26a   :  { %3685 = vmatpush.bf16.msra.mxu3 %v8161_v15  ;;  %v8617_v15 = vor.u32 %v10146_v13, %v8616_v11  ;;  %v3479_v11 = vpop.f32.mrf.mxu0  ;;  %v10094_v13 = vld [vmem:[#allocation13 + $0xe4] sm:$0xf] }
 0x26c   :  { %5557 = vmatpush.bf16.msra.mxu1 %v8617_v15  ;;  %v8422_v15 = vld [vmem:[#allocation13 + $0xfc] sm:$0xf0] }
 0x26d   :  { %3686 = vmatmul.bf16.vlgmr.msra.gmra.mxu3 %v10995_v10  ;;  %v11006_v2 = vpop.f32.mrf.mxu2 }
 0x26e   :  { %3734 = vmatpush.bf16.msrb.mxu3 %v8305_v17  ;;  %v8364_v17 = vld [vmem:[#allocation13 + $0x70] sm:$0xf] }
 0x26f   :  { %v8365_v56 = vor.u32 %v10083_v20, %v8364_v17  ;;  %v8425_v17 = vor.u32 %v10094_v13, %v8422_v15  ;;  %v9092_v20 = vld [vmem:[#allocation13 + $0x620] sm:$0xf]  ;;  %v10342_v13 = vld [vmem:[#allocation13 + $0x8a0] sm:$0xf0] }
 0x270   :  { %5558 = vmatpush.bf16.msra.mxu1 %v8589_v16  ;;  %v10122_v15 = vld [vmem:[#allocation13 + $0x1c4] sm:$0xf] }
 0x271   :  { %5544 = vmatpush.bf16.msra.mxu0 %v8365_v56  ;;  %v10265_v56 = vld [vmem:[#allocation13 + $0x638] sm:$0xf0] }
 0x272   :  { %3735 = vmatpush.bf16.msrb.mxu3 %v8285_v21  ;;  %v8840_v21 = vld [vmem:[#allocation13 + $0x428] sm:$0xf]  ;;  %v11012_v39 = vpop.f32.mrf.mxu0 }
 0x276   :  { %3736 = vmatpush.bf16.msrb.mxu3 %v8265_v23  ;;  %v8841_v23 = vor.u32 %v10202_v22, %v8840_v21  ;;  %v3507_v21 = vpop.f32.mrf.mxu2  ;;  %v9093_v22 = vor.u32 %v10265_v56, %v9092_v20  ;;  %v8534_v56 = vld [vmem:[#allocation13 + $0x1dc] sm:$0xf0] }
 0x27a   :  { %3737 = vmatpush.bf16.msrb.mxu3 %v8245_v31  ;;  %v8336_v31 = vld [vmem:[#allocation13 + $0x38] sm:$0xf] }
 0x27b   :  { %v8337_v0 = vor.u32 %v10076_v32, %v8336_v31  ;;  %v3493_v31 = vpop.f32.mrf.mxu1  ;;  %v10087_v32 = vld [vmem:[#allocation13 + $0xac] sm:$0xf] }
 0x27d   :  { %5545 = vmatpush.bf16.msra.mxu0 %v8337_v0  ;;  %v8394_v0 = vld [vmem:[#allocation13 + $0xc4] sm:$0xf0] }
 0x27e   :  { %3738 = vmatpush.bf16.msrb.mxu3 %v8225_v33  ;;  %v8812_v33 = vld [vmem:[#allocation13 + $0x3f0] sm:$0xf]  ;;  %v11015_v50 = vpop.f32.mrf.mxu2 }
 0x27f   :  { %v8813_v38 = vor.u32 %v10195_v37, %v8812_v33  ;;  %v8397_v33 = vor.u32 %v10087_v32, %v8394_v0  ;;  %v9064_v37 = vld [vmem:[#allocation13 + $0x5e8] sm:$0xf]  ;;  %v10335_v32 = vld [vmem:[#allocation13 + $0x868] sm:$0xf0]  ;;  %v10220_v0 = vld [vmem:[#allocation13 + $0x4d4] sm:$0xf] }
 0x282   :  { %3739 = vmatpush.bf16.msrb.mxu3 %v8205_v40  ;;  %v8560_v40 = vld [vmem:[#allocation13 + $0x1f8] sm:$0xf] }
 0x283   :  { %v8561_v45 = vor.u32 %v10132_v43, %v8560_v40  ;;  %v3547_v3 = vpop.f32.mrf.mxu1 }
 0x285   :  { %5559 = vmatpush.bf16.msra.mxu1 %v8561_v45  ;;  %v10143_v45 = vld [vmem:[#allocation13 + $0x26c] sm:$0xf] }
 0x286   :  { %3740 = vmatpush.bf16.msrb.mxu3 %v8185_v46  ;;  %v8308_v46 = vld [vmem:[#allocation13] sm:$0xf] }
 0x287   :  { %v8309_v35 = vor.u32 %v10069_v48, %v8308_v46  ;;  %v8618_v46 = vld [vmem:[#allocation13 + $0x284] sm:$0xf0] }
 0x289   :  { %5546 = vmatpush.bf16.msra.mxu0 %v8309_v35  ;;  %v8621_v35 = vor.u32 %v10143_v45, %v8618_v46 }
 0x28a   :  { %3741 = vmatpush.bf16.msrb.mxu3 %v8165_v52  ;;  %v8532_v52 = vld [vmem:[#allocation13 + $0x1c0] sm:$0xf] }
 0x28b   :  { %v8533_v54 = vor.u32 %v10125_v53, %v8532_v52 }
 0x28d   :  { %3742 = vmatmul.bf16.vlgmr.msrb.gmra.mxu3 %v10995_v10  ;;  %v8869_v10 = vor.u32 %v10209_v8, %v8868_v63  ;;  %5560 = vmatpush.bf16.msra.mxu1 %v8533_v54  ;;  %v8674_v63 = vld [vmem:[#allocation13 + $0x2f4] sm:$0xf0] }
 0x28e   :  { %5581 = vmatpush.bf16.msra.mxu3 %v9177_v34  ;;  %v8677_v8 = vor.u32 %v10157_v18, %v8674_v63  ;;  %v10237_v18 = vld [vmem:[#allocation13 + $0x558] sm:$0xf0]  ;;  %v3535_v63 = vpop.f32.mrf.mxu0 }
 0x28f   :  { %5570 = vmatpush.bf16.msra.mxu2 %v8869_v10  ;;  %v11008_v10 = vld [vmem:[#allocation11] sm:$0x1f] }
 0x290   :  { %v2626_v25 = vperm.slane %v11008_v10, 0 }
 0x291   :  { %5609 = vmatpush.bf16.msrb.mxu1 %v8509_v59  ;;  %v9037_v59 = vor.u32 %v10251_v57, %v9036_v55  ;;  %v8898_v55 = vld [vmem:[#allocation13 + $0x4b4] sm:$0xf0] }
 0x292   :  { %5582 = vmatpush.bf16.msra.mxu3 %v9149_v4  ;;  %v3478_v48 = vadd.f32 %v11004_v12, %v2626_v25  ;;  %v3480_v52 = vadd.f32 %v3479_v11, %v2626_v25  ;;  %v8593_v12 = vor.u32 %v10136_v61, %v8590_v14  ;;  %v8562_v4 = vld [vmem:[#allocation13 + $0x214] sm:$0xf0]  ;;  %v9400_v11 = vld [vmem:[#allocation13 + $0x888] sm:$0xf]  ;;  %v3563_v25 = vpop.f32.mrf.mxu2  ;;  %v9316_v14 = vld [vmem:[#allocation13 + $0x7e0] sm:$0xf] }
 0x293   :  { %5571 = vmatpush.bf16.msra.mxu2 %v8841_v23  ;;  %v8646_v23 = vld [vmem:[#allocation13 + $0x2bc] sm:$0xf0]  ;;  %v9401_v20 = vor.u32 %v10342_v13, %v9400_v11  ;;  %v10307_v11 = vld [vmem:[#allocation13 + $0x788] sm:$0xf0]  ;;  %v10192_v13 = vld [vmem:[#allocation13 + $0x3f4] sm:$0xf] }
 0x294   :  { %v8649_v16 = vor.u32 %v10150_v47, %v8646_v23  ;;  %v3492_v53 = vadd.f32 %v3491_v60, %v3478_v48  ;;  %v3494_v36 = vadd.f32 %v3493_v31, %v3480_v52  ;;  %v10129_v60 = vld [vmem:[#allocation13 + $0x1fc] sm:$0xf]  ;;  %v8537_v47 = vor.u32 %v10122_v15, %v8534_v56  ;;  %v9372_v31 = vld [vmem:[#allocation13 + $0x850] sm:$0xf]  ;;  %v9346_v56 = vld [vmem:[#allocation13 + $0x834] sm:$0xf0] }
 0x295   :  { %5610 = vmatpush.bf16.msrb.mxu1 %v8481_v1  ;;  %v10244_v1 = vld [vmem:[#allocation13 + $0x590] sm:$0xf0]  ;;  %5595 = vmatpush.bf16.msrb.mxu0 %v9401_v20  ;;  %v10325_v20 = vld [vmem:[#allocation13 + $0x81c] sm:$0xf] }
 0x296   :  { %5583 = vmatpush.bf16.msra.mxu3 %v9121_v19  ;;  %v3508_v34 = vadd.f32 %v3507_v21, %v3494_v36  ;;  %v9009_v26 = vor.u32 %v10244_v1, %v9008_v24  ;;  %v8980_v19 = vld [vmem:[#allocation13 + $0x540] sm:$0xf]  ;;  %v10227_v21 = vld [vmem:[#allocation13 + $0x50c] sm:$0xf]  ;;  %v3589_v48 = vpop.f32.mrf.mxu0  ;;  %v10321_v36 = vld [vmem:[#allocation13 + $0x7f8] sm:$0xf0] }
 0x297   :  { %5572 = vmatpush.bf16.msra.mxu2 %v8813_v38  ;;  %v10258_v38 = vld [vmem:[#allocation13 + $0x600] sm:$0xf0]  ;;  %v2628_v1 = vperm.slane %v11008_v10, 2 }
 0x298   :  { %v9065_v43 = vor.u32 %v10258_v38, %v9064_v37  ;;  %v9373_v37 = vor.u32 %v10335_v32, %v9372_v31  ;;  %v8926_v38 = vld [vmem:[#allocation13 + $0x4ec] sm:$0xf0]  ;;  %v9349_v31 = vor.u32 %v10325_v20, %v9346_v56  ;;  %v9232_v32 = vld [vmem:[#allocation13 + $0x738] sm:$0xf]  ;;  %v10098_v20 = vld [vmem:[#allocation13 + $0x100] sm:$0xf0] }
 0x299   :  { %5611 = vmatpush.bf16.msrb.mxu1 %v8453_v7 }
 0x29a   :  { %5584 = vmatpush.bf16.msra.mxu3 %v9093_v22  ;;  %v8954_v22 = vld [vmem:[#allocation13 + $0x524] sm:$0xf0]  ;;  %5596 = vmatpush.bf16.msrb.mxu0 %v9373_v37  ;;  %v3617_v24 = vpop.f32.mrf.mxu2 }
 0x29b   :  { %5573 = vmatpush.bf16.msra.mxu2 %v8785_v51  ;;  %v8366_v51 = vld [vmem:[#allocation13 + $0x8c] sm:$0xf0]  ;;  %v8957_v23 = vor.u32 %v10227_v21, %v8954_v22 }
 0x29c   :  { %v8369_v54 = vor.u32 %v10080_v58, %v8366_v51  ;;  %v10328_v58 = vld [vmem:[#allocation13 + $0x830] sm:$0xf0]  ;;  %v10213_v51 = vld [vmem:[#allocation13 + $0x49c] sm:$0xf]  ;;  %v8814_v22 = vld [vmem:[#allocation13 + $0x40c] sm:$0xf0] }
 0x29d   :  { %5612 = vmatpush.bf16.msrb.mxu1 %v8425_v17  ;;  %v8901_v57 = vor.u32 %v10213_v51, %v8898_v55  ;;  %v8512_v51 = vld [vmem:[#allocation13 + $0x190] sm:$0xf]  ;;  %v9204_v55 = vld [vmem:[#allocation13 + $0x700] sm:$0xf] }
 0x29e   :  { %5585 = vmatpush.bf16.msra.mxu3 %v9065_v43  ;;  %v8929_v43 = vor.u32 %v10220_v0, %v8926_v38  ;;  %v10300_v0 = vld [vmem:[#allocation13 + $0x750] sm:$0xf0] }
 0x29f   :  { %5574 = vmatpush.bf16.msra.mxu2 %v8757_v62  ;;  %v3506_v62 = vadd.f32 %v11006_v2, %v3492_v53  ;;  %v8565_v2 = vor.u32 %v10129_v60, %v8562_v4  ;;  %v9288_v60 = vld [vmem:[#allocation13 + $0x7a8] sm:$0xf]  ;;  %v10314_v4 = vld [vmem:[#allocation13 + $0x7c0] sm:$0xf0] }
 0x2a0   :  { %v9289_v41 = vor.u32 %v10314_v4, %v9288_v60  ;;  %v9262_v60 = vld [vmem:[#allocation13 + $0x78c] sm:$0xf0]  ;;  %v10276_v4 = vld [vmem:[#allocation13 + $0x694] sm:$0xf] }
 0x2a1   :  { %5613 = vmatpush.bf16.msrb.mxu1 %v8397_v33 }
 0x2a2   :  { %5586 = vmatpush.bf16.msra.mxu3 %v9037_v59 }
 0x2a3   :  { %5623 = vmatpush.bf16.msrb.mxu2 %v8733_v44 }
 0x2a5   :  { %5614 = vmatpush.bf16.msrb.mxu1 %v8369_v54 }
 0x2a6   :  { %5587 = vmatpush.bf16.msra.mxu3 %v9009_v26  ;;  %v9405_v26 = vor.u32 %v10339_v9, %v9402_v28  ;;  %v10283_v9 = vld [vmem:[#allocation13 + $0x6cc] sm:$0xf]  ;;  %v9178_v28 = vld [vmem:[#allocation13 + $0x6e4] sm:$0xf0] }
 0x2a7   :  { %5624 = vmatpush.bf16.msrb.mxu2 %v8705_v5  ;;  %v2627_v5 = vperm.slane %v11008_v10, 1 }
 0x2a9   :  { %5615 = vmatpush.bf16.msrb.mxu1 %v8341_v29  ;;  %v3534_v33 = vadd.f32 %v11012_v39, %v2627_v5  ;;  %v3536_v46 = vadd.f32 %v3535_v63, %v2627_v5  ;;  %v10332_v5 = vld [vmem:[#allocation13 + $0x854] sm:$0xf] }
 0x2aa   :  { %v9377_v63 = vor.u32 %v10332_v5, %v9374_v6 }
 0x2ab   :  { %5625 = vmatpush.bf16.msrb.mxu2 %v8677_v8  ;;  %v8981_v8 = vor.u32 %v10237_v18, %v8980_v19  ;;  %v3548_v45 = vadd.f32 %v3547_v3, %v3534_v33  ;;  %v3590_v19 = vadd.f32 %v3589_v48, %v2628_v1  ;;  %v10185_v33 = vld [vmem:[#allocation13 + $0x3bc] sm:$0xf] }
 0x2ad   :  { %5616 = vmatpush.bf16.msrb.mxu1 %v8313_v30  ;;  %5588 = vmatpush.bf16.msra.mxu3 %v8981_v8  ;;  %v3562_v53 = vadd.f32 %v11015_v50, %v3548_v45  ;;  %v9260_v8 = vld [vmem:[#allocation13 + $0x770] sm:$0xf]  ;;  %v9233_v45 = vor.u32 %v10300_v0, %v9232_v32 }
 0x2ae   :  { %v9261_v21 = vor.u32 %v10307_v11, %v9260_v8  ;;  %v9122_v8 = vld [vmem:[#allocation13 + $0x674] sm:$0xf0] }
 0x2af   :  { %5626 = vmatpush.bf16.msrb.mxu2 %v8649_v16 }
 0x2b0   :  { %v3519_v40 = vpop.f32.mrf.mxu3 }
 0x2b1   :  { %v3520_v44 = vadd.f32 %v3519_v40, %v3506_v62  ;;  %5637 = vmatpush.bf16.msrb.mxu3 %v8957_v23  ;;  %v3549_v40 = vpop.f32.mrf.mxu1  ;;  %v10206_v62 = vld [vmem:[#allocation13 + $0x464] sm:$0xf] }
 0x2b2   :  { %v3550_v52 = vadd.f32 %v3549_v40, %v3536_v46  ;;  %v10318_v40 = vld [vmem:[#allocation13 + $0x7e4] sm:$0xf]  ;;  %v8786_v46 = vld [vmem:[#allocation13 + $0x3d4] sm:$0xf0] }
 0x2b3   :  { %5627 = vmatpush.bf16.msrb.mxu2 %v8621_v35  ;;  %v3748_v7 = vmax.f32 %v3520_v44, 0.0  ;;  %v9344_v35 = vld [vmem:[#allocation13 + $0x818] sm:$0xf]  ;;  %v8870_v44 = vld [vmem:[#allocation13 + $0x47c] sm:$0xf0]  ;;  %v8789_v48 = vor.u32 %v10185_v33, %v8786_v46  ;;  %v2629_v33 = vperm.slane %v11008_v10, 3 }
 0x2b4   :  { %v9345_v54 = vor.u32 %v10328_v58, %v9344_v35  ;;  %v3564_v39 = vadd.f32 %v3563_v25, %v3550_v52  ;;  %v8873_v50 = vor.u32 %v10206_v62, %v8870_v44  ;;  %v10119_v52 = vld [vmem:[#allocation13 + $0x1a8] sm:$0xf0]  ;;  %v8758_v62 = vld [vmem:[#allocation13 + $0x39c] sm:$0xf0]  ;;  %v9156_v46 = vld [vmem:[#allocation13 + $0x698] sm:$0xf] }
 0x2b5   :  { %5638 = vmatpush.bf16.msrb.mxu3 %v8929_v43  ;;  %v9318_v43 = vld [vmem:[#allocation13 + $0x7fc] sm:$0xf0] }
 0x2b6   :  { %5597 = vmatpush.bf16.msrb.mxu0 %v9345_v54  ;;  %v9321_v54 = vor.u32 %v10318_v40, %v9318_v43  ;;  %v8400_v40 = vld [vmem:[#allocation13 + $0xb0] sm:$0xf]  ;;  %v10091_v43 = vld [vmem:[#allocation13 + $0xc8] sm:$0xf0] }
 0x2b7   :  { %5628 = vmatpush.bf16.msrb.mxu2 %v8593_v12 }
 0x2b8   :  { %v3521_v49 = vpop.f32.mrf.mxu3 }
 0x2b9   :  { %v3522_v27 = vadd.f32 %v3521_v49, %v3508_v34  ;;  %5639 = vmatpush.bf16.msrb.mxu3 %v8901_v57  ;;  %v9317_v34 = vor.u32 %v10321_v36, %v9316_v14  ;;  %v3603_v29 = vpop.f32.mrf.mxu1  ;;  %v10293_v57 = vld [vmem:[#allocation13 + $0x718] sm:$0xf0]  ;;  %v9290_v14 = vld [vmem:[#allocation13 + $0x7c4] sm:$0xf0] }
 0x2ba   :  { %v3604_v23 = vadd.f32 %v3603_v29, %v3590_v19  ;;  %v9205_v36 = vor.u32 %v10293_v57, %v9204_v55  ;;  %v9181_v29 = vor.u32 %v10283_v9, %v9178_v28  ;;  %v8372_v55 = vld [vmem:[#allocation13 + $0x78] sm:$0xf] }
 0x2bb   :  { %v3753_v42 = vmax.f32 %v3522_v27, 0.0  ;;  %5629 = vmatpush.bf16.msrb.mxu2 %v8565_v2  ;;  %5598 = vmatpush.bf16.msrb.mxu0 %v9317_v34  ;;  %v10199_v27 = vld [vmem:[#allocation13 + $0x42c] sm:$0xf] }
 0x2bc   :  { %v3618_v38 = vadd.f32 %v3617_v24, %v3604_v23  ;;  %v8513_v24 = vor.u32 %v10119_v52, %v8512_v51  ;;  %v9094_v23 = vld [vmem:[#allocation13 + $0x63c] sm:$0xf0] }
 0x2bd   :  { %v11018_v17 = vpack.c.bf16 %v3753_v42, %v3748_v7  ;;  %5640 = vmatpush.bf16.msrb.mxu3 %v8873_v50  ;;  %v8842_v7 = vld [vmem:[#allocation13 + $0x444] sm:$0xf0]  ;;  %v3591_v42 = vpop.f32.mrf.mxu0  ;;  %v8484_v50 = vld [vmem:[#allocation13 + $0x158] sm:$0xf] }
 0x2be   :  { %v8845_v30 = vor.u32 %v10199_v27, %v8842_v7  ;;  %v3592_v15 = vadd.f32 %v3591_v42, %v2628_v1  ;;  %v10112_v1 = vld [vmem:[#allocation13 + $0x170] sm:$0xf0]  ;;  %v9150_v27 = vld [vmem:[#allocation13 + $0x6ac] sm:$0xf0]  ;;  %v10105_v7 = vld [vmem:[#allocation13 + $0x138] sm:$0xf0] }
 0x2bf   :  { %5547 = vmatmul.bf16.vlgmr.msra.gmra.mxu0 %v11018_v17  ;;  %5630 = vmatpush.bf16.msrb.mxu2 %v8537_v47  ;;  %v8817_v47 = vor.u32 %v10192_v13, %v8814_v22  ;;  %v9153_v5 = vor.u32 %v10276_v4, %v9150_v27  ;;  %v8485_v6 = vor.u32 %v10112_v1, %v8484_v50  ;;  %v9206_v22 = vld [vmem:[#allocation13 + $0x71c] sm:$0xf0]  ;;  %v10077_v50 = vld [vmem:[#allocation13 + $0x58] sm:$0xf0]  ;;  %v10266_v4 = vld [vmem:[#allocation13 + $0x640] sm:$0xf0] }
 0x2c0   :  { %v3575_v16 = vpop.f32.mrf.mxu3  ;;  %5599 = vmatpush.bf16.msrb.mxu0 %v9289_v41  ;;  %v8456_v41 = vld [vmem:[#allocation13 + $0x120] sm:$0xf]  ;;  %v10241_v27 = vld [vmem:[#allocation13 + $0x57c] sm:$0xf] }
 0x2c1   :  { %v3576_v59 = vadd.f32 %v3575_v16, %v3562_v53  ;;  %5641 = vmatpush.bf16.msrb.mxu3 %v8845_v30  ;;  %v3605_v25 = vpop.f32.mrf.mxu1  ;;  %v3619_v16 = vpop.f32.mrf.mxu2  ;;  %v10297_v30 = vld [vmem:[#allocation13 + $0x73c] sm:$0xf]  ;;  %v8457_v13 = vor.u32 %v10105_v7, %v8456_v41 }
 0x2c2   :  { %v3606_v37 = vadd.f32 %v3605_v25, %v3592_v15  ;;  %v8428_v15 = vld [vmem:[#allocation13 + $0xe8] sm:$0xf]  ;;  %v9184_v25 = vld [vmem:[#allocation13 + $0x6d0] sm:$0xf] }
 0x2c3   :  { %v3749_v3 = vmax.f32 %v3576_v59, 0.0 }
 0x2c4   :  { %5600 = vmatpush.bf16.msrb.mxu0 %v9261_v21  ;;  %v3620_v35 = vadd.f32 %v3619_v16, %v3606_v37  ;;  %v10290_v21 = vld [vmem:[#allocation13 + $0x704] sm:$0xf]  ;;  %v10287_v16 = vld [vmem:[#allocation13 + $0x6e8] sm:$0xf0]  ;;  %v8429_v37 = vor.u32 %v10098_v20, %v8428_v15 }
 0x2c5   :  { %5642 = vmatpush.bf16.msrb.mxu3 %v8817_v47  ;;  %v3645_v19 = vpop.f32.mrf.mxu0  ;;  %v10262_v47 = vld [vmem:[#allocation13 + $0x624] sm:$0xf]  ;;  %v10343_v20 = vld [vmem:[#allocation13 + $0x8a8] sm:$0xf0] }
 0x2c8   :  { %v3577_v61 = vpop.f32.mrf.mxu3  ;;  %5601 = vmatpush.bf16.msrb.mxu0 %v9233_v45  ;;  %v9185_v45 = vor.u32 %v10287_v16, %v9184_v25 }
 0x2c9   :  { %v3578_v12 = vadd.f32 %v3577_v61, %v3564_v39  ;;  %v10178_v39 = vld [vmem:[#allocation13 + $0x384] sm:$0xf]  ;;  %v10311_v61 = vld [vmem:[#allocation13 + $0x7ac] sm:$0xf]  ;;  %5643 = vmatpush.bf16.msrb.mxu3 %v8789_v48  ;;  %v3659_v32 = vpop.f32.mrf.mxu1  ;;  %v3673_v0 = vpop.f32.mrf.mxu2  ;;  %v10280_v48 = vld [vmem:[#allocation13 + $0x6b0] sm:$0xf0] }
 0x2cb   :  { %v3754_v49 = vmax.f32 %v3578_v12, 0.0  ;;  %v8761_v12 = vor.u32 %v10178_v39, %v8758_v62  ;;  %v10084_v39 = vld [vmem:[#allocation13 + $0x90] sm:$0xf0]  ;;  %v9128_v62 = vld [vmem:[#allocation13 + $0x660] sm:$0xf] }
 0x2cc   :  { %5602 = vmatpush.bf16.msrb.mxu0 %v9205_v36 }
 0x2cd   :  { %v11024_v2 = vpack.c.bf16 %v3754_v49, %v3749_v3  ;;  %v9293_v3 = vor.u32 %v10311_v61, %v9290_v14  ;;  %5644 = vmatpush.bf16.msrb.mxu3 %v8761_v12  ;;  %v3647_v51 = vpop.f32.mrf.mxu0  ;;  %v10248_v61 = vld [vmem:[#allocation13 + $0x5b4] sm:$0xf]  ;;  %v9038_v14 = vld [vmem:[#allocation13 + $0x5cc] sm:$0xf0]  ;;  %v10273_v12 = vld [vmem:[#allocation13 + $0x678] sm:$0xf0] }
 0x2ce   :  { %v3648_v36 = vadd.f32 %v3647_v51, %v2629_v33  ;;  %v9041_v9 = vor.u32 %v10248_v61, %v9038_v14  ;;  %v9129_v1 = vor.u32 %v10273_v12, %v9128_v62  ;;  %v10154_v62 = vld [vmem:[#allocation13 + $0x2c0] sm:$0xf0]  ;;  %v9324_v12 = vld [vmem:[#allocation13 + $0x7e8] sm:$0xf] }
 0x2cf   :  { %5561 = vmatmul.bf16.vlgmr.msra.gmra.mxu1 %v11024_v2 }
 0x2d0   :  { %v3631_v18 = vpop.f32.mrf.mxu3  ;;  %5665 = vmatpush.bf16.msra.mxu1 %v9405_v26  ;;  %v10304_v26 = vld [vmem:[#allocation13 + $0x774] sm:$0xf]  ;;  %5651 = vmatpush.bf16.msra.mxu0 %v9181_v29 }
 0x2d1   :  { %v3632_v58 = vadd.f32 %v3631_v18, %v3618_v38  ;;  %v9265_v42 = vor.u32 %v10304_v26, %v9262_v60  ;;  %v9234_v18 = vld [vmem:[#allocation13 + $0x754] sm:$0xf0]  ;;  %v9209_v38 = vor.u32 %v10290_v21, %v9206_v22  ;;  %v3675_v29 = vpop.f32.mrf.mxu2  ;;  %v8982_v21 = vld [vmem:[#allocation13 + $0x55c] sm:$0xf0]  ;;  %v9072_v22 = vld [vmem:[#allocation13 + $0x5f0] sm:$0xf] }
 0x2d2   :  { %v9237_v56 = vor.u32 %v10297_v30, %v9234_v18  ;;  %v8316_v30 = vld [vmem:[#allocation13 + $0x8] sm:$0xf] }
 0x2d3   :  { %v3750_v34 = vmax.f32 %v3632_v58, 0.0  ;;  %v9066_v58 = vld [vmem:[#allocation13 + $0x604] sm:$0xf0] }
 0x2d4   :  { %5666 = vmatpush.bf16.msra.mxu1 %v9377_v63  ;;  %5652 = vmatpush.bf16.msra.mxu0 %v9153_v5  ;;  %v10269_v63 = vld [vmem:[#allocation13 + $0x65c] sm:$0xf]  ;;  %v9010_v5 = vld [vmem:[#allocation13 + $0x594] sm:$0xf0] }
 0x2d5   :  { %v9125_v11 = vor.u32 %v10269_v63, %v9122_v8  ;;  %v8736_v63 = vld [vmem:[#allocation13 + $0x350] sm:$0xf]  ;;  %v10175_v8 = vld [vmem:[#allocation13 + $0x368] sm:$0xf0] }
 0x2d8   :  { %v3633_v53 = vpop.f32.mrf.mxu3  ;;  %5667 = vmatpush.bf16.msra.mxu1 %v9349_v31  ;;  %5653 = vmatpush.bf16.msra.mxu0 %v9125_v11  ;;  %v9097_v31 = vor.u32 %v10262_v47, %v9094_v23  ;;  %v9408_v11 = vld [vmem:[#allocation13 + $0x890] sm:$0xf]  ;;  %v10259_v47 = vld [vmem:[#allocation13 + $0x608] sm:$0xf0] }
 0x2d9   :  { %v3634_v59 = vadd.f32 %v3633_v53, %v3620_v35  ;;  %v10255_v35 = vld [vmem:[#allocation13 + $0x5ec] sm:$0xf]  ;;  %v3646_v53 = vadd.f32 %v3645_v19, %v2629_v33  ;;  %v10070_v19 = vld [vmem:[#allocation13 + $0x20] sm:$0xf0]  ;;  %v8708_v33 = vld [vmem:[#allocation13 + $0x318] sm:$0xf] }
 0x2da   :  { %v9069_v52 = vor.u32 %v10255_v35, %v9066_v58  ;;  %v3701_v35 = vpop.f32.mrf.mxu0 }
 0x2db   :  { %v3755_v44 = vmax.f32 %v3634_v59, 0.0  ;;  %v9157_v59 = vor.u32 %v10280_v48, %v9156_v46  ;;  %v3660_v28 = vadd.f32 %v3659_v32, %v3646_v53  ;;  %v8737_v32 = vor.u32 %v10175_v8, %v8736_v63  ;;  %v9044_v46 = vld [vmem:[#allocation13 + $0x5b8] sm:$0xf]  ;;  %v10252_v48 = vld [vmem:[#allocation13 + $0x5d0] sm:$0xf0] }
 0x2dc   :  { %5668 = vmatpush.bf16.msra.mxu1 %v9321_v54  ;;  %5654 = vmatpush.bf16.msra.mxu0 %v9097_v31  ;;  %v8401_v54 = vor.u32 %v10091_v43, %v8400_v40  ;;  %v8317_v31 = vor.u32 %v10070_v19, %v8316_v30  ;;  %v9380_v40 = vld [vmem:[#allocation13 + $0x858] sm:$0xf]  ;;  %v10336_v43 = vld [vmem:[#allocation13 + $0x870] sm:$0xf0]  ;;  %v10161_v53 = vld [vmem:[#allocation13 + $0x2f8] sm:$0xf0] }
 0x2dd   :  { %v11027_v49 = vpack.c.bf16 %v3755_v44, %v3750_v34  ;;  %v8373_v34 = vor.u32 %v10084_v39, %v8372_v55  ;;  %v3661_v44 = vpop.f32.mrf.mxu1  ;;  %v3674_v60 = vadd.f32 %v3673_v0, %v3660_v28  ;;  %v9409_v0 = vor.u32 %v10343_v20, %v9408_v11  ;;  %v10329_v55 = vld [vmem:[#allocation13 + $0x838] sm:$0xf0]  ;;  %v9016_v39 = vld [vmem:[#allocation13 + $0x580] sm:$0xf]  ;;  %v8596_v30 = vld [vmem:[#allocation13 + $0x238] sm:$0xf] }
 0x2de   :  { %v3662_v26 = vadd.f32 %v3661_v44, %v3648_v36  ;;  %v9381_v51 = vor.u32 %v10336_v43, %v9380_v40  ;;  %v8652_v36 = vld [vmem:[#allocation13 + $0x2a8] sm:$0xf]  ;;  %v3729_v44 = vpop.f32.mrf.mxu2  ;;  %v9268_v63 = vld [vmem:[#allocation13 + $0x778] sm:$0xf]  ;;  %v10308_v8 = vld [vmem:[#allocation13 + $0x790] sm:$0xf0] }
 0x2df   :  { %5575 = vmatmul.bf16.vlgmr.msra.gmra.mxu2 %v11027_v49  ;;  %5617 = vmatmul.bf16.vlgmr.msrb.gmra.mxu1 %v11018_v17  ;;  %v10126_v43 = vld [vmem:[#allocation13 + $0x1e0] sm:$0xf0] }
 0x2e0   :  { %5679 = vmatpush.bf16.msra.mxu2 %v8513_v24  ;;  %5669 = vmatpush.bf16.msra.mxu1 %v9293_v3  ;;  %v8344_v24 = vld [vmem:[#allocation13 + $0x40] sm:$0xf]  ;;  %v9100_v3 = vld [vmem:[#allocation13 + $0x628] sm:$0xf]  ;;  %v3676_v41 = vadd.f32 %v3675_v29, %v3662_v26  ;;  %v8624_v26 = vld [vmem:[#allocation13 + $0x270] sm:$0xf] }
 0x2e1   :  { %5655 = vmatpush.bf16.msra.mxu0 %v9069_v52  ;;  %v8680_v52 = vld [vmem:[#allocation13 + $0x2e0] sm:$0xf]  ;;  %v8988_v29 = vld [vmem:[#allocation13 + $0x548] sm:$0xf] }
 0x2e2   :  { %v8681_v61 = vor.u32 %v10161_v53, %v8680_v52  ;;  %v8514_v52 = vld [vmem:[#allocation13 + $0x1ac] sm:$0xf0]  ;;  %v10228_v53 = vld [vmem:[#allocation13 + $0x514] sm:$0xf] }
 0x2e4   :  { %5680 = vmatpush.bf16.msra.mxu2 %v8485_v6  ;;  %5670 = vmatpush.bf16.msra.mxu1 %v9265_v42  ;;  %v9013_v6 = vor.u32 %v10241_v27, %v9010_v5  ;;  %v8345_v42 = vor.u32 %v10077_v50, %v8344_v24  ;;  %v10238_v24 = vld [vmem:[#allocation13 + $0x560] sm:$0xf0]  ;;  %v2630_v50 = vperm.slane %v11008_v10, 4  ;;  %v10315_v27 = vld [vmem:[#allocation13 + $0x7c8] sm:$0xf0] }
 0x2e5   :  { %5656 = vmatpush.bf16.msra.mxu0 %v9041_v9  ;;  %v10322_v9 = vld [vmem:[#allocation13 + $0x800] sm:$0xf0]  ;;  %v8989_v5 = vor.u32 %v10238_v24, %v8988_v29  ;;  %v10140_v10 = vld [vmem:[#allocation13 + $0x250] sm:$0xf0]  ;;  %v10109_v29 = vld [vmem:[#allocation13 + $0x15c] sm:$0xf] }
 0x2e6   :  { %v8597_v20 = vor.u32 %v10140_v10, %v8596_v30  ;;  %v8486_v24 = vld [vmem:[#allocation13 + $0x174] sm:$0xf0]  ;;  %v10214_v30 = vld [vmem:[#allocation13 + $0x4a4] sm:$0xf]  ;;  %v9130_v10 = vld [vmem:[#allocation13 + $0x67c] sm:$0xf0] }
 0x2e8   :  { %5681 = vmatpush.bf16.msra.mxu2 %v8457_v13  ;;  %5671 = vmatpush.bf16.msra.mxu1 %v9237_v56  ;;  %v9101_v13 = vor.u32 %v10266_v4, %v9100_v3  ;;  %v10234_v56 = vld [vmem:[#allocation13 + $0x544] sm:$0xf]  ;;  %v9325_v3 = vor.u32 %v10322_v9, %v9324_v12  ;;  %v9296_v4 = vld [vmem:[#allocation13 + $0x7b0] sm:$0xf]  ;;  %v8932_v9 = vld [vmem:[#allocation13 + $0x4d8] sm:$0xf] }
 0x2e9   :  { %5657 = vmatpush.bf16.msra.mxu0 %v9013_v6  ;;  %v8985_v23 = vor.u32 %v10234_v56, %v8982_v21  ;;  %v3703_v6 = vpop.f32.mrf.mxu0  ;;  %v9269_v56 = vor.u32 %v10308_v8, %v9268_v63  ;;  %v8568_v21 = vld [vmem:[#allocation13 + $0x200] sm:$0xf] }
 0x2ea   :  { %v3704_v19 = vadd.f32 %v3703_v6, %v2630_v50 }
 0x2ec   :  { %5682 = vmatpush.bf16.msra.mxu2 %v8429_v37  ;;  %5672 = vmatpush.bf16.msra.mxu1 %v9209_v38  ;;  %v10168_v38 = vld [vmem:[#allocation13 + $0x330] sm:$0xf0] }
 0x2ed   :  { %5658 = vmatpush.bf16.msra.mxu0 %v8985_v23  ;;  %v8709_v58 = vor.u32 %v10168_v38, %v8708_v33  ;;  %v9240_v23 = vld [vmem:[#allocation13 + $0x740] sm:$0xf]  ;;  %v8540_v38 = vld [vmem:[#allocation13 + $0x1c8] sm:$0xf] }
 0x2ef   :  { %5631 = vmatmul.bf16.vlgmr.msrb.gmra.mxu2 %v11024_v2 }
 0x2f0   :  { %v3687_v57 = vpop.f32.mrf.mxu3  ;;  %5721 = vmatpush.bf16.msrb.mxu1 %v9185_v45  ;;  %5683 = vmatpush.bf16.msra.mxu2 %v8401_v54  ;;  %v9073_v45 = vor.u32 %v10259_v47, %v9072_v22  ;;  %v9352_v54 = vld [vmem:[#allocation13 + $0x820] sm:$0xf]  ;;  %v10133_v47 = vld [vmem:[#allocation13 + $0x218] sm:$0xf0] }
 0x2f1   :  { %v3688_v7 = vadd.f32 %v3687_v57, %v3674_v60  ;;  %v9045_v57 = vor.u32 %v10252_v48, %v9044_v46  ;;  %v9353_v14 = vor.u32 %v10329_v55, %v9352_v54  ;;  %v10147_v60 = vld [vmem:[#allocation13 + $0x288] sm:$0xf0]  ;;  %v8962_v54 = vld [vmem:[#allocation13 + $0x52c] sm:$0xf0] }
 0x2f2   :  { %v10231_v46 = vld [vmem:[#allocation13 + $0x528] sm:$0xf0] }
 0x2f3   :  { %v3751_v25 = vmax.f32 %v3688_v7, 0.0  ;;  %v8625_v7 = vor.u32 %v10147_v60, %v8624_v26  ;;  %v9158_v26 = vld [vmem:[#allocation13 + $0x6b4] sm:$0xf0] }
 0x2f4   :  { %5722 = vmatpush.bf16.msrb.mxu1 %v9157_v59  ;;  %5684 = vmatpush.bf16.msra.mxu2 %v8373_v34  ;;  %v10245_v59 = vld [vmem:[#allocation13 + $0x598] sm:$0xf0]  ;;  %v3715_v34 = vpop.f32.mrf.mxu1 }
 0x2f5   :  { %v9017_v28 = vor.u32 %v10245_v59, %v9016_v39  ;;  %v8541_v39 = vor.u32 %v10126_v43, %v8540_v38  ;;  %v10284_v59 = vld [vmem:[#allocation13 + $0x6d4] sm:$0xf]  ;;  %v8402_v43 = vld [vmem:[#allocation13 + $0xcc] sm:$0xf0] }
 0x2f8   :  { %v3689_v18 = vpop.f32.mrf.mxu3  ;;  %5723 = vmatpush.bf16.msrb.mxu1 %v9129_v1  ;;  %5685 = vmatpush.bf16.msra.mxu2 %v8345_v42  ;;  %v8653_v1 = vor.u32 %v10154_v62, %v8652_v36  ;;  %v9297_v42 = vor.u32 %v10315_v27, %v9296_v4  ;;  %v8489_v4 = vor.u32 %v10109_v29, %v8486_v24  ;;  %v8904_v27 = vld [vmem:[#allocation13 + $0x4a0] sm:$0xf]  ;;  %v10074_v24 = vld [vmem:[#allocation13 + $0x44] sm:$0xf] }
 0x2f9   :  { %v3690_v15 = vadd.f32 %v3689_v18, %v3676_v41  ;;  %v3702_v41 = vadd.f32 %v3701_v35, %v2630_v50  ;;  %v9212_v35 = vld [vmem:[#allocation13 + $0x708] sm:$0xf]  ;;  %v10221_v50 = vld [vmem:[#allocation13 + $0x4dc] sm:$0xf] }
 0x2fb   :  { %v3756_v16 = vmax.f32 %v3690_v15, 0.0  ;;  %v3716_v11 = vadd.f32 %v3715_v34, %v3702_v41  ;;  %v3731_v15 = vpop.f32.mrf.mxu2  ;;  %v8965_v34 = vor.u32 %v10228_v53, %v8962_v54  ;;  %v10196_v53 = vld [vmem:[#allocation13 + $0x410] sm:$0xf0] }
 0x2fc   :  { %5724 = vmatpush.bf16.msrb.mxu1 %v9101_v13  ;;  %5686 = vmatpush.bf16.msra.mxu2 %v8317_v31  ;;  %v3717_v13 = vpop.f32.mrf.mxu1 }
 0x2fd   :  { %v11033_v37 = vpack.c.bf16 %v3756_v16, %v3751_v25  ;;  %v3718_v22 = vadd.f32 %v3717_v13, %v3704_v19  ;;  %v10301_v25 = vld [vmem:[#allocation13 + $0x758] sm:$0xf0]  ;;  %v3730_v16 = vadd.f32 %v3729_v44, %v3716_v11  ;;  %v8906_v19 = vld [vmem:[#allocation13 + $0x4bc] sm:$0xf0]  ;;  %v8876_v11 = vld [vmem:[#allocation13 + $0x468] sm:$0xf] }
 0x2fe   :  { %v9241_v33 = vor.u32 %v10301_v25, %v9240_v23  ;;  %v10210_v13 = vld [vmem:[#allocation13 + $0x480] sm:$0xf0]  ;;  %v10263_v23 = vld [vmem:[#allocation13 + $0x62c] sm:$0xf]  ;;  %v9102_v25 = vld [vmem:[#allocation13 + $0x644] sm:$0xf0] }
 0x2ff   :  { %5589 = vmatmul.bf16.vlgmr.msra.gmra.mxu3 %v11033_v37  ;;  %5687 = vmatmul.bf16.vlgmr.msra.gmra.mxu2 %v11018_v17  ;;  %v3732_v31 = vadd.f32 %v3731_v15, %v3718_v22  ;;  %v8909_v15 = vor.u32 %v10214_v30, %v8906_v19  ;;  %v10207_v22 = vld [vmem:[#allocation13 + $0x46c] sm:$0xf]  ;;  %v9105_v38 = vor.u32 %v10263_v23, %v9102_v25  ;;  %v8968_v23 = vld [vmem:[#allocation13 + $0x518] sm:$0xf]  ;;  %v10232_v25 = vld [vmem:[#allocation13 + $0x530] sm:$0xf0] }
 0x300   :  { %5693 = vmatpush.bf16.msra.mxu3 %v8737_v32  ;;  %5735 = vmatpush.bf16.msrb.mxu2 %v9409_v0  ;;  %v8569_v0 = vor.u32 %v10133_v47, %v8568_v21  ;;  %v8430_v21 = vld [vmem:[#allocation13 + $0x104] sm:$0xf0] }
 0x301   :  { %5725 = vmatpush.bf16.msrb.mxu1 %v9073_v45  ;;  %v8960_v45 = vld [vmem:[#allocation13 + $0x510] sm:$0xf]  ;;  %v8878_v47 = vld [vmem:[#allocation13 + $0x484] sm:$0xf0] }
 0x304   :  { %5694 = vmatpush.bf16.msra.mxu3 %v8709_v58  ;;  %5736 = vmatpush.bf16.msrb.mxu2 %v9381_v51  ;;  %v10294_v58 = vld [vmem:[#allocation13 + $0x720] sm:$0xf0]  ;;  %v10116_v51 = vld [vmem:[#allocation13 + $0x194] sm:$0xf] }
 0x305   :  { %5726 = vmatpush.bf16.msrb.mxu1 %v9045_v57  ;;  %v9213_v62 = vor.u32 %v10294_v58, %v9212_v35  ;;  %v8517_v12 = vor.u32 %v10116_v51, %v8514_v52  ;;  %v9074_v35 = vld [vmem:[#allocation13 + $0x60c] sm:$0xf0]  ;;  %v8820_v52 = vld [vmem:[#allocation13 + $0x3f8] sm:$0xf] }
 0x308   :  { %5695 = vmatpush.bf16.msra.mxu3 %v8681_v61  ;;  %5737 = vmatpush.bf16.msrb.mxu2 %v9353_v14  ;;  %v9186_v61 = vld [vmem:[#allocation13 + $0x6ec] sm:$0xf0]  ;;  %v8961_v14 = vor.u32 %v10231_v46, %v8960_v45  ;;  %v10200_v45 = vld [vmem:[#allocation13 + $0x434] sm:$0xf] }
 0x309   :  { %5727 = vmatpush.bf16.msrb.mxu1 %v9017_v28  ;;  %v10224_v28 = vld [vmem:[#allocation13 + $0x4f0] sm:$0xf0]  ;;  %v9189_v44 = vor.u32 %v10284_v59, %v9186_v61  ;;  %v8850_v46 = vld [vmem:[#allocation13 + $0x44c] sm:$0xf0]  ;;  %v10193_v59 = vld [vmem:[#allocation13 + $0x3fc] sm:$0xf] }
 0x30a   :  { %v8933_v60 = vor.u32 %v10224_v28, %v8932_v9  ;;  %v8853_v54 = vor.u32 %v10200_v45, %v8850_v46  ;;  %v8822_v61 = vld [vmem:[#allocation13 + $0x414] sm:$0xf0]  ;;  %v8792_v28 = vld [vmem:[#allocation13 + $0x3c0] sm:$0xf] }
 0x30b   :  { %v9382_v45 = vld [vmem:[#allocation13 + $0x874] sm:$0xf0]  ;;  %v8716_v46 = vld [vmem:[#allocation13 + $0x320] sm:$0xf] }
 0x30c   :  { %5696 = vmatpush.bf16.msra.mxu3 %v8653_v1  ;;  %5738 = vmatpush.bf16.msrb.mxu2 %v9325_v3  ;;  %v8934_v1 = vld [vmem:[#allocation13 + $0x4f4] sm:$0xf0]  ;;  %v10277_v3 = vld [vmem:[#allocation13 + $0x69c] sm:$0xf] }
 0x30d   :  { %5728 = vmatpush.bf16.msrb.mxu1 %v8989_v5  ;;  %v10217_v5 = vld [vmem:[#allocation13 + $0x4b8] sm:$0xf0]  ;;  %v8937_v6 = vor.u32 %v10221_v50, %v8934_v1  ;;  %v9161_v41 = vor.u32 %v10277_v3, %v9158_v26  ;;  %v8346_v50 = vld [vmem:[#allocation13 + $0x5c] sm:$0xf0]  ;;  %v10186_v1 = vld [vmem:[#allocation13 + $0x3c4] sm:$0xf] }
 0x30e   :  { %v8905_v63 = vor.u32 %v10217_v5, %v8904_v27  ;;  %v8794_v3 = vld [vmem:[#allocation13 + $0x3dc] sm:$0xf0]  ;;  %v10242_v26 = vld [vmem:[#allocation13 + $0x584] sm:$0xf]  ;;  %v8764_v27 = vld [vmem:[#allocation13 + $0x388] sm:$0xf] }
 0x30f   :  { %5645 = vmatmul.bf16.vlgmr.msrb.gmra.mxu3 %v11027_v49  ;;  %v10182_v5 = vld [vmem:[#allocation13 + $0x3a0] sm:$0xf0]  ;;  %v8797_v30 = vor.u32 %v10186_v1, %v8794_v3  ;;  %v9326_v1 = vld [vmem:[#allocation13 + $0x804] sm:$0xf0]  ;;  %v8660_v3 = vld [vmem:[#allocation13 + $0x2b0] sm:$0xf] }
 0x310   :  { %v3743_v18 = vpop.f32.mrf.mxu3  ;;  %5697 = vmatpush.bf16.msra.mxu3 %v8625_v7  ;;  %5739 = vmatpush.bf16.msrb.mxu2 %v9297_v42  ;;  %v10102_v7 = vld [vmem:[#allocation13 + $0x124] sm:$0xf]  ;;  %v8458_v42 = vld [vmem:[#allocation13 + $0x13c] sm:$0xf0] }
 0x311   :  { %v3744_v32 = vadd.f32 %v3743_v18, %v3730_v16  ;;  %v10270_v18 = vld [vmem:[#allocation13 + $0x664] sm:$0xf]  ;;  %v8461_v8 = vor.u32 %v10102_v7, %v8458_v42  ;;  %v8877_v16 = vor.u32 %v10210_v13, %v8876_v11  ;;  %v8318_v7 = vld [vmem:[#allocation13 + $0x24] sm:$0xf0]  ;;  %v10179_v42 = vld [vmem:[#allocation13 + $0x38c] sm:$0xf] }
 0x312   :  { %v8990_v11 = vld [vmem:[#allocation13 + $0x564] sm:$0xf0]  ;;  %v10340_v13 = vld [vmem:[#allocation13 + $0x894] sm:$0xf] }
 0x313   :  { %v3752_v55 = vmax.f32 %v3744_v32, 0.0  ;;  %v8848_v32 = vld [vmem:[#allocation13 + $0x430] sm:$0xf] }
 0x314   :  { %5698 = vmatpush.bf16.msra.mxu3 %v8597_v20  ;;  %5740 = vmatpush.bf16.msrb.mxu2 %v9269_v56  ;;  %v9133_v20 = vor.u32 %v10270_v18, %v9130_v10  ;;  %v10095_v56 = vld [vmem:[#allocation13 + $0xec] sm:$0xf]  ;;  %v8766_v18 = vld [vmem:[#allocation13 + $0x3a4] sm:$0xf0]  ;;  %v10172_v10 = vld [vmem:[#allocation13 + $0x354] sm:$0xf] }
 0x318   :  { %v3745_v40 = vpop.f32.mrf.mxu3  ;;  %5699 = vmatpush.bf16.msra.mxu3 %v8569_v0  ;;  %5741 = vmatpush.bf16.msrb.mxu2 %v9241_v33  ;;  %v10203_v0 = vld [vmem:[#allocation13 + $0x448] sm:$0xf0]  ;;  %v8881_v33 = vor.u32 %v10207_v22, %v8878_v47 }
 0x319   :  { %v3746_v48 = vadd.f32 %v3745_v40, %v3732_v31  ;;  %v8433_v31 = vor.u32 %v10095_v56, %v8430_v21  ;;  %v10088_v40 = vld [vmem:[#allocation13 + $0xb4] sm:$0xf]  ;;  %v8849_v58 = vor.u32 %v10203_v0, %v8848_v32  ;;  %v8744_v56 = vld [vmem:[#allocation13 + $0x358] sm:$0xf] }
 0x31a   :  { %v8405_v51 = vor.u32 %v10088_v40, %v8402_v43  ;;  %v10176_v21 = vld [vmem:[#allocation13 + $0x370] sm:$0xf0]  ;;  %v10333_v40 = vld [vmem:[#allocation13 + $0x85c] sm:$0xf]  ;;  %v8969_v43 = vor.u32 %v10232_v25, %v8968_v23  ;;  %v8604_v23 = vld [vmem:[#allocation13 + $0x240] sm:$0xf] }
 0x31b   :  { %v3757_v57 = vmax.f32 %v3746_v48, 0.0  ;;  %v10256_v48 = vld [vmem:[#allocation13 + $0x5f4] sm:$0xf]  ;;  %v8745_v0 = vor.u32 %v10176_v21, %v8744_v56  ;;  %v8598_v56 = vld [vmem:[#allocation13 + $0x254] sm:$0xf0] }
 0x31c   :  { %5700 = vmatpush.bf16.msra.mxu3 %v8541_v39  ;;  %5742 = vmatpush.bf16.msrb.mxu2 %v9213_v62  ;;  %v8374_v39 = vld [vmem:[#allocation13 + $0x94] sm:$0xf0]  ;;  %v10305_v21 = vld [vmem:[#allocation13 + $0x77c] sm:$0xf] }
 0x31d   :  { %v11039_v36 = vpack.c.bf16 %v3757_v57, %v3752_v55  ;;  %v9077_v55 = vor.u32 %v10256_v48, %v9074_v35  ;;  %v10081_v57 = vld [vmem:[#allocation13 + $0x7c] sm:$0xf]  ;;  %v9046_v62 = vld [vmem:[#allocation13 + $0x5d4] sm:$0xf0]  ;;  %v8940_v35 = vld [vmem:[#allocation13 + $0x4e0] sm:$0xf] }
 0x31e   :  { %v8377_v9 = vor.u32 %v10081_v57, %v8374_v39  ;;  %v10169_v48 = vld [vmem:[#allocation13 + $0x338] sm:$0xf0]  ;;  %v10326_v57 = vld [vmem:[#allocation13 + $0x824] sm:$0xf] }
 0x31f   :  { %5603 = vmatmul.bf16.vlgmr.msrb.gmra.mxu0 %v11039_v36  ;;  %5673 = vmatmul.bf16.vlgmr.msra.gmra.mxu1 %v11039_v36  ;;  %v10141_v25 = vld [vmem:[#allocation13 + $0x258] sm:$0xf0] }
 0x320   :  { %5707 = vmatpush.bf16.msrb.mxu0 %v8961_v14  ;;  %5749 = vmatpush.bf16.msrb.mxu3 %v8517_v12  ;;  %v10249_v14 = vld [vmem:[#allocation13 + $0x5bc] sm:$0xf]  ;;  %v8821_v12 = vor.u32 %v10196_v53, %v8820_v52  ;;  %v9385_v52 = vor.u32 %v10333_v40, %v9382_v45  ;;  %v8717_v53 = vor.u32 %v10169_v48, %v8716_v46  ;;  %v8570_v40 = vld [vmem:[#allocation13 + $0x21c] sm:$0xf0]  ;;  %v8576_v48 = vld [vmem:[#allocation13 + $0x208] sm:$0xf] }
 0x321   :  { %5777 = vmatpush.bf16.msra.mxu1 %v8965_v34  ;;  %5791 = vmatpush.bf16.msra.mxu2 %v9189_v44  ;;  %v10189_v34 = vld [vmem:[#allocation13 + $0x3d8] sm:$0xf0]  ;;  %v8825_v44 = vor.u32 %v10193_v59, %v8822_v61  ;;  %v9049_v29 = vor.u32 %v10249_v14, %v9046_v62  ;;  %v9354_v59 = vld [vmem:[#allocation13 + $0x83c] sm:$0xf0]  ;;  %v8688_v61 = vld [vmem:[#allocation13 + $0x2e8] sm:$0xf] }
 0x322   :  { %5701 = vmatmul.bf16.vlgmr.msra.gmra.mxu3 %v11024_v2  ;;  %5743 = vmatmul.bf16.vlgmr.msrb.gmra.mxu2 %v11039_v36  ;;  %v10162_v14 = vld [vmem:[#allocation13 + $0x300] sm:$0xf0]  ;;  %v8912_v62 = vld [vmem:[#allocation13 + $0x4a8] sm:$0xf]  ;;  %v9242_v46 = vld [vmem:[#allocation13 + $0x75c] sm:$0xf0] }
 0x324   :  { %5708 = vmatpush.bf16.msrb.mxu0 %v8933_v60  ;;  %5750 = vmatpush.bf16.msrb.mxu3 %v8489_v4  ;;  %v9018_v60 = vld [vmem:[#allocation13 + $0x59c] sm:$0xf0]  ;;  %v8793_v4 = vor.u32 %v10189_v34, %v8792_v28  ;;  %v9357_v28 = vor.u32 %v10326_v57, %v9354_v59  ;;  %v8689_v34 = vor.u32 %v10162_v14, %v8688_v61  ;;  %v9214_v59 = vld [vmem:[#allocation13 + $0x724] sm:$0xf0]  ;;  %v8548_v61 = vld [vmem:[#allocation13 + $0x1d0] sm:$0xf] }
 0x325   :  { %5778 = vmatpush.bf16.msra.mxu1 %v8937_v6  ;;  %5792 = vmatpush.bf16.msra.mxu2 %v9161_v41  ;;  %v8349_v6 = vor.u32 %v10074_v24, %v8346_v50  ;;  %v10067_v41 = vld [vmem:[#allocation13 + $0xc] sm:$0xf]  ;;  %v9021_v19 = vor.u32 %v10242_v26, %v9018_v60  ;;  %v8884_v60 = vld [vmem:[#allocation13 + $0x470] sm:$0xf] }
 0x326   :  { %v8321_v22 = vor.u32 %v10067_v41, %v8318_v7  ;;  %v10319_v24 = vld [vmem:[#allocation13 + $0x7ec] sm:$0xf]  ;;  %v10144_v41 = vld [vmem:[#allocation13 + $0x274] sm:$0xf]  ;;  %v8626_v7 = vld [vmem:[#allocation13 + $0x28c] sm:$0xf0] }
 0x327   :  { %v10155_v26 = vld [vmem:[#allocation13 + $0x2c8] sm:$0xf0] }
 0x328   :  { %5709 = vmatpush.bf16.msrb.mxu0 %v8905_v63  ;;  %5751 = vmatpush.bf16.msrb.mxu3 %v8461_v8  ;;  %v8738_v63 = vld [vmem:[#allocation13 + $0x36c] sm:$0xf0]  ;;  %v10235_v8 = vld [vmem:[#allocation13 + $0x54c] sm:$0xf] }
 0x329   :  { %5779 = vmatpush.bf16.msra.mxu1 %v8909_v15  ;;  %5793 = vmatpush.bf16.msra.mxu2 %v9133_v20  ;;  %v8765_v15 = vor.u32 %v10182_v5, %v8764_v27  ;;  %v9410_v20 = vld [vmem:[#allocation13 + $0x8ac] sm:$0xf0]  ;;  %v8741_v47 = vor.u32 %v10172_v10, %v8738_v63  ;;  %v9329_v5 = vor.u32 %v10319_v24, %v9326_v1  ;;  %v10148_v10 = vld [vmem:[#allocation13 + $0x290] sm:$0xf0]  ;;  %v8856_v63 = vld [vmem:[#allocation13 + $0x438] sm:$0xf] }
 0x32a   :  { %v9413_v32 = vor.u32 %v10340_v13, %v9410_v20  ;;  %v10137_v20 = vld [vmem:[#allocation13 + $0x23c] sm:$0xf]  ;;  %v10288_v24 = vld [vmem:[#allocation13 + $0x6f0] sm:$0xf0]  ;;  %v8522_v1 = vld [vmem:[#allocation13 + $0x1b4] sm:$0xf0] }
 0x32c   :  { %5710 = vmatpush.bf16.msrb.mxu0 %v8877_v16  ;;  %5752 = vmatpush.bf16.msrb.mxu3 %v8433_v31  ;;  %v8769_v16 = vor.u32 %v10179_v42, %v8766_v18  ;;  %v8993_v31 = vor.u32 %v10235_v8, %v8990_v11  ;;  %v10312_v42 = vld [vmem:[#allocation13 + $0x7b4] sm:$0xf]  ;;  %v8632_v18 = vld [vmem:[#allocation13 + $0x278] sm:$0xf]  ;;  %v8629_v11 = vor.u32 %v10144_v41, %v8626_v7  ;;  %v8492_v7 = vld [vmem:[#allocation13 + $0x160] sm:$0xf] }
 0x32d   :  { %5780 = vmatpush.bf16.msra.mxu1 %v8881_v33  ;;  %5794 = vmatpush.bf16.msra.mxu2 %v9105_v38  ;;  %v10165_v33 = vld [vmem:[#allocation13 + $0x31c] sm:$0xf]  ;;  %v8710_v38 = vld [vmem:[#allocation13 + $0x334] sm:$0xf0]  ;;  %v10204_v8 = vld [vmem:[#allocation13 + $0x450] sm:$0xf0] }
 0x32f   :  { %5659 = vmatmul.bf16.vlgmr.msra.gmra.mxu0 %v11033_v37  ;;  %5729 = vmatmul.bf16.vlgmr.msrb.gmra.mxu1 %v11033_v37 }
 0x330   :  { %5711 = vmatpush.bf16.msrb.mxu0 %v8849_v58  ;;  %5753 = vmatpush.bf16.msrb.mxu3 %v8405_v51  ;;  %v10225_v58 = vld [vmem:[#allocation13 + $0x4f8] sm:$0xf0]  ;;  %v8713_v51 = vor.u32 %v10165_v33, %v8710_v38  ;;  %v8605_v33 = vor.u32 %v10141_v25, %v8604_v23  ;;  %v10130_v38 = vld [vmem:[#allocation13 + $0x204] sm:$0xf]  ;;  %v10103_v25 = vld [vmem:[#allocation13 + $0x12c] sm:$0xf] }
 0x331   :  { %5781 = vmatpush.bf16.msra.mxu1 %v8853_v54  ;;  %5795 = vmatpush.bf16.msra.mxu2 %v9077_v55  ;;  %v10158_v54 = vld [vmem:[#allocation13 + $0x2e4] sm:$0xf]  ;;  %v8682_v55 = vld [vmem:[#allocation13 + $0x2fc] sm:$0xf0]  ;;  %v8941_v39 = vor.u32 %v10225_v58, %v8940_v35  ;;  %v8800_v58 = vld [vmem:[#allocation13 + $0x3c8] sm:$0xf] }
 0x332   :  { %v10134_v35 = vld [vmem:[#allocation13 + $0x220] sm:$0xf0] }
 0x333   :  { %v8577_v57 = vor.u32 %v10134_v35, %v8576_v48  ;;  %v10274_v23 = vld [vmem:[#allocation13 + $0x680] sm:$0xf0]  ;;  %v10267_v48 = vld [vmem:[#allocation13 + $0x648] sm:$0xf0]  ;;  %v10096_v35 = vld [vmem:[#allocation13 + $0xf4] sm:$0xf] }
 0x334   :  { %5712 = vmatpush.bf16.msrb.mxu0 %v8821_v12  ;;  %5754 = vmatpush.bf16.msrb.mxu3 %v8377_v9  ;;  %v10218_v12 = vld [vmem:[#allocation13 + $0x4c0] sm:$0xf0]  ;;  %v8685_v9 = vor.u32 %v10158_v54, %v8682_v55  ;;  %v8542_v54 = vld [vmem:[#allocation13 + $0x1e4] sm:$0xf0] }
 0x335   :  { %5782 = vmatpush.bf16.msra.mxu1 %v8825_v44  ;;  %5796 = vmatpush.bf16.msra.mxu2 %v9049_v29  ;;  %v10151_v44 = vld [vmem:[#allocation13 + $0x2ac] sm:$0xf]  ;;  %v8654_v29 = vld [vmem:[#allocation13 + $0x2c4] sm:$0xf0]  ;;  %v8913_v50 = vor.u32 %v10218_v12, %v8912_v62  ;;  %v8520_v12 = vld [vmem:[#allocation13 + $0x198] sm:$0xf] }
 0x336   :  { %v8657_v27 = vor.u32 %v10151_v44, %v8654_v29  ;;  %v10127_v62 = vld [vmem:[#allocation13 + $0x1e8] sm:$0xf0]  ;;  %v9192_v44 = vld [vmem:[#allocation13 + $0x6d8] sm:$0xf] }
 0x338   :  { %5713 = vmatpush.bf16.msrb.mxu0 %v8793_v4  ;;  %5755 = vmatpush.bf16.msrb.mxu3 %v8349_v6  ;;  %v10211_v4 = vld [vmem:[#allocation13 + $0x488] sm:$0xf0]  ;;  %v8661_v6 = vor.u32 %v10155_v26, %v8660_v3  ;;  %v8549_v26 = vor.u32 %v10127_v62, %v8548_v61  ;;  %v10089_v62 = vld [vmem:[#allocation13 + $0xbc] sm:$0xf] }
 0x339   :  { %5783 = vmatpush.bf16.msra.mxu1 %v8797_v30  ;;  %5797 = vmatpush.bf16.msra.mxu2 %v9021_v19  ;;  %v8885_v30 = vor.u32 %v10211_v4, %v8884_v60  ;;  %v9298_v19 = vld [vmem:[#allocation13 + $0x7cc] sm:$0xf0]  ;;  %v10173_v60 = vld [vmem:[#allocation13 + $0x35c] sm:$0xf]  ;;  %v8746_v4 = vld [vmem:[#allocation13 + $0x374] sm:$0xf0] }
 0x33a   :  { %v9301_v13 = vor.u32 %v10312_v42, %v9298_v19  ;;  %v10113_v42 = vld [vmem:[#allocation13 + $0x178] sm:$0xf0]  ;;  %v8749_v19 = vor.u32 %v10173_v60, %v8746_v4  ;;  %v10082_v60 = vld [vmem:[#allocation13 + $0x84] sm:$0xf]  ;;  %v8382_v4 = vld [vmem:[#allocation13 + $0x9c] sm:$0xf0] }
 0x33c   :  { %5714 = vmatpush.bf16.msrb.mxu0 %v8765_v15  ;;  %5756 = vmatpush.bf16.msrb.mxu3 %v8321_v22  ;;  %v8633_v15 = vor.u32 %v10148_v10, %v8632_v18  ;;  %v8857_v22 = vor.u32 %v10204_v8, %v8856_v63  ;;  %v10281_v18 = vld [vmem:[#allocation13 + $0x6b8] sm:$0xf0]  ;;  %v10110_v10 = vld [vmem:[#allocation13 + $0x164] sm:$0xf]  ;;  %v8494_v63 = vld [vmem:[#allocation13 + $0x17c] sm:$0xf0] }
 0x33d   :  { %5784 = vmatpush.bf16.msra.mxu1 %v8769_v16  ;;  %5798 = vmatpush.bf16.msra.mxu2 %v8993_v31  ;;  %v8828_v16 = vld [vmem:[#allocation13 + $0x400] sm:$0xf]  ;;  %v10197_v31 = vld [vmem:[#allocation13 + $0x418] sm:$0xf0]  ;;  %v10166_v8 = vld [vmem:[#allocation13 + $0x324] sm:$0xf] }
 0x33e   :  { %v8829_v45 = vor.u32 %v10197_v31, %v8828_v16  ;;  %v8466_v16 = vld [vmem:[#allocation13 + $0x144] sm:$0xf0]  ;;  %v10159_v31 = vld [vmem:[#allocation13 + $0x2ec] sm:$0xf] }
 0x33f   :  { %5757 = vmatmul.bf16.vlgmr.msrb.gmra.mxu3 %v11018_v17  ;;  %5715 = vmatmul.bf16.vlgmr.msrb.gmra.mxu0 %v11027_v49 }
 0x340   :  { %5763 = vmatpush.bf16.msra.mxu0 %v8741_v47  ;;  %5805 = vmatpush.bf16.msra.mxu3 %v9413_v32  ;;  %v9270_v47 = vld [vmem:[#allocation13 + $0x794] sm:$0xf0]  ;;  %v8601_v32 = vor.u32 %v10137_v20, %v8598_v56  ;;  %v8497_v20 = vor.u32 %v10110_v10, %v8494_v63  ;;  %v8464_v56 = vld [vmem:[#allocation13 + $0x128] sm:$0xf]  ;;  %v10246_v10 = vld [vmem:[#allocation13 + $0x5a0] sm:$0xf0] }
 0x341   :  { %5833 = vmatpush.bf16.msrb.mxu1 %v8745_v0  ;;  %5847 = vmatpush.bf16.msrb.mxu2 %v8969_v43  ;;  %v9273_v0 = vor.u32 %v10305_v21, %v9270_v47  ;;  %v10298_v43 = vld [vmem:[#allocation13 + $0x744] sm:$0xf]  ;;  %v10075_v63 = vld [vmem:[#allocation13 + $0x4c] sm:$0xf] }
 0x342   :  { %5785 = vmatmul.bf16.vlgmr.msra.gmra.mxu1 %v11027_v49  ;;  %5799 = vmatmul.bf16.vlgmr.msra.gmra.mxu2 %v11033_v37  ;;  %v9245_v55 = vor.u32 %v10298_v43, %v9242_v46  ;;  %v10106_v21 = vld [vmem:[#allocation13 + $0x140] sm:$0xf0]  ;;  %v10099_v43 = vld [vmem:[#allocation13 + $0x108] sm:$0xf0] }
 0x344   :  { %5764 = vmatpush.bf16.msra.mxu0 %v8713_v51  ;;  %5806 = vmatpush.bf16.msra.mxu3 %v9385_v52  ;;  %v10190_v51 = vld [vmem:[#allocation13 + $0x3e0] sm:$0xf0]  ;;  %v8573_v52 = vor.u32 %v10130_v38, %v8570_v40  ;;  %v8469_v38 = vor.u32 %v10103_v25, %v8466_v16  ;;  %v8436_v40 = vld [vmem:[#allocation13 + $0xf0] sm:$0xf]  ;;  %v10068_v25 = vld [vmem:[#allocation13 + $0x14] sm:$0xf] }
 0x345   :  { %5834 = vmatpush.bf16.msrb.mxu1 %v8717_v53  ;;  %5848 = vmatpush.bf16.msrb.mxu2 %v8941_v39  ;;  %v10123_v53 = vld [vmem:[#allocation13 + $0x1cc] sm:$0xf]  ;;  %v8801_v14 = vor.u32 %v10190_v51, %v8800_v58  ;;  %v8438_v58 = vld [vmem:[#allocation13 + $0x10c] sm:$0xf0]  ;;  %v10152_v51 = vld [vmem:[#allocation13 + $0x2b4] sm:$0xf] }
 0x346   :  { %v10291_v39 = vld [vmem:[#allocation13 + $0x70c] sm:$0xf]  ;;  %v8545_v29 = vor.u32 %v10123_v53, %v8542_v54  ;;  %v8437_v53 = vor.u32 %v10099_v43, %v8436_v40  ;;  %v10229_v40 = vld [vmem:[#allocation13 + $0x51c] sm:$0xf] }
 0x347   :  { %v9217_v3 = vor.u32 %v10291_v39, %v9214_v59  ;;  %v10092_v39 = vld [vmem:[#allocation13 + $0xd0] sm:$0xf0]  ;;  %v9080_v59 = vld [vmem:[#allocation13 + $0x5f8] sm:$0xf] }
 0x348   :  { %5765 = vmatpush.bf16.msra.mxu0 %v8685_v9  ;;  %5807 = vmatpush.bf16.msra.mxu3 %v9357_v28  ;;  %v10120_v9 = vld [vmem:[#allocation13 + $0x1b0] sm:$0xf0]  ;;  %v8772_v28 = vld [vmem:[#allocation13 + $0x390] sm:$0xf] }
 0x349   :  { %5835 = vmatpush.bf16.msrb.mxu1 %v8689_v34  ;;  %5849 = vmatpush.bf16.msrb.mxu2 %v8913_v50  ;;  %v10183_v34 = vld [vmem:[#allocation13 + $0x3a8] sm:$0xf0]  ;;  %v10117_v50 = vld [vmem:[#allocation13 + $0x19c] sm:$0xf] }
 0x34a   :  { %v8525_v41 = vor.u32 %v10117_v50, %v8522_v1  ;;  %v10085_v50 = vld [vmem:[#allocation13 + $0x98] sm:$0xf0]  ;;  %v9052_v1 = vld [vmem:[#allocation13 + $0x5c0] sm:$0xf] }
 0x34c   :  { %5766 = vmatpush.bf16.msra.mxu0 %v8657_v27  ;;  %5808 = vmatpush.bf16.msra.mxu3 %v9329_v5  ;;  %v8521_v27 = vor.u32 %v10120_v9, %v8520_v12  ;;  %v8773_v5 = vor.u32 %v10183_v34, %v8772_v28  ;;  %v8410_v12 = vld [vmem:[#allocation13 + $0xd4] sm:$0xf0]  ;;  %v10145_v9 = vld [vmem:[#allocation13 + $0x27c] sm:$0xf] }
 0x34d   :  { %5836 = vmatpush.bf16.msrb.mxu1 %v8661_v6  ;;  %5850 = vmatpush.bf16.msrb.mxu2 %v8885_v30  ;;  %v9193_v6 = vor.u32 %v10288_v24, %v9192_v44  ;;  %v9164_v30 = vld [vmem:[#allocation13 + $0x6a0] sm:$0xf]  ;;  %v8634_v28 = vld [vmem:[#allocation13 + $0x294] sm:$0xf0] }
 0x34e   :  { %v8380_v24 = vld [vmem:[#allocation13 + $0x80] sm:$0xf] }
 0x350   :  { %5767 = vmatpush.bf16.msra.mxu0 %v8629_v11  ;;  %5809 = vmatpush.bf16.msra.mxu3 %v9301_v13  ;;  %v8718_v11 = vld [vmem:[#allocation13 + $0x33c] sm:$0xf0]  ;;  %v8493_v13 = vor.u32 %v10113_v42, %v8492_v7  ;;  %v8385_v7 = vor.u32 %v10082_v60, %v8382_v4  ;;  %v8352_v42 = vld [vmem:[#allocation13 + $0x48] sm:$0xf]  ;;  %v10327_v4 = vld [vmem:[#allocation13 + $0x82c] sm:$0xf] }
 0x351   :  { %5837 = vmatpush.bf16.msrb.mxu1 %v8633_v15  ;;  %5851 = vmatpush.bf16.msrb.mxu2 %v8857_v22  ;;  %v9165_v15 = vor.u32 %v10281_v18, %v9164_v30  ;;  %v9136_v22 = vld [vmem:[#allocation13 + $0x668] sm:$0xf]  ;;  %v8721_v47 = vor.u32 %v10166_v8, %v8718_v11  ;;  %v10078_v30 = vld [vmem:[#allocation13 + $0x60] sm:$0xf0]  ;;  %v10131_v11 = vld [vmem:[#allocation13 + $0x20c] sm:$0xf] }
 0x352   :  { %v8354_v8 = vld [vmem:[#allocation13 + $0x64] sm:$0xf0] }
 0x353   :  { %v8914_v60 = vld [vmem:[#allocation13 + $0x4c4] sm:$0xf0] }
 0x354   :  { %5768 = vmatpush.bf16.msra.mxu0 %v8601_v32  ;;  %5810 = vmatpush.bf16.msra.mxu3 %v9273_v0  ;;  %v8690_v32 = vld [vmem:[#allocation13 + $0x304] sm:$0xf0]  ;;  %v8465_v0 = vor.u32 %v10106_v21, %v8464_v56  ;;  %v10071_v56 = vld [vmem:[#allocation13 + $0x28] sm:$0xf0] }
 0x355   :  { %5838 = vmatpush.bf16.msrb.mxu1 %v8605_v33  ;;  %5852 = vmatpush.bf16.msrb.mxu2 %v8829_v45  ;;  %v9137_v33 = vor.u32 %v10274_v23, %v9136_v22  ;;  %v9108_v45 = vld [vmem:[#allocation13 + $0x630] sm:$0xf]  ;;  %v8693_v46 = vor.u32 %v10159_v31, %v8690_v32  ;;  %v8357_v22 = vor.u32 %v10075_v63, %v8354_v8  ;;  %v10239_v23 = vld [vmem:[#allocation13 + $0x568] sm:$0xf0]  ;;  %v9416_v32 = vld [vmem:[#allocation13 + $0x898] sm:$0xf] }
 0x356   :  { %v9109_v54 = vor.u32 %v10267_v48, %v9108_v45  ;;  %v8326_v31 = vld [vmem:[#allocation13 + $0x2c] sm:$0xf0]  ;;  %v8970_v45 = vld [vmem:[#allocation13 + $0x534] sm:$0xf0]  ;;  %v10320_v8 = vld [vmem:[#allocation13 + $0x7f4] sm:$0xf] }
 0x357   :  { %v9418_v48 = vld [vmem:[#allocation13 + $0x8b4] sm:$0xf0]  ;;  %v8886_v63 = vld [vmem:[#allocation13 + $0x48c] sm:$0xf0] }
 0x358   :  { %5769 = vmatpush.bf16.msra.mxu0 %v8573_v52  ;;  %5811 = vmatpush.bf16.msra.mxu3 %v9245_v55  ;;  %v8662_v52 = vld [vmem:[#allocation13 + $0x2cc] sm:$0xf0]  ;;  %v8441_v55 = vor.u32 %v10096_v35, %v8438_v58  ;;  %v8329_v58 = vor.u32 %v10068_v25, %v8326_v31  ;;  %v11059_v25 = vpop.f32.mrf.mxu1  ;;  %v8858_v31 = vld [vmem:[#allocation13 + $0x454] sm:$0xf0] }
 0x359   :  { %5839 = vmatpush.bf16.msrb.mxu1 %v8577_v57  ;;  %5853 = vmatpush.bf16.msrb.mxu2 %v8801_v14  ;;  %v8408_v57 = vld [vmem:[#allocation13 + $0xb8] sm:$0xf]  ;;  %v8665_v61 = vor.u32 %v10152_v51, %v8662_v52  ;;  %v10260_v14 = vld [vmem:[#allocation13 + $0x610] sm:$0xf0]  ;;  %v8528_v51 = vld [vmem:[#allocation13 + $0x1a0] sm:$0xf] }
 0x35a   :  { %v8409_v34 = vor.u32 %v10092_v39, %v8408_v57  ;;  %v9081_v44 = vor.u32 %v10260_v14, %v9080_v59  ;;  %v10121_v52 = vld [vmem:[#allocation13 + $0x1b8] sm:$0xf0]  ;;  %v9388_v39 = vld [vmem:[#allocation13 + $0x860] sm:$0xf] }
 0x35b   :  { %v10337_v59 = vld [vmem:[#allocation13 + $0x878] sm:$0xf0]  ;;  %v8529_v14 = vor.u32 %v10121_v52, %v8528_v51  ;;  %v8830_v52 = vld [vmem:[#allocation13 + $0x41c] sm:$0xf0] }
 0x35c   :  { %5770 = vmatpush.bf16.msra.mxu0 %v8545_v29  ;;  %5812 = vmatpush.bf16.msra.mxu3 %v9217_v3  ;;  %v8413_v29 = vor.u32 %v10089_v62, %v8410_v12  ;;  %v8637_v3 = vor.u32 %v10145_v9, %v8634_v28  ;;  %v8942_v62 = vld [vmem:[#allocation13 + $0x4fc] sm:$0xf0]  ;;  %v10334_v12 = vld [vmem:[#allocation13 + $0x864] sm:$0xf]  ;;  %v8500_v28 = vld [vmem:[#allocation13 + $0x168] sm:$0xf] }
 0x35d   :  { %5840 = vmatpush.bf16.msrb.mxu1 %v8549_v26  ;;  %5854 = vmatpush.bf16.msrb.mxu2 %v8773_v5  ;;  %v10253_v26 = vld [vmem:[#allocation13 + $0x5d8] sm:$0xf0]  ;;  %v8606_v5 = vld [vmem:[#allocation13 + $0x25c] sm:$0xf0] }
 0x35e   :  { %v9390_v9 = vld [vmem:[#allocation13 + $0x87c] sm:$0xf0] }
 0x35f   :  { %5771 = vmatmul.bf16.vlgmr.msra.gmra.mxu0 %v11024_v2  ;;  %5813 = vmatmul.bf16.vlgmr.msra.gmra.mxu3 %v11039_v36 }
 0x360   :  { %5819 = vmatpush.bf16.msrb.mxu0 %v8521_v27  ;;  %5861 = vmatpush.bf16.msrb.mxu3 %v9193_v6  ;;  %v10138_v27 = vld [vmem:[#allocation13 + $0x244] sm:$0xf]  ;;  %v8381_v6 = vor.u32 %v10085_v50, %v8380_v24  ;;  %v9393_v24 = vor.u32 %v10334_v12, %v9390_v9  ;;  %v9360_v50 = vld [vmem:[#allocation13 + $0x828] sm:$0xf]  ;;  %v10187_v9 = vld [vmem:[#allocation13 + $0x3cc] sm:$0xf] }
 0x361   :  { %5889 = vmatpush.bf16.msra.mxu1 %v8525_v41  ;;  %5903 = vmatpush.bf16.msra.mxu2 %v8749_v19  ;;  %v9053_v41 = vor.u32 %v10253_v26, %v9052_v1  ;;  %v9024_v19 = vld [vmem:[#allocation13 + $0x588] sm:$0xf]  ;;  %v8609_v18 = vor.u32 %v10138_v27, %v8606_v5  ;;  %v10330_v1 = vld [vmem:[#allocation13 + $0x840] sm:$0xf0]  ;;  %v8472_v5 = vld [vmem:[#allocation13 + $0x130] sm:$0xf] }
 0x362   :  { %5841 = vmatmul.bf16.vlgmr.msrb.gmra.mxu1 %v11024_v2  ;;  %5855 = vmatmul.bf16.vlgmr.msrb.gmra.mxu2 %v11027_v49  ;;  %v9025_v21 = vor.u32 %v10246_v10, %v9024_v19  ;;  %v9362_v27 = vld [vmem:[#allocation13 + $0x844] sm:$0xf0]  ;;  %v10323_v19 = vld [vmem:[#allocation13 + $0x808] sm:$0xf0]  ;;  %v10302_v12 = vld [vmem:[#allocation13 + $0x760] sm:$0xf0] }
 0x364   :  { %5820 = vmatpush.bf16.msrb.mxu0 %v8493_v13  ;;  %5862 = vmatpush.bf16.msrb.mxu3 %v9165_v15  ;;  %v8578_v13 = vld [vmem:[#allocation13 + $0x224] sm:$0xf0]  ;;  %v8353_v15 = vor.u32 %v10078_v30, %v8352_v42  ;;  %v9365_v42 = vor.u32 %v10327_v4, %v9362_v27  ;;  %v9332_v30 = vld [vmem:[#allocation13 + $0x7f0] sm:$0xf] }
 0x365   :  { %5890 = vmatpush.bf16.msra.mxu1 %v8497_v20  ;;  %5904 = vmatpush.bf16.msra.mxu2 %v8721_v47  ;;  %v8324_v20 = vld [vmem:[#allocation13 + $0x10] sm:$0xf]  ;;  %v8581_v16 = vor.u32 %v10131_v11, %v8578_v13  ;;  %v8444_v13 = vld [vmem:[#allocation13 + $0xf8] sm:$0xf] }
 0x366   :  { %v8996_v47 = vld [vmem:[#allocation13 + $0x550] sm:$0xf]  ;;  %v8325_v43 = vor.u32 %v10071_v56, %v8324_v20  ;;  %v9333_v20 = vor.u32 %v10323_v19, %v9332_v30 }
 0x367   :  { %v8997_v35 = vor.u32 %v10239_v23, %v8996_v47  ;;  %v9334_v11 = vld [vmem:[#allocation13 + $0x80c] sm:$0xf0]  ;;  %v10316_v47 = vld [vmem:[#allocation13 + $0x7d0] sm:$0xf0]  ;;  %v10201_v23 = vld [vmem:[#allocation13 + $0x43c] sm:$0xf] }
 0x368   :  { %5821 = vmatpush.bf16.msrb.mxu0 %v8465_v0  ;;  %5863 = vmatpush.bf16.msrb.mxu3 %v9137_v33  ;;  %v10344_v0 = vld [vmem:[#allocation13 + $0x8b0] sm:$0xf0]  ;;  %v9222_v19 = vld [vmem:[#allocation13 + $0x72c] sm:$0xf0] }
 0x369   :  { %5891 = vmatpush.bf16.msra.mxu1 %v8469_v38  ;;  %5905 = vmatpush.bf16.msra.mxu2 %v8693_v46  ;;  %v10124_v33 = vld [vmem:[#allocation13 + $0x1d4] sm:$0xf]  ;;  %v8550_v38 = vld [vmem:[#allocation13 + $0x1ec] sm:$0xf0]  ;;  %v10341_v46 = vld [vmem:[#allocation13 + $0x89c] sm:$0xf] }
 0x36a   :  { %v9421_v57 = vor.u32 %v10341_v46, %v9418_v48  ;;  %v9276_v48 = vld [vmem:[#allocation13 + $0x780] sm:$0xf] }
 0x36c   :  { %5822 = vmatpush.bf16.msrb.mxu0 %v8437_v53  ;;  %5864 = vmatpush.bf16.msrb.mxu3 %v9109_v54  ;;  %v9417_v53 = vor.u32 %v10344_v0, %v9416_v32  ;;  %v8553_v54 = vor.u32 %v10124_v33, %v8550_v38  ;;  %v10313_v32 = vld [vmem:[#allocation13 + $0x7bc] sm:$0xf]  ;;  %v9306_v0 = vld [vmem:[#allocation13 + $0x7d4] sm:$0xf0]  ;;  %v11061_v33 = vpop.f32.mrf.mxu2  ;;  %v8416_v38 = vld [vmem:[#allocation13 + $0xc0] sm:$0xf] }
 0x36d   :  { %5892 = vmatpush.bf16.msra.mxu1 %v8441_v55  ;;  %5906 = vmatpush.bf16.msra.mxu2 %v8665_v61  ;;  %v8973_v55 = vor.u32 %v10229_v40, %v8970_v45  ;;  %v10222_v61 = vld [vmem:[#allocation13 + $0x4e4] sm:$0xf]  ;;  %v10093_v40 = vld [vmem:[#allocation13 + $0xd8] sm:$0xf0]  ;;  %v8861_v45 = vor.u32 %v10201_v23, %v8858_v31  ;;  %v9309_v46 = vor.u32 %v10313_v32, %v9306_v0 }
 0x36e   :  { %v8417_v51 = vor.u32 %v10093_v40, %v8416_v38  ;;  %v10345_v23 = vld [vmem:[#allocation13 + $0x8b8] sm:$0xf0]  ;;  %v10278_v40 = vld [vmem:[#allocation13 + $0x6a4] sm:$0xf] }
 0x370   :  { %5823 = vmatpush.bf16.msrb.mxu0 %v8409_v34  ;;  %5865 = vmatpush.bf16.msrb.mxu3 %v9081_v44  ;;  %v10114_v34 = vld [vmem:[#allocation13 + $0x180] sm:$0xf0]  ;;  %v9389_v44 = vor.u32 %v10337_v59, %v9388_v39  ;;  %v11063_v39 = vpop.f32.mrf.mxu0 }
 0x371   :  { %5893 = vmatpush.bf16.msra.mxu1 %v8413_v29  ;;  %5907 = vmatpush.bf16.msra.mxu2 %v8637_v3  ;;  %v8945_v29 = vor.u32 %v10222_v61, %v8942_v62  ;;  %v10215_v3 = vld [vmem:[#allocation13 + $0x4ac] sm:$0xf]  ;;  %v8501_v26 = vor.u32 %v10114_v34, %v8500_v28  ;;  %v9248_v62 = vld [vmem:[#allocation13 + $0x748] sm:$0xf] }
 0x372   :  { %v8802_v34 = vld [vmem:[#allocation13 + $0x3e4] sm:$0xf0] }
 0x373   :  { %v8805_v27 = vor.u32 %v10187_v9, %v8802_v34  ;;  %v9144_v34 = vld [vmem:[#allocation13 + $0x670] sm:$0xf] }
 0x374   :  { %5824 = vmatpush.bf16.msrb.mxu0 %v8381_v6  ;;  %5866 = vmatpush.bf16.msrb.mxu3 %v9053_v41  ;;  %v10107_v6 = vld [vmem:[#allocation13 + $0x148] sm:$0xf0]  ;;  %v9361_v41 = vor.u32 %v10330_v1, %v9360_v50  ;;  %v11065_v1 = vpop.f32.mrf.mxu1  ;;  %v11067_v4 = vpop.f32.mrf.mxu2 }
 0x375   :  { %5894 = vmatpush.bf16.msra.mxu1 %v8385_v7  ;;  %5908 = vmatpush.bf16.msra.mxu2 %v8609_v18  ;;  %v8917_v7 = vor.u32 %v10215_v3, %v8914_v60  ;;  %v10208_v18 = vld [vmem:[#allocation13 + $0x474] sm:$0xf]  ;;  %v8473_v10 = vor.u32 %v10107_v6, %v8472_v5  ;;  %v10079_v50 = vld [vmem:[#allocation13 + $0x68] sm:$0xf0]  ;;  %v9249_v3 = vor.u32 %v10302_v12, %v9248_v62  ;;  %v8696_v62 = vld [vmem:[#allocation13 + $0x2f0] sm:$0xf] }
 0x376   :  { %v8889_v56 = vor.u32 %v10208_v18, %v8886_v63  ;;  %v10295_v60 = vld [vmem:[#allocation13 + $0x728] sm:$0xf0]  ;;  %v10180_v6 = vld [vmem:[#allocation13 + $0x394] sm:$0xf]  ;;  %v10285_v18 = vld [vmem:[#allocation13 + $0x6dc] sm:$0xf] }
 0x377   :  { %v8332_v63 = vld [vmem:[#allocation13 + $0x18] sm:$0xf] }
 0x378   :  { %5825 = vmatpush.bf16.msrb.mxu0 %v8353_v15  ;;  %5867 = vmatpush.bf16.msrb.mxu3 %v9025_v21  ;;  %v10100_v15 = vld [vmem:[#allocation13 + $0x110] sm:$0xf0]  ;;  %v9337_v21 = vor.u32 %v10320_v8, %v9334_v11  ;;  %v8752_v11 = vld [vmem:[#allocation13 + $0x360] sm:$0xf] }
 0x379   :  { %5895 = vmatpush.bf16.msra.mxu1 %v8357_v22  ;;  %5909 = vmatpush.bf16.msra.mxu2 %v8581_v16  ;;  %v9304_v22 = vld [vmem:[#allocation13 + $0x7b8] sm:$0xf]  ;;  %v8445_v16 = vor.u32 %v10100_v15, %v8444_v13  ;;  %v10072_v8 = vld [vmem:[#allocation13 + $0x30] sm:$0xf0]  ;;  %v10177_v15 = vld [vmem:[#allocation13 + $0x378] sm:$0xf0] }
 0x37a   :  { %v8333_v32 = vor.u32 %v10072_v8, %v8332_v63  ;;  %v8753_v0 = vor.u32 %v10177_v15, %v8752_v11  ;;  %v10257_v11 = vld [vmem:[#allocation13 + $0x5fc] sm:$0xf]  ;;  %v8640_v15 = vld [vmem:[#allocation13 + $0x280] sm:$0xf] }
 0x37c   :  { %5826 = vmatpush.bf16.msrb.mxu0 %v8325_v43  ;;  %5868 = vmatpush.bf16.msrb.mxu3 %v8997_v35  ;;  %v9305_v43 = vor.u32 %v10316_v47, %v9304_v22  ;;  %v10309_v35 = vld [vmem:[#allocation13 + $0x798] sm:$0xf0]  ;;  %v9424_v47 = vld [vmem:[#allocation13 + $0x8a0] sm:$0xf] }
 0x37d   :  { %5896 = vmatpush.bf16.msra.mxu1 %v8329_v58  ;;  %5910 = vmatpush.bf16.msra.mxu2 %v8553_v54  ;;  %v10194_v58 = vld [vmem:[#allocation13 + $0x404] sm:$0xf]  ;;  %v9278_v54 = vld [vmem:[#allocation13 + $0x79c] sm:$0xf0]  ;;  %v9277_v59 = vor.u32 %v10309_v35, %v9276_v48  ;;  %v9172_v35 = vld [vmem:[#allocation13 + $0x6a8] sm:$0xf] }
 0x37e   :  { %v8833_v61 = vor.u32 %v10194_v58, %v8830_v52  ;;  %v10170_v48 = vld [vmem:[#allocation13 + $0x340] sm:$0xf0] }
 0x37f   :  { %5827 = vmatmul.bf16.vlgmr.msrb.gmra.mxu0 %v11018_v17  ;;  %5869 = vmatmul.bf16.vlgmr.msrb.gmra.mxu3 %v11033_v37  ;;  %v10282_v58 = vld [vmem:[#allocation13 + $0x6c0] sm:$0xf0] }
 0x380   :  { %5875 = vmatpush.bf16.msra.mxu0 %v9417_v53  ;;  %5917 = vmatpush.bf16.msra.mxu3 %v8973_v55  ;;  %v10306_v53 = vld [vmem:[#allocation13 + $0x784] sm:$0xf]  ;;  %v8388_v55 = vld [vmem:[#allocation13 + $0x88] sm:$0xf] }
 0x381   :  { %5945 = vmatpush.bf16.msrb.mxu1 %v9421_v57  ;;  %5959 = vmatpush.bf16.msrb.mxu2 %v8529_v14  ;;  %v10086_v57 = vld [vmem:[#allocation13 + $0xa0] sm:$0xf0]  ;;  %v9281_v14 = vor.u32 %v10306_v53, %v9278_v54  ;;  %v11073_v53 = vpop.f32.mrf.mxu1 }
 0x382   :  { %5897 = vmatmul.bf16.vlgmr.msra.gmra.mxu1 %v11018_v17  ;;  %5911 = vmatmul.bf16.vlgmr.msra.gmra.mxu2 %v11024_v2  ;;  %v8389_v28 = vor.u32 %v10086_v57, %v8388_v55  ;;  %v10338_v52 = vld [vmem:[#allocation13 + $0x880] sm:$0xf0]  ;;  %v11075_v55 = vpop.f32.mrf.mxu2 }
 0x384   :  { %5876 = vmatpush.bf16.msra.mxu0 %v9389_v44  ;;  %5918 = vmatpush.bf16.msra.mxu3 %v8945_v29  ;;  %v10299_v44 = vld [vmem:[#allocation13 + $0x74c] sm:$0xf]  ;;  %v9250_v29 = vld [vmem:[#allocation13 + $0x764] sm:$0xf0] }
 0x385   :  { %5946 = vmatpush.bf16.msrb.mxu1 %v9393_v24  ;;  %5960 = vmatpush.bf16.msrb.mxu2 %v8501_v26  ;;  %v8360_v24 = vld [vmem:[#allocation13 + $0x50] sm:$0xf]  ;;  %v9253_v5 = vor.u32 %v10299_v44, %v9250_v29  ;;  %v10275_v44 = vld [vmem:[#allocation13 + $0x688] sm:$0xf0] }
 0x386   :  { %v9220_v26 = vld [vmem:[#allocation13 + $0x710] sm:$0xf]  ;;  %v8361_v30 = vor.u32 %v10079_v50, %v8360_v24  ;;  %v10331_v24 = vld [vmem:[#allocation13 + $0x848] sm:$0xf0] }
 0x387   :  { %v9221_v13 = vor.u32 %v10295_v60, %v9220_v26  ;;  %v9368_v29 = vld [vmem:[#allocation13 + $0x830] sm:$0xf]  ;;  %v9145_v60 = vor.u32 %v10275_v44, %v9144_v34 }
 0x388   :  { %5877 = vmatpush.bf16.msra.mxu0 %v9361_v41  ;;  %5919 = vmatpush.bf16.msra.mxu3 %v8917_v7  ;;  %v8774_v41 = vld [vmem:[#allocation13 + $0x3ac] sm:$0xf0]  ;;  %v10292_v7 = vld [vmem:[#allocation13 + $0x714] sm:$0xf] }
 0x389   :  { %5947 = vmatpush.bf16.msrb.mxu1 %v9365_v42  ;;  %5961 = vmatpush.bf16.msrb.mxu2 %v8473_v10  ;;  %v11069_v42 = vpop.f32.mrf.mxu3  ;;  %v9194_v10 = vld [vmem:[#allocation13 + $0x6f4] sm:$0xf0]  ;;  %v9225_v22 = vor.u32 %v10292_v7, %v9222_v19  ;;  %v10156_v7 = vld [vmem:[#allocation13 + $0x2d0] sm:$0xf0]  ;;  %v8584_v34 = vld [vmem:[#allocation13 + $0x210] sm:$0xf] }
 0x38a   :  { %v9197_v31 = vor.u32 %v10285_v18, %v9194_v10  ;;  %v10268_v19 = vld [vmem:[#allocation13 + $0x650] sm:$0xf0]  ;;  %v9340_v18 = vld [vmem:[#allocation13 + $0x7f8] sm:$0xf] }
 0x38b   :  { %v10324_v10 = vld [vmem:[#allocation13 + $0x810] sm:$0xf0] }
 0x38c   :  { %5878 = vmatpush.bf16.msra.mxu0 %v9333_v20  ;;  %5920 = vmatpush.bf16.msra.mxu3 %v8889_v56  ;;  %v9200_v20 = vld [vmem:[#allocation13 + $0x6e0] sm:$0xf]  ;;  %v10289_v56 = vld [vmem:[#allocation13 + $0x6f8] sm:$0xf0] }
 0x38d   :  { %5948 = vmatpush.bf16.msrb.mxu1 %v9337_v21  ;;  %5962 = vmatpush.bf16.msrb.mxu2 %v8445_v16  ;;  %v8777_v21 = vor.u32 %v10180_v6, %v8774_v41  ;;  %v11071_v16 = vpop.f32.mrf.mxu0  ;;  %v9201_v38 = vor.u32 %v10289_v56, %v9200_v20  ;;  %v8668_v6 = vld [vmem:[#allocation13 + $0x2b8] sm:$0xf]  ;;  %v9369_v41 = vor.u32 %v10331_v24, %v9368_v29  ;;  %v11085_v20 = vpop.f32.mrf.mxu1  ;;  %v10135_v24 = vld [vmem:[#allocation13 + $0x228] sm:$0xf0] }
 0x38e   :  { %v8669_v63 = vor.u32 %v10156_v7, %v8668_v6  ;;  %v9341_v56 = vor.u32 %v10324_v10, %v9340_v18  ;;  %v8585_v7 = vor.u32 %v10135_v24, %v8584_v34  ;;  %v8556_v18 = vld [vmem:[#allocation13 + $0x1d8] sm:$0xf]  ;;  %v10128_v10 = vld [vmem:[#allocation13 + $0x1f0] sm:$0xf0] }
 0x38f   :  { %v10376_v24 = vld [vmem:[#allocation16 + $0xf0] sm:$0xff] }
 0x390   :  { %5879 = vmatpush.bf16.msra.mxu0 %v9305_v43  ;;  %5921 = vmatpush.bf16.msra.mxu3 %v8861_v45  ;;  %v9166_v43 = vld [vmem:[#allocation13 + $0x6bc] sm:$0xf0]  ;;  %v8724_v45 = vld [vmem:[#allocation13 + $0x328] sm:$0xf] }
 0x391   :  { %5949 = vmatpush.bf16.msrb.mxu1 %v9309_v46  ;;  %5963 = vmatpush.bf16.msrb.mxu2 %v8417_v51  ;;  %v9425_v46 = vor.u32 %v10345_v23, %v9424_v47  ;;  %v9396_v51 = vld [vmem:[#allocation13 + $0x868] sm:$0xf]  ;;  %v9169_v54 = vor.u32 %v10278_v40, %v9166_v43  ;;  %v8725_v57 = vor.u32 %v10170_v48, %v8724_v45  ;;  %v11077_v12 = vpop.f32.mrf.mxu3  ;;  %v10261_v47 = vld [vmem:[#allocation13 + $0x618] sm:$0xf0]  ;;  %v11087_v23 = vpop.f32.mrf.mxu2  ;;  %v9054_v48 = vld [vmem:[#allocation13 + $0x5dc] sm:$0xf0] }
 0x392   :  { %v9397_v9 = vor.u32 %v10338_v52, %v9396_v51  ;;  %v10142_v51 = vld [vmem:[#allocation13 + $0x260] sm:$0xf0]  ;;  %v9060_v52 = vld [vmem:[#allocation13 + $0x5c8] sm:$0xf] }
 0x394   :  { %5880 = vmatpush.bf16.msra.mxu0 %v9277_v59  ;;  %5922 = vmatpush.bf16.msra.mxu3 %v8833_v61  ;;  %v9173_v59 = vor.u32 %v10282_v58, %v9172_v35  ;;  %v10271_v61 = vld [vmem:[#allocation13 + $0x66c] sm:$0xf]  ;;  %v8612_v35 = vld [vmem:[#allocation13 + $0x248] sm:$0xf] }
 0x395   :  { %5950 = vmatpush.bf16.msrb.mxu1 %v9281_v14  ;;  %5964 = vmatpush.bf16.msrb.mxu2 %v8389_v28  ;;  %v9138_v14 = vld [vmem:[#allocation13 + $0x684] sm:$0xf0]  ;;  %v10163_v28 = vld [vmem:[#allocation13 + $0x308] sm:$0xf0] }
 0x396   :  { %v9141_v50 = vor.u32 %v10271_v61, %v9138_v14  ;;  %v8697_v26 = vor.u32 %v10163_v28, %v8696_v62  ;;  %v8613_v14 = vor.u32 %v10142_v51, %v8612_v35  ;;  %v9026_v28 = vld [vmem:[#allocation13 + $0x5a4] sm:$0xf0]  ;;  %v10226_v35 = vld [vmem:[#allocation13 + $0x500] sm:$0xf0] }
 0x398   :  { %5881 = vmatpush.bf16.msra.mxu0 %v9249_v3  ;;  %5923 = vmatpush.bf16.msra.mxu3 %v8805_v27  ;;  %v10264_v27 = vld [vmem:[#allocation13 + $0x634] sm:$0xf] }
 0x399   :  { %5951 = vmatpush.bf16.msrb.mxu1 %v9253_v5  ;;  %5965 = vmatpush.bf16.msrb.mxu2 %v8361_v30  ;;  %v9110_v5 = vld [vmem:[#allocation13 + $0x64c] sm:$0xf0]  ;;  %v9116_v30 = vld [vmem:[#allocation13 + $0x638] sm:$0xf] }
 0x39a   :  { %v9117_v8 = vor.u32 %v10268_v19, %v9116_v30  ;;  %v8998_v19 = vld [vmem:[#allocation13 + $0x56c] sm:$0xf0] }
 0x39c   :  { %5882 = vmatpush.bf16.msra.mxu0 %v9221_v13  ;;  %5924 = vmatpush.bf16.msra.mxu3 %v8777_v21  ;;  %v11083_v3 = vpop.f32.mrf.mxu0  ;;  %v9082_v13 = vld [vmem:[#allocation13 + $0x614] sm:$0xf0]  ;;  %v10149_v21 = vld [vmem:[#allocation13 + $0x298] sm:$0xf0]  ;;  %v11093_v44 = vpop.f32.mrf.mxu1 }
 0x39d   :  { %5952 = vmatpush.bf16.msrb.mxu1 %v9225_v22  ;;  %5966 = vmatpush.bf16.msrb.mxu2 %v8333_v32  ;;  %v9088_v22 = vld [vmem:[#allocation13 + $0x600] sm:$0xf]  ;;  %v10317_v32 = vld [vmem:[#allocation13 + $0x7d8] sm:$0xf0]  ;;  %v8641_v43 = vor.u32 %v10149_v21, %v8640_v15  ;;  %v9228_v21 = vld [vmem:[#allocation13 + $0x718] sm:$0xf] }
 0x39e   :  { %v9089_v45 = vor.u32 %v10261_v47, %v9088_v22  ;;  %v8976_v15 = vld [vmem:[#allocation13 + $0x520] sm:$0xf]  ;;  %v10296_v22 = vld [vmem:[#allocation13 + $0x730] sm:$0xf0] }
 0x39f   :  { %5883 = vmatmul.bf16.vlgmr.msra.gmra.mxu0 %v11039_v36  ;;  %5925 = vmatmul.bf16.vlgmr.msra.gmra.mxu3 %v11027_v49 }
 0x3a0   :  { %5931 = vmatpush.bf16.msrb.mxu0 %v9197_v31  ;;  %5973 = vmatpush.bf16.msrb.mxu3 %v8753_v0  ;;  %v9312_v31 = vld [vmem:[#allocation13 + $0x7c0] sm:$0xf]  ;;  %v11089_v0 = vpop.f32.mrf.mxu3 }
 0x3a1   :  { %6001 = vmatpush.bf16.msra.mxu1 %v9201_v38  ;;  %6015 = vmatpush.bf16.msra.mxu2 %v9425_v46  ;;  %v9085_v38 = vor.u32 %v10257_v11, %v9082_v13  ;;  %v10250_v46 = vld [vmem:[#allocation13 + $0x5c4] sm:$0xf]  ;;  %v9313_v58 = vor.u32 %v10317_v32, %v9312_v31  ;;  %v9004_v11 = vld [vmem:[#allocation13 + $0x558] sm:$0xf]  ;;  %v10240_v13 = vld [vmem:[#allocation13 + $0x570] sm:$0xf0]  ;;  %v8557_v31 = vor.u32 %v10128_v10, %v8556_v18 }
 0x3a2   :  { %5953 = vmatmul.bf16.vlgmr.msrb.gmra.mxu1 %v11039_v36  ;;  %5967 = vmatmul.bf16.vlgmr.msrb.gmra.mxu2 %v11018_v17  ;;  %v9113_v17 = vor.u32 %v10264_v27, %v9110_v5  ;;  %v9057_v61 = vor.u32 %v10250_v46, %v9054_v48  ;;  %v10303_v27 = vld [vmem:[#allocation13 + $0x768] sm:$0xf0]  ;;  %v9005_v32 = vor.u32 %v10240_v13, %v9004_v11  ;;  %v10369_v46 = vld [vmem:[#allocation16 + $0xb8] sm:$0xff]  ;;  %v8948_v48 = vld [vmem:[#allocation13 + $0x4e8] sm:$0xf] }
 0x3a4   :  { %5932 = vmatpush.bf16.msrb.mxu0 %v9169_v54  ;;  %5974 = vmatpush.bf16.msrb.mxu3 %v8725_v57  ;;  %v11091_v40 = vpop.f32.mrf.mxu0  ;;  %v10254_v54 = vld [vmem:[#allocation13 + $0x5e0] sm:$0xf0]  ;;  %v9284_v57 = vld [vmem:[#allocation13 + $0x788] sm:$0xf] }
 0x3a5   :  { %6002 = vmatpush.bf16.msra.mxu1 %v9173_v59  ;;  %6016 = vmatpush.bf16.msra.mxu2 %v9397_v9  ;;  %v10310_v59 = vld [vmem:[#allocation13 + $0x7a0] sm:$0xf0]  ;;  %v9061_v62 = vor.u32 %v10254_v54, %v9060_v52  ;;  %v10243_v9 = vld [vmem:[#allocation13 + $0x58c] sm:$0xf]  ;;  %v8949_v52 = vor.u32 %v10226_v35, %v8948_v48  ;;  %v10352_v54 = vld [vmem:[#allocation16 + $0x30] sm:$0xff] }
 0x3a6   :  { %v9285_v29 = vor.u32 %v10310_v59, %v9284_v57  ;;  %v9029_v5 = vor.u32 %v10243_v9, %v9026_v28  ;;  %v10377_v57 = vld [vmem:[#allocation16 + $0xf8] sm:$0xff]  ;;  %v10368_v59 = vld [vmem:[#allocation16 + $0xb0] sm:$0xff] }
 0x3a7   :  { %v11109_v28 = vld [vmem:[#allocation14] sm:$0xff] }
 0x3a8   :  { %5933 = vmatpush.bf16.msrb.mxu0 %v9141_v50  ;;  %5975 = vmatpush.bf16.msrb.mxu3 %v8697_v26  ;;  %v9032_v50 = vld [vmem:[#allocation13 + $0x590] sm:$0xf]  ;;  %v10247_v26 = vld [vmem:[#allocation13 + $0x5a8] sm:$0xf0] }
 0x3a9   :  { %6003 = vmatpush.bf16.msra.mxu1 %v9145_v60  ;;  %6017 = vmatpush.bf16.msra.mxu2 %v9369_v41  ;;  %v9256_v60 = vld [vmem:[#allocation13 + $0x750] sm:$0xf]  ;;  %v10236_v41 = vld [vmem:[#allocation13 + $0x554] sm:$0xf]  ;;  %v9033_v30 = vor.u32 %v10247_v26, %v9032_v50  ;;  %v8892_v26 = vld [vmem:[#allocation13 + $0x478] sm:$0xf] }
 0x3aa   :  { %v9001_v47 = vor.u32 %v10236_v41, %v8998_v19  ;;  %v10367_v50 = vld [vmem:[#allocation16 + $0xa8] sm:$0xff]  ;;  %v10350_v41 = vld [vmem:[#allocation16 + $0x20] sm:$0xff]  ;;  %v10205_v19 = vld [vmem:[#allocation13 + $0x458] sm:$0xf0] }
 0x3ac   :  { %5934 = vmatpush.bf16.msrb.mxu0 %v9113_v17  ;;  %5976 = vmatpush.bf16.msrb.mxu3 %v8669_v63  ;;  %v11095_v6 = vpop.f32.mrf.mxu0  ;;  %v11097_v17 = vpop.f32.mrf.mxu2 }
 0x3ad   :  { %6004 = vmatpush.bf16.msra.mxu1 %v9117_v8  ;;  %6018 = vmatpush.bf16.msra.mxu2 %v9341_v56  ;;  %v11099_v63 = vpop.f32.mrf.mxu3  ;;  %v9257_v8 = vor.u32 %v10303_v27, %v9256_v60  ;;  %v10233_v56 = vld [vmem:[#allocation13 + $0x538] sm:$0xf0]  ;;  %v10212_v60 = vld [vmem:[#allocation13 + $0x490] sm:$0xf0]  ;;  %v4087_v27 = vperm.slane %v11109_v28, 2 }
 0x3af   :  { %v5689_v18 = vadd.f32 %v11097_v17, %v4087_v27 }
 0x3b0   :  { %5935 = vmatpush.bf16.msrb.mxu0 %v9085_v38  ;;  %5977 = vmatpush.bf16.msrb.mxu3 %v8641_v43  ;;  %v8977_v38 = vor.u32 %v10233_v56, %v8976_v15  ;;  %v9229_v43 = vor.u32 %v10296_v22, %v9228_v21  ;;  %v10349_v56 = vld [vmem:[#allocation16 + $0x18] sm:$0xff]  ;;  %v10374_v21 = vld [vmem:[#allocation16 + $0xe0] sm:$0xff] }
 0x3b1   :  { %6005 = vmatpush.bf16.msra.mxu1 %v9089_v45  ;;  %6019 = vmatpush.bf16.msra.mxu2 %v9313_v58  ;;  %v10353_v45 = vld [vmem:[#allocation16 + $0x38] sm:$0xff]  ;;  %v11101_v58 = vpop.f32.mrf.mxu1 }
 0x3b4   :  { %5936 = vmatpush.bf16.msrb.mxu0 %v9057_v61  ;;  %5978 = vmatpush.bf16.msrb.mxu3 %v8613_v14  ;;  %v11103_v51 = vpop.f32.mrf.mxu0  ;;  %v8920_v61 = vld [vmem:[#allocation13 + $0x4b0] sm:$0xf]  ;;  %v10219_v14 = vld [vmem:[#allocation13 + $0x4c8] sm:$0xf0] }
 0x3b5   :  { %6006 = vmatpush.bf16.msra.mxu1 %v9061_v62  ;;  %6020 = vmatpush.bf16.msra.mxu2 %v9285_v29  ;;  %v5690_v62 = vpop.f32.mrf.mxu2  ;;  %v5702_v9 = vpop.f32.mrf.mxu3  ;;  %v8921_v34 = vor.u32 %v10219_v14, %v8920_v61  ;;  %v10351_v29 = vld [vmem:[#allocation16 + $0x28] sm:$0xff]  ;;  %v10191_v14 = vld [vmem:[#allocation13 + $0x3e8] sm:$0xf0] }
 0x3b6   :  { %v5703_v11 = vadd.f32 %v5702_v9, %v5689_v18  ;;  %v5691_v22 = vadd.f32 %v5690_v62, %v4087_v27  ;;  %v8808_v61 = vld [vmem:[#allocation13 + $0x3d0] sm:$0xf] }
 0x3b8   :  { %5937 = vmatpush.bf16.msrb.mxu0 %v9029_v5  ;;  %5979 = vmatpush.bf16.msrb.mxu3 %v8585_v7  ;;  %v10366_v7 = vld [vmem:[#allocation16 + $0xa0] sm:$0xff] }
 0x3b9   :  { %6007 = vmatpush.bf16.msra.mxu1 %v9033_v30  ;;  %6021 = vmatpush.bf16.msra.mxu2 %v9257_v8  ;;  %v5730_v5 = vpop.f32.mrf.mxu1  ;;  %v8864_v30 = vld [vmem:[#allocation13 + $0x440] sm:$0xf]  ;;  %v4085_v8 = vperm.slane %v11109_v28, 0 }
 0x3ba   :  { %v8865_v15 = vor.u32 %v10205_v19, %v8864_v30  ;;  %v10346_v30 = vld [vmem:[#allocation16] sm:$0xff] }
 0x3bb   :  { %v10362_v19 = vld [vmem:[#allocation16 + $0x80] sm:$0xff] }
 0x3bc   :  { %5938 = vmatpush.bf16.msrb.mxu0 %v9001_v47  ;;  %5980 = vmatpush.bf16.msrb.mxu3 %v8557_v31  ;;  %v10365_v47 = vld [vmem:[#allocation16 + $0x98] sm:$0xff]  ;;  %v8836_v31 = vld [vmem:[#allocation13 + $0x408] sm:$0xf] }
 0x3bd   :  { %6008 = vmatpush.bf16.msra.mxu1 %v9005_v32  ;;  %6022 = vmatpush.bf16.msra.mxu2 %v9229_v43  ;;  %v5744_v10 = vpop.f32.mrf.mxu2  ;;  %v5704_v13 = vpop.f32.mrf.mxu3  ;;  %v10198_v32 = vld [vmem:[#allocation13 + $0x420] sm:$0xf0] }
 0x3be   :  { %v5705_v17 = vadd.f32 %v5704_v13, %v5691_v22  ;;  %v8837_v35 = vor.u32 %v10198_v32, %v8836_v31  ;;  %v10361_v13 = vld [vmem:[#allocation16 + $0x78] sm:$0xff] }
 0x3bf   :  { %5939 = vmatmul.bf16.vlgmr.msrb.gmra.mxu0 %v11033_v37  ;;  %5981 = vmatmul.bf16.vlgmr.msrb.gmra.mxu3 %v11024_v2  ;;  %v5716_v2 = vpop.f32.mrf.mxu0 }
 0x3c0   :  { %5987 = vmatpush.bf16.msra.mxu0 %v8977_v38  ;;  %6502 = vmatpush.bf16.msra.mxu3 %v10353_v45  ;;  %v5551_v38 = vadd.f32 %v11071_v16, %v4085_v8  ;;  %v5717_v43 = vadd.f32 %v5716_v2, %v5703_v11  ;;  %v5549_v45 = vadd.f32 %v11063_v39, %v4085_v8  ;;  %v10363_v2 = vld [vmem:[#allocation16 + $0x88] sm:$0xff] }
 0x3c1   :  { %6530 = vmatpush.bf16.msrb.mxu1 %v10369_v46  ;;  %6023 = vmatmul.bf16.vlgmr.msra.gmra.mxu2 %v11039_v36  ;;  %v10375_v36 = vld [vmem:[#allocation16 + $0xe8] sm:$0xff]  ;;  %v5732_v9 = vpop.f32.mrf.mxu1 }
 0x3c2   :  { %6009 = vmatmul.bf16.vlgmr.msra.gmra.mxu1 %v11033_v37  ;;  %6544 = vmatpush.bf16.msrb.mxu2 %v10377_v57  ;;  %v8893_v37 = vor.u32 %v10212_v60, %v8892_v26  ;;  %v5565_v46 = vadd.f32 %v11065_v1, %v5551_v38  ;;  %v5563_v16 = vadd.f32 %v11059_v25, %v5549_v45  ;;  %v10347_v26 = vld [vmem:[#allocation16 + $0x8] sm:$0xff]  ;;  %v10372_v60 = vld [vmem:[#allocation16 + $0xd0] sm:$0xff]  ;;  %v10358_v38 = vld [vmem:[#allocation16 + $0x60] sm:$0xff] }
 0x3c3   :  { %v5731_v39 = vadd.f32 %v5730_v5, %v5717_v43  ;;  %v8780_v25 = vld [vmem:[#allocation13 + $0x398] sm:$0xf]  ;;  %v4086_v43 = vperm.slane %v11109_v28, 1 }
 0x3c4   :  { %5988 = vmatpush.bf16.msra.mxu0 %v8949_v52  ;;  %6503 = vmatpush.bf16.msra.mxu3 %v10352_v54  ;;  %v10348_v52 = vld [vmem:[#allocation16 + $0x10] sm:$0xff]  ;;  %v10373_v54 = vld [vmem:[#allocation16 + $0xd8] sm:$0xff]  ;;  %v5579_v62 = vadd.f32 %v11067_v4, %v5565_v46  ;;  %v5577_v1 = vadd.f32 %v11061_v33, %v5563_v16 }
 0x3c5   :  { %6531 = vmatpush.bf16.msrb.mxu1 %v10368_v59  ;;  %v10364_v59 = vld [vmem:[#allocation16 + $0x90] sm:$0xff]  ;;  %v5758_v11 = vpop.f32.mrf.mxu3  ;;  %v5621_v46 = vadd.f32 %v11085_v20, %v4086_v43 }
 0x3c6   :  { %6545 = vmatpush.bf16.msrb.mxu2 %v10376_v24  ;;  %v5746_v24 = vpop.f32.mrf.mxu2  ;;  %v5591_v4 = vadd.f32 %v11069_v42, %v5577_v1 }
 0x3c7   :  { %v5718_v48 = vpop.f32.mrf.mxu0 }
 0x3c8   :  { %5989 = vmatpush.bf16.msra.mxu0 %v8921_v34  ;;  %6504 = vmatpush.bf16.msra.mxu3 %v10351_v29  ;;  %v5719_v57 = vadd.f32 %v5718_v48, %v5705_v17  ;;  %v5593_v29 = vadd.f32 %v11077_v12, %v5579_v62  ;;  %v5605_v33 = vadd.f32 %v11083_v3, %v5591_v4  ;;  %v10370_v3 = vld [vmem:[#allocation16 + $0xc0] sm:$0xff]  ;;  %v10356_v62 = vld [vmem:[#allocation16 + $0x50] sm:$0xff] }
 0x3c9   :  { %6532 = vmatpush.bf16.msrb.mxu1 %v10367_v50  ;;  %v8809_v50 = vor.u32 %v10191_v14, %v8808_v61  ;;  %v5619_v48 = vadd.f32 %v11073_v53, %v4086_v43 }
 0x3ca   :  { %6546 = vmatpush.bf16.msrb.mxu2 %v10375_v36  ;;  %v5733_v34 = vadd.f32 %v5732_v9, %v5719_v57  ;;  %v5607_v5 = vadd.f32 %v11091_v40, %v5593_v29  ;;  %v10385_v9 = vld [vmem:[#allocation16 + $0x138] sm:$0xff] }
 0x3cc   :  { %5990 = vmatpush.bf16.msra.mxu0 %v8893_v37  ;;  %6505 = vmatpush.bf16.msra.mxu3 %v10350_v41  ;;  %v5747_v27 = vadd.f32 %v5746_v24, %v5733_v34  ;;  %v10184_v37 = vld [vmem:[#allocation13 + $0x3b0] sm:$0xf0]  ;;  %v5745_v41 = vadd.f32 %v5744_v10, %v5731_v39  ;;  %v6036_v18 = vmax.f32 %v5607_v5, 0.0  ;;  %v10360_v10 = vld [vmem:[#allocation16 + $0x70] sm:$0xff] }
 0x3cd   :  { %6533 = vmatpush.bf16.msrb.mxu1 %v10366_v7  ;;  %v8781_v36 = vor.u32 %v10184_v37, %v8780_v25  ;;  %v10371_v7 = vld [vmem:[#allocation16 + $0xc8] sm:$0xff]  ;;  %v5760_v22 = vpop.f32.mrf.mxu3 }
 0x3ce   :  { %6547 = vmatpush.bf16.msrb.mxu2 %v10374_v21  ;;  %v6038_v12 = vmax.f32 %v5747_v27, 0.0  ;;  %v6031_v8 = vmax.f32 %v5745_v41, 0.0  ;;  %v10359_v21 = vld [vmem:[#allocation16 + $0x68] sm:$0xff]  ;;  %v5800_v17 = vpop.f32.mrf.mxu2  ;;  %v10382_v41 = vld [vmem:[#allocation16 + $0x120] sm:$0xff] }
 0x3d0   :  { %5991 = vmatpush.bf16.msra.mxu0 %v8865_v15  ;;  %6506 = vmatpush.bf16.msra.mxu3 %v10349_v56  ;;  %v6029_v15 = vmax.f32 %v5605_v33, 0.0  ;;  %v6045_v42 = vpack.c.bf16 %v6038_v12, %v6031_v8  ;;  %v4088_v56 = vperm.slane %v11109_v28, 3  ;;  %v10379_v12 = vld [vmem:[#allocation16 + $0x108] sm:$0xff]  ;;  %v4089_v8 = vperm.slane %v11109_v28, 4 }
 0x3d1   :  { %6534 = vmatpush.bf16.msrb.mxu1 %v10365_v47  ;;  %v5786_v47 = vpop.f32.mrf.mxu1 }
 0x3d2   :  { %6548 = vmatpush.bf16.msrb.mxu2 %v10373_v54  ;;  %v6043_v40 = vpack.c.bf16 %v6036_v18, %v6029_v15  ;;  %v5759_v31 = vadd.f32 %v5758_v11, %v4088_v56  ;;  %v5761_v54 = vadd.f32 %v5760_v22, %v4088_v56  ;;  %v10391_v11 = vld [vmem:[#allocation16 + $0x168] sm:$0xff] }
 0x3d4   :  { %5992 = vmatpush.bf16.msra.mxu0 %v8837_v35  ;;  %6507 = vmatpush.bf16.msra.mxu3 %v10348_v52  ;;  %v5635_v35 = vadd.f32 %v11087_v23, %v5621_v46 }
 0x3d5   :  { %6535 = vmatpush.bf16.msrb.mxu1 %v10364_v59  ;;  %v5633_v59 = vadd.f32 %v11075_v55, %v5619_v48  ;;  %v10355_v55 = vld [vmem:[#allocation16 + $0x48] sm:$0xff] }
 0x3d6   :  { %6549 = vmatpush.bf16.msrb.mxu2 %v10372_v60  ;;  %v5649_v61 = vadd.f32 %v11099_v63, %v5635_v35  ;;  %v5802_v29 = vpop.f32.mrf.mxu2  ;;  %v10384_v60 = vld [vmem:[#allocation16 + $0x130] sm:$0xff]  ;;  %v10387_v35 = vld [vmem:[#allocation16 + $0x148] sm:$0xff] }
 0x3d7   :  { %v5647_v20 = vadd.f32 %v11089_v0, %v5633_v59 }
 0x3d8   :  { %5993 = vmatpush.bf16.msra.mxu0 %v8809_v50  ;;  %6508 = vmatpush.bf16.msra.mxu3 %v10347_v26  ;;  %v5663_v39 = vadd.f32 %v11103_v51, %v5649_v61  ;;  %v10354_v51 = vld [vmem:[#allocation16 + $0x40] sm:$0xff] }
 0x3d9   :  { %6536 = vmatpush.bf16.msrb.mxu1 %v10363_v2  ;;  %v5788_v34 = vpop.f32.mrf.mxu1  ;;  %v5661_v23 = vadd.f32 %v11095_v6, %v5647_v20  ;;  %v10383_v2 = vld [vmem:[#allocation16 + $0x128] sm:$0xff]  ;;  %v10386_v61 = vld [vmem:[#allocation16 + $0x140] sm:$0xff] }
 0x3da   :  { %6550 = vmatpush.bf16.msrb.mxu2 %v10371_v7  ;;  %v5677_v63 = vadd.f32 %v11101_v58, %v5663_v39  ;;  %v10381_v58 = vld [vmem:[#allocation16 + $0x118] sm:$0xff]  ;;  %v10399_v20 = vld [vmem:[#allocation16 + $0x1a8] sm:$0xff] }
 0x3db   :  { %v5675_v27 = vadd.f32 %v11093_v44, %v5661_v23  ;;  %v10380_v44 = vld [vmem:[#allocation16 + $0x110] sm:$0xff]  ;;  %v10398_v23 = vld [vmem:[#allocation16 + $0x1a0] sm:$0xff] }
 0x3dc   :  { %5994 = vmatpush.bf16.msra.mxu0 %v8781_v36  ;;  %6509 = vmatpush.bf16.msra.mxu3 %v10346_v30  ;;  %v5772_v32 = vpop.f32.mrf.mxu0  ;;  %v6037_v25 = vmax.f32 %v5677_v63, 0.0  ;;  %v10378_v36 = vld [vmem:[#allocation16 + $0x100] sm:$0xff]  ;;  %v10393_v30 = vld [vmem:[#allocation16 + $0x178] sm:$0xff] }
 0x3dd   :  { %6537 = vmatpush.bf16.msrb.mxu1 %v10362_v19  ;;  %v5773_v45 = vadd.f32 %v5772_v32, %v5759_v31  ;;  %v6030_v6 = vmax.f32 %v5675_v27, 0.0  ;;  %v10392_v19 = vld [vmem:[#allocation16 + $0x170] sm:$0xff]  ;;  %v10397_v63 = vld [vmem:[#allocation16 + $0x198] sm:$0xff] }
 0x3de   :  { %6551 = vmatpush.bf16.msrb.mxu2 %v10370_v3  ;;  %v10390_v3 = vld [vmem:[#allocation16 + $0x160] sm:$0xff] }
 0x3df   :  { %5995 = vmatmul.bf16.vlgmr.msra.gmra.mxu0 %v11027_v49  ;;  %6510 = vmatmul.bf16.vlgmr.msra.gmra.mxu3 %v6043_v40  ;;  %v10357_v49 = vld [vmem:[#allocation16 + $0x58] sm:$0xff]  ;;  %v5787_v52 = vadd.f32 %v5786_v47, %v5773_v45  ;;  %v6044_v33 = vpack.c.bf16 %v6037_v25, %v6030_v6  ;;  %v10395_v6 = vld [vmem:[#allocation16 + $0x188] sm:$0xff] }
 0x3e0   :  { %6516 = vmatpush.bf16.msrb.mxu0 %v10361_v13  ;;  %6538 = vmatmul.bf16.vlgmr.msrb.gmra.mxu1 %v6045_v42  ;;  %v10389_v47 = vld [vmem:[#allocation16 + $0x158] sm:$0xff] }
 0x3e1   :  { %v5801_v53 = vadd.f32 %v5800_v17, %v5787_v52  ;;  %6558 = vmatpush.bf16.msrb.mxu3 %v10385_v9  ;;  %v5842_v18 = vpop.f32.mrf.mxu1  ;;  %v10388_v17 = vld [vmem:[#allocation16 + $0x150] sm:$0xff] }
 0x3e2   :  { %v5814_v57 = vpop.f32.mrf.mxu3  ;;  %v10400_v9 = vld [vmem:[#allocation16 + $0x1b0] sm:$0xff] }
 0x3e3   :  { %v5815_v50 = vadd.f32 %v5814_v57, %v5801_v53 }
 0x3e4   :  { %6517 = vmatpush.bf16.msrb.mxu0 %v10360_v10  ;;  %v5774_v14 = vpop.f32.mrf.mxu0 }
 0x3e5   :  { %v5775_v16 = vadd.f32 %v5774_v14, %v5761_v54  ;;  %6559 = vmatpush.bf16.msrb.mxu3 %v10384_v60  ;;  %v6032_v37 = vmax.f32 %v5815_v50, 0.0  ;;  %v5856_v13 = vpop.f32.mrf.mxu2 }
 0x3e7   :  { %v5789_v1 = vadd.f32 %v5788_v34, %v5775_v16 }
 0x3e8   :  { %6518 = vmatpush.bf16.msrb.mxu0 %v10359_v21 }
 0x3e9   :  { %v5803_v24 = vadd.f32 %v5802_v29, %v5789_v1  ;;  %6560 = vmatpush.bf16.msrb.mxu3 %v10383_v2  ;;  %v5844_v21 = vpop.f32.mrf.mxu1  ;;  %v4090_v1 = vperm.slane %v11109_v28, 5 }
 0x3ea   :  { %v5816_v26 = vpop.f32.mrf.mxu3 }
 0x3eb   :  { %v5817_v0 = vadd.f32 %v5816_v26, %v5803_v24 }
 0x3ec   :  { %6519 = vmatpush.bf16.msrb.mxu0 %v10358_v38 }
 0x3ed   :  { %v6039_v4 = vmax.f32 %v5817_v0, 0.0  ;;  %6561 = vmatpush.bf16.msrb.mxu3 %v10382_v41  ;;  %v5858_v38 = vpop.f32.mrf.mxu2 }
 0x3ef   :  { %v6046_v5 = vpack.c.bf16 %v6039_v4, %v6032_v37 }
 0x3f0   :  { %6520 = vmatpush.bf16.msrb.mxu0 %v10357_v49 }
 0x3f1   :  { %6552 = vmatmul.bf16.vlgmr.msrb.gmra.mxu2 %v6046_v5  ;;  %6562 = vmatpush.bf16.msrb.mxu3 %v10381_v58 }
 0x3f4   :  { %6521 = vmatpush.bf16.msrb.mxu0 %v10356_v62  ;;  %v10401_v62 = vld [vmem:[#allocation16 + $0x1b8] sm:$0xff] }
 0x3f5   :  { %6563 = vmatpush.bf16.msrb.mxu3 %v10380_v44  ;;  %6586 = vmatpush.bf16.msra.mxu1 %v10401_v62  ;;  %v10394_v44 = vld [vmem:[#allocation16 + $0x180] sm:$0xff] }
 0x3f8   :  { %6522 = vmatpush.bf16.msrb.mxu0 %v10355_v55 }
 0x3f9   :  { %6564 = vmatpush.bf16.msrb.mxu3 %v10379_v12  ;;  %6587 = vmatpush.bf16.msra.mxu1 %v10400_v9 }
 0x3fc   :  { %6523 = vmatpush.bf16.msrb.mxu0 %v10354_v51  ;;  %v5828_v7 = vpop.f32.mrf.mxu0  ;;  %v10396_v51 = vld [vmem:[#allocation16 + $0x190] sm:$0xff] }
 0x3fd   :  { %6565 = vmatpush.bf16.msrb.mxu3 %v10378_v36  ;;  %v5829_v42 = vadd.f32 %v5828_v7, %v4089_v8  ;;  %6588 = vmatpush.bf16.msra.mxu1 %v10399_v20 }
 0x3ff   :  { %6524 = vmatmul.bf16.vlgmr.msrb.gmra.mxu0 %v6044_v33  ;;  %v5843_v56 = vadd.f32 %v5842_v18, %v5829_v42  ;;  %v5898_v14 = vpop.f32.mrf.mxu1 }
 0x400   :  { %6572 = vmatpush.bf16.msra.mxu0 %v10393_v30  ;;  %v5899_v29 = vadd.f32 %v5898_v14, %v4090_v1 }
 0x401   :  { %v5857_v32 = vadd.f32 %v5856_v13, %v5843_v56  ;;  %6589 = vmatpush.bf16.msra.mxu1 %v10398_v23 }
 0x402   :  { %v5870_v40 = vpop.f32.mrf.mxu3 }
 0x403   :  { %v5871_v46 = vadd.f32 %v5870_v40, %v5857_v32 }
 0x404   :  { %6573 = vmatpush.bf16.msra.mxu0 %v10392_v19  ;;  %v5830_v15 = vpop.f32.mrf.mxu0 }
 0x405   :  { %v5831_v10 = vadd.f32 %v5830_v15, %v4089_v8  ;;  %v5912_v39 = vpop.f32.mrf.mxu2  ;;  %6590 = vmatpush.bf16.msra.mxu1 %v10397_v63  ;;  %v4091_v8 = vperm.slane %v11109_v28, 6 }
 0x406   :  { %v5913_v50 = vadd.f32 %v5912_v39, %v5899_v29 }
 0x407   :  { %v5845_v22 = vadd.f32 %v5844_v21, %v5831_v10  ;;  %v5900_v34 = vpop.f32.mrf.mxu1 }
 0x408   :  { %6574 = vmatpush.bf16.msra.mxu0 %v10391_v11  ;;  %v5901_v60 = vadd.f32 %v5900_v34, %v4090_v1 }
 0x409   :  { %v5859_v43 = vadd.f32 %v5858_v38, %v5845_v22  ;;  %6591 = vmatpush.bf16.msra.mxu1 %v10396_v51 }
 0x40a   :  { %v5872_v45 = vpop.f32.mrf.mxu3 }
 0x40b   :  { %v5873_v49 = vadd.f32 %v5872_v45, %v5859_v43 }
 0x40c   :  { %6575 = vmatpush.bf16.msra.mxu0 %v10390_v3 }
 0x40d   :  { %v5914_v26 = vpop.f32.mrf.mxu2  ;;  %6592 = vmatpush.bf16.msra.mxu1 %v10395_v6 }
 0x40e   :  { %v5915_v2 = vadd.f32 %v5914_v26, %v5901_v60 }
 0x410   :  { %6576 = vmatpush.bf16.msra.mxu0 %v10389_v47 }
 0x411   :  { %6593 = vmatpush.bf16.msra.mxu1 %v10394_v44 }
 0x414   :  { %6577 = vmatpush.bf16.msra.mxu0 %v10388_v17 }
 0x418   :  { %6578 = vmatpush.bf16.msra.mxu0 %v10387_v35 }
 0x41c   :  { %v5884_v31 = vpop.f32.mrf.mxu0  ;;  %6579 = vmatpush.bf16.msra.mxu0 %v10386_v61 }
 0x41d   :  { %v5885_v48 = vadd.f32 %v5884_v31, %v5871_v46 }
 0x41f   :  { %v6033_v57 = vmax.f32 %v5885_v48, 0.0  ;;  %v5954_v55 = vpop.f32.mrf.mxu1 }
 0x422   :  { %v5926_v53 = vpop.f32.mrf.mxu3 }
 0x423   :  { %v5927_v27 = vadd.f32 %v5926_v53, %v5913_v50 }
 0x424   :  { %v5886_v52 = vpop.f32.mrf.mxu0 }
 0x425   :  { %v5887_v54 = vadd.f32 %v5886_v52, %v5873_v49  ;;  %v5968_v12 = vpop.f32.mrf.mxu2 }
 0x426   :  { %v5969_v11 = vadd.f32 %v5968_v12, %v4091_v8 }
 0x427   :  { %v6040_v59 = vmax.f32 %v5887_v54, 0.0  ;;  %v5956_v33 = vpop.f32.mrf.mxu1  ;;  %v10423_v54 = vld [vmem:[#allocation17] ss:$0 sm:$0xff] }
 0x429   :  { %v6047_v16 = vpack.c.bf16 %v6040_v59, %v6033_v57 }
 0x42a   :  { %v5928_v0 = vpop.f32.mrf.mxu3 }
 0x42b   :  { %6566 = vmatmul.bf16.vlgmr.msrb.gmra.mxu3 %v6047_v16  ;;  %v5929_v37 = vadd.f32 %v5928_v0, %v5915_v2 }
 0x42d   :  { %v5970_v19 = vpop.f32.mrf.mxu2 }
 0x42e   :  { %v5971_v56 = vadd.f32 %v5970_v19, %v4091_v8 }
 0x43c   :  { %v5940_v24 = vpop.f32.mrf.mxu0 }
 0x43d   :  { %v5941_v25 = vadd.f32 %v5940_v24, %v5927_v27 }
 0x43f   :  { %v5955_v5 = vadd.f32 %v5954_v55, %v5941_v25  ;;  %v6010_v13 = vpop.f32.mrf.mxu1 }
 0x441   :  { %v6034_v36 = vmax.f32 %v5955_v5, 0.0 }
 0x442   :  { %v5982_v18 = vpop.f32.mrf.mxu3 }
 0x443   :  { %v5983_v42 = vadd.f32 %v5982_v18, %v5969_v11 }
 0x444   :  { %v5942_v4 = vpop.f32.mrf.mxu0  ;;  %v6024_v3 = vpop.f32.mrf.mxu2 }
 0x445   :  { %v5943_v41 = vadd.f32 %v5942_v4, %v5929_v37 }
 0x447   :  { %v5957_v58 = vadd.f32 %v5956_v33, %v5943_v41  ;;  %v6012_v32 = vpop.f32.mrf.mxu1 }
 0x449   :  { %v6041_v7 = vmax.f32 %v5957_v58, 0.0 }
 0x44a   :  { %v5984_v10 = vpop.f32.mrf.mxu3 }
 0x44b   :  { %v6048_v30 = vpack.c.bf16 %v6041_v7, %v6034_v36  ;;  %v5985_v21 = vadd.f32 %v5984_v10, %v5971_v56 }
 0x44c   :  { %v6026_v17 = vpop.f32.mrf.mxu2 }
 0x44d   :  { %6580 = vmatmul.bf16.vlgmr.msra.gmra.mxu0 %v6048_v30 }
 0x45c   :  { %v5996_v15 = vpop.f32.mrf.mxu0 }
 0x45d   :  { %v5997_v40 = vadd.f32 %v5996_v15, %v5983_v42  ;;  %v6539_v52 = vpop.f32.mrf.mxu1 }
 0x45f   :  { %v6011_v22 = vadd.f32 %v6010_v13, %v5997_v40 }
 0x461   :  { %v6025_v38 = vadd.f32 %v6024_v3, %v6011_v22 }
 0x462   :  { %v6511_v48 = vpop.f32.mrf.mxu3 }
 0x463   :  { %v6035_v46 = vmax.f32 %v6025_v38, 0.0  ;;  %v6512_v61 = vadd.f32 %v10423_v54, %v6511_v48 }
 0x464   :  { %v5998_v47 = vpop.f32.mrf.mxu0 }
 0x465   :  { %v5999_v31 = vadd.f32 %v5998_v47, %v5985_v21  ;;  %v6541_v62 = vpop.f32.mrf.mxu1 }
 0x467   :  { %v6013_v43 = vadd.f32 %v6012_v32, %v5999_v31 }
 0x469   :  { %v6027_v45 = vadd.f32 %v6026_v17, %v6013_v43 }
 0x46a   :  { %v6513_v57 = vpop.f32.mrf.mxu3 }
 0x46b   :  { %v6042_v49 = vmax.f32 %v6027_v45, 0.0  ;;  %v6514_v34 = vadd.f32 %v10423_v54, %v6513_v57 }
 0x46d   :  { %v6049_v28 = vpack.c.bf16 %v6042_v49, %v6035_v46 }
 0x46f   :  { %6594 = vmatmul.bf16.vlgmr.msra.gmra.mxu1 %v6049_v28 }
 0x474   :  { %v6553_v16 = vpop.f32.mrf.mxu2 }
 0x47c   :  { %v6525_v35 = vpop.f32.mrf.mxu0  ;;  %v6555_v55 = vpop.f32.mrf.mxu2 }
 0x47d   :  { %v6526_v14 = vadd.f32 %v6525_v35, %v6512_v61 }
 0x47f   :  { %v6540_v20 = vadd.f32 %v6539_v52, %v6526_v14 }
 0x481   :  { %v6554_v53 = vadd.f32 %v6553_v16, %v6540_v20 }
 0x484   :  { %v6527_v59 = vpop.f32.mrf.mxu0 }
 0x485   :  { %v6528_v1 = vadd.f32 %v6527_v59, %v6514_v34 }
 0x487   :  { %v6542_v63 = vadd.f32 %v6541_v62, %v6528_v1 }
 0x489   :  { %v6556_v60 = vadd.f32 %v6555_v55, %v6542_v63 }
 0x4ae   :  { %v6567_v9 = vpop.f32.mrf.mxu3 }
 0x4af   :  { %v6568_v23 = vadd.f32 %v6567_v9, %v6554_v53 }
 0x4b6   :  { %v6569_v26 = vpop.f32.mrf.mxu3 }
 0x4b7   :  { %v6570_v0 = vadd.f32 %v6569_v26, %v6556_v60 }
 0x4ca   :  { %v6581_v39 = vpop.f32.mrf.mxu0 }
 0x4cb   :  { %v6582_v29 = vadd.f32 %v6581_v39, %v6568_v23 }
 0x4d2   :  { %v6583_v27 = vpop.f32.mrf.mxu0 }
 0x4d3   :  { %v6584_v51 = vadd.f32 %v6583_v27, %v6570_v0 }
 0x4ec   :  { %v6595_v24 = vpop.f32.mrf.mxu1 }
 0x4ed   :  { %v6596_v50 = vadd.f32 %v6595_v24, %v6582_v29 }
 0x4ef   :  { %6600 = vst [vmem:[#allocation19] sm:$0xff] %v6596_v50 }
 0x4f4   :  { %v6597_v2 = vpop.f32.mrf.mxu1 }
 0x4f5   :  { %v6598_v25 = vadd.f32 %v6597_v2, %v6584_v51 }
 0x4f7   :  { %6601 = vst [vmem:[#allocation19 + $0x8] sm:$0xff] %v6598_v25 }
 0x4f8   :  { %6614 = dma.vmem_to_hbm [thread:$0]  %s6607_s1, 256, %s6609_s29, [#allocation4], %s10722_s3, %s10722_s3, %s10723_s2  }
 0x4f9   :  { %10701 = dma.done.wait [#allocation4], 256  }
 0x4fa   :  { %10702 = vsyncadd [#allocation4], 4294967040 }
 0x4fb   :  { %6619 = vsyncpa [#allocation3], 1 }
 0x4fc   :  { %6620 = vsyncpa [#allocation6], 1 }
 0x4fd   :  { %6621 = vsyncpa [#allocation9], 1 }
 0x4fe   :  { %6622 = vsyncpa [#allocation12], 1 }
 0x4ff   :  { %6623 = vsyncpa [#allocation15], 1 }
 0x500   :  { %6624 = vsyncpa [#allocation18], 1 }
 0x501   :  { %6625 = vsyncpa [#allocation4], 1 }

// kernel: tpu_custom_call.1
= control target key start
LH: loop header
LB: loop body
LE: loop exit
PB: predicated region body
PF: predicated region fallthrough
CT: control target
= control target key end

     0   :  { %16 = vsyncpa [#allocation3], 0  ;;  %s11143_s0 = inlined_call_operand.vmem [shape: f32[16,8], index: 0, kind: input, shape index: {}]   ;;  %s11144_s1 = inlined_call_operand.hbm [shape: f32[8,1024], index: 1, kind: input, shape index: {}]   ;;  %s11145_s2 = inlined_call_operand.hbm [shape: f32[1,1024], index: 2, kind: input, shape index: {}]   ;;  %s11146_s3 = inlined_call_operand.hbm [shape: bf16[1024,512], index: 3, kind: input, shape index: {}]   ;;  %s11147_s4 = inlined_call_operand.hbm [shape: f32[1,512], index: 4, kind: input, shape index: {}]   ;;  %s11148_s5 = inlined_call_operand.hbm [shape: bf16[512,640], index: 5, kind: input, shape index: {}]   ;;  %s11149_s6 = inlined_call_operand.hbm [shape: f32[1,640], index: 6, kind: input, shape index: {}]   ;;  %s11150_s7 = inlined_call_operand.hbm [shape: bf16[640,896], index: 7, kind: input, shape index: {}]   ;;  %s11151_s8 = inlined_call_operand.hbm [shape: f32[1,896], index: 8, kind: input, shape index: {}]   ;;  %s11152_s9 = inlined_call_operand.hbm [shape: bf16[896,128], index: 9, kind: input, shape index: {}]   ;;  %s11153_s10 = inlined_call_operand.hbm [shape: f32[1,128], index: 10, kind: input, shape index: {}]   ;;  %s11154_s11 = inlined_call_operand.hbm [shape: f32[16,128], index: 11, kind: output, shape index: {}]  }
   0x1   :  { %17 = vsyncpa [#allocation6], 0 }
   0x2   :  { %18 = vsyncpa [#allocation9], 0 }
   0x3   :  { %19 = vsyncpa [#allocation12], 0 }
   0x4   :  { %20 = vsyncpa [#allocation15], 0 }
   0x5   :  { %21 = vsyncpa [#allocation18], 0  ;;  %s41_s19 = sshll.u32 %s11145_s2, 4  ;;  %s42_s19 = int_to_ptr.hbm [resolvable:$true] %s41_s19 }
   0x6   :  { %22 = vsyncpa [#allocation4], 0  ;;  %s10703_s20 = smov [#allocation5]   ;;  %s65_s24 = sshll.u32 %s11147_s4, 4  ;;  %s66_s24 = int_to_ptr.hbm [resolvable:$true] %s65_s24 }
   0x7   :  { %s43_s21 = sshll.u32 %s10703_s20, 4  ;;  %s10704_s25 = smov [#allocation8]   ;;  %s44_s21 = int_to_ptr.vmem [resolvable:$true] %s43_s21 }
   0x8   :  { %46 = dma.hbm_to_vmem [thread:$0]  %s42_s19, 128, %s44_s21, [#allocation6]  }
   0x9   :  { %s67_s26 = sshll.u32 %s10704_s25, 4  ;;  %s89_s29 = sshll.u32 %s11149_s6, 4  ;;  %s68_s26 = int_to_ptr.vmem [resolvable:$true] %s67_s26  ;;  %s90_s29 = int_to_ptr.hbm [resolvable:$true] %s89_s29 }
   0xa   :  { %70 = dma.hbm_to_vmem [thread:$0]  %s66_s24, 64, %s68_s26, [#allocation9]  }
   0xb   :  { %s113_s12 = sshll.u32 %s11151_s8, 4  ;;  %s10705_s13 = smov [#allocation11]   ;;  %s114_s12 = int_to_ptr.hbm [resolvable:$true] %s113_s12 }
   0xc   :  { %s91_s14 = sshll.u32 %s10705_s13, 4  ;;  %s10706_s4 = smov [#allocation14]   ;;  %s92_s14 = int_to_ptr.vmem [resolvable:$true] %s91_s14 }
   0xd   :  { %94 = dma.hbm_to_vmem [thread:$0]  %s90_s29, 80, %s92_s14, [#allocation12]  }
   0xe   :  { %s115_s15 = sshll.u32 %s10706_s4, 4  ;;  %s30_s18 = sshll.u32 %s11144_s1, 4  ;;  %s116_s15 = int_to_ptr.vmem [resolvable:$true] %s115_s15  ;;  %s31_s18 = int_to_ptr.hbm [resolvable:$true] %s30_s18 }
   0xf   :  { %118 = dma.hbm_to_vmem [thread:$0]  %s114_s12, 112, %s116_s15, [#allocation15]  }
  0x10   :  { %s51_s20 = sshll.u32 %s11146_s3, 4  ;;  %s10707_s21 = smov [#allocation2]   ;;  %s52_s20 = int_to_ptr.hbm [resolvable:$true] %s51_s20 }
  0x11   :  { %s32_s8 = sshll.u32 %s10707_s21, 4  ;;  %s10708_s22 = smov [#allocation7]   ;;  %s33_s8 = int_to_ptr.vmem [resolvable:$true] %s32_s8 }
  0x12   :  { %35 = dma.hbm_to_vmem [thread:$0]  %s31_s18, 1024, %s33_s8, [#allocation3]  }
  0x13   :  { %s53_s23 = sshll.u32 %s10708_s22, 4  ;;  %s10709_s24 = smov 256   ;;  %s54_s23 = int_to_ptr.vmem [resolvable:$true] %s53_s23 }
  0x14   :  { %s10710_s25 = smov 16   ;;  %s75_s27 = sshll.u32 %s11148_s5, 4  ;;  %s76_s27 = int_to_ptr.hbm [resolvable:$true] %s75_s27 }
  0x15   :  { %59 = dma.hbm_to_vmem [thread:$0]  %s52_s20, 32768, %s54_s23, [#allocation6], %s10709_s24, %s10709_s24, %s10710_s25  }
  0x16   :  { %s10711_s28 = smov [#allocation10]   ;;  %s99_s30 = sshll.u32 %s11150_s7, 4  ;;  %s100_s30 = int_to_ptr.hbm [resolvable:$true] %s99_s30 }
  0x17   :  { %s77_s29 = sshll.u32 %s10711_s28, 4  ;;  %s10712_s12 = smov 320   ;;  %s78_s29 = int_to_ptr.vmem [resolvable:$true] %s77_s29 }
  0x18   :  { %s10713_s13 = smov 20   ;;  %s10714_s14 = smov [#allocation13]  }
  0x19   :  { %83 = dma.hbm_to_vmem [thread:$0]  %s76_s27, 20480, %s78_s29, [#allocation9], %s10712_s12, %s10712_s12, %s10713_s13  }
  0x1a   :  { %s101_s4 = sshll.u32 %s10714_s14, 4  ;;  %s10715_s15 = smov 448   ;;  %s102_s4 = int_to_ptr.vmem [resolvable:$true] %s101_s4 }
  0x1b   :  { %s10716_s16 = smov 28   ;;  %s123_s18 = sshll.u32 %s11152_s9, 4  ;;  %s124_s18 = int_to_ptr.hbm [resolvable:$true] %s123_s18 }
  0x1c   :  { %107 = dma.hbm_to_vmem [thread:$0]  %s100_s30, 35840, %s102_s4, [#allocation12], %s10715_s15, %s10715_s15, %s10716_s16  }
  0x1d   :  { %s10717_s6 = smov [#allocation16]   ;;  %s137_s21 = sshll.u32 %s11153_s10, 4  ;;  %s138_s21 = int_to_ptr.hbm [resolvable:$true] %s137_s21 }
  0x1e   :  { %s125_s19 = sshll.u32 %s10717_s6, 4  ;;  %s10718_s8 = smov 64   ;;  %s126_s19 = int_to_ptr.vmem [resolvable:$true] %s125_s19 }
  0x1f   :  { %s10719_s22 = smov 4   ;;  %s10720_s23 = smov [#allocation17]  }
  0x20   :  { %131 = dma.hbm_to_vmem [thread:$0]  %s124_s18, 7168, %s126_s19, [#allocation15], %s10718_s8, %s10718_s8, %s10719_s22  }
  0x21   :  { %s139_s24 = sshll.u32 %s10720_s23, 4  ;;  %s140_s24 = int_to_ptr.vmem [resolvable:$true] %s139_s24 }
  0x22   :  { %142 = dma.hbm_to_vmem [thread:$0]  %s138_s21, 16, %s140_s24, [#allocation18]  }
  0x23   :  { %10689 = dma.done.wait [#allocation3], 1024  }
  0x24   :  { %10690 = vsyncadd [#allocation3], 4294966272 }
  0x25   :  { %10691 = dma.done.wait [#allocation6], 32896  }
  0x26   :  { %10692 = vsyncadd [#allocation6], 4294934400 }
  0x27   :  { %10693 = dma.done.wait [#allocation9], 20544  }
  0x28   :  { %10694 = vsyncadd [#allocation9], 4294946752 }
  0x29   :  { %10695 = dma.done.wait [#allocation12], 35920  }
  0x2a   :  { %10696 = vsyncadd [#allocation12], 4294931376 }
  0x2b   :  { %10697 = dma.done.wait [#allocation15], 7280  }
  0x2c   :  { %10698 = vsyncadd [#allocation15], 4294960016 }
  0x2d   :  { %10699 = dma.done.wait [#allocation18], 16  }
  0x2e   :  { %10700 = vsyncadd [#allocation18], 4294967280  ;;  %vm211_vm0 = vcmask 64512   ;;  %v185_v0 = vld [vmem:[#allocation2] sm:$0xff]  ;;  %v186_v1 = vld [vmem:[#allocation2 + $0x8] sm:$0xff]  ;;  %s6608_s29 = sshll.u32 %s11154_s11, 4  ;;  %s6609_s29 = int_to_ptr.hbm [resolvable:$true] %s6608_s29 }
  0x2f   :  { %v10817_v2 = vld [vmem:[%s11143_s0] sm:$0xff]  ;;  %233 = vmatpush.msra.mxu2 %v185_v0  ;;  %256 = vmatpush.msra.mxu3 %v186_v1  ;;  %v187_v3 = vld [vmem:[#allocation2 + $0x10] sm:$0xff]  ;;  %v188_v4 = vld [vmem:[#allocation2 + $0x18] sm:$0xff]  ;;  %s10722_s3 = smov 128   ;;  %s10723_s2 = smov 8  }
  0x30   :  { %6626 = vmatmul.msk.f32.vlgmr.msra.gmra.mxu2 %vm211_vm0, %v10817_v2  ;;  %6628 = vmatmul.msk.f32.vlgmr.msra.gmra.mxu3 %vm211_vm0, %v10817_v2  ;;  %v189_v5 = vld [vmem:[#allocation2 + $0x20] sm:$0xff]  ;;  %v190_v6 = vld [vmem:[#allocation2 + $0x28] sm:$0xff]  ;;  %v191_v7 = vld [vmem:[#allocation2 + $0x30] sm:$0xff] }
  0x31   :  { %279 = vmatpush.msrb.mxu2 %v187_v3  ;;  %302 = vmatpush.msrb.mxu3 %v188_v4  ;;  %v192_v8 = vld [vmem:[#allocation2 + $0x38] sm:$0xff]  ;;  %v10830_v9 = vld [vmem:[%s11143_s0 + $0x8] sm:$0xff]  ;;  %s10721_s0 = smov [#allocation19]  }
  0x32   :  { %325 = vmatpush.msra.mxu0 %v189_v5  ;;  %348 = vmatpush.msra.mxu1 %v190_v6  ;;  %v6756_v10 = vld [vmem:[#allocation7 + $0xe0] sm:$0xf]  ;;  %v9680_v11 = vld [vmem:[#allocation7 + $0xec] sm:$0xf0]  ;;  %s6606_s1 = sshll.u32 %s10721_s0, 4  ;;  %s6607_s1 = int_to_ptr.vmem [resolvable:$true] %s6606_s1 }
  0x33   :  { %6634 = vmatmul.msk.f32.vlgmr.msra.gmra.mxu0 %vm211_vm0, %v10817_v2  ;;  %6636 = vmatmul.msk.f32.vlgmr.msra.gmra.mxu1 %vm211_vm0, %v10817_v2  ;;  %v6884_v12 = vld [vmem:[#allocation7 + $0x1e0] sm:$0xf]  ;;  %v6757_v13 = vor.u32 %v9680_v11, %v6756_v10  ;;  %v9712_v14 = vld [vmem:[#allocation7 + $0x1ec] sm:$0xf0] }
  0x34   :  { %371 = vmatpush.msra.mxu2 %v191_v7  ;;  %394 = vmatpush.msra.mxu3 %v192_v8  ;;  %v6740_v15 = vld [vmem:[#allocation7 + $0xc0] sm:$0xf]  ;;  %v6885_v16 = vor.u32 %v9712_v14, %v6884_v12  ;;  %v9676_v17 = vld [vmem:[#allocation7 + $0xcc] sm:$0xf0] }
  0x35   :  { %v6868_v18 = vld [vmem:[#allocation7 + $0x1c0] sm:$0xf]  ;;  %v9708_v19 = vld [vmem:[#allocation7 + $0x1cc] sm:$0xf0]  ;;  %1972 = vmatpush.bf16.msrb.mxu0 %v6757_v13  ;;  %v6741_v20 = vor.u32 %v9676_v17, %v6740_v15 }
  0x36   :  { %1986 = vmatpush.bf16.msrb.mxu1 %v6885_v16  ;;  %v6869_v21 = vor.u32 %v9708_v19, %v6868_v18  ;;  %v6724_v22 = vld [vmem:[#allocation7 + $0xa0] sm:$0xf]  ;;  %v9672_v23 = vld [vmem:[#allocation7 + $0xac] sm:$0xf0] }
  0x37   :  { %v6852_v24 = vld [vmem:[#allocation7 + $0x1a0] sm:$0xf]  ;;  %v9704_v25 = vld [vmem:[#allocation7 + $0x1ac] sm:$0xf0]  ;;  %v6725_v34 = vor.u32 %v9672_v23, %v6724_v22 }
  0x38   :  { %6627 = vmatmul.msk.f32.gmra.mxu2 %vm211_vm0, %v10830_v9  ;;  %6629 = vmatmul.msk.f32.gmra.mxu3 %vm211_vm0, %v10830_v9  ;;  %v7012_v26 = vld [vmem:[#allocation7 + $0x2e0] sm:$0xf]  ;;  %v9744_v27 = vld [vmem:[#allocation7 + $0x2ec] sm:$0xf0]  ;;  %v6853_v35 = vor.u32 %v9704_v25, %v6852_v24 }
  0x39   :  { %v7140_v28 = vld [vmem:[#allocation7 + $0x3e0] sm:$0xf]  ;;  %v9776_v29 = vld [vmem:[#allocation7 + $0x3ec] sm:$0xf0]  ;;  %v7013_v32 = vor.u32 %v9744_v27, %v7012_v26  ;;  %1973 = vmatpush.bf16.msrb.mxu0 %v6741_v20 }
  0x3a   :  { %v6708_v30 = vld [vmem:[#allocation7 + $0x80] sm:$0xf]  ;;  %v9668_v31 = vld [vmem:[#allocation7 + $0x8c] sm:$0xf0]  ;;  %v7141_v33 = vor.u32 %v9776_v29, %v7140_v28  ;;  %1987 = vmatpush.bf16.msrb.mxu1 %v6869_v21 }
  0x3b   :  { %6635 = vmatmul.msk.f32.gmra.mxu0 %vm211_vm0, %v10830_v9  ;;  %6637 = vmatmul.msk.f32.gmra.mxu1 %vm211_vm0, %v10830_v9  ;;  %v6836_v36 = vld [vmem:[#allocation7 + $0x180] sm:$0xf]  ;;  %v9740_v38 = vld [vmem:[#allocation7 + $0x2cc] sm:$0xf0]  ;;  %v6709_v47 = vor.u32 %v9668_v31, %v6708_v30 }
  0x3c   :  { %v6996_v37 = vld [vmem:[#allocation7 + $0x2c0] sm:$0xf]  ;;  %v9700_v39 = vld [vmem:[#allocation7 + $0x18c] sm:$0xf0] }
  0x3d   :  { %v6997_v40 = vor.u32 %v9740_v38, %v6996_v37  ;;  %v7124_v41 = vld [vmem:[#allocation7 + $0x3c0] sm:$0xf]  ;;  %v9772_v42 = vld [vmem:[#allocation7 + $0x3cc] sm:$0xf0]  ;;  %1974 = vmatpush.bf16.msrb.mxu0 %v6725_v34  ;;  %v6837_v48 = vor.u32 %v9700_v39, %v6836_v36 }
  0x3e   :  { %v7125_v43 = vor.u32 %v9772_v42, %v7124_v41  ;;  %v6980_v44 = vld [vmem:[#allocation7 + $0x2a0] sm:$0xf]  ;;  %v9736_v45 = vld [vmem:[#allocation7 + $0x2ac] sm:$0xf0]  ;;  %1988 = vmatpush.bf16.msrb.mxu1 %v6853_v35 }
  0x3f   :  { %v7108_v46 = vld [vmem:[#allocation7 + $0x3a0] sm:$0xf]  ;;  %v9664_v50 = vld [vmem:[#allocation7 + $0x6c] sm:$0xf0]  ;;  %v6981_v54 = vor.u32 %v9736_v45, %v6980_v44 }
  0x40   :  { %6630 = vmatmul.msk.f32.vlgmr.msrb.gmra.mxu2 %vm211_vm0, %v10817_v2  ;;  %6632 = vmatmul.msk.f32.vlgmr.msrb.gmra.mxu3 %vm211_vm0, %v10817_v2  ;;  %v6692_v49 = vld [vmem:[#allocation7 + $0x60] sm:$0xf]  ;;  %v9768_v51 = vld [vmem:[#allocation7 + $0x3ac] sm:$0xf0] }
  0x41   :  { %2000 = vmatpush.bf16.msrb.mxu2 %v7013_v32  ;;  %2014 = vmatpush.bf16.msrb.mxu3 %v7141_v33  ;;  %v6820_v52 = vld [vmem:[#allocation7 + $0x160] sm:$0xf]  ;;  %v9696_v53 = vld [vmem:[#allocation7 + $0x16c] sm:$0xf0]  ;;  %v7109_v55 = vor.u32 %v9768_v51, %v7108_v46  ;;  %v6693_v60 = vor.u32 %v9664_v50, %v6692_v49 }
  0x42   :  { %v6964_v56 = vld [vmem:[#allocation7 + $0x280] sm:$0xf]  ;;  %v9732_v57 = vld [vmem:[#allocation7 + $0x28c] sm:$0xf0]  ;;  %1975 = vmatpush.bf16.msrb.mxu0 %v6709_v47  ;;  %1989 = vmatpush.bf16.msrb.mxu1 %v6837_v48  ;;  %v6821_v61 = vor.u32 %v9696_v53, %v6820_v52 }
  0x43   :  { %v7092_v58 = vld [vmem:[#allocation7 + $0x380] sm:$0xf]  ;;  %v9764_v59 = vld [vmem:[#allocation7 + $0x38c] sm:$0xf0]  ;;  %v6965_v3 = vor.u32 %v9732_v57, %v6964_v56 }
  0x44   :  { %v6676_v62 = vld [vmem:[#allocation7 + $0x40] sm:$0xf]  ;;  %v9660_v63 = vld [vmem:[#allocation7 + $0x4c] sm:$0xf0]  ;;  %v7093_v4 = vor.u32 %v9764_v59, %v7092_v58 }
  0x45   :  { %2001 = vmatpush.bf16.msrb.mxu2 %v6997_v40  ;;  %2015 = vmatpush.bf16.msrb.mxu3 %v7125_v43  ;;  %v6804_v0 = vld [vmem:[#allocation7 + $0x140] sm:$0xf]  ;;  %v9692_v1 = vld [vmem:[#allocation7 + $0x14c] sm:$0xf0]  ;;  %v6677_v10 = vor.u32 %v9660_v63, %v6676_v62 }
  0x46   :  { %v6948_v5 = vld [vmem:[#allocation7 + $0x260] sm:$0xf]  ;;  %v9728_v6 = vld [vmem:[#allocation7 + $0x26c] sm:$0xf0]  ;;  %1976 = vmatpush.bf16.msrb.mxu0 %v6693_v60  ;;  %1990 = vmatpush.bf16.msrb.mxu1 %v6821_v61  ;;  %v6805_v11 = vor.u32 %v9692_v1, %v6804_v0 }
  0x47   :  { %v7076_v7 = vld [vmem:[#allocation7 + $0x360] sm:$0xf]  ;;  %v9760_v8 = vld [vmem:[#allocation7 + $0x36c] sm:$0xf0]  ;;  %v6949_v16 = vor.u32 %v9728_v6, %v6948_v5 }
  0x48   :  { %6631 = vmatmul.msk.f32.gmra.mxu2 %vm211_vm0, %v10830_v9  ;;  %6633 = vmatmul.msk.f32.gmra.mxu3 %vm211_vm0, %v10830_v9  ;;  %v6660_v12 = vld [vmem:[#allocation7 + $0x20] sm:$0xf]  ;;  %v9656_v13 = vld [vmem:[#allocation7 + $0x2c] sm:$0xf0]  ;;  %v7077_v17 = vor.u32 %v9760_v8, %v7076_v7 }
  0x49   :  { %2002 = vmatpush.bf16.msrb.mxu2 %v6981_v54  ;;  %2016 = vmatpush.bf16.msrb.mxu3 %v7109_v55  ;;  %v6788_v14 = vld [vmem:[#allocation7 + $0x120] sm:$0xf]  ;;  %v9688_v15 = vld [vmem:[#allocation7 + $0x12c] sm:$0xf0]  ;;  %v6661_v22 = vor.u32 %v9656_v13, %v6660_v12 }
  0x4a   :  { %v6932_v18 = vld [vmem:[#allocation7 + $0x240] sm:$0xf]  ;;  %v9724_v19 = vld [vmem:[#allocation7 + $0x24c] sm:$0xf0]  ;;  %1977 = vmatpush.bf16.msrb.mxu0 %v6677_v10  ;;  %1991 = vmatpush.bf16.msrb.mxu1 %v6805_v11  ;;  %v6789_v23 = vor.u32 %v9688_v15, %v6788_v14 }
  0x4b   :  { %v7060_v20 = vld [vmem:[#allocation7 + $0x340] sm:$0xf]  ;;  %v9756_v21 = vld [vmem:[#allocation7 + $0x34c] sm:$0xf0]  ;;  %v6933_v30 = vor.u32 %v9724_v19, %v6932_v18 }
  0x4c   :  { %v6644_v24 = vld [vmem:[#allocation7] sm:$0xf]  ;;  %v9652_v25 = vld [vmem:[#allocation7 + $0xc] sm:$0xf0]  ;;  %v7061_v31 = vor.u32 %v9756_v21, %v7060_v20 }
  0x4d   :  { %2003 = vmatpush.bf16.msrb.mxu2 %v6965_v3  ;;  %2017 = vmatpush.bf16.msrb.mxu3 %v7093_v4  ;;  %v6772_v26 = vld [vmem:[#allocation7 + $0x100] sm:$0xf]  ;;  %v9684_v27 = vld [vmem:[#allocation7 + $0x10c] sm:$0xf0]  ;;  %v6645_v37 = vor.u32 %v9652_v25, %v6644_v24 }
  0x4e   :  { %v7268_v28 = vld [vmem:[#allocation7 + $0x4e0] sm:$0xf]  ;;  %v9808_v29 = vld [vmem:[#allocation7 + $0x4ec] sm:$0xf0]  ;;  %1978 = vmatpush.bf16.msrb.mxu0 %v6661_v22  ;;  %1992 = vmatpush.bf16.msrb.mxu1 %v6789_v23  ;;  %v6773_v38 = vor.u32 %v9684_v27, %v6772_v26 }
  0x4f   :  { %v7396_v32 = vld [vmem:[#allocation7 + $0x5e0] sm:$0xf]  ;;  %v9840_v33 = vld [vmem:[#allocation7 + $0x5ec] sm:$0xf0]  ;;  %v7269_v39 = vor.u32 %v9808_v29, %v7268_v28 }
  0x50   :  { %6638 = vmatmul.msk.f32.vlgmr.msra.gmra.mxu2 %vm211_vm0, %v10817_v2  ;;  %6640 = vmatmul.msk.f32.vlgmr.msra.gmra.mxu3 %vm211_vm0, %v10817_v2  ;;  %v6916_v34 = vld [vmem:[#allocation7 + $0x220] sm:$0xf]  ;;  %v9720_v35 = vld [vmem:[#allocation7 + $0x22c] sm:$0xf0]  ;;  %v7397_v40 = vor.u32 %v9840_v33, %v7396_v32 }
  0x51   :  { %2004 = vmatpush.bf16.msrb.mxu2 %v6949_v16  ;;  %2018 = vmatpush.bf16.msrb.mxu3 %v7077_v17  ;;  %v7044_v36 = vld [vmem:[#allocation7 + $0x320] sm:$0xf]  ;;  %v9752_v2 = vld [vmem:[#allocation7 + $0x32c] sm:$0xf0]  ;;  %v6917_v45 = vor.u32 %v9720_v35, %v6916_v34 }
  0x52   :  { %v7252_v41 = vld [vmem:[#allocation7 + $0x4c0] sm:$0xf]  ;;  %v9804_v42 = vld [vmem:[#allocation7 + $0x4cc] sm:$0xf0]  ;;  %v7045_v46 = vor.u32 %v9752_v2, %v7044_v36  ;;  %1979 = vmatpush.bf16.msrb.mxu0 %v6645_v37  ;;  %1993 = vmatpush.bf16.msrb.mxu1 %v6773_v38 }
  0x53   :  { %v7380_v43 = vld [vmem:[#allocation7 + $0x5c0] sm:$0xf]  ;;  %v9836_v44 = vld [vmem:[#allocation7 + $0x5cc] sm:$0xf0]  ;;  %v7253_v47 = vor.u32 %v9804_v42, %v7252_v41 }
  0x54   :  { %v7381_v48 = vor.u32 %v9836_v44, %v7380_v43  ;;  %v7236_v49 = vld [vmem:[#allocation7 + $0x4a0] sm:$0xf]  ;;  %v9800_v50 = vld [vmem:[#allocation7 + $0x4ac] sm:$0xf0] }
  0x55   :  { %2005 = vmatpush.bf16.msrb.mxu2 %v6933_v30  ;;  %2019 = vmatpush.bf16.msrb.mxu3 %v7061_v31  ;;  %v7364_v51 = vld [vmem:[#allocation7 + $0x5a0] sm:$0xf]  ;;  %v9832_v52 = vld [vmem:[#allocation7 + $0x5ac] sm:$0xf0]  ;;  %v7237_v53 = vor.u32 %v9800_v50, %v7236_v49 }
  0x56   :  { %2028 = vmatpush.bf16.msra.mxu0 %v7269_v39  ;;  %2042 = vmatpush.bf16.msra.mxu1 %v7397_v40  ;;  %v7365_v54 = vor.u32 %v9832_v52, %v7364_v51  ;;  %v7220_v55 = vld [vmem:[#allocation7 + $0x480] sm:$0xf]  ;;  %v9796_v56 = vld [vmem:[#allocation7 + $0x48c] sm:$0xf0] }
  0x57   :  { %v7348_v57 = vld [vmem:[#allocation7 + $0x580] sm:$0xf]  ;;  %v7221_v58 = vor.u32 %v9796_v56, %v7220_v55  ;;  %v9716_v61 = vld [vmem:[#allocation7 + $0x20c] sm:$0xf0] }
  0x58   :  { %6639 = vmatmul.msk.f32.gmra.mxu2 %vm211_vm0, %v10830_v9  ;;  %6641 = vmatmul.msk.f32.gmra.mxu3 %vm211_vm0, %v10830_v9  ;;  %v9828_v9 = vld [vmem:[#allocation7 + $0x58c] sm:$0xf0]  ;;  %v6900_v60 = vld [vmem:[#allocation7 + $0x200] sm:$0xf] }
  0x59   :  { %2006 = vmatpush.bf16.msrb.mxu2 %v6917_v45  ;;  %2020 = vmatpush.bf16.msrb.mxu3 %v7045_v46  ;;  %v7349_v59 = vor.u32 %v9828_v9, %v7348_v57  ;;  %v7028_v62 = vld [vmem:[#allocation7 + $0x300] sm:$0xf]  ;;  %v6901_v63 = vor.u32 %v9716_v61, %v6900_v60  ;;  %v9748_v0 = vld [vmem:[#allocation7 + $0x30c] sm:$0xf0] }
  0x5a   :  { %2029 = vmatpush.bf16.msra.mxu0 %v7253_v47  ;;  %2043 = vmatpush.bf16.msra.mxu1 %v7381_v48  ;;  %v7204_v1 = vld [vmem:[#allocation7 + $0x460] sm:$0xf]  ;;  %v9792_v3 = vld [vmem:[#allocation7 + $0x46c] sm:$0xf0]  ;;  %v7029_v4 = vor.u32 %v9748_v0, %v7028_v62 }
  0x5b   :  { %v7205_v5 = vor.u32 %v9792_v3, %v7204_v1  ;;  %v7332_v6 = vld [vmem:[#allocation7 + $0x560] sm:$0xf]  ;;  %v9824_v7 = vld [vmem:[#allocation7 + $0x56c] sm:$0xf0] }
  0x5c   :  { %v7524_v8 = vld [vmem:[#allocation7 + $0x6e0] sm:$0xf]  ;;  %v7333_v10 = vor.u32 %v9824_v7, %v7332_v6  ;;  %v9872_v11 = vld [vmem:[#allocation7 + $0x6ec] sm:$0xf0] }
  0x5d   :  { %2007 = vmatpush.bf16.msrb.mxu2 %v6901_v63  ;;  %v7652_v12 = vld [vmem:[#allocation7 + $0x7e0] sm:$0xf]  ;;  %2021 = vmatpush.bf16.msrb.mxu3 %v7029_v4  ;;  %v7525_v13 = vor.u32 %v9872_v11, %v7524_v8  ;;  %v9904_v14 = vld [vmem:[#allocation7 + $0x7ec] sm:$0xf0] }
  0x5e   :  { %2030 = vmatpush.bf16.msra.mxu0 %v7237_v53  ;;  %2044 = vmatpush.bf16.msra.mxu1 %v7365_v54  ;;  %v7653_v15 = vor.u32 %v9904_v14, %v7652_v12  ;;  %v7188_v16 = vld [vmem:[#allocation7 + $0x440] sm:$0xf]  ;;  %v9788_v17 = vld [vmem:[#allocation7 + $0x44c] sm:$0xf0]  ;;  %v10856_v12 = vld [vmem:[#allocation5] sm:$0xff] }
  0x5f   :  { %v7316_v18 = vld [vmem:[#allocation7 + $0x540] sm:$0xf]  ;;  %v7189_v19 = vor.u32 %v9788_v17, %v7188_v16  ;;  %v9820_v20 = vld [vmem:[#allocation7 + $0x54c] sm:$0xf0]  ;;  %v196_v16 = vperm.slane %v10856_v12, 1 }
  0x60   :  { %v7508_v21 = vld [vmem:[#allocation7 + $0x6c0] sm:$0xf]  ;;  %v9868_v22 = vld [vmem:[#allocation7 + $0x6cc] sm:$0xf0]  ;;  %v7317_v23 = vor.u32 %v9820_v20, %v7316_v18 }
  0x61   :  { %2056 = vmatpush.bf16.msra.mxu2 %v7525_v13  ;;  %2070 = vmatpush.bf16.msra.mxu3 %v7653_v15  ;;  %v7509_v24 = vor.u32 %v9868_v22, %v7508_v21  ;;  %v7636_v25 = vld [vmem:[#allocation7 + $0x7c0] sm:$0xf]  ;;  %v9900_v26 = vld [vmem:[#allocation7 + $0x7cc] sm:$0xf0]  ;;  %v195_v15 = vperm.slane %v10856_v12, 0 }
  0x62   :  { %2031 = vmatpush.bf16.msra.mxu0 %v7221_v58  ;;  %2045 = vmatpush.bf16.msra.mxu1 %v7349_v59  ;;  %v7637_v27 = vor.u32 %v9900_v26, %v7636_v25  ;;  %v7172_v28 = vld [vmem:[#allocation7 + $0x420] sm:$0xf]  ;;  %v9784_v29 = vld [vmem:[#allocation7 + $0x42c] sm:$0xf0]  ;;  %v6758_v26 = vld [vmem:[#allocation7 + $0xf0] sm:$0xf0] }
  0x63   :  { %v7300_v30 = vld [vmem:[#allocation7 + $0x520] sm:$0xf]  ;;  %v7173_v31 = vor.u32 %v9784_v29, %v7172_v28  ;;  %v9816_v32 = vld [vmem:[#allocation7 + $0x52c] sm:$0xf0]  ;;  %v6886_v28 = vld [vmem:[#allocation7 + $0x1f0] sm:$0xf0] }
  0x64   :  { %v7492_v33 = vld [vmem:[#allocation7 + $0x6a0] sm:$0xf]  ;;  %v9864_v34 = vld [vmem:[#allocation7 + $0x6ac] sm:$0xf0]  ;;  %v7301_v35 = vor.u32 %v9816_v32, %v7300_v30 }
  0x65   :  { %2057 = vmatpush.bf16.msra.mxu2 %v7509_v24  ;;  %2071 = vmatpush.bf16.msra.mxu3 %v7637_v27  ;;  %v7493_v36 = vor.u32 %v9864_v34, %v7492_v33  ;;  %v7620_v2 = vld [vmem:[#allocation7 + $0x7a0] sm:$0xf]  ;;  %v9896_v37 = vld [vmem:[#allocation7 + $0x7ac] sm:$0xf0]  ;;  %v9710_v27 = vld [vmem:[#allocation7 + $0x1e4] sm:$0xf] }
  0x66   :  { %2032 = vmatpush.bf16.msra.mxu0 %v7205_v5  ;;  %2046 = vmatpush.bf16.msra.mxu1 %v7333_v10  ;;  %v7621_v38 = vor.u32 %v9896_v37, %v7620_v2  ;;  %v7156_v39 = vld [vmem:[#allocation7 + $0x400] sm:$0xf]  ;;  %v9780_v40 = vld [vmem:[#allocation7 + $0x40c] sm:$0xf0]  ;;  %v6889_v34 = vor.u32 %v9710_v27, %v6886_v28  ;;  %v6742_v37 = vld [vmem:[#allocation7 + $0xd0] sm:$0xf0] }
  0x67   :  { %v7284_v41 = vld [vmem:[#allocation7 + $0x500] sm:$0xf]  ;;  %v7157_v42 = vor.u32 %v9780_v40, %v7156_v39  ;;  %v9812_v43 = vld [vmem:[#allocation7 + $0x50c] sm:$0xf0]  ;;  %v6870_v39 = vld [vmem:[#allocation7 + $0x1d0] sm:$0xf0] }
  0x68   :  { %v7476_v44 = vld [vmem:[#allocation7 + $0x680] sm:$0xf]  ;;  %v9860_v45 = vld [vmem:[#allocation7 + $0x68c] sm:$0xf0]  ;;  %v7285_v46 = vor.u32 %v9812_v43, %v7284_v41  ;;  %v199_v40 = vperm.slane %v10856_v12, 4  ;;  %v200_v41 = vperm.slane %v10856_v12, 5 }
  0x69   :  { %2058 = vmatpush.bf16.msra.mxu2 %v7493_v36  ;;  %2072 = vmatpush.bf16.msra.mxu3 %v7621_v38  ;;  %v7477_v47 = vor.u32 %v9860_v45, %v7476_v44  ;;  %v7604_v48 = vld [vmem:[#allocation7 + $0x780] sm:$0xf]  ;;  %v9892_v49 = vld [vmem:[#allocation7 + $0x78c] sm:$0xf0]  ;;  %v9706_v38 = vld [vmem:[#allocation7 + $0x1c4] sm:$0xf] }
  0x6a   :  { %2033 = vmatpush.bf16.msra.mxu0 %v7189_v19  ;;  %2047 = vmatpush.bf16.msra.mxu1 %v7317_v23  ;;  %v7605_v50 = vor.u32 %v9892_v49, %v7604_v48  ;;  %v7460_v51 = vld [vmem:[#allocation7 + $0x660] sm:$0xf]  ;;  %v9856_v52 = vld [vmem:[#allocation7 + $0x66c] sm:$0xf0]  ;;  %v9678_v23 = vld [vmem:[#allocation7 + $0xe4] sm:$0xf] }
  0x6b   :  { %v7461_v53 = vor.u32 %v9856_v52, %v7460_v51  ;;  %v7588_v54 = vld [vmem:[#allocation7 + $0x760] sm:$0xf]  ;;  %v9888_v55 = vld [vmem:[#allocation7 + $0x76c] sm:$0xf0]  ;;  %v6761_v33 = vor.u32 %v9678_v23, %v6758_v26  ;;  %v9702_v48 = vld [vmem:[#allocation7 + $0x1a4] sm:$0xf] }
  0x6c   :  { %v7589_v56 = vor.u32 %v9888_v55, %v7588_v54  ;;  %v7444_v57 = vld [vmem:[#allocation7 + $0x640] sm:$0xf]  ;;  %v9852_v9 = vld [vmem:[#allocation7 + $0x64c] sm:$0xf0]  ;;  %v6854_v49 = vld [vmem:[#allocation7 + $0x1b0] sm:$0xf0] }
  0x6d   :  { %2059 = vmatpush.bf16.msra.mxu2 %v7477_v47  ;;  %2073 = vmatpush.bf16.msra.mxu3 %v7605_v50  ;;  %v7572_v58 = vld [vmem:[#allocation7 + $0x740] sm:$0xf]  ;;  %v7445_v59 = vor.u32 %v9852_v9, %v7444_v57  ;;  %v9884_v60 = vld [vmem:[#allocation7 + $0x74c] sm:$0xf0]  ;;  %v6726_v47 = vld [vmem:[#allocation7 + $0xb0] sm:$0xf0] }
  0x6e   :  { %2034 = vmatpush.bf16.msra.mxu0 %v7173_v31  ;;  %2048 = vmatpush.bf16.msra.mxu1 %v7301_v35  ;;  %v7573_v61 = vor.u32 %v9884_v60, %v7572_v58  ;;  %v7428_v62 = vld [vmem:[#allocation7 + $0x620] sm:$0xf]  ;;  %v9848_v63 = vld [vmem:[#allocation7 + $0x62c] sm:$0xf0]  ;;  %v9674_v35 = vld [vmem:[#allocation7 + $0xc4] sm:$0xf] }
  0x6f   :  { %v7556_v0 = vld [vmem:[#allocation7 + $0x720] sm:$0xf]  ;;  %v7429_v1 = vor.u32 %v9848_v63, %v7428_v62  ;;  %v9880_v3 = vld [vmem:[#allocation7 + $0x72c] sm:$0xf0]  ;;  %v6745_v45 = vor.u32 %v9674_v35, %v6742_v37  ;;  %v197_v52 = vperm.slane %v10856_v12, 2 }
  0x70   :  { %v7557_v4 = vor.u32 %v9880_v3, %v7556_v0  ;;  %v7412_v5 = vld [vmem:[#allocation7 + $0x600] sm:$0xf]  ;;  %v9844_v6 = vld [vmem:[#allocation7 + $0x60c] sm:$0xf0]  ;;  %v9666_v57 = vld [vmem:[#allocation7 + $0x84] sm:$0xf] }
  0x71   :  { %2060 = vmatpush.bf16.msra.mxu2 %v7461_v53  ;;  %2074 = vmatpush.bf16.msra.mxu3 %v7589_v56  ;;  %v7540_v7 = vld [vmem:[#allocation7 + $0x700] sm:$0xf]  ;;  %v7413_v8 = vor.u32 %v9844_v6, %v7412_v5  ;;  %v9876_v10 = vld [vmem:[#allocation7 + $0x70c] sm:$0xf0]  ;;  %v198_v53 = vperm.slane %v10856_v12, 3  ;;  %v6857_v56 = vor.u32 %v9702_v48, %v6854_v49 }
  0x72   :  { %2035 = vmatpush.bf16.msra.mxu0 %v7157_v42  ;;  %2049 = vmatpush.bf16.msra.mxu1 %v7285_v46  ;;  %v7541_v11 = vor.u32 %v9876_v10, %v7540_v7  ;;  %v9670_v42 = vld [vmem:[#allocation7 + $0xa4] sm:$0xf]  ;;  %v6873_v46 = vor.u32 %v9706_v38, %v6870_v39  ;;  %v6710_v60 = vld [vmem:[#allocation7 + $0x90] sm:$0xf0] }
  0x73   :  { %v6729_v55 = vor.u32 %v9670_v42, %v6726_v47  ;;  %v6838_v62 = vld [vmem:[#allocation7 + $0x190] sm:$0xf0]  ;;  %v9690_v37 = vld [vmem:[#allocation7 + $0x144] sm:$0xf] }
  0x74   :  { %v6806_v38 = vld [vmem:[#allocation7 + $0x150] sm:$0xf0]  ;;  %v9738_v39 = vld [vmem:[#allocation7 + $0x2c4] sm:$0xf] }
  0x75   :  { %2061 = vmatpush.bf16.msra.mxu2 %v7445_v59  ;;  %2075 = vmatpush.bf16.msra.mxu3 %v7573_v61  ;;  %v9698_v61 = vld [vmem:[#allocation7 + $0x184] sm:$0xf]  ;;  %v7126_v42 = vld [vmem:[#allocation7 + $0x3d0] sm:$0xf0]  ;;  %v6809_v48 = vor.u32 %v9690_v37, %v6806_v38 }
  0x76   :  { %v6841_v3 = vor.u32 %v9698_v61, %v6838_v62  ;;  %v9654_v49 = vld [vmem:[#allocation7 + $0x24] sm:$0xf]  ;;  %v6646_v62 = vld [vmem:[#allocation7 + $0x10] sm:$0xf0] }
  0x77   :  { %v9802_v37 = vld [vmem:[#allocation7 + $0x4c4] sm:$0xf]  ;;  %v7254_v38 = vld [vmem:[#allocation7 + $0x4d0] sm:$0xf0] }
  0x79   :  { %2062 = vmatpush.bf16.msra.mxu2 %v7429_v1  ;;  %2076 = vmatpush.bf16.msra.mxu3 %v7557_v4  ;;  %v6713_v1 = vor.u32 %v9666_v57, %v6710_v60  ;;  %v9766_v57 = vld [vmem:[#allocation7 + $0x3a4] sm:$0xf] }
  0x7d   :  { %2063 = vmatpush.bf16.msra.mxu2 %v7413_v8  ;;  %2077 = vmatpush.bf16.msra.mxu3 %v7541_v11  ;;  %v9662_v11 = vld [vmem:[#allocation7 + $0x64] sm:$0xf] }
  0xb0   :  { %v327_v19 = vpop.f32.mrf.mxu0  ;;  %v350_v20 = vpop.f32.mrf.mxu1 }
  0xb1   :  { %v328_v54 = vadd.f32 %v327_v19, %v199_v40  ;;  %v351_v9 = vadd.f32 %v350_v20, %v200_v41  ;;  %v7014_v19 = vld [vmem:[#allocation7 + $0x2f0] sm:$0xf0]  ;;  %v9774_v20 = vld [vmem:[#allocation7 + $0x3e4] sm:$0xf] }
  0xb3   :  { %v235_v13 = vpop.f32.mrf.mxu2  ;;  %v258_v14 = vpop.f32.mrf.mxu3  ;;  %v406_v4 = vmax.f32 %v328_v54, 0.0  ;;  %v407_v5 = vmax.f32 %v351_v9, 0.0  ;;  %v6790_v54 = vld [vmem:[#allocation7 + $0x130] sm:$0xf0] }
  0xb4   :  { %v236_v17 = vadd.f32 %v235_v13, %v195_v15  ;;  %v259_v18 = vadd.f32 %v258_v14, %v196_v16  ;;  %v7110_v9 = vld [vmem:[#allocation7 + $0x3b0] sm:$0xf0] }
  0xb6   :  { %v402_v29 = vmax.f32 %v236_v17, 0.0  ;;  %v403_v30 = vmax.f32 %v259_v18, 0.0  ;;  %v6822_v17 = vld [vmem:[#allocation7 + $0x170] sm:$0xf0]  ;;  %v9742_v18 = vld [vmem:[#allocation7 + $0x2e4] sm:$0xf] }
  0xb8   :  { %v330_v50 = vpop.f32.mrf.mxu0  ;;  %v353_v51 = vpop.f32.mrf.mxu1 }
  0xb9   :  { %v331_v58 = vadd.f32 %v330_v50, %v199_v40  ;;  %v354_v59 = vadd.f32 %v353_v51, %v200_v41  ;;  %v6998_v40 = vld [vmem:[#allocation7 + $0x2d0] sm:$0xf0]  ;;  %v9770_v41 = vld [vmem:[#allocation7 + $0x3c4] sm:$0xf] }
  0xba   :  { %v6662_v50 = vld [vmem:[#allocation7 + $0x30] sm:$0xf0]  ;;  %v7001_v51 = vor.u32 %v9738_v39, %v6998_v40  ;;  %v9834_v39 = vld [vmem:[#allocation7 + $0x5c4] sm:$0xf] }
  0xbb   :  { %v238_v21 = vpop.f32.mrf.mxu2  ;;  %v261_v22 = vpop.f32.mrf.mxu3  ;;  %v414_v8 = vmax.f32 %v331_v58, 0.0  ;;  %v415_v10 = vmax.f32 %v354_v59, 0.0  ;;  %v6665_v58 = vor.u32 %v9654_v49, %v6662_v50  ;;  %v9650_v59 = vld [vmem:[#allocation7 + $0x4] sm:$0xf]  ;;  %v7382_v40 = vld [vmem:[#allocation7 + $0x5d0] sm:$0xf0] }
  0xbc   :  { %v239_v24 = vadd.f32 %v238_v21, %v195_v15  ;;  %v262_v25 = vadd.f32 %v261_v22, %v196_v16  ;;  %v6694_v15 = vld [vmem:[#allocation7 + $0x70] sm:$0xf0]  ;;  %v9694_v16 = vld [vmem:[#allocation7 + $0x164] sm:$0xf] }
  0xbd   :  { %v10870_v26 = vpack.c.bf16 %v414_v8, %v406_v4  ;;  %v10872_v27 = vpack.c.bf16 %v415_v10, %v407_v5  ;;  %v9730_v4 = vld [vmem:[#allocation7 + $0x284] sm:$0xf]  ;;  %v6966_v5 = vld [vmem:[#allocation7 + $0x290] sm:$0xf0] }
  0xbe   :  { %v410_v31 = vmax.f32 %v239_v24, 0.0  ;;  %v411_v32 = vmax.f32 %v262_v25, 0.0  ;;  %v7142_v25 = vld [vmem:[#allocation7 + $0x3f0] sm:$0xf0]  ;;  %v9806_v8 = vld [vmem:[#allocation7 + $0x4e4] sm:$0xf] }
  0xbf   :  { %v7145_v35 = vor.u32 %v9774_v20, %v7142_v25  ;;  %v6950_v25 = vld [vmem:[#allocation7 + $0x270] sm:$0xf0]  ;;  %v9754_v49 = vld [vmem:[#allocation7 + $0x344] sm:$0xf] }
  0xc0   :  { %v10860_v36 = vpack.c.bf16 %v410_v31, %v402_v29  ;;  %v10862_v2 = vpack.c.bf16 %v411_v32, %v403_v30  ;;  %v6697_v30 = vor.u32 %v9662_v11, %v6694_v15  ;;  %v6825_v31 = vor.u32 %v9694_v16, %v6822_v17  ;;  %v9658_v32 = vld [vmem:[#allocation7 + $0x44] sm:$0xf]  ;;  %v7270_v15 = vld [vmem:[#allocation7 + $0x4f0] sm:$0xf0] }
  0xc1   :  { %v9838_v16 = vld [vmem:[#allocation7 + $0x5e4] sm:$0xf]  ;;  %v7398_v17 = vld [vmem:[#allocation7 + $0x5f0] sm:$0xf0] }
  0xc2   :  { %1980 = vmatmul.bf16.vlgmr.msrb.gmra.mxu0 %v10860_v36  ;;  %1994 = vmatmul.bf16.vlgmr.msrb.gmra.mxu1 %v10862_v2  ;;  %v7062_v50 = vld [vmem:[#allocation7 + $0x350] sm:$0xf0] }
  0xc3   :  { %2084 = vmatpush.bf16.msrb.mxu0 %v6761_v33  ;;  %2098 = vmatpush.bf16.msrb.mxu1 %v6889_v34  ;;  %v281_v43 = vpop.f32.mrf.mxu2  ;;  %v304_v44 = vpop.f32.mrf.mxu3  ;;  %v6678_v33 = vld [vmem:[#allocation7 + $0x50] sm:$0xf0]  ;;  %v7017_v34 = vor.u32 %v9742_v18, %v7014_v19 }
  0xc4   :  { %v282_v63 = vadd.f32 %v281_v43, %v197_v52  ;;  %v305_v0 = vadd.f32 %v304_v44, %v198_v53  ;;  %v6681_v47 = vor.u32 %v9658_v32, %v6678_v33  ;;  %v7273_v33 = vor.u32 %v9806_v8, %v7270_v15  ;;  %v7334_v15 = vld [vmem:[#allocation7 + $0x570] sm:$0xf0] }
  0xc6   :  { %v404_v21 = vmax.f32 %v282_v63, 0.0  ;;  %v405_v22 = vmax.f32 %v305_v0, 0.0  ;;  %v9682_v63 = vld [vmem:[#allocation7 + $0x104] sm:$0xf]  ;;  %v6774_v0 = vld [vmem:[#allocation7 + $0x110] sm:$0xf0] }
  0xc7   :  { %2085 = vmatpush.bf16.msrb.mxu0 %v6745_v45  ;;  %2099 = vmatpush.bf16.msrb.mxu1 %v6873_v46  ;;  %v201_v45 = vperm.slane %v10856_v12, 6  ;;  %v202_v46 = vperm.slane %v10856_v12, 7 }
  0xcb   :  { %2086 = vmatpush.bf16.msrb.mxu0 %v6729_v55  ;;  %2100 = vmatpush.bf16.msrb.mxu1 %v6857_v56  ;;  %v284_v6 = vpop.f32.mrf.mxu2  ;;  %v307_v7 = vpop.f32.mrf.mxu3  ;;  %v9734_v55 = vld [vmem:[#allocation7 + $0x2a4] sm:$0xf]  ;;  %v6982_v56 = vld [vmem:[#allocation7 + $0x2b0] sm:$0xf0] }
  0xcc   :  { %v285_v13 = vadd.f32 %v284_v6, %v197_v52  ;;  %v308_v14 = vadd.f32 %v307_v7, %v198_v53  ;;  %v7129_v52 = vor.u32 %v9770_v41, %v7126_v42  ;;  %v9686_v53 = vld [vmem:[#allocation7 + $0x124] sm:$0xf]  ;;  %v7094_v7 = vld [vmem:[#allocation7 + $0x390] sm:$0xf0] }
  0xcd   :  { %v6793_v12 = vor.u32 %v9686_v53, %v6790_v54  ;;  %v9762_v6 = vld [vmem:[#allocation7 + $0x384] sm:$0xf]  ;;  %v7366_v54 = vld [vmem:[#allocation7 + $0x5b0] sm:$0xf0] }
  0xce   :  { %v412_v23 = vmax.f32 %v285_v13, 0.0  ;;  %v413_v24 = vmax.f32 %v308_v14, 0.0  ;;  %v6649_v13 = vor.u32 %v9650_v59, %v6646_v62  ;;  %v6777_v14 = vor.u32 %v9682_v63, %v6774_v0  ;;  %v9830_v53 = vld [vmem:[#allocation7 + $0x5a4] sm:$0xf]  ;;  %v7222_v62 = vld [vmem:[#allocation7 + $0x490] sm:$0xf0] }
  0xcf   :  { %2087 = vmatpush.bf16.msrb.mxu0 %v6713_v1  ;;  %2101 = vmatpush.bf16.msrb.mxu1 %v6841_v3  ;;  %v6985_v1 = vor.u32 %v9734_v55, %v6982_v56  ;;  %v7113_v3 = vor.u32 %v9766_v57, %v7110_v9  ;;  %v7065_v56 = vor.u32 %v9754_v49, %v7062_v50  ;;  %v9718_v57 = vld [vmem:[#allocation7 + $0x224] sm:$0xf]  ;;  %v6918_v9 = vld [vmem:[#allocation7 + $0x230] sm:$0xf0] }
  0xd0   :  { %v10874_v28 = vpack.c.bf16 %v412_v23, %v404_v21  ;;  %v10876_v29 = vpack.c.bf16 %v413_v24, %v405_v22  ;;  %v6969_v22 = vor.u32 %v9730_v4, %v6966_v5  ;;  %v7097_v23 = vor.u32 %v9762_v6, %v7094_v7  ;;  %v9726_v24 = vld [vmem:[#allocation7 + $0x264] sm:$0xf]  ;;  %v7350_v0 = vld [vmem:[#allocation7 + $0x590] sm:$0xf0] }
  0xd1   :  { %v7369_v59 = vor.u32 %v9830_v53, %v7366_v54  ;;  %v9826_v63 = vld [vmem:[#allocation7 + $0x584] sm:$0xf]  ;;  %v6902_v5 = vld [vmem:[#allocation7 + $0x210] sm:$0xf0] }
  0xd2   :  { %2008 = vmatmul.bf16.vlgmr.msrb.gmra.mxu2 %v10874_v28  ;;  %2022 = vmatmul.bf16.vlgmr.msrb.gmra.mxu3 %v10876_v29  ;;  %v9714_v4 = vld [vmem:[#allocation7 + $0x204] sm:$0xf]  ;;  %v7353_v8 = vor.u32 %v9826_v63, %v7350_v0  ;;  %v7494_v50 = vld [vmem:[#allocation7 + $0x6b0] sm:$0xf0]  ;;  %v6764_v63 = vld [vmem:[#allocation7 + $0xe8] sm:$0xf] }
  0xd3   :  { %2036 = vmatmul.bf16.vlgmr.msra.gmra.mxu0 %v10870_v26  ;;  %2050 = vmatmul.bf16.vlgmr.msra.gmra.mxu1 %v10872_v27  ;;  %v373_v43 = vpop.f32.mrf.mxu2  ;;  %v396_v44 = vpop.f32.mrf.mxu3  ;;  %v9746_v6 = vld [vmem:[#allocation7 + $0x304] sm:$0xf]  ;;  %v9681_v0 = vld [vmem:[#allocation7 + $0xf4] sm:$0xf0] }
  0xd4   :  { %2088 = vmatpush.bf16.msrb.mxu0 %v6697_v30  ;;  %2102 = vmatpush.bf16.msrb.mxu1 %v6825_v31  ;;  %v374_v60 = vadd.f32 %v373_v43, %v201_v45  ;;  %v397_v61 = vadd.f32 %v396_v44, %v202_v46  ;;  %v9758_v30 = vld [vmem:[#allocation7 + $0x364] sm:$0xf]  ;;  %v6953_v43 = vor.u32 %v9726_v24, %v6950_v25  ;;  %v7190_v25 = vld [vmem:[#allocation7 + $0x450] sm:$0xf0] }
  0xd5   :  { %2112 = vmatpush.bf16.msrb.mxu2 %v7017_v34  ;;  %2126 = vmatpush.bf16.msrb.mxu3 %v7145_v35  ;;  %v7401_v34 = vor.u32 %v9838_v16, %v7398_v17  ;;  %v7078_v35 = vld [vmem:[#allocation7 + $0x370] sm:$0xf0]  ;;  %v9870_v16 = vld [vmem:[#allocation7 + $0x6e4] sm:$0xf] }
  0xd6   :  { %v408_v18 = vmax.f32 %v374_v60, 0.0  ;;  %v409_v19 = vmax.f32 %v397_v61, 0.0  ;;  %v7081_v44 = vor.u32 %v9758_v30, %v7078_v35  ;;  %v9750_v60 = vld [vmem:[#allocation7 + $0x324] sm:$0xf]  ;;  %v7046_v61 = vld [vmem:[#allocation7 + $0x330] sm:$0xf0] }
  0xd7   :  { %v7526_v17 = vld [vmem:[#allocation7 + $0x6f0] sm:$0xf0]  ;;  %v9786_v24 = vld [vmem:[#allocation7 + $0x444] sm:$0xf] }
  0xd8   :  { %2089 = vmatpush.bf16.msrb.mxu0 %v6681_v47  ;;  %2103 = vmatpush.bf16.msrb.mxu1 %v6809_v48  ;;  %v7257_v47 = vor.u32 %v9802_v37, %v7254_v38  ;;  %v7385_v48 = vor.u32 %v9834_v39, %v7382_v40  ;;  %v7529_v30 = vor.u32 %v9870_v16, %v7526_v17  ;;  %v7510_v35 = vld [vmem:[#allocation7 + $0x6d0] sm:$0xf0]  ;;  %v9898_v37 = vld [vmem:[#allocation7 + $0x7c4] sm:$0xf]  ;;  %v6748_v16 = vld [vmem:[#allocation7 + $0xc8] sm:$0xf] }
  0xd9   :  { %2113 = vmatpush.bf16.msrb.mxu2 %v7001_v51  ;;  %2127 = vmatpush.bf16.msrb.mxu3 %v7129_v52  ;;  %v9798_v51 = vld [vmem:[#allocation7 + $0x4a4] sm:$0xf]  ;;  %v7238_v52 = vld [vmem:[#allocation7 + $0x4b0] sm:$0xf0]  ;;  %v7193_v39 = vor.u32 %v9786_v24, %v7190_v25  ;;  %v9677_v17 = vld [vmem:[#allocation7 + $0xd4] sm:$0xf0] }
  0xda   :  { %v7638_v38 = vld [vmem:[#allocation7 + $0x7d0] sm:$0xf0]  ;;  %v9862_v49 = vld [vmem:[#allocation7 + $0x6a4] sm:$0xf]  ;;  %v6749_v24 = vor.u32 %v9677_v17, %v6748_v16  ;;  %v7132_v16 = vld [vmem:[#allocation7 + $0x3c8] sm:$0xf] }
  0xdb   :  { %v376_v10 = vpop.f32.mrf.mxu2  ;;  %v399_v11 = vpop.f32.mrf.mxu3  ;;  %v9773_v17 = vld [vmem:[#allocation7 + $0x3d4] sm:$0xf0] }
  0xdc   :  { %2090 = vmatpush.bf16.msrb.mxu0 %v6665_v58  ;;  %2104 = vmatpush.bf16.msrb.mxu1 %v6793_v12  ;;  %v377_v20 = vadd.f32 %v376_v10, %v201_v45  ;;  %v400_v21 = vadd.f32 %v399_v11, %v202_v46  ;;  %v9722_v45 = vld [vmem:[#allocation7 + $0x244] sm:$0xf]  ;;  %v6934_v46 = vld [vmem:[#allocation7 + $0x250] sm:$0xf0]  ;;  %v7241_v58 = vor.u32 %v9798_v51, %v7238_v52 }
  0xdd   :  { %2114 = vmatpush.bf16.msrb.mxu2 %v6985_v1  ;;  %2128 = vmatpush.bf16.msrb.mxu3 %v7113_v3  ;;  %v6937_v55 = vor.u32 %v9722_v45, %v6934_v46  ;;  %v9794_v12 = vld [vmem:[#allocation7 + $0x484] sm:$0xf]  ;;  %v6921_v1 = vor.u32 %v9718_v57, %v6918_v9  ;;  %v7049_v3 = vor.u32 %v9750_v60, %v7046_v61  ;;  %v7030_v10 = vld [vmem:[#allocation7 + $0x310] sm:$0xf0] }
  0xde   :  { %v416_v31 = vmax.f32 %v377_v20, 0.0  ;;  %v417_v32 = vmax.f32 %v400_v21, 0.0  ;;  %v7225_v7 = vor.u32 %v9794_v12, %v7222_v62  ;;  %v9790_v11 = vld [vmem:[#allocation7 + $0x464] sm:$0xf]  ;;  %v6905_v20 = vor.u32 %v9714_v4, %v6902_v5  ;;  %v7622_v52 = vld [vmem:[#allocation7 + $0x7b0] sm:$0xf0] }
  0xdf   :  { %v7033_v21 = vor.u32 %v9746_v6, %v7030_v10  ;;  %v7641_v46 = vor.u32 %v9898_v37, %v7638_v38  ;;  %v9894_v51 = vld [vmem:[#allocation7 + $0x7a4] sm:$0xf]  ;;  %v7497_v9 = vor.u32 %v9862_v49, %v7494_v50  ;;  %v7478_v61 = vld [vmem:[#allocation7 + $0x690] sm:$0xf0]  ;;  %v6844_v49 = vld [vmem:[#allocation7 + $0x188] sm:$0xf] }
  0xe0   :  { %v10884_v41 = vpack.c.bf16 %v416_v31, %v408_v18  ;;  %v10886_v42 = vpack.c.bf16 %v417_v32, %v409_v19  ;;  %2091 = vmatpush.bf16.msrb.mxu0 %v6649_v13  ;;  %2105 = vmatpush.bf16.msrb.mxu1 %v6777_v14  ;;  %v7206_v13 = vld [vmem:[#allocation7 + $0x470] sm:$0xf0]  ;;  %v9822_v14 = vld [vmem:[#allocation7 + $0x564] sm:$0xf]  ;;  %v9701_v50 = vld [vmem:[#allocation7 + $0x194] sm:$0xf0] }
  0xe1   :  { %2115 = vmatpush.bf16.msrb.mxu2 %v6969_v22  ;;  %2129 = vmatpush.bf16.msrb.mxu3 %v7097_v23  ;;  %v9902_v18 = vld [vmem:[#allocation7 + $0x7e4] sm:$0xf]  ;;  %v7654_v19 = vld [vmem:[#allocation7 + $0x7f0] sm:$0xf0]  ;;  %v7209_v22 = vor.u32 %v9790_v11, %v7206_v13  ;;  %v7337_v23 = vor.u32 %v9822_v14, %v7334_v15  ;;  %v6765_v11 = vor.u32 %v9681_v0, %v6764_v63  ;;  %v7148_v63 = vld [vmem:[#allocation7 + $0x3e8] sm:$0xf] }
  0xe2   :  { %2064 = vmatmul.bf16.vlgmr.msra.gmra.mxu2 %v10884_v41  ;;  %2078 = vmatmul.bf16.vlgmr.msra.gmra.mxu3 %v10886_v42  ;;  %v7657_v31 = vor.u32 %v9902_v18, %v7654_v19  ;;  %v9818_v32 = vld [vmem:[#allocation7 + $0x544] sm:$0xf]  ;;  %v7606_v62 = vld [vmem:[#allocation7 + $0x790] sm:$0xf0]  ;;  %v6876_v18 = vld [vmem:[#allocation7 + $0x1c8] sm:$0xf] }
  0xe3   :  { %2092 = vmatmul.bf16.vlgmr.msrb.gmra.mxu0 %v10860_v36  ;;  %2106 = vmatmul.bf16.vlgmr.msrb.gmra.mxu1 %v10862_v2  ;;  %v9810_v57 = vld [vmem:[#allocation7 + $0x504] sm:$0xf]  ;;  %v7462_v10 = vld [vmem:[#allocation7 + $0x670] sm:$0xf0]  ;;  %v9709_v19 = vld [vmem:[#allocation7 + $0x1d4] sm:$0xf0] }
  0xe4   :  { %2140 = vmatpush.bf16.msra.mxu0 %v7273_v33  ;;  %2154 = vmatpush.bf16.msra.mxu1 %v7401_v34  ;;  %v7318_v33 = vld [vmem:[#allocation7 + $0x550] sm:$0xf0]  ;;  %v9866_v34 = vld [vmem:[#allocation7 + $0x6c4] sm:$0xf]  ;;  %v6877_v25 = vor.u32 %v9709_v19, %v6876_v18  ;;  %v9777_v0 = vld [vmem:[#allocation7 + $0x3f4] sm:$0xf0] }
  0xe5   :  { %2116 = vmatpush.bf16.msrb.mxu2 %v6953_v43  ;;  %2130 = vmatpush.bf16.msrb.mxu3 %v7081_v44  ;;  %v7321_v40 = vor.u32 %v9818_v32, %v7318_v33  ;;  %v9782_v43 = vld [vmem:[#allocation7 + $0x424] sm:$0xf]  ;;  %v7174_v44 = vld [vmem:[#allocation7 + $0x430] sm:$0xf0]  ;;  %v7513_v45 = vor.u32 %v9866_v34, %v7510_v35  ;;  %v6732_v32 = vld [vmem:[#allocation7 + $0xa8] sm:$0xf] }
  0xe6   :  { %v7177_v53 = vor.u32 %v9782_v43, %v7174_v44  ;;  %v9858_v60 = vld [vmem:[#allocation7 + $0x684] sm:$0xf]  ;;  %v7590_v15 = vld [vmem:[#allocation7 + $0x770] sm:$0xf0]  ;;  %v9673_v33 = vld [vmem:[#allocation7 + $0xb4] sm:$0xf0] }
  0xe7   :  { %v9890_v12 = vld [vmem:[#allocation7 + $0x784] sm:$0xf]  ;;  %v7481_v6 = vor.u32 %v9858_v60, %v7478_v61  ;;  %v6860_v34 = vld [vmem:[#allocation7 + $0x1a8] sm:$0xf]  ;;  %v9705_v35 = vld [vmem:[#allocation7 + $0x1b4] sm:$0xf0]  ;;  %v6733_v43 = vor.u32 %v9673_v33, %v6732_v32 }
  0xe8   :  { %2141 = vmatpush.bf16.msra.mxu0 %v7257_v47  ;;  %2155 = vmatpush.bf16.msra.mxu1 %v7385_v48  ;;  %v9814_v47 = vld [vmem:[#allocation7 + $0x524] sm:$0xf]  ;;  %v7302_v48 = vld [vmem:[#allocation7 + $0x530] sm:$0xf0]  ;;  %v6861_v44 = vor.u32 %v9705_v35, %v6860_v34  ;;  %v6828_v60 = vld [vmem:[#allocation7 + $0x168] sm:$0xf] }
  0xe9   :  { %2117 = vmatpush.bf16.msrb.mxu2 %v6937_v55  ;;  %2131 = vmatpush.bf16.msrb.mxu3 %v7065_v56  ;;  %v7305_v54 = vor.u32 %v9814_v47, %v7302_v48  ;;  %v9778_v55 = vld [vmem:[#allocation7 + $0x404] sm:$0xf]  ;;  %v7158_v56 = vld [vmem:[#allocation7 + $0x410] sm:$0xf0]  ;;  %v6716_v47 = vld [vmem:[#allocation7 + $0x88] sm:$0xf] }
  0xea   :  { %v7161_v4 = vor.u32 %v9778_v55, %v7158_v56  ;;  %v9886_v14 = vld [vmem:[#allocation7 + $0x764] sm:$0xf]  ;;  %v9669_v48 = vld [vmem:[#allocation7 + $0x94] sm:$0xf0]  ;;  %v7116_v32 = vld [vmem:[#allocation7 + $0x3a8] sm:$0xf] }
  0xeb   :  { %v9874_v55 = vld [vmem:[#allocation7 + $0x704] sm:$0xf]  ;;  %v6717_v56 = vor.u32 %v9669_v48, %v6716_v47  ;;  %v9697_v61 = vld [vmem:[#allocation7 + $0x174] sm:$0xf0]  ;;  %v7100_v47 = vld [vmem:[#allocation7 + $0x388] sm:$0xf] }
  0xec   :  { %2142 = vmatpush.bf16.msra.mxu0 %v7241_v58  ;;  %2156 = vmatpush.bf16.msra.mxu1 %v7369_v59  ;;  %v7625_v58 = vor.u32 %v9894_v51, %v7622_v52  ;;  %v7286_v59 = vld [vmem:[#allocation7 + $0x510] sm:$0xf0]  ;;  %v9769_v33 = vld [vmem:[#allocation7 + $0x3b4] sm:$0xf0] }
  0xed   :  { %2118 = vmatpush.bf16.msrb.mxu2 %v6921_v1  ;;  %2132 = vmatpush.bf16.msrb.mxu3 %v7049_v3  ;;  %v6892_v1 = vld [vmem:[#allocation7 + $0x1e8] sm:$0xf]  ;;  %v9713_v3 = vld [vmem:[#allocation7 + $0x1f4] sm:$0xf0]  ;;  %v7289_v5 = vor.u32 %v9810_v57, %v7286_v59  ;;  %v6845_v57 = vor.u32 %v9701_v50, %v6844_v49 }
  0xee   :  { %v6893_v13 = vor.u32 %v9713_v3, %v6892_v1  ;;  %v9665_v59 = vld [vmem:[#allocation7 + $0x74] sm:$0xf0]  ;;  %v7276_v49 = vld [vmem:[#allocation7 + $0x4e8] sm:$0xf] }
  0xef   :  { %v9765_v48 = vld [vmem:[#allocation7 + $0x394] sm:$0xf0] }
  0xf0   :  { %2143 = vmatpush.bf16.msra.mxu0 %v7225_v7  ;;  %2157 = vmatpush.bf16.msra.mxu1 %v7353_v8  ;;  %v7609_v7 = vor.u32 %v9890_v12, %v7606_v62  ;;  %v9854_v8 = vld [vmem:[#allocation7 + $0x664] sm:$0xf]  ;;  %v7020_v12 = vld [vmem:[#allocation7 + $0x2e8] sm:$0xf]  ;;  %v9745_v62 = vld [vmem:[#allocation7 + $0x2f4] sm:$0xf0] }
  0xf1   :  { %2119 = vmatpush.bf16.msrb.mxu2 %v6905_v20  ;;  %2133 = vmatpush.bf16.msrb.mxu3 %v7033_v21  ;;  %v7465_v20 = vor.u32 %v9854_v8, %v7462_v10  ;;  %v7593_v21 = vor.u32 %v9886_v14, %v7590_v15  ;;  %v7021_v8 = vor.u32 %v9745_v62, %v7020_v12  ;;  %v7004_v14 = vld [vmem:[#allocation7 + $0x2c8] sm:$0xf]  ;;  %v9741_v15 = vld [vmem:[#allocation7 + $0x2d4] sm:$0xf0] }
  0xf2   :  { %v7149_v10 = vor.u32 %v9777_v0, %v7148_v63  ;;  %v9809_v50 = vld [vmem:[#allocation7 + $0x4f4] sm:$0xf0]  ;;  %v7260_v12 = vld [vmem:[#allocation7 + $0x4c8] sm:$0xf] }
  0xf3   :  { %v9805_v62 = vld [vmem:[#allocation7 + $0x4d4] sm:$0xf0]  ;;  %v7388_v63 = vld [vmem:[#allocation7 + $0x5c8] sm:$0xf] }
  0xf4   :  { %2144 = vmatpush.bf16.msra.mxu0 %v7209_v22  ;;  %2158 = vmatpush.bf16.msra.mxu1 %v7337_v23  ;;  %v9850_v22 = vld [vmem:[#allocation7 + $0x644] sm:$0xf]  ;;  %v7446_v23 = vld [vmem:[#allocation7 + $0x650] sm:$0xf0]  ;;  %v9837_v0 = vld [vmem:[#allocation7 + $0x5d4] sm:$0xf0] }
  0xf5   :  { %2168 = vmatpush.bf16.msra.mxu2 %v7529_v30  ;;  %2182 = vmatpush.bf16.msra.mxu3 %v7657_v31  ;;  %v9882_v30 = vld [vmem:[#allocation7 + $0x744] sm:$0xf]  ;;  %v7574_v31 = vld [vmem:[#allocation7 + $0x750] sm:$0xf0]  ;;  %v7449_v37 = vor.u32 %v9850_v22, %v7446_v23  ;;  %v7005_v22 = vor.u32 %v9741_v15, %v7004_v14  ;;  %v7133_v23 = vor.u32 %v9773_v17, %v7132_v16  ;;  %v7372_v14 = vld [vmem:[#allocation7 + $0x5a8] sm:$0xf] }
  0xf6   :  { %2120 = vmatmul.bf16.vlgmr.msrb.gmra.mxu2 %v10874_v28  ;;  %2134 = vmatmul.bf16.vlgmr.msrb.gmra.mxu3 %v10876_v29  ;;  %v7577_v38 = vor.u32 %v9882_v30, %v7574_v31  ;;  %v6988_v30 = vld [vmem:[#allocation7 + $0x2a8] sm:$0xf]  ;;  %v9737_v31 = vld [vmem:[#allocation7 + $0x2b4] sm:$0xf0] }
  0xf7   :  { %v9833_v15 = vld [vmem:[#allocation7 + $0x5b4] sm:$0xf0] }
  0xf8   :  { %2145 = vmatpush.bf16.msra.mxu0 %v7193_v39  ;;  %2159 = vmatpush.bf16.msra.mxu1 %v7321_v40  ;;  %v9846_v39 = vld [vmem:[#allocation7 + $0x624] sm:$0xf]  ;;  %v7430_v40 = vld [vmem:[#allocation7 + $0x630] sm:$0xf0] }
  0xf9   :  { %2169 = vmatpush.bf16.msra.mxu2 %v7513_v45  ;;  %2183 = vmatpush.bf16.msra.mxu3 %v7641_v46  ;;  %v9878_v45 = vld [vmem:[#allocation7 + $0x724] sm:$0xf]  ;;  %v7558_v46 = vld [vmem:[#allocation7 + $0x730] sm:$0xf0]  ;;  %v7433_v51 = vor.u32 %v9846_v39, %v7430_v40  ;;  %v6780_v39 = vld [vmem:[#allocation7 + $0x108] sm:$0xf]  ;;  %v6989_v40 = vor.u32 %v9737_v31, %v6988_v30 }
  0xfa   :  { %v7561_v52 = vor.u32 %v9878_v45, %v7558_v46  ;;  %v6972_v45 = vld [vmem:[#allocation7 + $0x288] sm:$0xf]  ;;  %v9733_v46 = vld [vmem:[#allocation7 + $0x294] sm:$0xf0] }
  0xfb   :  { %v7356_v30 = vld [vmem:[#allocation7 + $0x588] sm:$0xf]  ;;  %v9829_v31 = vld [vmem:[#allocation7 + $0x594] sm:$0xf0] }
  0xfc   :  { %2146 = vmatpush.bf16.msra.mxu0 %v7177_v53  ;;  %2160 = vmatpush.bf16.msra.mxu1 %v7305_v54  ;;  %v9842_v53 = vld [vmem:[#allocation7 + $0x604] sm:$0xf]  ;;  %v7414_v54 = vld [vmem:[#allocation7 + $0x610] sm:$0xf0] }
  0xfd   :  { %2170 = vmatpush.bf16.msra.mxu2 %v7497_v9  ;;  %2184 = vmatpush.bf16.msra.mxu3 %v7625_v58  ;;  %v7542_v9 = vld [vmem:[#allocation7 + $0x710] sm:$0xf0]  ;;  %v6700_v58 = vld [vmem:[#allocation7 + $0x68] sm:$0xf]  ;;  %v7417_v1 = vor.u32 %v9842_v53, %v7414_v54 }
  0xfe   :  { %v7545_v3 = vor.u32 %v9874_v55, %v7542_v9  ;;  %v6973_v55 = vor.u32 %v9733_v46, %v6972_v45  ;;  %v9729_v9 = vld [vmem:[#allocation7 + $0x274] sm:$0xf0]  ;;  %v7340_v45 = vld [vmem:[#allocation7 + $0x568] sm:$0xf] }
  0xff   :  { %v9825_v46 = vld [vmem:[#allocation7 + $0x574] sm:$0xf0] }
 0x100   :  { %2147 = vmatpush.bf16.msra.mxu0 %v7161_v4  ;;  %2161 = vmatpush.bf16.msra.mxu1 %v7289_v5  ;;  %v6701_v4 = vor.u32 %v9665_v59, %v6700_v58  ;;  %v6829_v5 = vor.u32 %v9697_v61, %v6828_v60  ;;  %v7277_v58 = vor.u32 %v9809_v50, %v7276_v49  ;;  %v7084_v60 = vld [vmem:[#allocation7 + $0x368] sm:$0xf]  ;;  %v9761_v61 = vld [vmem:[#allocation7 + $0x374] sm:$0xf0] }
 0x101   :  { %2171 = vmatpush.bf16.msra.mxu2 %v7481_v6  ;;  %2185 = vmatpush.bf16.msra.mxu3 %v7609_v7  ;;  %v6684_v6 = vld [vmem:[#allocation7 + $0x48] sm:$0xf]  ;;  %v9661_v7 = vld [vmem:[#allocation7 + $0x54] sm:$0xf0] }
 0x102   :  { %v6685_v18 = vor.u32 %v9661_v7, %v6684_v6  ;;  %v7261_v6 = vor.u32 %v9805_v62, %v7260_v12  ;;  %v7389_v7 = vor.u32 %v9837_v0, %v7388_v63  ;;  %v7660_v49 = vld [vmem:[#allocation7 + $0x7e8] sm:$0xf]  ;;  %v9905_v50 = vld [vmem:[#allocation7 + $0x7f4] sm:$0xf0] }
 0x103   :  { %2148 = vmatmul.bf16.vlgmr.msra.gmra.mxu0 %v10870_v26  ;;  %2162 = vmatmul.bf16.vlgmr.msra.gmra.mxu1 %v10872_v27  ;;  %v7644_v12 = vld [vmem:[#allocation7 + $0x7c8] sm:$0xf]  ;;  %v9901_v62 = vld [vmem:[#allocation7 + $0x7d4] sm:$0xf0] }
 0x104   :  { %2196 = vmatpush.bf16.msrb.mxu0 %v6765_v11  ;;  %2210 = vmatpush.bf16.msrb.mxu1 %v6893_v13  ;;  %v6812_v11 = vld [vmem:[#allocation7 + $0x148] sm:$0xf]  ;;  %v9693_v13 = vld [vmem:[#allocation7 + $0x154] sm:$0xf0] }
 0x105   :  { %2172 = vmatpush.bf16.msra.mxu2 %v7465_v20  ;;  %2186 = vmatpush.bf16.msra.mxu3 %v7593_v21  ;;  %v6813_v19 = vor.u32 %v9693_v13, %v6812_v11  ;;  %v6668_v20 = vld [vmem:[#allocation7 + $0x28] sm:$0xf]  ;;  %v9657_v21 = vld [vmem:[#allocation7 + $0x34] sm:$0xf0] }
 0x106   :  { %v6669_v34 = vor.u32 %v9657_v21, %v6668_v20  ;;  %v7244_v11 = vld [vmem:[#allocation7 + $0x4a8] sm:$0xf]  ;;  %v9801_v13 = vld [vmem:[#allocation7 + $0x4b4] sm:$0xf0]  ;;  %v7373_v21 = vor.u32 %v9833_v15, %v7372_v14 }
 0x107   :  { %v7245_v20 = vor.u32 %v9801_v13, %v7244_v11  ;;  %v7628_v11 = vld [vmem:[#allocation7 + $0x7a8] sm:$0xf]  ;;  %v9897_v13 = vld [vmem:[#allocation7 + $0x7b4] sm:$0xf0] }
 0x108   :  { %2197 = vmatpush.bf16.msrb.mxu0 %v6749_v24  ;;  %2211 = vmatpush.bf16.msrb.mxu1 %v6877_v25  ;;  %v6796_v24 = vld [vmem:[#allocation7 + $0x128] sm:$0xf]  ;;  %v9689_v25 = vld [vmem:[#allocation7 + $0x134] sm:$0xf0] }
 0x109   :  { %2173 = vmatpush.bf16.msra.mxu2 %v7449_v37  ;;  %2187 = vmatpush.bf16.msra.mxu3 %v7577_v38  ;;  %v6797_v35 = vor.u32 %v9689_v25, %v6796_v24  ;;  %v6652_v37 = vld [vmem:[#allocation7 + $0x8] sm:$0xf]  ;;  %v9653_v38 = vld [vmem:[#allocation7 + $0x14] sm:$0xf0] }
 0x10a   :  { %v6653_v53 = vor.u32 %v9653_v38, %v6652_v37  ;;  %v7228_v24 = vld [vmem:[#allocation7 + $0x488] sm:$0xf]  ;;  %v9797_v25 = vld [vmem:[#allocation7 + $0x494] sm:$0xf0] }
 0x10b   :  { %v7036_v37 = vld [vmem:[#allocation7 + $0x308] sm:$0xf]  ;;  %v7229_v38 = vor.u32 %v9797_v25, %v7228_v24  ;;  %v9893_v25 = vld [vmem:[#allocation7 + $0x794] sm:$0xf0] }
 0x10c   :  { %2198 = vmatpush.bf16.msrb.mxu0 %v6733_v43  ;;  %2212 = vmatpush.bf16.msrb.mxu1 %v6861_v44  ;;  %v7117_v43 = vor.u32 %v9769_v33, %v7116_v32  ;;  %v9685_v44 = vld [vmem:[#allocation7 + $0x114] sm:$0xf0]  ;;  %v7612_v24 = vld [vmem:[#allocation7 + $0x788] sm:$0xf] }
 0x10d   :  { %2174 = vmatpush.bf16.msra.mxu2 %v7433_v51  ;;  %2188 = vmatpush.bf16.msra.mxu3 %v7561_v52  ;;  %v7404_v51 = vld [vmem:[#allocation7 + $0x5e8] sm:$0xf]  ;;  %v9841_v52 = vld [vmem:[#allocation7 + $0x5f4] sm:$0xf0]  ;;  %v6781_v54 = vor.u32 %v9685_v44, %v6780_v39  ;;  %v7357_v39 = vor.u32 %v9829_v31, %v7356_v30  ;;  %v9679_v30 = vld [vmem:[#allocation7 + $0xec] sm:$0xf] }
 0x10e   :  { %v7405_v59 = vor.u32 %v9841_v52, %v7404_v51  ;;  %v9793_v44 = vld [vmem:[#allocation7 + $0x474] sm:$0xf0]  ;;  %v6766_v31 = vld [vmem:[#allocation7 + $0xf8] sm:$0xf0] }
 0x110   :  { %2199 = vmatpush.bf16.msrb.mxu0 %v6717_v56  ;;  %2213 = vmatpush.bf16.msrb.mxu1 %v6845_v57  ;;  %v7101_v56 = vor.u32 %v9765_v48, %v7100_v47  ;;  %v6956_v57 = vld [vmem:[#allocation7 + $0x268] sm:$0xf]  ;;  %v9873_v48 = vld [vmem:[#allocation7 + $0x6f4] sm:$0xf0] }
 0x111   :  { %2175 = vmatpush.bf16.msra.mxu2 %v7417_v1  ;;  %2189 = vmatpush.bf16.msra.mxu3 %v7545_v3  ;;  %v6957_v1 = vor.u32 %v9729_v9, %v6956_v57  ;;  %v7085_v3 = vor.u32 %v9761_v61, %v7084_v60  ;;  %v7532_v47 = vld [vmem:[#allocation7 + $0x6e8] sm:$0xf]  ;;  %v7661_v9 = vor.u32 %v9905_v50, %v7660_v49  ;;  %v9869_v61 = vld [vmem:[#allocation7 + $0x6d4] sm:$0xf0]  ;;  %v9707_v49 = vld [vmem:[#allocation7 + $0x1cc] sm:$0xf] }
 0x112   :  { %v7533_v57 = vor.u32 %v9873_v48, %v7532_v47  ;;  %v7516_v60 = vld [vmem:[#allocation7 + $0x6c8] sm:$0xf]  ;;  %v9675_v47 = vld [vmem:[#allocation7 + $0xcc] sm:$0xf]  ;;  %v6750_v48 = vld [vmem:[#allocation7 + $0xd8] sm:$0xf0] }
 0x113   :  { %v6878_v50 = vld [vmem:[#allocation7 + $0x1d8] sm:$0xf0] }
 0x114   :  { %2200 = vmatpush.bf16.msrb.mxu0 %v6701_v4  ;;  %2214 = vmatpush.bf16.msrb.mxu1 %v6829_v5  ;;  %v6940_v4 = vld [vmem:[#allocation7 + $0x248] sm:$0xf]  ;;  %v9725_v5 = vld [vmem:[#allocation7 + $0x254] sm:$0xf0] }
 0x115   :  { %2224 = vmatpush.bf16.msrb.mxu2 %v7021_v8  ;;  %2238 = vmatpush.bf16.msrb.mxu3 %v7149_v10  ;;  %v7068_v8 = vld [vmem:[#allocation7 + $0x348] sm:$0xf]  ;;  %v9757_v10 = vld [vmem:[#allocation7 + $0x354] sm:$0xf0]  ;;  %v6941_v16 = vor.u32 %v9725_v5, %v6940_v4  ;;  %v7517_v4 = vor.u32 %v9869_v61, %v7516_v60  ;;  %v7645_v5 = vor.u32 %v9901_v62, %v7644_v12  ;;  %v9703_v60 = vld [vmem:[#allocation7 + $0x1ac] sm:$0xf] }
 0x116   :  { %2176 = vmatmul.bf16.vlgmr.msra.gmra.mxu2 %v10884_v41  ;;  %2190 = vmatmul.bf16.vlgmr.msra.gmra.mxu3 %v10886_v42  ;;  %v7069_v17 = vor.u32 %v9757_v10, %v7068_v8  ;;  %v7500_v8 = vld [vmem:[#allocation7 + $0x6a8] sm:$0xf]  ;;  %v9865_v10 = vld [vmem:[#allocation7 + $0x6b4] sm:$0xf0]  ;;  %v6862_v61 = vld [vmem:[#allocation7 + $0x1b8] sm:$0xf0] }
 0x118   :  { %2201 = vmatpush.bf16.msrb.mxu0 %v6685_v18  ;;  %2215 = vmatpush.bf16.msrb.mxu1 %v6813_v19  ;;  %v6924_v18 = vld [vmem:[#allocation7 + $0x228] sm:$0xf]  ;;  %v9721_v19 = vld [vmem:[#allocation7 + $0x234] sm:$0xf0] }
 0x119   :  { %2225 = vmatpush.bf16.msrb.mxu2 %v7005_v22  ;;  %2239 = vmatpush.bf16.msrb.mxu3 %v7133_v23  ;;  %v7052_v22 = vld [vmem:[#allocation7 + $0x328] sm:$0xf]  ;;  %v9753_v23 = vld [vmem:[#allocation7 + $0x334] sm:$0xf0]  ;;  %v6925_v32 = vor.u32 %v9721_v19, %v6924_v18  ;;  %v7501_v19 = vor.u32 %v9865_v10, %v7500_v8  ;;  %v9699_v8 = vld [vmem:[#allocation7 + $0x18c] sm:$0xf] }
 0x11a   :  { %v7053_v33 = vor.u32 %v9753_v23, %v7052_v22  ;;  %v7292_v18 = vld [vmem:[#allocation7 + $0x508] sm:$0xf]  ;;  %v9861_v23 = vld [vmem:[#allocation7 + $0x694] sm:$0xf0]  ;;  %v6846_v10 = vld [vmem:[#allocation7 + $0x198] sm:$0xf0] }
 0x11b   :  { %v7484_v22 = vld [vmem:[#allocation7 + $0x688] sm:$0xf] }
 0x11c   :  { %2202 = vmatpush.bf16.msrb.mxu0 %v6669_v34  ;;  %2216 = vmatpush.bf16.msrb.mxu1 %v6797_v35  ;;  %v6908_v34 = vld [vmem:[#allocation7 + $0x208] sm:$0xf]  ;;  %v9717_v35 = vld [vmem:[#allocation7 + $0x214] sm:$0xf0] }
 0x11d   :  { %2226 = vmatpush.bf16.msrb.mxu2 %v6989_v40  ;;  %2240 = vmatpush.bf16.msrb.mxu3 %v7117_v43  ;;  %v9749_v40 = vld [vmem:[#allocation7 + $0x314] sm:$0xf0]  ;;  %v7212_v43 = vld [vmem:[#allocation7 + $0x468] sm:$0xf]  ;;  %v6909_v51 = vor.u32 %v9717_v35, %v6908_v34 }
 0x11e   :  { %v7037_v52 = vor.u32 %v9749_v40, %v7036_v37  ;;  %v7485_v37 = vor.u32 %v9861_v23, %v7484_v22  ;;  %v9857_v40 = vld [vmem:[#allocation7 + $0x674] sm:$0xf0]  ;;  %v9695_v22 = vld [vmem:[#allocation7 + $0x16c] sm:$0xf]  ;;  %v6830_v23 = vld [vmem:[#allocation7 + $0x178] sm:$0xf0] }
 0x120   :  { %2203 = vmatpush.bf16.msrb.mxu0 %v6653_v53  ;;  %2217 = vmatpush.bf16.msrb.mxu1 %v6781_v54  ;;  %v7213_v53 = vor.u32 %v9793_v44, %v7212_v43  ;;  %v7341_v54 = vor.u32 %v9825_v46, %v7340_v45  ;;  %v6769_v43 = vor.u32 %v9679_v30, %v6766_v31  ;;  %v7596_v45 = vld [vmem:[#allocation7 + $0x768] sm:$0xf]  ;;  %v9889_v46 = vld [vmem:[#allocation7 + $0x774] sm:$0xf0]  ;;  %v9775_v30 = vld [vmem:[#allocation7 + $0x3ec] sm:$0xf] }
 0x121   :  { %2227 = vmatpush.bf16.msrb.mxu2 %v6973_v55  ;;  %2241 = vmatpush.bf16.msrb.mxu3 %v7101_v56  ;;  %v7196_v55 = vld [vmem:[#allocation7 + $0x448] sm:$0xf]  ;;  %v9789_v56 = vld [vmem:[#allocation7 + $0x454] sm:$0xf0]  ;;  %v7150_v31 = vld [vmem:[#allocation7 + $0x3f8] sm:$0xf0] }
 0x122   :  { %v7197_v63 = vor.u32 %v9789_v56, %v7196_v55  ;;  %v6753_v55 = vor.u32 %v9675_v47, %v6750_v48  ;;  %v6881_v56 = vor.u32 %v9707_v49, %v6878_v50  ;;  %v9771_v47 = vld [vmem:[#allocation7 + $0x3cc] sm:$0xf]  ;;  %v7134_v48 = vld [vmem:[#allocation7 + $0x3d8] sm:$0xf0] }
 0x123   :  { %2204 = vmatmul.bf16.vlgmr.msrb.gmra.mxu0 %v10860_v36  ;;  %2218 = vmatmul.bf16.vlgmr.msrb.gmra.mxu1 %v10862_v2 }
 0x124   :  { %2252 = vmatpush.bf16.msra.mxu0 %v7277_v58  ;;  %2266 = vmatpush.bf16.msra.mxu1 %v7405_v59  ;;  %v7324_v58 = vld [vmem:[#allocation7 + $0x548] sm:$0xf]  ;;  %v9821_v59 = vld [vmem:[#allocation7 + $0x554] sm:$0xf0] }
 0x125   :  { %2228 = vmatpush.bf16.msrb.mxu2 %v6957_v1  ;;  %2242 = vmatpush.bf16.msrb.mxu3 %v7085_v3  ;;  %v7325_v0 = vor.u32 %v9821_v59, %v7324_v58  ;;  %v7180_v1 = vld [vmem:[#allocation7 + $0x428] sm:$0xf]  ;;  %v9785_v3 = vld [vmem:[#allocation7 + $0x434] sm:$0xf0]  ;;  %v9671_v58 = vld [vmem:[#allocation7 + $0xac] sm:$0xf] }
 0x126   :  { %v7181_v14 = vor.u32 %v9785_v3, %v7180_v1  ;;  %v6734_v59 = vld [vmem:[#allocation7 + $0xb8] sm:$0xf0]  ;;  %v6865_v3 = vor.u32 %v9703_v60, %v6862_v61 }
 0x127   :  { %v6737_v1 = vor.u32 %v9671_v58, %v6734_v59  ;;  %v9767_v58 = vld [vmem:[#allocation7 + $0x3ac] sm:$0xf]  ;;  %v7118_v59 = vld [vmem:[#allocation7 + $0x3b8] sm:$0xf0] }
 0x128   :  { %2253 = vmatpush.bf16.msra.mxu0 %v7261_v6  ;;  %2267 = vmatpush.bf16.msra.mxu1 %v7389_v7  ;;  %v7308_v6 = vld [vmem:[#allocation7 + $0x528] sm:$0xf]  ;;  %v9817_v7 = vld [vmem:[#allocation7 + $0x534] sm:$0xf0] }
 0x129   :  { %2229 = vmatpush.bf16.msrb.mxu2 %v6941_v16  ;;  %2243 = vmatpush.bf16.msrb.mxu3 %v7069_v17  ;;  %v7309_v15 = vor.u32 %v9817_v7, %v7308_v6  ;;  %v7164_v16 = vld [vmem:[#allocation7 + $0x408] sm:$0xf]  ;;  %v9781_v17 = vld [vmem:[#allocation7 + $0x414] sm:$0xf0]  ;;  %v9667_v6 = vld [vmem:[#allocation7 + $0x8c] sm:$0xf] }
 0x12a   :  { %v7165_v34 = vor.u32 %v9781_v17, %v7164_v16  ;;  %v6718_v7 = vld [vmem:[#allocation7 + $0x98] sm:$0xf0]  ;;  %v7548_v16 = vld [vmem:[#allocation7 + $0x708] sm:$0xf] }
 0x12b   :  { %v6721_v17 = vor.u32 %v9667_v6, %v6718_v7  ;;  %v6974_v6 = vld [vmem:[#allocation7 + $0x298] sm:$0xf0]  ;;  %v9763_v7 = vld [vmem:[#allocation7 + $0x38c] sm:$0xf] }
 0x12c   :  { %2254 = vmatpush.bf16.msra.mxu0 %v7245_v20  ;;  %2268 = vmatpush.bf16.msra.mxu1 %v7373_v21  ;;  %v7629_v20 = vor.u32 %v9897_v13, %v7628_v11  ;;  %v9813_v21 = vld [vmem:[#allocation7 + $0x514] sm:$0xf0] }
 0x12d   :  { %2230 = vmatpush.bf16.msrb.mxu2 %v6925_v32  ;;  %2244 = vmatpush.bf16.msrb.mxu3 %v7053_v33  ;;  %v9711_v32 = vld [vmem:[#allocation7 + $0x1ec] sm:$0xf]  ;;  %v6894_v33 = vld [vmem:[#allocation7 + $0x1f8] sm:$0xf0]  ;;  %v7293_v35 = vor.u32 %v9813_v21, %v7292_v18  ;;  %v6849_v18 = vor.u32 %v9699_v8, %v6846_v10 }
 0x12e   :  { %v6897_v44 = vor.u32 %v9711_v32, %v6894_v33  ;;  %v6702_v21 = vld [vmem:[#allocation7 + $0x78] sm:$0xf0]  ;;  %v9807_v10 = vld [vmem:[#allocation7 + $0x4ec] sm:$0xf] }
 0x12f   :  { %v7102_v8 = vld [vmem:[#allocation7 + $0x398] sm:$0xf0] }
 0x130   :  { %2255 = vmatpush.bf16.msra.mxu0 %v7229_v38  ;;  %2269 = vmatpush.bf16.msra.mxu1 %v7357_v39  ;;  %v7613_v38 = vor.u32 %v9893_v25, %v7612_v24  ;;  %v7468_v39 = vld [vmem:[#allocation7 + $0x668] sm:$0xf]  ;;  %v9743_v24 = vld [vmem:[#allocation7 + $0x2ec] sm:$0xf]  ;;  %v7022_v25 = vld [vmem:[#allocation7 + $0x2f8] sm:$0xf0] }
 0x131   :  { %2231 = vmatpush.bf16.msrb.mxu2 %v6909_v51  ;;  %2245 = vmatpush.bf16.msrb.mxu3 %v7037_v52  ;;  %v7469_v51 = vor.u32 %v9857_v40, %v7468_v39  ;;  %v7597_v52 = vor.u32 %v9889_v46, %v7596_v45  ;;  %v7025_v39 = vor.u32 %v9743_v24, %v7022_v25  ;;  %v9739_v45 = vld [vmem:[#allocation7 + $0x2cc] sm:$0xf]  ;;  %v7006_v46 = vld [vmem:[#allocation7 + $0x2d8] sm:$0xf0] }
 0x132   :  { %v7153_v40 = vor.u32 %v9775_v30, %v7150_v31  ;;  %v7086_v24 = vld [vmem:[#allocation7 + $0x378] sm:$0xf0]  ;;  %v9803_v25 = vld [vmem:[#allocation7 + $0x4cc] sm:$0xf] }
 0x133   :  { %v7262_v31 = vld [vmem:[#allocation7 + $0x4d8] sm:$0xf0] }
 0x134   :  { %2256 = vmatpush.bf16.msra.mxu0 %v7213_v53  ;;  %2270 = vmatpush.bf16.msra.mxu1 %v7341_v54  ;;  %v7452_v53 = vld [vmem:[#allocation7 + $0x648] sm:$0xf]  ;;  %v9853_v54 = vld [vmem:[#allocation7 + $0x654] sm:$0xf0] }
 0x135   :  { %2280 = vmatpush.bf16.msra.mxu2 %v7533_v57  ;;  %2294 = vmatpush.bf16.msra.mxu3 %v7661_v9  ;;  %v7580_v57 = vld [vmem:[#allocation7 + $0x748] sm:$0xf]  ;;  %v9885_v9 = vld [vmem:[#allocation7 + $0x754] sm:$0xf0]  ;;  %v7453_v12 = vor.u32 %v9853_v54, %v7452_v53  ;;  %v7009_v53 = vor.u32 %v9739_v45, %v7006_v46  ;;  %v7137_v54 = vor.u32 %v9771_v47, %v7134_v48  ;;  %v7070_v45 = vld [vmem:[#allocation7 + $0x358] sm:$0xf0] }
 0x136   :  { %2232 = vmatmul.bf16.vlgmr.msrb.gmra.mxu2 %v10874_v28  ;;  %2246 = vmatmul.bf16.vlgmr.msrb.gmra.mxu3 %v10876_v29  ;;  %v7581_v62 = vor.u32 %v9885_v9, %v7580_v57  ;;  %v9735_v57 = vld [vmem:[#allocation7 + $0x2ac] sm:$0xf]  ;;  %v6990_v9 = vld [vmem:[#allocation7 + $0x2b8] sm:$0xf0] }
 0x137   :  { %v9799_v46 = vld [vmem:[#allocation7 + $0x4ac] sm:$0xf] }
 0x138   :  { %2257 = vmatpush.bf16.msra.mxu0 %v7197_v63  ;;  %2271 = vmatpush.bf16.msra.mxu1 %v7325_v0  ;;  %v7436_v63 = vld [vmem:[#allocation7 + $0x628] sm:$0xf]  ;;  %v9849_v0 = vld [vmem:[#allocation7 + $0x634] sm:$0xf0] }
 0x139   :  { %2281 = vmatpush.bf16.msra.mxu2 %v7517_v4  ;;  %2295 = vmatpush.bf16.msra.mxu3 %v7645_v5  ;;  %v7564_v4 = vld [vmem:[#allocation7 + $0x728] sm:$0xf]  ;;  %v9881_v5 = vld [vmem:[#allocation7 + $0x734] sm:$0xf0]  ;;  %v7437_v11 = vor.u32 %v9849_v0, %v7436_v63  ;;  %v6654_v63 = vld [vmem:[#allocation7 + $0x18] sm:$0xf0] }
 0x13a   :  { %v7565_v13 = vor.u32 %v9881_v5, %v7564_v4  ;;  %v9683_v0 = vld [vmem:[#allocation7 + $0x10c] sm:$0xf]  ;;  %v6782_v4 = vld [vmem:[#allocation7 + $0x118] sm:$0xf0] }
 0x13b   :  { %v9731_v5 = vld [vmem:[#allocation7 + $0x28c] sm:$0xf] }
 0x13c   :  { %2258 = vmatpush.bf16.msra.mxu0 %v7181_v14  ;;  %2272 = vmatpush.bf16.msra.mxu1 %v7309_v15  ;;  %v7420_v14 = vld [vmem:[#allocation7 + $0x608] sm:$0xf]  ;;  %v9845_v15 = vld [vmem:[#allocation7 + $0x614] sm:$0xf0] }
 0x13d   :  { %2282 = vmatpush.bf16.msra.mxu2 %v7501_v19  ;;  %2296 = vmatpush.bf16.msra.mxu3 %v7629_v20  ;;  %v9877_v19 = vld [vmem:[#allocation7 + $0x714] sm:$0xf0]  ;;  %v9663_v20 = vld [vmem:[#allocation7 + $0x6c] sm:$0xf]  ;;  %v7421_v32 = vor.u32 %v9845_v15, %v7420_v14  ;;  %v7406_v14 = vld [vmem:[#allocation7 + $0x5f8] sm:$0xf0] }
 0x13e   :  { %v7549_v33 = vor.u32 %v9877_v19, %v7548_v16  ;;  %v6785_v16 = vor.u32 %v9683_v0, %v6782_v4  ;;  %v9727_v19 = vld [vmem:[#allocation7 + $0x26c] sm:$0xf] }
 0x13f   :  { %v10906_v60 = vpop.f32.mrf.mxu0  ;;  %v10908_v30 = vpop.f32.mrf.mxu1  ;;  %v9715_v0 = vld [vmem:[#allocation7 + $0x20c] sm:$0xf] }
 0x140   :  { %2259 = vmatpush.bf16.msra.mxu0 %v7165_v34  ;;  %2273 = vmatpush.bf16.msra.mxu1 %v7293_v35  ;;  %v6705_v34 = vor.u32 %v9663_v20, %v6702_v21  ;;  %v6833_v35 = vor.u32 %v9695_v22, %v6830_v23  ;;  %v6958_v20 = vld [vmem:[#allocation7 + $0x278] sm:$0xf0]  ;;  %v9759_v23 = vld [vmem:[#allocation7 + $0x36c] sm:$0xf] }
 0x141   :  { %2283 = vmatpush.bf16.msra.mxu2 %v7485_v37  ;;  %2297 = vmatpush.bf16.msra.mxu3 %v7613_v38  ;;  %v9659_v37 = vld [vmem:[#allocation7 + $0x4c] sm:$0xf]  ;;  %v6686_v38 = vld [vmem:[#allocation7 + $0x58] sm:$0xf0] }
 0x142   :  { %v6689_v49 = vor.u32 %v9659_v37, %v6686_v38  ;;  %v9723_v37 = vld [vmem:[#allocation7 + $0x24c] sm:$0xf]  ;;  %v6942_v38 = vld [vmem:[#allocation7 + $0x258] sm:$0xf0] }
 0x143   :  { %2260 = vmatmul.bf16.vlgmr.msra.gmra.mxu0 %v10870_v26  ;;  %2274 = vmatmul.bf16.vlgmr.msra.gmra.mxu1 %v10872_v27 }
 0x144   :  { %2308 = vmatpush.bf16.msrb.mxu0 %v6769_v43  ;;  %2322 = vmatpush.bf16.msrb.mxu1 %v6897_v44  ;;  %v9691_v43 = vld [vmem:[#allocation7 + $0x14c] sm:$0xf]  ;;  %v6814_v44 = vld [vmem:[#allocation7 + $0x158] sm:$0xf0] }
 0x145   :  { %2284 = vmatpush.bf16.msra.mxu2 %v7469_v51  ;;  %2298 = vmatpush.bf16.msra.mxu3 %v7597_v52  ;;  %v6817_v50 = vor.u32 %v9691_v43, %v6814_v44  ;;  %v9655_v51 = vld [vmem:[#allocation7 + $0x2c] sm:$0xf]  ;;  %v6670_v52 = vld [vmem:[#allocation7 + $0x38] sm:$0xf0] }
 0x146   :  { %v6673_v61 = vor.u32 %v9655_v51, %v6670_v52  ;;  %v9755_v44 = vld [vmem:[#allocation7 + $0x34c] sm:$0xf]  ;;  %v7374_v51 = vld [vmem:[#allocation7 + $0x5b8] sm:$0xf0]  ;;  %v6945_v52 = vor.u32 %v9723_v37, %v6942_v38 }
 0x147   :  { %v7518_v37 = vld [vmem:[#allocation7 + $0x6d8] sm:$0xf0]  ;;  %v9899_v38 = vld [vmem:[#allocation7 + $0x7cc] sm:$0xf] }
 0x148   :  { %2309 = vmatpush.bf16.msrb.mxu0 %v6753_v55  ;;  %2323 = vmatpush.bf16.msrb.mxu1 %v6881_v56  ;;  %v9687_v55 = vld [vmem:[#allocation7 + $0x12c] sm:$0xf]  ;;  %v6798_v56 = vld [vmem:[#allocation7 + $0x138] sm:$0xf0] }
 0x149   :  { %2285 = vmatpush.bf16.msra.mxu2 %v7453_v12  ;;  %2299 = vmatpush.bf16.msra.mxu3 %v7581_v62  ;;  %v6801_v12 = vor.u32 %v9687_v55, %v6798_v56  ;;  %v9651_v62 = vld [vmem:[#allocation7 + $0xc] sm:$0xf]  ;;  %v6926_v55 = vld [vmem:[#allocation7 + $0x238] sm:$0xf0] }
 0x14a   :  { %v6657_v15 = vor.u32 %v9651_v62, %v6654_v63 }
 0x14c   :  { %2310 = vmatpush.bf16.msrb.mxu0 %v6737_v1  ;;  %2324 = vmatpush.bf16.msrb.mxu1 %v6865_v3  ;;  %v6993_v1 = vor.u32 %v9735_v57, %v6990_v9  ;;  %v7121_v3 = vor.u32 %v9767_v58, %v7118_v59  ;;  %v9751_v9 = vld [vmem:[#allocation7 + $0x32c] sm:$0xf]  ;;  %v7054_v58 = vld [vmem:[#allocation7 + $0x338] sm:$0xf0] }
 0x14d   :  { %2286 = vmatpush.bf16.msra.mxu2 %v7437_v11  ;;  %2300 = vmatpush.bf16.msra.mxu3 %v7565_v13  ;;  %v7278_v11 = vld [vmem:[#allocation7 + $0x4f8] sm:$0xf0]  ;;  %v9839_v13 = vld [vmem:[#allocation7 + $0x5ec] sm:$0xf]  ;;  %v7057_v63 = vor.u32 %v9751_v9, %v7054_v58  ;;  %v10930_v9 = vld [vmem:[#allocation8] sm:$0xf] }
 0x14e   :  { %v7281_v21 = vor.u32 %v9807_v10, %v7278_v11  ;;  %v7409_v22 = vor.u32 %v9839_v13, %v7406_v14  ;;  %v9795_v59 = vld [vmem:[#allocation7 + $0x48c] sm:$0xf]  ;;  %v7342_v11 = vld [vmem:[#allocation7 + $0x578] sm:$0xf0] }
 0x14f   :  { %v9823_v10 = vld [vmem:[#allocation7 + $0x56c] sm:$0xf] }
 0x150   :  { %2311 = vmatpush.bf16.msrb.mxu0 %v6721_v17  ;;  %2325 = vmatpush.bf16.msrb.mxu1 %v6849_v18  ;;  %v6977_v17 = vor.u32 %v9731_v5, %v6974_v6  ;;  %v7105_v18 = vor.u32 %v9763_v7, %v7102_v8  ;;  %v7038_v6 = vld [vmem:[#allocation7 + $0x318] sm:$0xf0]  ;;  %v9791_v7 = vld [vmem:[#allocation7 + $0x46c] sm:$0xf] }
 0x151   :  { %2287 = vmatpush.bf16.msra.mxu2 %v7421_v32  ;;  %2301 = vmatpush.bf16.msra.mxu3 %v7549_v33  ;;  %v9835_v32 = vld [vmem:[#allocation7 + $0x5cc] sm:$0xf]  ;;  %v7390_v33 = vld [vmem:[#allocation7 + $0x5d8] sm:$0xf0] }
 0x152   :  { %v7393_v43 = vor.u32 %v9835_v32, %v7390_v33  ;;  %v7214_v8 = vld [vmem:[#allocation7 + $0x478] sm:$0xf0]  ;;  %v9871_v13 = vld [vmem:[#allocation7 + $0x6ec] sm:$0xf] }
 0x153   :  { %v9819_v33 = vld [vmem:[#allocation7 + $0x54c] sm:$0xf] }
 0x154   :  { %2312 = vmatpush.bf16.msrb.mxu0 %v6705_v34  ;;  %2326 = vmatpush.bf16.msrb.mxu1 %v6833_v35  ;;  %v6961_v34 = vor.u32 %v9727_v19, %v6958_v20  ;;  %v7089_v35 = vor.u32 %v9759_v23, %v7086_v24  ;;  %v7345_v23 = vor.u32 %v9823_v10, %v7342_v11  ;;  %v9787_v24 = vld [vmem:[#allocation7 + $0x44c] sm:$0xf]  ;;  %v7968_v10 = vld [vmem:[#allocation10 + $0x258] sm:$0xf]  ;;  %v9983_v11 = vld [vmem:[#allocation10 + $0x268] sm:$0xf0] }
 0x155   :  { %2336 = vmatpush.bf16.msrb.mxu2 %v7025_v39  ;;  %2350 = vmatpush.bf16.msrb.mxu3 %v7153_v40  ;;  %v10910_v39 = vpop.f32.mrf.mxu0  ;;  %v7265_v40 = vor.u32 %v9803_v25, %v7262_v31  ;;  %v10912_v47 = vpop.f32.mrf.mxu2  ;;  %v7198_v25 = vld [vmem:[#allocation7 + $0x458] sm:$0xf0] }
 0x156   :  { %2288 = vmatmul.bf16.vlgmr.msra.gmra.mxu2 %v10884_v41  ;;  %2302 = vmatmul.bf16.vlgmr.msra.gmra.mxu3 %v10886_v42  ;;  %v10914_v48 = vpop.f32.mrf.mxu3 }
 0x158   :  { %2313 = vmatpush.bf16.msrb.mxu0 %v6689_v49  ;;  %2327 = vmatpush.bf16.msrb.mxu1 %v6817_v50  ;;  %v7246_v49 = vld [vmem:[#allocation7 + $0x4b8] sm:$0xf0]  ;;  %v9831_v50 = vld [vmem:[#allocation7 + $0x5ac] sm:$0xf] }
 0x159   :  { %2337 = vmatpush.bf16.msrb.mxu2 %v7009_v53  ;;  %2351 = vmatpush.bf16.msrb.mxu3 %v7137_v54  ;;  %v7073_v53 = vor.u32 %v9755_v44, %v7070_v45  ;;  %v9719_v54 = vld [vmem:[#allocation7 + $0x22c] sm:$0xf]  ;;  %v7249_v56 = vor.u32 %v9799_v46, %v7246_v49  ;;  %v7377_v57 = vor.u32 %v9831_v50, %v7374_v51  ;;  %v7182_v46 = vld [vmem:[#allocation7 + $0x438] sm:$0xf0] }
 0x15a   :  { %v6929_v62 = vor.u32 %v9719_v54, %v6926_v55  ;;  %v9783_v45 = vld [vmem:[#allocation7 + $0x42c] sm:$0xf]  ;;  %v7502_v55 = vld [vmem:[#allocation7 + $0x6b8] sm:$0xf0] }
 0x15b   :  { %v9863_v54 = vld [vmem:[#allocation7 + $0x6ac] sm:$0xf] }
 0x15c   :  { %2314 = vmatpush.bf16.msrb.mxu0 %v6673_v61  ;;  %2328 = vmatpush.bf16.msrb.mxu1 %v6801_v12  ;;  %v7230_v61 = vld [vmem:[#allocation7 + $0x498] sm:$0xf0] }
 0x15d   :  { %2338 = vmatpush.bf16.msrb.mxu2 %v6993_v1  ;;  %2352 = vmatpush.bf16.msrb.mxu3 %v7121_v3  ;;  %v7358_v12 = vld [vmem:[#allocation7 + $0x598] sm:$0xf0]  ;;  %v9747_v3 = vld [vmem:[#allocation7 + $0x30c] sm:$0xf]  ;;  %v7233_v4 = vor.u32 %v9795_v59, %v7230_v61  ;;  %v10920_v14 = vpop.f32.mrf.mxu0  ;;  %v7185_v59 = vor.u32 %v9783_v45, %v7182_v46 }
 0x15e   :  { %v6910_v1 = vld [vmem:[#allocation7 + $0x218] sm:$0xf0]  ;;  %v10924_v19 = vpop.f32.mrf.mxu3  ;;  %v9851_v45 = vld [vmem:[#allocation7 + $0x64c] sm:$0xf] }
 0x15f   :  { %v6913_v20 = vor.u32 %v9715_v0, %v6910_v1  ;;  %v7294_v1 = vld [vmem:[#allocation7 + $0x518] sm:$0xf0] }
 0x160   :  { %2315 = vmatpush.bf16.msrb.mxu0 %v6657_v15  ;;  %2329 = vmatpush.bf16.msrb.mxu1 %v6785_v16  ;;  %v7534_v15 = vld [vmem:[#allocation7 + $0x6f8] sm:$0xf0]  ;;  %v9903_v16 = vld [vmem:[#allocation7 + $0x7ec] sm:$0xf] }
 0x161   :  { %2339 = vmatpush.bf16.msrb.mxu2 %v6977_v17  ;;  %2353 = vmatpush.bf16.msrb.mxu3 %v7105_v18  ;;  %v7662_v17 = vld [vmem:[#allocation7 + $0x7f8] sm:$0xf0]  ;;  %v10922_v18 = vpop.f32.mrf.mxu2  ;;  %v7537_v31 = vor.u32 %v9871_v13, %v7534_v15  ;;  %v684_v13 = vperm.slane %v10930_v9, 0 }
 0x162   :  { %v7665_v32 = vor.u32 %v9903_v16, %v7662_v17  ;;  %v7454_v46 = vld [vmem:[#allocation7 + $0x658] sm:$0xf0] }
 0x163   :  { %2316 = vmatmul.bf16.vlgmr.msrb.gmra.mxu0 %v10860_v36  ;;  %2330 = vmatmul.bf16.vlgmr.msrb.gmra.mxu1 %v10862_v2  ;;  %v9827_v36 = vld [vmem:[#allocation7 + $0x58c] sm:$0xf]  ;;  %v10918_v2 = vpop.f32.mrf.mxu1 }
 0x164   :  { %2364 = vmatpush.bf16.msra.mxu0 %v7281_v21  ;;  %2378 = vmatpush.bf16.msra.mxu1 %v7409_v22  ;;  %v7361_v5 = vor.u32 %v9827_v36, %v7358_v12  ;;  %v7041_v21 = vor.u32 %v9747_v3, %v7038_v6  ;;  %v7217_v22 = vor.u32 %v9791_v7, %v7214_v8  ;;  %v9779_v36 = vld [vmem:[#allocation7 + $0x40c] sm:$0xf]  ;;  %v7166_v12 = vld [vmem:[#allocation7 + $0x418] sm:$0xf0]  ;;  %v9943_v8 = vld [vmem:[#allocation10 + $0x128] sm:$0xf0] }
 0x165   :  { %2340 = vmatpush.bf16.msrb.mxu2 %v6961_v34  ;;  %2354 = vmatpush.bf16.msrb.mxu3 %v7089_v35  ;;  %v7326_v34 = vld [vmem:[#allocation7 + $0x558] sm:$0xf0]  ;;  %v9867_v35 = vld [vmem:[#allocation7 + $0x6cc] sm:$0xf]  ;;  %v10932_v58 = vpop.f32.mrf.mxu0  ;;  %v7169_v15 = vor.u32 %v9779_v36, %v7166_v12 }
 0x166   :  { %v7329_v44 = vor.u32 %v9819_v33, %v7326_v34  ;;  %v7521_v50 = vor.u32 %v9867_v35, %v7518_v37  ;;  %v10936_v0 = vpop.f32.mrf.mxu3  ;;  %v9859_v3 = vld [vmem:[#allocation7 + $0x68c] sm:$0xf]  ;;  %v7614_v6 = vld [vmem:[#allocation7 + $0x798] sm:$0xf0]  ;;  %v1984_v33 = vadd.f32 %v10910_v39, %v684_v13  ;;  %v9938_v35 = vld [vmem:[#allocation10 + $0x100] sm:$0xf0] }
 0x167   :  { %v7808_v7 = vld [vmem:[#allocation10 + $0x118] sm:$0xf]  ;;  %v7948_v37 = vld [vmem:[#allocation10 + $0x230] sm:$0xf] }
 0x168   :  { %2365 = vmatpush.bf16.msra.mxu0 %v7265_v40  ;;  %2379 = vmatpush.bf16.msra.mxu1 %v7393_v43  ;;  %v7646_v40 = vld [vmem:[#allocation7 + $0x7d8] sm:$0xf0]  ;;  %v7201_v43 = vor.u32 %v9787_v24, %v7198_v25  ;;  %v7969_v24 = vor.u32 %v9983_v11, %v7968_v10  ;;  %v9887_v25 = vld [vmem:[#allocation7 + $0x76c] sm:$0xf] }
 0x169   :  { %2341 = vmatpush.bf16.msrb.mxu2 %v6945_v52  ;;  %2355 = vmatpush.bf16.msrb.mxu3 %v7073_v53  ;;  %v7649_v51 = vor.u32 %v9899_v38, %v7646_v40  ;;  %v9815_v52 = vld [vmem:[#allocation7 + $0x52c] sm:$0xf]  ;;  %v7310_v53 = vld [vmem:[#allocation7 + $0x538] sm:$0xf0]  ;;  %v9978_v38 = vld [vmem:[#allocation10 + $0x240] sm:$0xf0]  ;;  %v1982_v40 = vadd.f32 %v10906_v60, %v684_v13 }
 0x16a   :  { %v7313_v61 = vor.u32 %v9815_v52, %v7310_v53  ;;  %v9883_v52 = vld [vmem:[#allocation7 + $0x74c] sm:$0xf]  ;;  %v7582_v53 = vld [vmem:[#allocation7 + $0x758] sm:$0xf0] }
 0x16b   :  { %v10926_v49 = vpop.f32.mrf.mxu1  ;;  %v1996_v36 = vadd.f32 %v10908_v30, %v1982_v40  ;;  %v9968_v30 = vld [vmem:[#allocation10 + $0x1f0] sm:$0xf0]  ;;  %v9843_v13 = vld [vmem:[#allocation7 + $0x60c] sm:$0xf] }
 0x16c   :  { %2366 = vmatpush.bf16.msra.mxu0 %v7249_v56  ;;  %2380 = vmatpush.bf16.msra.mxu1 %v7377_v57  ;;  %v9895_v56 = vld [vmem:[#allocation7 + $0x7ac] sm:$0xf]  ;;  %v7630_v57 = vld [vmem:[#allocation7 + $0x7b8] sm:$0xf0] }
 0x16d   :  { %2342 = vmatpush.bf16.msrb.mxu2 %v6929_v62  ;;  %2356 = vmatpush.bf16.msrb.mxu3 %v7057_v63  ;;  %v9811_v62 = vld [vmem:[#allocation7 + $0x50c] sm:$0xf]  ;;  %v10934_v63 = vpop.f32.mrf.mxu2 }
 0x16e   :  { %v7297_v16 = vor.u32 %v9811_v62, %v7294_v1  ;;  %v7457_v62 = vor.u32 %v9851_v45, %v7454_v46  ;;  %v9918_v45 = vld [vmem:[#allocation10 + $0x60] sm:$0xf0]  ;;  %v7868_v46 = vld [vmem:[#allocation10 + $0x190] sm:$0xf] }
 0x170   :  { %2367 = vmatpush.bf16.msra.mxu0 %v7233_v4  ;;  %2381 = vmatpush.bf16.msra.mxu1 %v7361_v5  ;;  %v7486_v4 = vld [vmem:[#allocation7 + $0x698] sm:$0xf0]  ;;  %v9891_v5 = vld [vmem:[#allocation7 + $0x78c] sm:$0xf] }
 0x171   :  { %2343 = vmatpush.bf16.msrb.mxu2 %v6913_v20  ;;  %2357 = vmatpush.bf16.msrb.mxu3 %v7041_v21  ;;  %v7489_v17 = vor.u32 %v9859_v3, %v7486_v4  ;;  %v7617_v20 = vor.u32 %v9891_v5, %v7614_v6  ;;  %v9855_v21 = vld [vmem:[#allocation7 + $0x66c] sm:$0xf]  ;;  %v7566_v4 = vld [vmem:[#allocation7 + $0x738] sm:$0xf0]  ;;  %v2010_v5 = vadd.f32 %v10912_v47, %v1996_v36  ;;  %v9928_v6 = vld [vmem:[#allocation10 + $0xb0] sm:$0xf0] }
 0x173   :  { %v10940_v34 = vpop.f32.mrf.mxu1  ;;  %v2024_v47 = vadd.f32 %v10914_v48, %v2010_v5  ;;  %v7708_v48 = vld [vmem:[#allocation10 + $0x50] sm:$0xf] }
 0x174   :  { %2368 = vmatpush.bf16.msra.mxu0 %v7217_v22  ;;  %2382 = vmatpush.bf16.msra.mxu1 %v7345_v23  ;;  %v7470_v22 = vld [vmem:[#allocation7 + $0x678] sm:$0xf0]  ;;  %v7809_v23 = vor.u32 %v9943_v8, %v7808_v7  ;;  %v7908_v7 = vld [vmem:[#allocation10 + $0x1e0] sm:$0xf] }
 0x175   :  { %2392 = vmatpush.bf16.msra.mxu2 %v7537_v31  ;;  %2406 = vmatpush.bf16.msra.mxu3 %v7665_v32  ;;  %v7598_v31 = vld [vmem:[#allocation7 + $0x778] sm:$0xf0]  ;;  %v7788_v32 = vld [vmem:[#allocation10 + $0xf0] sm:$0xf]  ;;  %v10946_v60 = vpop.f32.mrf.mxu2 }
 0x176   :  { %2344 = vmatmul.bf16.vlgmr.msrb.gmra.mxu2 %v10874_v28  ;;  %2358 = vmatmul.bf16.vlgmr.msrb.gmra.mxu3 %v10876_v29  ;;  %v7505_v28 = vor.u32 %v9863_v54, %v7502_v55  ;;  %v7633_v29 = vor.u32 %v9895_v56, %v7630_v57  ;;  %v7789_v39 = vor.u32 %v9938_v35, %v7788_v32  ;;  %v7768_v54 = vld [vmem:[#allocation10 + $0xc8] sm:$0xf]  ;;  %v10948_v56 = vpop.f32.mrf.mxu3  ;;  %v9933_v57 = vld [vmem:[#allocation10 + $0xd8] sm:$0xf0]  ;;  %v685_v32 = vperm.slane %v10930_v9, 1 }
 0x177   :  { %v1998_v55 = vadd.f32 %v10918_v2, %v1984_v33  ;;  %v9847_v2 = vld [vmem:[#allocation7 + $0x62c] sm:$0xf]  ;;  %v7769_v1 = vor.u32 %v9933_v57, %v7768_v54  ;;  %v7709_v54 = vor.u32 %v9918_v45, %v7708_v48 }
 0x178   :  { %2369 = vmatpush.bf16.msra.mxu0 %v7201_v43  ;;  %2383 = vmatpush.bf16.msra.mxu1 %v7329_v44  ;;  %v7473_v43 = vor.u32 %v9855_v21, %v7470_v22  ;;  %v7601_v44 = vor.u32 %v9887_v25, %v7598_v31  ;;  %v7550_v21 = vld [vmem:[#allocation7 + $0x718] sm:$0xf0]  ;;  %v9963_v25 = vld [vmem:[#allocation10 + $0x1c8] sm:$0xf0]  ;;  %v7688_v57 = vld [vmem:[#allocation10 + $0x28] sm:$0xf] }
 0x179   :  { %2393 = vmatpush.bf16.msra.mxu2 %v7521_v50  ;;  %2407 = vmatpush.bf16.msra.mxu3 %v7649_v51  ;;  %v10943_v50 = vpop.f32.mrf.mxu0  ;;  %v7949_v51 = vor.u32 %v9978_v38, %v7948_v37  ;;  %v2012_v12 = vadd.f32 %v10922_v18, %v1998_v55  ;;  %v7728_v22 = vld [vmem:[#allocation10 + $0x78] sm:$0xf] }
 0x17b   :  { %v2026_v18 = vadd.f32 %v10924_v19, %v2012_v12  ;;  %v2107_v8 = vpop.f32.mrf.mxu1  ;;  %v9913_v12 = vld [vmem:[#allocation10 + $0x38] sm:$0xf0] }
 0x17c   :  { %2370 = vmatpush.bf16.msra.mxu0 %v7185_v59  ;;  %2384 = vmatpush.bf16.msra.mxu1 %v7313_v61  ;;  %v7928_v59 = vld [vmem:[#allocation10 + $0x208] sm:$0xf]  ;;  %v9973_v61 = vld [vmem:[#allocation10 + $0x218] sm:$0xf0] }
 0x17d   :  { %2394 = vmatpush.bf16.msra.mxu2 %v7505_v28  ;;  %2408 = vmatpush.bf16.msra.mxu3 %v7633_v29  ;;  %v7585_v28 = vor.u32 %v9883_v52, %v7582_v53  ;;  %v7438_v29 = vld [vmem:[#allocation7 + $0x638] sm:$0xf0]  ;;  %v7929_v3 = vor.u32 %v9973_v61, %v7928_v59  ;;  %v2040_v31 = vadd.f32 %v10932_v58, %v2026_v18  ;;  %v2121_v33 = vpop.f32.mrf.mxu2  ;;  %v10023_v53 = vld [vmem:[#allocation10 + $0x3a8] sm:$0xf0] }
 0x17e   :  { %v7441_v10 = vor.u32 %v9847_v2, %v7438_v29  ;;  %v10959_v35 = vpop.f32.mrf.mxu3  ;;  %v2094_v58 = vadd.f32 %v10943_v50, %v685_v32  ;;  %v8128_v52 = vld [vmem:[#allocation10 + $0x398] sm:$0xf]  ;;  %v9953_v50 = vld [vmem:[#allocation10 + $0x178] sm:$0xf0] }
 0x17f   :  { %v8129_v59 = vor.u32 %v10023_v53, %v8128_v52  ;;  %v9971_v52 = vld [vmem:[#allocation10 + $0x20c] sm:$0xf] }
 0x180   :  { %2371 = vmatpush.bf16.msra.mxu0 %v7169_v15  ;;  %2385 = vmatpush.bf16.msra.mxu1 %v7297_v16  ;;  %v7422_v15 = vld [vmem:[#allocation7 + $0x618] sm:$0xf0] }
 0x181   :  { %2395 = vmatpush.bf16.msra.mxu2 %v7489_v17  ;;  %2409 = vmatpush.bf16.msra.mxu3 %v7617_v20  ;;  %v7909_v17 = vor.u32 %v9968_v30, %v7908_v7  ;;  %v9875_v20 = vld [vmem:[#allocation7 + $0x70c] sm:$0xf]  ;;  %v2095_v19 = vpop.f32.mrf.mxu0  ;;  %v7425_v37 = vor.u32 %v9843_v13, %v7422_v15  ;;  %v7828_v7 = vld [vmem:[#allocation10 + $0x140] sm:$0xf]  ;;  %v9941_v30 = vld [vmem:[#allocation10 + $0x11c] sm:$0xf] }
 0x182   :  { %v7553_v38 = vor.u32 %v9875_v20, %v7550_v21  ;;  %v2096_v29 = vadd.f32 %v2095_v19, %v685_v32  ;;  %v8088_v15 = vld [vmem:[#allocation10 + $0x348] sm:$0xf]  ;;  %v9976_v32 = vld [vmem:[#allocation10 + $0x234] sm:$0xf] }
 0x183   :  { %2372 = vmatmul.bf16.vlgmr.msra.gmra.mxu0 %v10870_v26  ;;  %2386 = vmatmul.bf16.vlgmr.msra.gmra.mxu1 %v10872_v27  ;;  %v9879_v26 = vld [vmem:[#allocation7 + $0x72c] sm:$0xf]  ;;  %v7748_v27 = vld [vmem:[#allocation10 + $0xa0] sm:$0xf] }
 0x184   :  { %3468 = vmatpush.bf16.msrb.mxu0 %v7809_v23  ;;  %3482 = vmatpush.bf16.msrb.mxu1 %v7969_v24  ;;  %v7569_v11 = vor.u32 %v9879_v26, %v7566_v4  ;;  %v7749_v16 = vor.u32 %v9928_v6, %v7748_v27  ;;  %v9923_v23 = vld [vmem:[#allocation10 + $0x88] sm:$0xf0]  ;;  %v7888_v24 = vld [vmem:[#allocation10 + $0x1b8] sm:$0xf]  ;;  %v9908_v4 = vld [vmem:[#allocation10 + $0x10] sm:$0xf0] }
 0x185   :  { %2396 = vmatpush.bf16.msra.mxu2 %v7473_v43  ;;  %2410 = vmatpush.bf16.msra.mxu3 %v7601_v44  ;;  %v7729_v40 = vor.u32 %v9923_v23, %v7728_v22  ;;  %v7889_v43 = vor.u32 %v9963_v25, %v7888_v24  ;;  %v2038_v44 = vadd.f32 %v10920_v14, %v2024_v47  ;;  %v2109_v14 = vpop.f32.mrf.mxu1  ;;  %v2123_v6 = vpop.f32.mrf.mxu2  ;;  %v9936_v24 = vld [vmem:[#allocation10 + $0xf4] sm:$0xf] }
 0x186   :  { %v2110_v13 = vadd.f32 %v2109_v14, %v2096_v29 }
 0x187   :  { %v2052_v61 = vadd.f32 %v10926_v49, %v2038_v44  ;;  %v7689_v49 = vor.u32 %v9913_v12, %v7688_v57  ;;  %v10003_v57 = vld [vmem:[#allocation10 + $0x308] sm:$0xf0] }
 0x188   :  { %3469 = vmatpush.bf16.msrb.mxu0 %v7789_v39  ;;  %3483 = vmatpush.bf16.msrb.mxu1 %v7949_v51  ;;  %v9958_v39 = vld [vmem:[#allocation10 + $0x1a0] sm:$0xf0]  ;;  %v2054_v51 = vadd.f32 %v10940_v34, %v2040_v31  ;;  %v2108_v34 = vadd.f32 %v2107_v8, %v2094_v58  ;;  %v9981_v8 = vld [vmem:[#allocation10 + $0x25c] sm:$0xf]  ;;  %v2124_v19 = vadd.f32 %v2123_v6, %v2110_v13  ;;  %v7790_v31 = vld [vmem:[#allocation10 + $0x104] sm:$0xf0] }
 0x189   :  { %2397 = vmatpush.bf16.msra.mxu2 %v7457_v62  ;;  %2411 = vmatpush.bf16.msra.mxu3 %v7585_v28  ;;  %v7869_v55 = vor.u32 %v9958_v39, %v7868_v46  ;;  %v7848_v62 = vld [vmem:[#allocation10 + $0x168] sm:$0xf]  ;;  %v2149_v28 = vpop.f32.mrf.mxu0  ;;  %v2066_v2 = vadd.f32 %v10934_v63, %v2052_v61  ;;  %v7810_v63 = vld [vmem:[#allocation10 + $0x12c] sm:$0xf0]  ;;  %v9931_v58 = vld [vmem:[#allocation10 + $0xcc] sm:$0xf] }
 0x18a   :  { %v2068_v36 = vadd.f32 %v10946_v60, %v2054_v51  ;;  %v7849_v26 = vor.u32 %v9953_v50, %v7848_v62  ;;  %v7668_v60 = vld [vmem:[#allocation10] sm:$0xf]  ;;  %v2122_v18 = vadd.f32 %v2121_v33, %v2108_v34  ;;  %v7813_v47 = vor.u32 %v9941_v30, %v7810_v63  ;;  %v9926_v62 = vld [vmem:[#allocation10 + $0xa4] sm:$0xf]  ;;  %v7730_v6 = vld [vmem:[#allocation10 + $0x8c] sm:$0xf0] }
 0x18b   :  { %v7770_v51 = vld [vmem:[#allocation10 + $0xdc] sm:$0xf0]  ;;  %v9966_v34 = vld [vmem:[#allocation10 + $0x1e4] sm:$0xf]  ;;  %v7890_v30 = vld [vmem:[#allocation10 + $0x1cc] sm:$0xf0] }
 0x18c   :  { %3470 = vmatpush.bf16.msrb.mxu0 %v7769_v1  ;;  %3484 = vmatpush.bf16.msrb.mxu1 %v7929_v3  ;;  %v8108_v1 = vld [vmem:[#allocation10 + $0x370] sm:$0xf]  ;;  %v10018_v3 = vld [vmem:[#allocation10 + $0x380] sm:$0xf0]  ;;  %v2082_v5 = vadd.f32 %v10948_v56, %v2068_v36  ;;  %v2136_v25 = vadd.f32 %v10959_v35, %v2122_v18  ;;  %v7793_v35 = vor.u32 %v9936_v24, %v7790_v31  ;;  %v8008_v18 = vld [vmem:[#allocation10 + $0x2a8] sm:$0xf] }
 0x18d   :  { %2398 = vmatpush.bf16.msra.mxu2 %v7441_v10  ;;  %2412 = vmatpush.bf16.msra.mxu3 %v7569_v11  ;;  %v8109_v27 = vor.u32 %v10018_v3, %v8108_v1  ;;  %v7970_v10 = vld [vmem:[#allocation10 + $0x26c] sm:$0xf0]  ;;  %v2080_v11 = vadd.f32 %v10936_v0, %v2066_v2  ;;  %v2163_v22 = vpop.f32.mrf.mxu1  ;;  %v7950_v0 = vld [vmem:[#allocation10 + $0x244] sm:$0xf0]  ;;  %v7773_v36 = vor.u32 %v9931_v58, %v7770_v51  ;;  %v7910_v2 = vld [vmem:[#allocation10 + $0x1f4] sm:$0xf0] }
 0x18e   :  { %v2424_v21 = vmax.f32 %v2082_v5, 0.0  ;;  %v7973_v23 = vor.u32 %v9981_v8, %v7970_v10  ;;  %v7953_v39 = vor.u32 %v9976_v32, %v7950_v0  ;;  %v8028_v1 = vld [vmem:[#allocation10 + $0x2d0] sm:$0xf]  ;;  %v9998_v3 = vld [vmem:[#allocation10 + $0x2e0] sm:$0xf0] }
 0x18f   :  { %v2420_v33 = vmax.f32 %v2080_v11, 0.0  ;;  %v9921_v5 = vld [vmem:[#allocation10 + $0x7c] sm:$0xf]  ;;  %v9911_v32 = vld [vmem:[#allocation10 + $0x2c] sm:$0xf] }
 0x190   :  { %3471 = vmatpush.bf16.msrb.mxu0 %v7749_v16  ;;  %3485 = vmatpush.bf16.msrb.mxu1 %v7909_v17  ;;  %v10013_v16 = vld [vmem:[#allocation10 + $0x358] sm:$0xf0]  ;;  %v7669_v17 = vor.u32 %v9908_v4, %v7668_v60  ;;  %v7733_v13 = vor.u32 %v9921_v5, %v7730_v6  ;;  %v7670_v58 = vld [vmem:[#allocation10 + $0x14] sm:$0xf0]  ;;  %v9934_v5 = vld [vmem:[#allocation10 + $0xe0] sm:$0xf0] }
 0x191   :  { %2399 = vmatpush.bf16.msra.mxu2 %v7425_v37  ;;  %2413 = vmatpush.bf16.msra.mxu3 %v7553_v38  ;;  %v8089_v56 = vor.u32 %v10013_v16, %v8088_v15  ;;  %v8068_v37 = vld [vmem:[#allocation10 + $0x320] sm:$0xf]  ;;  %v10008_v38 = vld [vmem:[#allocation10 + $0x330] sm:$0xf0]  ;;  %v10972_v44 = vpack.c.bf16 %v2424_v21, %v2420_v33  ;;  %v9993_v63 = vld [vmem:[#allocation10 + $0x2b8] sm:$0xf0] }
 0x192   :  { %v8069_v48 = vor.u32 %v10008_v38, %v8068_v37  ;;  %v8009_v10 = vor.u32 %v9993_v63, %v8008_v18  ;;  %v9916_v16 = vld [vmem:[#allocation10 + $0x54] sm:$0xf]  ;;  %v10021_v0 = vld [vmem:[#allocation10 + $0x39c] sm:$0xf]  ;;  %v8130_v33 = vld [vmem:[#allocation10 + $0x3ac] sm:$0xf0] }
 0x193   :  { %v9956_v21 = vld [vmem:[#allocation10 + $0x194] sm:$0xf]  ;;  %v7690_v37 = vld [vmem:[#allocation10 + $0x3c] sm:$0xf0]  ;;  %v9951_v38 = vld [vmem:[#allocation10 + $0x16c] sm:$0xf] }
 0x194   :  { %3472 = vmatpush.bf16.msrb.mxu0 %v7729_v40  ;;  %3486 = vmatpush.bf16.msrb.mxu1 %v7889_v43  ;;  %v2150_v40 = vadd.f32 %v2149_v28, %v2136_v25  ;;  %v2151_v43 = vpop.f32.mrf.mxu0  ;;  %v7750_v28 = vld [vmem:[#allocation10 + $0xb4] sm:$0xf0]  ;;  %v7936_v6 = vld [vmem:[#allocation10 + $0x210] sm:$0xf] }
 0x195   :  { %2400 = vmatmul.bf16.vlgmr.msra.gmra.mxu2 %v10884_v41  ;;  %2414 = vmatmul.bf16.vlgmr.msra.gmra.mxu3 %v10886_v42  ;;  %v2137_v41 = vpop.f32.mrf.mxu3  ;;  %v9948_v42 = vld [vmem:[#allocation10 + $0x150] sm:$0xf0]  ;;  %v2165_v29 = vpop.f32.mrf.mxu1  ;;  %v7753_v4 = vor.u32 %v9926_v62, %v7750_v28 }
 0x196   :  { %3496 = vmatpush.bf16.msrb.mxu2 %v8129_v59  ;;  %v7829_v20 = vor.u32 %v9948_v42, %v7828_v7  ;;  %v2138_v53 = vadd.f32 %v2137_v41, %v2124_v19  ;;  %v2164_v61 = vadd.f32 %v2163_v22, %v2150_v40  ;;  %v9961_v41 = vld [vmem:[#allocation10 + $0x1bc] sm:$0xf]  ;;  %v7870_v22 = vld [vmem:[#allocation10 + $0x1a4] sm:$0xf0]  ;;  %v7850_v40 = vld [vmem:[#allocation10 + $0x17c] sm:$0xf0] }
 0x197   :  { %v7893_v15 = vor.u32 %v9961_v41, %v7890_v30  ;;  %v7873_v31 = vor.u32 %v9956_v21, %v7870_v22  ;;  %v9974_v41 = vld [vmem:[#allocation10 + $0x220] sm:$0xf0]  ;;  %v8050_v30 = vld [vmem:[#allocation10 + $0x30c] sm:$0xf0]  ;;  %v7736_v22 = vld [vmem:[#allocation10 + $0x80] sm:$0xf] }
 0x198   :  { %3473 = vmatpush.bf16.msrb.mxu0 %v7709_v54  ;;  %3487 = vmatpush.bf16.msrb.mxu1 %v7869_v55  ;;  %v7930_v54 = vld [vmem:[#allocation10 + $0x21c] sm:$0xf0]  ;;  %v8048_v55 = vld [vmem:[#allocation10 + $0x2f8] sm:$0xf]  ;;  %v2152_v14 = vadd.f32 %v2151_v43, %v2138_v53  ;;  %v8133_v43 = vor.u32 %v10021_v0, %v8130_v33 }
 0x199   :  { %v2177_v45 = vpop.f32.mrf.mxu2  ;;  %v8049_v59 = vor.u32 %v10003_v57, %v8048_v55  ;;  %v7933_v12 = vor.u32 %v9971_v52, %v7930_v54  ;;  %v9946_v52 = vld [vmem:[#allocation10 + $0x144] sm:$0xf]  ;;  %v7830_v53 = vld [vmem:[#allocation10 + $0x154] sm:$0xf0]  ;;  %v7816_v54 = vld [vmem:[#allocation10 + $0x120] sm:$0xf] }
 0x19a   :  { %3497 = vmatpush.bf16.msrb.mxu2 %v8109_v27  ;;  %v2178_v50 = vadd.f32 %v2177_v45, %v2164_v61  ;;  %v7913_v27 = vor.u32 %v9966_v34, %v7910_v2  ;;  %v8110_v45 = vld [vmem:[#allocation10 + $0x384] sm:$0xf0]  ;;  %v9944_v55 = vld [vmem:[#allocation10 + $0x130] sm:$0xf0]  ;;  %v7976_v57 = vld [vmem:[#allocation10 + $0x260] sm:$0xf] }
 0x19b   :  { %v10011_v61 = vld [vmem:[#allocation10 + $0x34c] sm:$0xf]  ;;  %v7796_v34 = vld [vmem:[#allocation10 + $0xf8] sm:$0xf] }
 0x19c   :  { %3474 = vmatpush.bf16.msrb.mxu0 %v7689_v49  ;;  %3488 = vmatpush.bf16.msrb.mxu1 %v7849_v26  ;;  %v2166_v49 = vadd.f32 %v2165_v29, %v2152_v14  ;;  %v8029_v26 = vor.u32 %v9998_v3, %v8028_v1  ;;  %v8090_v14 = vld [vmem:[#allocation10 + $0x35c] sm:$0xf0]  ;;  %v9939_v2 = vld [vmem:[#allocation10 + $0x108] sm:$0xf0]  ;;  %v7956_v29 = vld [vmem:[#allocation10 + $0x238] sm:$0xf] }
 0x19d   :  { %v2191_v46 = vpop.f32.mrf.mxu3  ;;  %v8093_v62 = vor.u32 %v10011_v61, %v8090_v14  ;;  %v9979_v1 = vld [vmem:[#allocation10 + $0x248] sm:$0xf0]  ;;  %v10006_v3 = vld [vmem:[#allocation10 + $0x324] sm:$0xf]  ;;  %v7856_v14 = vld [vmem:[#allocation10 + $0x170] sm:$0xf] }
 0x19e   :  { %3498 = vmatpush.bf16.msrb.mxu2 %v8089_v56  ;;  %v2192_v7 = vadd.f32 %v2191_v46, %v2178_v50  ;;  %v7693_v46 = vor.u32 %v9911_v32, %v7690_v37  ;;  %v7817_v50 = vor.u32 %v9944_v55, %v7816_v54  ;;  %v8010_v32 = vld [vmem:[#allocation10 + $0x2bc] sm:$0xf0]  ;;  %v7696_v55 = vld [vmem:[#allocation10 + $0x30] sm:$0xf]  ;;  %v9914_v61 = vld [vmem:[#allocation10 + $0x40] sm:$0xf0] }
 0x1a0   :  { %3475 = vmatpush.bf16.msrb.mxu0 %v7669_v17  ;;  %3489 = vmatpush.bf16.msrb.mxu1 %v7829_v20  ;;  %v7710_v17 = vld [vmem:[#allocation10 + $0x64] sm:$0xf0]  ;;  %v2421_v20 = vmax.f32 %v2192_v7, 0.0  ;;  %v2205_v7 = vpop.f32.mrf.mxu0 }
 0x1a1   :  { %v2179_v60 = vpop.f32.mrf.mxu2  ;;  %v7713_v19 = vor.u32 %v9916_v16, %v7710_v17  ;;  %v9996_v16 = vld [vmem:[#allocation10 + $0x2d4] sm:$0xf]  ;;  %v8030_v17 = vld [vmem:[#allocation10 + $0x2e4] sm:$0xf0] }
 0x1a2   :  { %3499 = vmatpush.bf16.msrb.mxu2 %v8069_v48  ;;  %v2180_v42 = vadd.f32 %v2179_v60, %v2166_v49  ;;  %v10016_v48 = vld [vmem:[#allocation10 + $0x374] sm:$0xf]  ;;  %v8070_v49 = vld [vmem:[#allocation10 + $0x334] sm:$0xf0]  ;;  %v7797_v60 = vor.u32 %v9939_v2, %v7796_v34  ;;  %v7697_v2 = vor.u32 %v9914_v61, %v7696_v55  ;;  %v7758_v61 = vld [vmem:[#allocation10 + $0xbc] sm:$0xf0] }
 0x1a3   :  { %3476 = vmatmul.bf16.vlgmr.msrb.gmra.mxu0 %v10972_v44  ;;  %v8113_v51 = vor.u32 %v10016_v48, %v8110_v45  ;;  %v9919_v45 = vld [vmem:[#allocation10 + $0x68] sm:$0xf0] }
 0x1a4   :  { %3524 = vmatpush.bf16.msra.mxu0 %v7813_v47  ;;  %3538 = vmatpush.bf16.msra.mxu1 %v7973_v23  ;;  %v7988_v47 = vld [vmem:[#allocation10 + $0x280] sm:$0xf]  ;;  %v9988_v23 = vld [vmem:[#allocation10 + $0x290] sm:$0xf0] }
 0x1a5   :  { %v2193_v8 = vpop.f32.mrf.mxu3  ;;  %v7989_v25 = vor.u32 %v9988_v23, %v7988_v47  ;;  %v2219_v47 = vpop.f32.mrf.mxu1  ;;  %v9924_v23 = vld [vmem:[#allocation10 + $0x90] sm:$0xf0] }
 0x1a6   :  { %3500 = vmatpush.bf16.msrb.mxu2 %v8049_v59  ;;  %v2194_v11 = vadd.f32 %v2193_v8, %v2180_v42  ;;  %v9984_v59 = vld [vmem:[#allocation10 + $0x270] sm:$0xf0]  ;;  %v10001_v42 = vld [vmem:[#allocation10 + $0x2fc] sm:$0xf]  ;;  %v7937_v8 = vor.u32 %v9974_v41, %v7936_v6  ;;  %v7737_v37 = vor.u32 %v9924_v23, %v7736_v22  ;;  %v7818_v6 = vld [vmem:[#allocation10 + $0x134] sm:$0xf0] }
 0x1a7   :  { %v7977_v28 = vor.u32 %v9984_v59, %v7976_v57  ;;  %v8053_v18 = vor.u32 %v10001_v42, %v8050_v30  ;;  %v8288_v57 = vld [vmem:[#allocation10 + $0x4d8] sm:$0xf]  ;;  %v10063_v59 = vld [vmem:[#allocation10 + $0x4e8] sm:$0xf0]  ;;  %v9982_v41 = vld [vmem:[#allocation10 + $0x264] sm:$0xf] }
 0x1a8   :  { %3525 = vmatpush.bf16.msra.mxu0 %v7793_v35  ;;  %3539 = vmatpush.bf16.msra.mxu1 %v7953_v39  ;;  %v2425_v56 = vmax.f32 %v2194_v11, 0.0  ;;  %v7853_v35 = vor.u32 %v9951_v38, %v7850_v40  ;;  %v9906_v39 = vld [vmem:[#allocation10 + $0x4] sm:$0xf]  ;;  %v9929_v11 = vld [vmem:[#allocation10 + $0xb8] sm:$0xf0]  ;;  %v2207_v33 = vpop.f32.mrf.mxu0 }
 0x1a9   :  { %v7716_v40 = vld [vmem:[#allocation10 + $0x58] sm:$0xf]  ;;  %v7958_v22 = vld [vmem:[#allocation10 + $0x24c] sm:$0xf0] }
 0x1aa   :  { %3501 = vmatpush.bf16.msrb.mxu2 %v8029_v26  ;;  %v10975_v24 = vpack.c.bf16 %v2425_v56, %v2421_v20  ;;  %v8073_v26 = vor.u32 %v10006_v3, %v8070_v49  ;;  %v8033_v20 = vor.u32 %v9996_v16, %v8030_v17  ;;  %v9909_v3 = vld [vmem:[#allocation10 + $0x18] sm:$0xf0] }
 0x1ab   :  { %v9937_v17 = vld [vmem:[#allocation10 + $0xfc] sm:$0xf] }
 0x1ac   :  { %3526 = vmatpush.bf16.msra.mxu0 %v7773_v36  ;;  %3540 = vmatpush.bf16.msra.mxu1 %v7933_v12  ;;  %v7673_v36 = vor.u32 %v9906_v39, %v7670_v58  ;;  %v7833_v12 = vor.u32 %v9946_v52, %v7830_v53  ;;  %v686_v39 = vperm.slane %v10930_v9, 2  ;;  %v9986_v58 = vld [vmem:[#allocation10 + $0x284] sm:$0xf]  ;;  %v7717_v53 = vor.u32 %v9919_v45, %v7716_v40  ;;  %v8268_v9 = vld [vmem:[#allocation10 + $0x4b0] sm:$0xf] }
 0x1ad   :  { %3490 = vmatmul.bf16.vlgmr.msrb.gmra.mxu1 %v10975_v24  ;;  %v9972_v45 = vld [vmem:[#allocation10 + $0x214] sm:$0xf] }
 0x1ae   :  { %3502 = vmatpush.bf16.msrb.mxu2 %v8009_v10  ;;  %v7756_v10 = vld [vmem:[#allocation10 + $0xa8] sm:$0xf] }
 0x1af   :  { %v7757_v56 = vor.u32 %v9929_v11, %v7756_v10 }
 0x1b0   :  { %3527 = vmatpush.bf16.msra.mxu0 %v7753_v4  ;;  %3541 = vmatpush.bf16.msra.mxu1 %v7913_v27  ;;  %v7957_v4 = vor.u32 %v9979_v1, %v7956_v29  ;;  %v7776_v27 = vld [vmem:[#allocation10 + $0xd0] sm:$0xf]  ;;  %v7676_v1 = vld [vmem:[#allocation10 + $0x8] sm:$0xf] }
 0x1b1   :  { %v7777_v63 = vor.u32 %v9934_v5, %v7776_v27  ;;  %v2208_v5 = vadd.f32 %v2207_v33, %v686_v39  ;;  %v9932_v33 = vld [vmem:[#allocation10 + $0xd4] sm:$0xf] }
 0x1b2   :  { %3503 = vmatpush.bf16.msrb.mxu2 %v7989_v25  ;;  %v7896_v25 = vld [vmem:[#allocation10 + $0x1c0] sm:$0xf] }
 0x1b4   :  { %3528 = vmatpush.bf16.msra.mxu0 %v7733_v13  ;;  %3542 = vmatpush.bf16.msra.mxu1 %v7893_v15  ;;  %v7916_v13 = vld [vmem:[#allocation10 + $0x1e8] sm:$0xf]  ;;  %v9969_v15 = vld [vmem:[#allocation10 + $0x1f8] sm:$0xf0] }
 0x1b5   :  { %v7917_v21 = vor.u32 %v9969_v15, %v7916_v13 }
 0x1b6   :  { %3552 = vmatpush.bf16.msra.mxu2 %v8133_v43 }
 0x1b8   :  { %3529 = vmatpush.bf16.msra.mxu0 %v7713_v19  ;;  %3543 = vmatpush.bf16.msra.mxu1 %v7873_v31  ;;  %v9964_v19 = vld [vmem:[#allocation10 + $0x1d0] sm:$0xf0]  ;;  %v9991_v31 = vld [vmem:[#allocation10 + $0x2ac] sm:$0xf] }
 0x1b9   :  { %v8013_v0 = vor.u32 %v9991_v31, %v8010_v32  ;;  %v7897_v38 = vor.u32 %v9964_v19, %v7896_v25  ;;  %v2233_v43 = vpop.f32.mrf.mxu2  ;;  %v2247_v48 = vpop.f32.mrf.mxu3  ;;  %v8228_v19 = vld [vmem:[#allocation10 + $0x460] sm:$0xf]  ;;  %v10048_v31 = vld [vmem:[#allocation10 + $0x470] sm:$0xf0] }
 0x1ba   :  { %3553 = vmatpush.bf16.msra.mxu2 %v8113_v51  ;;  %v7990_v51 = vld [vmem:[#allocation10 + $0x294] sm:$0xf0] }
 0x1bb   :  { %v7993_v52 = vor.u32 %v9986_v58, %v7990_v51  ;;  %v8208_v58 = vld [vmem:[#allocation10 + $0x438] sm:$0xf]  ;;  %v10043_v51 = vld [vmem:[#allocation10 + $0x448] sm:$0xf0] }
 0x1bc   :  { %3530 = vmatpush.bf16.msra.mxu0 %v7693_v46  ;;  %3544 = vmatpush.bf16.msra.mxu1 %v7853_v35  ;;  %v7876_v46 = vld [vmem:[#allocation10 + $0x198] sm:$0xf]  ;;  %v9959_v35 = vld [vmem:[#allocation10 + $0x1a8] sm:$0xf0]  ;;  %v8209_v55 = vor.u32 %v10043_v51, %v8208_v58  ;;  %v10056_v58 = vld [vmem:[#allocation10 + $0x4b4] sm:$0xf] }
 0x1bd   :  { %v7877_v54 = vor.u32 %v9959_v35, %v7876_v46  ;;  %v7938_v46 = vld [vmem:[#allocation10 + $0x224] sm:$0xf0] }
 0x1be   :  { %3554 = vmatpush.bf16.msra.mxu2 %v8093_v62  ;;  %v2206_v62 = vadd.f32 %v2205_v7, %v686_v39  ;;  %v7978_v7 = vld [vmem:[#allocation10 + $0x274] sm:$0xf0] }
 0x1bf   :  { %v7981_v16 = vor.u32 %v9982_v41, %v7978_v7 }
 0x1c0   :  { %3531 = vmatpush.bf16.msra.mxu0 %v7673_v36  ;;  %3545 = vmatpush.bf16.msra.mxu1 %v7833_v12  ;;  %v9954_v36 = vld [vmem:[#allocation10 + $0x180] sm:$0xf0]  ;;  %v8289_v12 = vor.u32 %v10063_v59, %v8288_v57  ;;  %v2261_v34 = vpop.f32.mrf.mxu0  ;;  %v2220_v27 = vadd.f32 %v2219_v47, %v2206_v62  ;;  %v8188_v62 = vld [vmem:[#allocation10 + $0x410] sm:$0xf] }
 0x1c1   :  { %v7857_v29 = vor.u32 %v9954_v36, %v7856_v14  ;;  %v2235_v42 = vpop.f32.mrf.mxu2  ;;  %v2249_v30 = vpop.f32.mrf.mxu3  ;;  %v9967_v14 = vld [vmem:[#allocation10 + $0x1ec] sm:$0xf]  ;;  %v7918_v36 = vld [vmem:[#allocation10 + $0x1fc] sm:$0xf0] }
 0x1c2   :  { %3555 = vmatpush.bf16.msra.mxu2 %v8073_v26  ;;  %3510 = vmatpush.bf16.msrb.mxu3 %v8289_v12  ;;  %v7836_v26 = vld [vmem:[#allocation10 + $0x148] sm:$0xf]  ;;  %v2234_v10 = vadd.f32 %v2233_v43, %v2220_v27 }
 0x1c3   :  { %3532 = vmatmul.bf16.vlgmr.msra.gmra.mxu0 %v10972_v44  ;;  %3546 = vmatmul.bf16.vlgmr.msra.gmra.mxu1 %v10975_v24  ;;  %v7778_v43 = vld [vmem:[#allocation10 + $0xe4] sm:$0xf0] }
 0x1c4   :  { %3580 = vmatpush.bf16.msrb.mxu0 %v7817_v50  ;;  %3594 = vmatpush.bf16.msrb.mxu1 %v7977_v28  ;;  %v2221_v50 = vpop.f32.mrf.mxu1  ;;  %v10058_v28 = vld [vmem:[#allocation10 + $0x4c0] sm:$0xf0]  ;;  %v2248_v23 = vadd.f32 %v2247_v48, %v2234_v10  ;;  %v9957_v10 = vld [vmem:[#allocation10 + $0x19c] sm:$0xf] }
 0x1c5   :  { %v8269_v49 = vor.u32 %v10058_v28, %v8268_v9 }
 0x1c6   :  { %3556 = vmatpush.bf16.msra.mxu2 %v8053_v18  ;;  %v7677_v18 = vor.u32 %v9909_v3, %v7676_v1  ;;  %v7738_v3 = vld [vmem:[#allocation10 + $0x94] sm:$0xf0] }
 0x1c7   :  { %3511 = vmatpush.bf16.msrb.mxu3 %v8269_v49  ;;  %v9962_v49 = vld [vmem:[#allocation10 + $0x1c4] sm:$0xf] }
 0x1c8   :  { %3581 = vmatpush.bf16.msrb.mxu0 %v7797_v60  ;;  %3595 = vmatpush.bf16.msrb.mxu1 %v7957_v4  ;;  %v9949_v60 = vld [vmem:[#allocation10 + $0x158] sm:$0xf0]  ;;  %v9942_v4 = vld [vmem:[#allocation10 + $0x124] sm:$0xf]  ;;  %v2263_v40 = vpop.f32.mrf.mxu0 }
 0x1c9   :  { %v7837_v11 = vor.u32 %v9949_v60, %v7836_v26  ;;  %v7821_v15 = vor.u32 %v9942_v4, %v7818_v6  ;;  %v7898_v26 = vld [vmem:[#allocation10 + $0x1d4] sm:$0xf0]  ;;  %v10033_v6 = vld [vmem:[#allocation10 + $0x3f8] sm:$0xf0] }
 0x1ca   :  { %3557 = vmatpush.bf16.msra.mxu2 %v8033_v20  ;;  %v2222_v20 = vadd.f32 %v2221_v50, %v2208_v5  ;;  %v10038_v50 = vld [vmem:[#allocation10 + $0x420] sm:$0xf0]  ;;  %v8168_v5 = vld [vmem:[#allocation10 + $0x3e8] sm:$0xf] }
 0x1cc   :  { %3582 = vmatpush.bf16.msrb.mxu0 %v7777_v63  ;;  %3596 = vmatpush.bf16.msrb.mxu1 %v7937_v8  ;;  %v8248_v63 = vld [vmem:[#allocation10 + $0x488] sm:$0xf]  ;;  %v10053_v8 = vld [vmem:[#allocation10 + $0x498] sm:$0xf0]  ;;  %v2275_v47 = vpop.f32.mrf.mxu1  ;;  %v2236_v25 = vadd.f32 %v2235_v42, %v2222_v20  ;;  %v7901_v42 = vor.u32 %v9962_v49, %v7898_v26  ;;  %v8148_v20 = vld [vmem:[#allocation10 + $0x3c0] sm:$0xf] }
 0x1cd   :  { %v8249_v13 = vor.u32 %v10053_v8, %v8248_v63  ;;  %v7718_v8 = vld [vmem:[#allocation10 + $0x6c] sm:$0xf0]  ;;  %v9940_v49 = vld [vmem:[#allocation10 + $0x110] sm:$0xf0] }
 0x1ce   :  { %3558 = vmatpush.bf16.msra.mxu2 %v8013_v0  ;;  %v2250_v39 = vadd.f32 %v2249_v30, %v2236_v25  ;;  %v9917_v30 = vld [vmem:[#allocation10 + $0x5c] sm:$0xf] }
 0x1cf   :  { %3512 = vmatpush.bf16.msrb.mxu3 %v8249_v13  ;;  %v8136_v13 = vld [vmem:[#allocation10 + $0x3a0] sm:$0xf] }
 0x1d0   :  { %3583 = vmatpush.bf16.msrb.mxu0 %v7757_v56  ;;  %3597 = vmatpush.bf16.msrb.mxu1 %v7917_v21  ;;  %v7798_v56 = vld [vmem:[#allocation10 + $0x10c] sm:$0xf0]  ;;  %v9977_v21 = vld [vmem:[#allocation10 + $0x23c] sm:$0xf]  ;;  %v2264_v59 = vadd.f32 %v2263_v40, %v2250_v39  ;;  %v9947_v39 = vld [vmem:[#allocation10 + $0x14c] sm:$0xf] }
 0x1d1   :  { %v7801_v32 = vor.u32 %v9937_v17, %v7798_v56  ;;  %v7961_v0 = vor.u32 %v9977_v21, %v7958_v22  ;;  %v10028_v56 = vld [vmem:[#allocation10 + $0x3d0] sm:$0xf0]  ;;  %v7721_v21 = vor.u32 %v9917_v30, %v7718_v8  ;;  %v8290_v40 = vld [vmem:[#allocation10 + $0x4ec] sm:$0xf0] }
 0x1d2   :  { %3559 = vmatpush.bf16.msra.mxu2 %v7993_v52  ;;  %v7781_v52 = vor.u32 %v9932_v33, %v7778_v43  ;;  %v8149_v25 = vor.u32 %v10028_v56, %v8148_v20  ;;  %v8116_v33 = vld [vmem:[#allocation10 + $0x378] sm:$0xf]  ;;  %v9907_v43 = vld [vmem:[#allocation10 + $0xc] sm:$0xf]  ;;  %v10004_v30 = vld [vmem:[#allocation10 + $0x310] sm:$0xf0] }
 0x1d3   :  { %v8036_v56 = vld [vmem:[#allocation10 + $0x2d8] sm:$0xf] }
 0x1d4   :  { %3584 = vmatpush.bf16.msrb.mxu0 %v7737_v37  ;;  %3598 = vmatpush.bf16.msrb.mxu1 %v7897_v38  ;;  %v8229_v37 = vor.u32 %v10048_v31, %v8228_v19  ;;  %v2262_v38 = vadd.f32 %v2261_v34, %v2248_v23  ;;  %v2277_v9 = vpop.f32.mrf.mxu1  ;;  %v7921_v34 = vor.u32 %v9967_v14, %v7918_v36  ;;  %v7698_v23 = vld [vmem:[#allocation10 + $0x44] sm:$0xf0]  ;;  %v9985_v36 = vld [vmem:[#allocation10 + $0x278] sm:$0xf0] }
 0x1d5   :  { %v2278_v1 = vadd.f32 %v2277_v9, %v2264_v59  ;;  %v9945_v59 = vld [vmem:[#allocation10 + $0x138] sm:$0xf0]  ;;  %v7984_v14 = vld [vmem:[#allocation10 + $0x268] sm:$0xf]  ;;  %v8250_v9 = vld [vmem:[#allocation10 + $0x49c] sm:$0xf0] }
 0x1d6   :  { %3513 = vmatpush.bf16.msrb.mxu3 %v8229_v37  ;;  %v2276_v57 = vadd.f32 %v2275_v47, %v2262_v38  ;;  %v9912_v47 = vld [vmem:[#allocation10 + $0x34] sm:$0xf]  ;;  %v10019_v37 = vld [vmem:[#allocation10 + $0x388] sm:$0xf0]  ;;  %v10061_v38 = vld [vmem:[#allocation10 + $0x4dc] sm:$0xf] }
 0x1d7   :  { %v8117_v51 = vor.u32 %v10019_v37, %v8116_v33  ;;  %v8190_v33 = vld [vmem:[#allocation10 + $0x424] sm:$0xf0] }
 0x1d8   :  { %3585 = vmatpush.bf16.msrb.mxu0 %v7717_v53  ;;  %3599 = vmatpush.bf16.msrb.mxu1 %v7877_v54  ;;  %v7941_v53 = vor.u32 %v9972_v45, %v7938_v46  ;;  %v9927_v54 = vld [vmem:[#allocation10 + $0xac] sm:$0xf]  ;;  %v8293_v45 = vor.u32 %v10061_v38, %v8290_v40  ;;  %v7701_v46 = vor.u32 %v9912_v47, %v7698_v23  ;;  %v7764_v47 = vld [vmem:[#allocation10 + $0xb0] sm:$0xf]  ;;  %v9930_v23 = vld [vmem:[#allocation10 + $0xc0] sm:$0xf0] }
 0x1d9   :  { %v2289_v48 = vpop.f32.mrf.mxu2  ;;  %v2303_v35 = vpop.f32.mrf.mxu3  ;;  %v7761_v28 = vor.u32 %v9927_v54, %v7758_v61  ;;  %v8270_v54 = vld [vmem:[#allocation10 + $0x4c4] sm:$0xf0]  ;;  %v7765_v38 = vor.u32 %v9930_v23, %v7764_v47  ;;  %v8016_v40 = vld [vmem:[#allocation10 + $0x2b0] sm:$0xf]  ;;  %v10012_v47 = vld [vmem:[#allocation10 + $0x354] sm:$0xf] }
 0x1da   :  { %v2290_v12 = vadd.f32 %v2289_v48, %v2276_v57  ;;  %3514 = vmatpush.bf16.msrb.mxu3 %v8209_v55  ;;  %v10014_v55 = vld [vmem:[#allocation10 + $0x360] sm:$0xf0]  ;;  %v7824_v57 = vld [vmem:[#allocation10 + $0x128] sm:$0xf]  ;;  %v8273_v61 = vor.u32 %v10056_v58, %v8270_v54  ;;  %v9965_v58 = vld [vmem:[#allocation10 + $0x1d8] sm:$0xf0] }
 0x1db   :  { %v8098_v23 = vld [vmem:[#allocation10 + $0x364] sm:$0xf0] }
 0x1dc   :  { %3586 = vmatpush.bf16.msrb.mxu0 %v7697_v2  ;;  %3600 = vmatpush.bf16.msrb.mxu1 %v7857_v29  ;;  %v9922_v2 = vld [vmem:[#allocation10 + $0x84] sm:$0xf]  ;;  %v8189_v29 = vor.u32 %v10038_v50, %v8188_v62  ;;  %v2304_v4 = vadd.f32 %v2303_v35, %v2290_v12  ;;  %v7678_v35 = vld [vmem:[#allocation10 + $0x1c] sm:$0xf0]  ;;  %v10051_v50 = vld [vmem:[#allocation10 + $0x48c] sm:$0xf] }
 0x1dd   :  { %v7741_v7 = vor.u32 %v9922_v2, %v7738_v3  ;;  %v7681_v12 = vor.u32 %v9907_v43, %v7678_v35  ;;  %v8076_v2 = vld [vmem:[#allocation10 + $0x328] sm:$0xf]  ;;  %v7804_v3 = vld [vmem:[#allocation10 + $0x100] sm:$0xf]  ;;  %v8253_v26 = vor.u32 %v10051_v50, %v8250_v9  ;;  %v9960_v9 = vld [vmem:[#allocation10 + $0x1b0] sm:$0xf0] }
 0x1de   :  { %3515 = vmatpush.bf16.msrb.mxu3 %v8189_v29  ;;  %v7985_v29 = vor.u32 %v9985_v36, %v7984_v14  ;;  %v7724_v14 = vld [vmem:[#allocation10 + $0x60] sm:$0xf]  ;;  %v9920_v36 = vld [vmem:[#allocation10 + $0x70] sm:$0xf0] }
 0x1e0   :  { %3587 = vmatpush.bf16.msrb.mxu0 %v7677_v18  ;;  %3601 = vmatpush.bf16.msrb.mxu1 %v7837_v11  ;;  %v8169_v18 = vor.u32 %v10033_v6, %v8168_v5  ;;  %v7878_v11 = vld [vmem:[#allocation10 + $0x1ac] sm:$0xf0]  ;;  %v8230_v5 = vld [vmem:[#allocation10 + $0x474] sm:$0xf0] }
 0x1e1   :  { %v2291_v60 = vpop.f32.mrf.mxu2  ;;  %v2305_v41 = vpop.f32.mrf.mxu3  ;;  %v7881_v22 = vor.u32 %v9957_v10, %v7878_v11  ;;  %v7944_v10 = vld [vmem:[#allocation10 + $0x218] sm:$0xf]  ;;  %v9975_v11 = vld [vmem:[#allocation10 + $0x228] sm:$0xf0] }
 0x1e2   :  { %v2292_v27 = vadd.f32 %v2291_v60, %v2278_v1  ;;  %3516 = vmatpush.bf16.msrb.mxu3 %v8169_v18  ;;  %v10009_v1 = vld [vmem:[#allocation10 + $0x338] sm:$0xf0]  ;;  %v7964_v60 = vld [vmem:[#allocation10 + $0x240] sm:$0xf]  ;;  %v7784_v18 = vld [vmem:[#allocation10 + $0xd8] sm:$0xf] }
 0x1e3   :  { %3588 = vmatmul.bf16.vlgmr.msrb.gmra.mxu0 %v10972_v44  ;;  %3602 = vmatmul.bf16.vlgmr.msrb.gmra.mxu1 %v10975_v24  ;;  %v8077_v6 = vor.u32 %v10009_v1, %v8076_v2  ;;  %v10026_v1 = vld [vmem:[#allocation10 + $0x3c4] sm:$0xf] }
 0x1e4   :  { %3636 = vmatpush.bf16.msra.mxu0 %v7821_v15  ;;  %3650 = vmatpush.bf16.msra.mxu1 %v7981_v16  ;;  %v2306_v63 = vadd.f32 %v2305_v41, %v2292_v27  ;;  %v10024_v15 = vld [vmem:[#allocation10 + $0x3b0] sm:$0xf0]  ;;  %v2422_v16 = vmax.f32 %v2304_v4, 0.0  ;;  %v10046_v27 = vld [vmem:[#allocation10 + $0x464] sm:$0xf]  ;;  %v7805_v41 = vor.u32 %v9940_v49, %v7804_v3 }
 0x1e5   :  { %v8137_v31 = vor.u32 %v10024_v15, %v8136_v13  ;;  %v9980_v4 = vld [vmem:[#allocation10 + $0x250] sm:$0xf0]  ;;  %v8233_v8 = vor.u32 %v10046_v27, %v8230_v5  ;;  %v10041_v13 = vld [vmem:[#allocation10 + $0x43c] sm:$0xf]  ;;  %v8210_v15 = vld [vmem:[#allocation10 + $0x44c] sm:$0xf0] }
 0x1e6   :  { %v2426_v17 = vmax.f32 %v2306_v63, 0.0  ;;  %3517 = vmatpush.bf16.msrb.mxu3 %v8149_v25  ;;  %v9935_v63 = vld [vmem:[#allocation10 + $0xe8] sm:$0xf0]  ;;  %v8213_v25 = vor.u32 %v10041_v13, %v8210_v15  ;;  %v8150_v3 = vld [vmem:[#allocation10 + $0x3d4] sm:$0xf0] }
 0x1e7   :  { %v7785_v20 = vor.u32 %v9935_v63, %v7784_v18  ;;  %v10424_v49 = vld [vmem:[#allocation8] sm:$0xf]  ;;  %v8118_v18 = vld [vmem:[#allocation10 + $0x38c] sm:$0xf0]  ;;  %v8153_v63 = vor.u32 %v10026_v1, %v8150_v3  ;;  %v9987_v3 = vld [vmem:[#allocation10 + $0x28c] sm:$0xf] }
 0x1e8   :  { %3637 = vmatpush.bf16.msra.mxu0 %v7801_v32  ;;  %3651 = vmatpush.bf16.msra.mxu1 %v7961_v0  ;;  %v10983_v19 = vpack.c.bf16 %v2426_v17, %v2422_v16  ;;  %v9952_v32 = vld [vmem:[#allocation10 + $0x174] sm:$0xf]  ;;  %v7858_v0 = vld [vmem:[#allocation10 + $0x184] sm:$0xf0]  ;;  %v10988_v16 = vpop.f32.mrf.mxu0 }
 0x1e9   :  { %v7861_v48 = vor.u32 %v9952_v32, %v7858_v0  ;;  %v9970_v32 = vld [vmem:[#allocation10 + $0x200] sm:$0xf0]  ;;  %v10036_v0 = vld [vmem:[#allocation10 + $0x414] sm:$0xf] }
 0x1ea   :  { %3504 = vmatmul.bf16.vlgmr.msrb.gmra.mxu2 %v10983_v19  ;;  %3566 = vmatpush.bf16.msra.mxu3 %v8293_v45  ;;  %v9994_v45 = vld [vmem:[#allocation10 + $0x2c0] sm:$0xf0]  ;;  %v8193_v35 = vor.u32 %v10036_v0, %v8190_v33 }
 0x1eb   :  { %3608 = vmatpush.bf16.msrb.mxu2 %v8137_v31  ;;  %v7924_v31 = vld [vmem:[#allocation10 + $0x1f0] sm:$0xf]  ;;  %v8017_v54 = vor.u32 %v9994_v45, %v8016_v40  ;;  %v10007_v40 = vld [vmem:[#allocation10 + $0x32c] sm:$0xf] }
 0x1ec   :  { %3638 = vmatpush.bf16.msra.mxu0 %v7781_v52  ;;  %3652 = vmatpush.bf16.msra.mxu1 %v7941_v53  ;;  %v7838_v52 = vld [vmem:[#allocation10 + $0x15c] sm:$0xf0]  ;;  %v8096_v53 = vld [vmem:[#allocation10 + $0x350] sm:$0xf]  ;;  %v7925_v43 = vor.u32 %v9970_v32, %v7924_v31 }
 0x1ed   :  { %v7841_v62 = vor.u32 %v9947_v39, %v7838_v52  ;;  %v7904_v39 = vld [vmem:[#allocation10 + $0x1c8] sm:$0xf]  ;;  %v10031_v52 = vld [vmem:[#allocation10 + $0x3ec] sm:$0xf] }
 0x1ee   :  { %3567 = vmatpush.bf16.msra.mxu3 %v8273_v61  ;;  %v7905_v61 = vor.u32 %v9965_v58, %v7904_v39  ;;  %v10002_v58 = vld [vmem:[#allocation10 + $0x304] sm:$0xf] }
 0x1ef   :  { %3609 = vmatpush.bf16.msrb.mxu2 %v8117_v51  ;;  %v2331_v51 = vpop.f32.mrf.mxu1 }
 0x1f0   :  { %3639 = vmatpush.bf16.msra.mxu0 %v7761_v28  ;;  %3653 = vmatpush.bf16.msra.mxu1 %v7921_v34  ;;  %v8097_v28 = vor.u32 %v10014_v55, %v8096_v53  ;;  %v7825_v34 = vor.u32 %v9945_v59, %v7824_v57  ;;  %v8170_v53 = vld [vmem:[#allocation10 + $0x3fc] sm:$0xf0]  ;;  %v7996_v57 = vld [vmem:[#allocation10 + $0x288] sm:$0xf]  ;;  %v9989_v59 = vld [vmem:[#allocation10 + $0x298] sm:$0xf0]  ;;  %v2319_v50 = vpop.f32.mrf.mxu0 }
 0x1f2   :  { %3568 = vmatpush.bf16.msra.mxu3 %v8253_v26  ;;  %v687_v26 = vperm.slane %v10424_v49, 3  ;;  %v7998_v49 = vld [vmem:[#allocation10 + $0x29c] sm:$0xf0] }
 0x1f3   :  { %3610 = vmatpush.bf16.msrb.mxu2 %v8097_v28  ;;  %v10022_v28 = vld [vmem:[#allocation10 + $0x3a4] sm:$0xf] }
 0x1f4   :  { %3640 = vmatpush.bf16.msra.mxu0 %v7741_v7  ;;  %3654 = vmatpush.bf16.msra.mxu1 %v7901_v42  ;;  %v8056_v7 = vld [vmem:[#allocation10 + $0x300] sm:$0xf]  ;;  %v7965_v42 = vor.u32 %v9980_v4, %v7964_v60  ;;  %v7997_v60 = vor.u32 %v9989_v59, %v7996_v57  ;;  %v7725_v4 = vor.u32 %v9920_v36, %v7724_v14  ;;  %v8038_v14 = vld [vmem:[#allocation10 + $0x2ec] sm:$0xf0] }
 0x1f5   :  { %v8057_v17 = vor.u32 %v10004_v30, %v8056_v7  ;;  %v7864_v7 = vld [vmem:[#allocation10 + $0x178] sm:$0xf]  ;;  %v10017_v30 = vld [vmem:[#allocation10 + $0x37c] sm:$0xf] }
 0x1f6   :  { %3569 = vmatpush.bf16.msra.mxu3 %v8233_v8  ;;  %v2318_v8 = vadd.f32 %v10988_v16, %v687_v26  ;;  %v8121_v15 = vor.u32 %v10017_v30, %v8118_v18  ;;  %v2320_v16 = vadd.f32 %v2319_v50, %v687_v26 }
 0x1f7   :  { %3611 = vmatpush.bf16.msrb.mxu2 %v8077_v6  ;;  %v7704_v6 = vld [vmem:[#allocation10 + $0x38] sm:$0xf] }
 0x1f8   :  { %3641 = vmatpush.bf16.msra.mxu0 %v7721_v21  ;;  %3655 = vmatpush.bf16.msra.mxu1 %v7881_v22  ;;  %v7945_v21 = vor.u32 %v9975_v11, %v7944_v10  ;;  %v9999_v22 = vld [vmem:[#allocation10 + $0x2e8] sm:$0xf0]  ;;  %v2333_v11 = vpop.f32.mrf.mxu1 }
 0x1f9   :  { %v8037_v37 = vor.u32 %v9999_v22, %v8036_v56  ;;  %v2345_v2 = vpop.f32.mrf.mxu2  ;;  %v7844_v56 = vld [vmem:[#allocation10 + $0x150] sm:$0xf]  ;;  %v9950_v22 = vld [vmem:[#allocation10 + $0x160] sm:$0xf0]  ;;  %v2334_v45 = vadd.f32 %v2333_v11, %v2320_v16  ;;  %v8276_v11 = vld [vmem:[#allocation10 + $0x4b8] sm:$0xf] }
 0x1fa   :  { %3560 = vmatmul.bf16.vlgmr.msra.gmra.mxu2 %v10983_v19  ;;  %3570 = vmatpush.bf16.msra.mxu3 %v8213_v25  ;;  %v2332_v25 = vadd.f32 %v2331_v51, %v2318_v8  ;;  %v7845_v33 = vor.u32 %v9950_v22, %v7844_v56  ;;  %v8058_v51 = vld [vmem:[#allocation10 + $0x314] sm:$0xf0]  ;;  %v10020_v8 = vld [vmem:[#allocation10 + $0x390] sm:$0xf0]  ;;  %v10015_v56 = vld [vmem:[#allocation10 + $0x368] sm:$0xf0] }
 0x1fb   :  { %3612 = vmatpush.bf16.msrb.mxu2 %v8057_v17  ;;  %v7684_v17 = vld [vmem:[#allocation10 + $0x10] sm:$0xf]  ;;  %v8061_v57 = vor.u32 %v10002_v58, %v8058_v51  ;;  %v10054_v22 = vld [vmem:[#allocation10 + $0x4a0] sm:$0xf0]  ;;  %v10039_v58 = vld [vmem:[#allocation10 + $0x428] sm:$0xf0] }
 0x1fc   :  { %3642 = vmatpush.bf16.msra.mxu0 %v7701_v46  ;;  %3656 = vmatpush.bf16.msra.mxu1 %v7861_v48  ;;  %v7744_v46 = vld [vmem:[#allocation10 + $0x88] sm:$0xf]  ;;  %v9925_v48 = vld [vmem:[#allocation10 + $0x98] sm:$0xf0]  ;;  %v10010_v16 = vld [vmem:[#allocation10 + $0x340] sm:$0xf0] }
 0x1fd   :  { %v7745_v55 = vor.u32 %v9925_v48, %v7744_v46 }
 0x1fe   :  { %3571 = vmatpush.bf16.msra.mxu3 %v8193_v35 }
 0x1ff   :  { %3613 = vmatpush.bf16.msrb.mxu2 %v8037_v37  ;;  %v8101_v37 = vor.u32 %v10012_v47, %v8098_v23 }
 0x200   :  { %3643 = vmatpush.bf16.msra.mxu0 %v7681_v12  ;;  %3657 = vmatpush.bf16.msra.mxu1 %v7841_v62  ;;  %v7884_v12 = vld [vmem:[#allocation10 + $0x1a0] sm:$0xf]  ;;  %v8173_v62 = vor.u32 %v10031_v52, %v8170_v53  ;;  %v2387_v46 = vpop.f32.mrf.mxu1 }
 0x201   :  { %v7885_v27 = vor.u32 %v9960_v9, %v7884_v12  ;;  %v2347_v32 = vpop.f32.mrf.mxu2  ;;  %v9992_v9 = vld [vmem:[#allocation10 + $0x2b4] sm:$0xf] }
 0x202   :  { %3572 = vmatpush.bf16.msra.mxu3 %v8173_v62  ;;  %v2348_v39 = vadd.f32 %v2347_v32, %v2334_v45  ;;  %v10049_v32 = vld [vmem:[#allocation10 + $0x478] sm:$0xf0] }
 0x203   :  { %3644 = vmatmul.bf16.vlgmr.msra.gmra.mxu0 %v10972_v44  ;;  %3658 = vmatmul.bf16.vlgmr.msra.gmra.mxu1 %v10975_v24 }
 0x204   :  { %3692 = vmatpush.bf16.msrb.mxu0 %v7825_v34  ;;  %3706 = vmatpush.bf16.msrb.mxu1 %v7985_v29  ;;  %v8138_v34 = vld [vmem:[#allocation10 + $0x3b4] sm:$0xf0]  ;;  %v2359_v29 = vpop.f32.mrf.mxu3 }
 0x205   :  { %3614 = vmatpush.bf16.msrb.mxu2 %v8017_v54  ;;  %v8141_v5 = vor.u32 %v10022_v28, %v8138_v34  ;;  %v8018_v28 = vld [vmem:[#allocation10 + $0x2c4] sm:$0xf0] }
 0x206   :  { %3573 = vmatpush.bf16.msra.mxu3 %v8153_v63  ;;  %v8124_v63 = vld [vmem:[#allocation10 + $0x380] sm:$0xf] }
 0x208   :  { %3693 = vmatpush.bf16.msrb.mxu0 %v7805_v41  ;;  %3707 = vmatpush.bf16.msrb.mxu1 %v7965_v42  ;;  %v9915_v41 = vld [vmem:[#allocation10 + $0x48] sm:$0xf0]  ;;  %v2389_v34 = vpop.f32.mrf.mxu1 }
 0x209   :  { %v9955_v42 = vld [vmem:[#allocation10 + $0x188] sm:$0xf0]  ;;  %3615 = vmatpush.bf16.msrb.mxu2 %v7997_v60  ;;  %v7705_v10 = vor.u32 %v9915_v41, %v7704_v6  ;;  %v8144_v60 = vld [vmem:[#allocation10 + $0x3a8] sm:$0xf]  ;;  %v10064_v6 = vld [vmem:[#allocation10 + $0x4f0] sm:$0xf0]  ;;  %v8001_v41 = vor.u32 %v9987_v3, %v7998_v49 }
 0x20a   :  { %v7865_v13 = vor.u32 %v9955_v42, %v7864_v7  ;;  %v8258_v3 = vld [vmem:[#allocation10 + $0x4a4] sm:$0xf0] }
 0x20c   :  { %3694 = vmatpush.bf16.msrb.mxu0 %v7785_v20  ;;  %3708 = vmatpush.bf16.msrb.mxu1 %v7945_v21  ;;  %v9910_v20 = vld [vmem:[#allocation10 + $0x20] sm:$0xf0]  ;;  %v2373_v21 = vpop.f32.mrf.mxu0  ;;  %v2361_v0 = vpop.f32.mrf.mxu3 }
 0x20d   :  { %3664 = vmatpush.bf16.msra.mxu2 %v8141_v5  ;;  %v7685_v31 = vor.u32 %v9910_v20, %v7684_v17  ;;  %v2362_v59 = vadd.f32 %v2361_v0, %v2348_v39  ;;  %v8296_v5 = vld [vmem:[#allocation10 + $0x4e0] sm:$0xf]  ;;  %v8104_v20 = vld [vmem:[#allocation10 + $0x358] sm:$0xf] }
 0x20e   :  { %3616 = vmatmul.bf16.vlgmr.msrb.gmra.mxu2 %v10983_v19  ;;  %v8297_v18 = vor.u32 %v10064_v6, %v8296_v5  ;;  %v8105_v47 = vor.u32 %v10015_v56, %v8104_v20  ;;  %v8196_v39 = vld [vmem:[#allocation10 + $0x418] sm:$0xf]  ;;  %v8284_v20 = vld [vmem:[#allocation10 + $0x4c0] sm:$0xf]  ;;  %v10060_v56 = vld [vmem:[#allocation10 + $0x4d0] sm:$0xf0] }
 0x20f   :  { %v8218_v5 = vld [vmem:[#allocation10 + $0x454] sm:$0xf0] }
 0x210   :  { %3695 = vmatpush.bf16.msrb.mxu0 %v7765_v38  ;;  %3709 = vmatpush.bf16.msrb.mxu1 %v7925_v43  ;;  %v2346_v38 = vadd.f32 %v2345_v2, %v2332_v25  ;;  %v8078_v43 = vld [vmem:[#allocation10 + $0x33c] sm:$0xf0]  ;;  %v8084_v25 = vld [vmem:[#allocation10 + $0x330] sm:$0xf] }
 0x211   :  { %3665 = vmatpush.bf16.msra.mxu2 %v8121_v15  ;;  %v8081_v48 = vor.u32 %v10007_v40, %v8078_v43  ;;  %v8125_v15 = vor.u32 %v10020_v8, %v8124_v63  ;;  %v8085_v0 = vor.u32 %v10010_v16, %v8084_v25  ;;  %v8216_v40 = vld [vmem:[#allocation10 + $0x440] sm:$0xf]  ;;  %v10044_v43 = vld [vmem:[#allocation10 + $0x450] sm:$0xf0]  ;;  %v10027_v63 = vld [vmem:[#allocation10 + $0x3cc] sm:$0xf] }
 0x212   :  { %v2360_v35 = vadd.f32 %v2359_v29, %v2346_v38  ;;  %v8021_v29 = vor.u32 %v9992_v9, %v8018_v28  ;;  %v10005_v38 = vld [vmem:[#allocation10 + $0x318] sm:$0xf0]  ;;  %v8298_v9 = vld [vmem:[#allocation10 + $0x4f4] sm:$0xf0]  ;;  %v8158_v8 = vld [vmem:[#allocation10 + $0x3dc] sm:$0xf0] }
 0x213   :  { %v8244_v25 = vld [vmem:[#allocation10 + $0x470] sm:$0xf]  ;;  %v10050_v16 = vld [vmem:[#allocation10 + $0x480] sm:$0xf0] }
 0x214   :  { %3696 = vmatpush.bf16.msrb.mxu0 %v7745_v55  ;;  %3710 = vmatpush.bf16.msrb.mxu1 %v7905_v61  ;;  %v2374_v52 = vadd.f32 %v2373_v21, %v2360_v35  ;;  %v2375_v53 = vpop.f32.mrf.mxu0  ;;  %v9997_v61 = vld [vmem:[#allocation10 + $0x2dc] sm:$0xf]  ;;  %v8256_v21 = vld [vmem:[#allocation10 + $0x490] sm:$0xf]  ;;  %v10000_v35 = vld [vmem:[#allocation10 + $0x2f0] sm:$0xf0] }
 0x215   :  { %3666 = vmatpush.bf16.msra.mxu2 %v8101_v37  ;;  %v2376_v12 = vadd.f32 %v2375_v53, %v2362_v59  ;;  %v8041_v62 = vor.u32 %v9997_v61, %v8038_v14  ;;  %v8257_v23 = vor.u32 %v10054_v22, %v8256_v21  ;;  %v8064_v37 = vld [vmem:[#allocation10 + $0x308] sm:$0xf]  ;;  %v8024_v53 = vld [vmem:[#allocation10 + $0x2b8] sm:$0xf]  ;;  %v8004_v14 = vld [vmem:[#allocation10 + $0x290] sm:$0xf]  ;;  %v8285_v21 = vor.u32 %v10060_v56, %v8284_v20 }
 0x216   :  { %v2388_v36 = vadd.f32 %v2387_v46, %v2374_v52  ;;  %v8065_v45 = vor.u32 %v10005_v38, %v8064_v37  ;;  %v8217_v46 = vor.u32 %v10044_v43, %v8216_v40  ;;  %v8197_v52 = vor.u32 %v10039_v58, %v8196_v39  ;;  %v8264_v22 = vld [vmem:[#allocation10 + $0x498] sm:$0xf]  ;;  %v8204_v37 = vld [vmem:[#allocation10 + $0x420] sm:$0xf]  ;;  %v10040_v38 = vld [vmem:[#allocation10 + $0x430] sm:$0xf0] }
 0x217   :  { %v8205_v40 = vor.u32 %v10040_v38, %v8204_v37  ;;  %v8184_v43 = vld [vmem:[#allocation10 + $0x3f8] sm:$0xf]  ;;  %v8504_v39 = vld [vmem:[#allocation13 + $0x188] sm:$0xf]  ;;  %v10118_v58 = vld [vmem:[#allocation13 + $0x1a0] sm:$0xf0] }
 0x218   :  { %3697 = vmatpush.bf16.msrb.mxu0 %v7725_v4  ;;  %3711 = vmatpush.bf16.msrb.mxu1 %v7885_v27  ;;  %v2401_v54 = vpop.f32.mrf.mxu2  ;;  %v2415_v55 = vpop.f32.mrf.mxu3  ;;  %v10025_v4 = vld [vmem:[#allocation10 + $0x3b8] sm:$0xf0]  ;;  %v10083_v20 = vld [vmem:[#allocation13 + $0x88] sm:$0xf0] }
 0x219   :  { %3667 = vmatpush.bf16.msra.mxu2 %v8081_v48  ;;  %v2402_v50 = vadd.f32 %v2401_v54, %v2388_v36  ;;  %v8145_v30 = vor.u32 %v10025_v4, %v8144_v60  ;;  %v8044_v48 = vld [vmem:[#allocation10 + $0x2e0] sm:$0xf]  ;;  %v9995_v54 = vld [vmem:[#allocation10 + $0x2c8] sm:$0xf0]  ;;  %v9990_v36 = vld [vmem:[#allocation10 + $0x2a0] sm:$0xf0] }
 0x21a   :  { %v8045_v51 = vor.u32 %v10000_v35, %v8044_v48  ;;  %v8025_v59 = vor.u32 %v9995_v54, %v8024_v53  ;;  %v8005_v28 = vor.u32 %v9990_v36, %v8004_v14  ;;  %v8238_v60 = vld [vmem:[#allocation10 + $0x47c] sm:$0xf0]  ;;  %v8164_v48 = vld [vmem:[#allocation10 + $0x3d0] sm:$0xf]  ;;  %v10030_v35 = vld [vmem:[#allocation10 + $0x3e0] sm:$0xf0] }
 0x21b   :  { %v8728_v53 = vld [vmem:[#allocation13 + $0x348] sm:$0xf]  ;;  %v10174_v54 = vld [vmem:[#allocation13 + $0x360] sm:$0xf0]  ;;  %v10195_v37 = vld [vmem:[#allocation13 + $0x408] sm:$0xf0] }
 0x21c   :  { %3698 = vmatpush.bf16.msrb.mxu0 %v7705_v10  ;;  %3712 = vmatpush.bf16.msrb.mxu1 %v7865_v13  ;;  %v10059_v13 = vld [vmem:[#allocation10 + $0x4c8] sm:$0xf0] }
 0x21d   :  { %3668 = vmatpush.bf16.msra.mxu2 %v8061_v57  ;;  %v8277_v17 = vor.u32 %v10059_v13, %v8276_v11  ;;  %v10034_v57 = vld [vmem:[#allocation10 + $0x400] sm:$0xf0]  ;;  %v8304_v11 = vld [vmem:[#allocation10 + $0x4e8] sm:$0xf]  ;;  %v10065_v13 = vld [vmem:[#allocation10 + $0x4f8] sm:$0xf0] }
 0x21e   :  { %v10230_v36 = vld [vmem:[#allocation13 + $0x520] sm:$0xf0] }
 0x220   :  { %3699 = vmatpush.bf16.msrb.mxu0 %v7685_v31  ;;  %3713 = vmatpush.bf16.msrb.mxu1 %v7845_v33  ;;  %v2403_v2 = vpop.f32.mrf.mxu2  ;;  %v2417_v26 = vpop.f32.mrf.mxu3  ;;  %v8236_v31 = vld [vmem:[#allocation10 + $0x468] sm:$0xf] }
 0x221   :  { %3669 = vmatpush.bf16.msra.mxu2 %v8041_v62  ;;  %v8237_v33 = vor.u32 %v10049_v32, %v8236_v31  ;;  %v10029_v62 = vld [vmem:[#allocation10 + $0x3d8] sm:$0xf0]  ;;  %v8245_v31 = vor.u32 %v10050_v16, %v8244_v25  ;;  %v8224_v32 = vld [vmem:[#allocation10 + $0x448] sm:$0xf]  ;;  %v10139_v25 = vld [vmem:[#allocation13 + $0x248] sm:$0xf0] }
 0x223   :  { %3700 = vmatmul.bf16.vlgmr.msrb.gmra.mxu0 %v10972_v44  ;;  %3714 = vmatmul.bf16.vlgmr.msrb.gmra.mxu1 %v10975_v24  ;;  %v2390_v44 = vadd.f32 %v2389_v34, %v2376_v12  ;;  %v2416_v24 = vadd.f32 %v2415_v55, %v2402_v50  ;;  %v8176_v55 = vld [vmem:[#allocation10 + $0x3f0] sm:$0xf]  ;;  %v8156_v12 = vld [vmem:[#allocation10 + $0x3c8] sm:$0xf]  ;;  %v10062_v50 = vld [vmem:[#allocation10 + $0x4e4] sm:$0xf] }
 0x224   :  { %v8177_v61 = vor.u32 %v10034_v57, %v8176_v55  ;;  %v8157_v34 = vor.u32 %v10029_v62, %v8156_v12  ;;  %v8729_v55 = vor.u32 %v10174_v54, %v8728_v53  ;;  %v8476_v57 = vld [vmem:[#allocation13 + $0x150] sm:$0xf]  ;;  %v10167_v62 = vld [vmem:[#allocation13 + $0x328] sm:$0xf0]  ;;  %v10125_v53 = vld [vmem:[#allocation13 + $0x1d8] sm:$0xf0] }
 0x225   :  { %v2404_v1 = vadd.f32 %v2403_v2, %v2390_v44  ;;  %3670 = vmatpush.bf16.msra.mxu2 %v8021_v29  ;;  %v2423_v7 = vmax.f32 %v2416_v24, 0.0  ;;  %v8301_v44 = vor.u32 %v10062_v50, %v8298_v9  ;;  %v10057_v2 = vld [vmem:[#allocation10 + $0x4bc] sm:$0xf]  ;;  %v8278_v29 = vld [vmem:[#allocation10 + $0x4cc] sm:$0xf0] }
 0x226   :  { %v8281_v24 = vor.u32 %v10057_v2, %v8278_v29  ;;  %v8700_v12 = vld [vmem:[#allocation13 + $0x310] sm:$0xf]  ;;  %5553 = vmatpush.bf16.msra.mxu1 %v8729_v55  ;;  %v10223_v29 = vld [vmem:[#allocation13 + $0x4e8] sm:$0xf0] }
 0x227   :  { %v2418_v27 = vadd.f32 %v2417_v26, %v2404_v1  ;;  %v10052_v1 = vld [vmem:[#allocation10 + $0x494] sm:$0xf]  ;;  %v10047_v26 = vld [vmem:[#allocation10 + $0x46c] sm:$0xf]  ;;  %v8701_v9 = vor.u32 %v10167_v62, %v8700_v12  ;;  %v11004_v12 = vpop.f32.mrf.mxu0 }
 0x228   :  { %v8261_v49 = vor.u32 %v10052_v1, %v8258_v3  ;;  %v8241_v4 = vor.u32 %v10047_v26, %v8238_v60  ;;  %v10160_v1 = vld [vmem:[#allocation13 + $0x2f0] sm:$0xf0]  ;;  %v10097_v26 = vld [vmem:[#allocation13 + $0xf8] sm:$0xf0]  ;;  %v8896_v60 = vld [vmem:[#allocation13 + $0x498] sm:$0xf] }
 0x229   :  { %v2427_v42 = vmax.f32 %v2418_v27, 0.0  ;;  %3671 = vmatpush.bf16.msra.mxu2 %v8001_v41  ;;  %v10042_v27 = vld [vmem:[#allocation10 + $0x444] sm:$0xf]  ;;  %v10037_v41 = vld [vmem:[#allocation10 + $0x41c] sm:$0xf] }
 0x22a   :  { %v8221_v6 = vor.u32 %v10042_v27, %v8218_v5  ;;  %5554 = vmatpush.bf16.msra.mxu1 %v8701_v9  ;;  %v10115_v55 = vld [vmem:[#allocation13 + $0x18c] sm:$0xf] }
 0x22b   :  { %v10995_v10 = vpack.c.bf16 %v2427_v42, %v2423_v7  ;;  %v8198_v7 = vld [vmem:[#allocation10 + $0x42c] sm:$0xf0] }
 0x22c   :  { %3672 = vmatmul.bf16.vlgmr.msra.gmra.mxu2 %v10983_v19  ;;  %v8201_v42 = vor.u32 %v10037_v41, %v8198_v7  ;;  %v10153_v41 = vld [vmem:[#allocation13 + $0x2b8] sm:$0xf0]  ;;  %v10171_v9 = vld [vmem:[#allocation13 + $0x34c] sm:$0xf] }
 0x22d   :  { %3518 = vmatmul.bf16.vlgmr.msrb.gmra.mxu3 %v10995_v10  ;;  %3720 = vmatpush.bf16.msrb.mxu2 %v8145_v30  ;;  %v10032_v30 = vld [vmem:[#allocation10 + $0x3f4] sm:$0xf] }
 0x22e   :  { %3622 = vmatpush.bf16.msrb.mxu3 %v8297_v18 }
 0x231   :  { %3721 = vmatpush.bf16.msrb.mxu2 %v8125_v15  ;;  %v8161_v15 = vor.u32 %v10027_v63, %v8158_v8  ;;  %v8868_v63 = vld [vmem:[#allocation13 + $0x460] sm:$0xf]  ;;  %v10209_v8 = vld [vmem:[#allocation13 + $0x478] sm:$0xf0] }
 0x232   :  { %3623 = vmatpush.bf16.msrb.mxu3 %v8277_v17  ;;  %v8305_v17 = vor.u32 %v10065_v13, %v8304_v11  ;;  %v8616_v11 = vld [vmem:[#allocation13 + $0x268] sm:$0xf]  ;;  %v10146_v13 = vld [vmem:[#allocation13 + $0x280] sm:$0xf0] }
 0x235   :  { %3722 = vmatpush.bf16.msrb.mxu2 %v8105_v47  ;;  %v10055_v47 = vld [vmem:[#allocation10 + $0x4a8] sm:$0xf0] }
 0x236   :  { %3624 = vmatpush.bf16.msrb.mxu3 %v8257_v23  ;;  %v8265_v23 = vor.u32 %v10055_v47, %v8264_v22  ;;  %v10202_v22 = vld [vmem:[#allocation13 + $0x440] sm:$0xf0]  ;;  %v8588_v47 = vld [vmem:[#allocation13 + $0x230] sm:$0xf] }
 0x237   :  { %v8589_v16 = vor.u32 %v10139_v25, %v8588_v47  ;;  %v10150_v47 = vld [vmem:[#allocation13 + $0x2a4] sm:$0xf] }
 0x239   :  { %3723 = vmatpush.bf16.msrb.mxu2 %v8085_v0  ;;  %v10045_v0 = vld [vmem:[#allocation10 + $0x458] sm:$0xf0] }
 0x23a   :  { %3625 = vmatpush.bf16.msrb.mxu3 %v8237_v33  ;;  %v8225_v33 = vor.u32 %v10045_v0, %v8224_v32  ;;  %v10076_v32 = vld [vmem:[#allocation13 + $0x50] sm:$0xf0] }
 0x23d   :  { %3574 = vmatmul.bf16.vlgmr.msra.gmra.mxu3 %v10995_v10  ;;  %3724 = vmatpush.bf16.msrb.mxu2 %v8065_v45  ;;  %v10035_v45 = vld [vmem:[#allocation10 + $0x408] sm:$0xf0] }
 0x23e   :  { %3626 = vmatpush.bf16.msrb.mxu3 %v8217_v46  ;;  %v8185_v46 = vor.u32 %v10035_v45, %v8184_v43  ;;  %v10132_v43 = vld [vmem:[#allocation13 + $0x210] sm:$0xf0] }
 0x241   :  { %3725 = vmatpush.bf16.msrb.mxu2 %v8045_v51  ;;  %v8505_v51 = vor.u32 %v10118_v58, %v8504_v39  ;;  %v8784_v39 = vld [vmem:[#allocation13 + $0x3b8] sm:$0xf]  ;;  %v10188_v58 = vld [vmem:[#allocation13 + $0x3d0] sm:$0xf0] }
 0x242   :  { %3627 = vmatpush.bf16.msrb.mxu3 %v8197_v52  ;;  %v8165_v52 = vor.u32 %v10030_v35, %v8164_v48  ;;  %v10069_v48 = vld [vmem:[#allocation13 + $0x18] sm:$0xf0] }
 0x243   :  { %5539 = vmatpush.bf16.msra.mxu0 %v8505_v51  ;;  %v8785_v51 = vor.u32 %v10188_v58, %v8784_v39  ;;  %v10080_v58 = vld [vmem:[#allocation13 + $0x74] sm:$0xf] }
 0x245   :  { %3726 = vmatpush.bf16.msrb.mxu2 %v8025_v59  ;;  %v10111_v59 = vld [vmem:[#allocation13 + $0x168] sm:$0xf0] }
 0x246   :  { %3628 = vmatpush.bf16.msrb.mxu3 %v8177_v61  ;;  %v8952_v61 = vld [vmem:[#allocation13 + $0x508] sm:$0xf]  ;;  %v8477_v14 = vor.u32 %v10111_v59, %v8476_v57 }
 0x247   :  { %v8953_v50 = vor.u32 %v10230_v36, %v8952_v61  ;;  %v8506_v57 = vld [vmem:[#allocation13 + $0x1a4] sm:$0xf0]  ;;  %v8756_v61 = vld [vmem:[#allocation13 + $0x380] sm:$0xf] }
 0x248   :  { %5540 = vmatpush.bf16.msra.mxu0 %v8477_v14  ;;  %v8509_v59 = vor.u32 %v10115_v55, %v8506_v57  ;;  %v10181_v14 = vld [vmem:[#allocation13 + $0x398] sm:$0xf0]  ;;  %v9176_v36 = vld [vmem:[#allocation13 + $0x6c8] sm:$0xf]  ;;  %v9036_v55 = vld [vmem:[#allocation13 + $0x5b0] sm:$0xf] }
 0x249   :  { %3727 = vmatpush.bf16.msrb.mxu2 %v8005_v28  ;;  %v8448_v28 = vld [vmem:[#allocation13 + $0x118] sm:$0xf]  ;;  %v8757_v62 = vor.u32 %v10181_v14, %v8756_v61  ;;  %v10251_v57 = vld [vmem:[#allocation13 + $0x5c8] sm:$0xf0]  ;;  %v10136_v61 = vld [vmem:[#allocation13 + $0x234] sm:$0xf] }
 0x24a   :  { %3629 = vmatpush.bf16.msrb.mxu3 %v8157_v34  ;;  %v10104_v34 = vld [vmem:[#allocation13 + $0x130] sm:$0xf0]  ;;  %v8590_v14 = vld [vmem:[#allocation13 + $0x24c] sm:$0xf0] }
 0x24b   :  { %v8449_v2 = vor.u32 %v10104_v34, %v8448_v28  ;;  %v8730_v28 = vld [vmem:[#allocation13 + $0x364] sm:$0xf0] }
 0x24c   :  { %3728 = vmatmul.bf16.vlgmr.msrb.gmra.mxu2 %v10983_v19  ;;  %v8178_v19 = vld [vmem:[#allocation10 + $0x404] sm:$0xf0] }
 0x24d   :  { %3630 = vmatmul.bf16.vlgmr.msrb.gmra.mxu3 %v10995_v10  ;;  %v8181_v18 = vor.u32 %v10032_v30, %v8178_v19  ;;  %5567 = vmatpush.bf16.msra.mxu2 %v8953_v50  ;;  %v8392_v30 = vld [vmem:[#allocation13 + $0xa8] sm:$0xf]  ;;  %v10090_v19 = vld [vmem:[#allocation13 + $0xc0] sm:$0xf0] }
 0x24e   :  { %3678 = vmatpush.bf16.msra.mxu3 %v8301_v44  ;;  %v8924_v44 = vld [vmem:[#allocation13 + $0x4d0] sm:$0xf]  ;;  %5541 = vmatpush.bf16.msra.mxu0 %v8449_v2  ;;  %v10286_v50 = vld [vmem:[#allocation13 + $0x6e0] sm:$0xf0] }
 0x24f   :  { %v8925_v3 = vor.u32 %v10223_v29, %v8924_v44  ;;  %v9177_v34 = vor.u32 %v10286_v50, %v9176_v36  ;;  %v8733_v44 = vor.u32 %v10171_v9, %v8730_v28  ;;  %v10108_v29 = vld [vmem:[#allocation13 + $0x154] sm:$0xf]  ;;  %v10073_v9 = vld [vmem:[#allocation13 + $0x3c] sm:$0xf]  ;;  %v8338_v28 = vld [vmem:[#allocation13 + $0x54] sm:$0xf0] }
 0x251   :  { %5568 = vmatpush.bf16.msra.mxu2 %v8925_v3  ;;  %v9148_v3 = vld [vmem:[#allocation13 + $0x690] sm:$0xf] }
 0x252   :  { %3679 = vmatpush.bf16.msra.mxu3 %v8281_v24  ;;  %v8672_v24 = vld [vmem:[#allocation13 + $0x2d8] sm:$0xf] }
 0x253   :  { %v8673_v27 = vor.u32 %v10160_v1, %v8672_v24  ;;  %v8478_v24 = vld [vmem:[#allocation13 + $0x16c] sm:$0xf0] }
 0x254   :  { %v8481_v1 = vor.u32 %v10108_v29, %v8478_v24  ;;  %v8341_v29 = vor.u32 %v10073_v9, %v8338_v28  ;;  %v9008_v24 = vld [vmem:[#allocation13 + $0x578] sm:$0xf]  ;;  %v10339_v9 = vld [vmem:[#allocation13 + $0x88c] sm:$0xf]  ;;  %v9402_v28 = vld [vmem:[#allocation13 + $0x8a4] sm:$0xf0] }
 0x255   :  { %5555 = vmatpush.bf16.msra.mxu1 %v8673_v27  ;;  %v8702_v27 = vld [vmem:[#allocation13 + $0x32c] sm:$0xf0] }
 0x256   :  { %3680 = vmatpush.bf16.msra.mxu3 %v8261_v49  ;;  %v8420_v49 = vld [vmem:[#allocation13 + $0xe0] sm:$0xf] }
 0x257   :  { %v8421_v5 = vor.u32 %v10097_v26, %v8420_v49  ;;  %v10279_v49 = vld [vmem:[#allocation13 + $0x6a8] sm:$0xf0]  ;;  %v10164_v26 = vld [vmem:[#allocation13 + $0x314] sm:$0xf] }
 0x259   :  { %5542 = vmatpush.bf16.msra.mxu0 %v8421_v5  ;;  %v8705_v5 = vor.u32 %v10164_v26, %v8702_v27 }
 0x25a   :  { %3681 = vmatpush.bf16.msra.mxu3 %v8241_v4  ;;  %v10216_v4 = vld [vmem:[#allocation13 + $0x4b0] sm:$0xf0] }
 0x25b   :  { %v8897_v7 = vor.u32 %v10216_v4, %v8896_v60  ;;  %v3491_v60 = vpop.f32.mrf.mxu1  ;;  %v9149_v4 = vor.u32 %v10279_v49, %v9148_v3 }
 0x25d   :  { %5569 = vmatpush.bf16.msra.mxu2 %v8897_v7 }
 0x25e   :  { %3682 = vmatpush.bf16.msra.mxu3 %v8221_v6  ;;  %v8644_v6 = vld [vmem:[#allocation13 + $0x2a0] sm:$0xf] }
 0x262   :  { %3683 = vmatpush.bf16.msra.mxu3 %v8201_v42  ;;  %v8645_v42 = vor.u32 %v10153_v41, %v8644_v6  ;;  %v10101_v6 = vld [vmem:[#allocation13 + $0x11c] sm:$0xf]  ;;  %v8450_v41 = vld [vmem:[#allocation13 + $0x134] sm:$0xf0] }
 0x263   :  { %v8453_v7 = vor.u32 %v10101_v6, %v8450_v41  ;;  %v10066_v6 = vld [vmem:[#allocation13 + $0x4] sm:$0xf]  ;;  %v8310_v41 = vld [vmem:[#allocation13 + $0x1c] sm:$0xf0] }
 0x264   :  { %5556 = vmatpush.bf16.msra.mxu1 %v8645_v42  ;;  %v9120_v42 = vld [vmem:[#allocation13 + $0x658] sm:$0xf] }
 0x266   :  { %3684 = vmatpush.bf16.msra.mxu3 %v8181_v18  ;;  %v8393_v18 = vor.u32 %v10090_v19, %v8392_v30  ;;  %v10272_v30 = vld [vmem:[#allocation13 + $0x670] sm:$0xf0] }
 0x267   :  { %v9121_v19 = vor.u32 %v10272_v30, %v9120_v42  ;;  %v8313_v30 = vor.u32 %v10066_v6, %v8310_v41  ;;  %v9374_v6 = vld [vmem:[#allocation13 + $0x86c] sm:$0xf0] }
 0x268   :  { %5543 = vmatpush.bf16.msra.mxu0 %v8393_v18  ;;  %v10157_v18 = vld [vmem:[#allocation13 + $0x2dc] sm:$0xf] }
 0x26a   :  { %3685 = vmatpush.bf16.msra.mxu3 %v8161_v15  ;;  %v8617_v15 = vor.u32 %v10146_v13, %v8616_v11  ;;  %v3479_v11 = vpop.f32.mrf.mxu0  ;;  %v10094_v13 = vld [vmem:[#allocation13 + $0xe4] sm:$0xf] }
 0x26c   :  { %5557 = vmatpush.bf16.msra.mxu1 %v8617_v15  ;;  %v8422_v15 = vld [vmem:[#allocation13 + $0xfc] sm:$0xf0] }
 0x26d   :  { %3686 = vmatmul.bf16.vlgmr.msra.gmra.mxu3 %v10995_v10  ;;  %v11006_v2 = vpop.f32.mrf.mxu2 }
 0x26e   :  { %3734 = vmatpush.bf16.msrb.mxu3 %v8305_v17  ;;  %v8364_v17 = vld [vmem:[#allocation13 + $0x70] sm:$0xf] }
 0x26f   :  { %v8365_v56 = vor.u32 %v10083_v20, %v8364_v17  ;;  %v8425_v17 = vor.u32 %v10094_v13, %v8422_v15  ;;  %v9092_v20 = vld [vmem:[#allocation13 + $0x620] sm:$0xf]  ;;  %v10342_v13 = vld [vmem:[#allocation13 + $0x8a0] sm:$0xf0] }
 0x270   :  { %5558 = vmatpush.bf16.msra.mxu1 %v8589_v16  ;;  %v10122_v15 = vld [vmem:[#allocation13 + $0x1c4] sm:$0xf] }
 0x271   :  { %5544 = vmatpush.bf16.msra.mxu0 %v8365_v56  ;;  %v10265_v56 = vld [vmem:[#allocation13 + $0x638] sm:$0xf0] }
 0x272   :  { %3735 = vmatpush.bf16.msrb.mxu3 %v8285_v21  ;;  %v8840_v21 = vld [vmem:[#allocation13 + $0x428] sm:$0xf]  ;;  %v11012_v39 = vpop.f32.mrf.mxu0 }
 0x276   :  { %3736 = vmatpush.bf16.msrb.mxu3 %v8265_v23  ;;  %v8841_v23 = vor.u32 %v10202_v22, %v8840_v21  ;;  %v3507_v21 = vpop.f32.mrf.mxu2  ;;  %v9093_v22 = vor.u32 %v10265_v56, %v9092_v20  ;;  %v8534_v56 = vld [vmem:[#allocation13 + $0x1dc] sm:$0xf0] }
 0x27a   :  { %3737 = vmatpush.bf16.msrb.mxu3 %v8245_v31  ;;  %v8336_v31 = vld [vmem:[#allocation13 + $0x38] sm:$0xf] }
 0x27b   :  { %v8337_v0 = vor.u32 %v10076_v32, %v8336_v31  ;;  %v3493_v31 = vpop.f32.mrf.mxu1  ;;  %v10087_v32 = vld [vmem:[#allocation13 + $0xac] sm:$0xf] }
 0x27d   :  { %5545 = vmatpush.bf16.msra.mxu0 %v8337_v0  ;;  %v8394_v0 = vld [vmem:[#allocation13 + $0xc4] sm:$0xf0] }
 0x27e   :  { %3738 = vmatpush.bf16.msrb.mxu3 %v8225_v33  ;;  %v8812_v33 = vld [vmem:[#allocation13 + $0x3f0] sm:$0xf]  ;;  %v11015_v50 = vpop.f32.mrf.mxu2 }
 0x27f   :  { %v8813_v38 = vor.u32 %v10195_v37, %v8812_v33  ;;  %v8397_v33 = vor.u32 %v10087_v32, %v8394_v0  ;;  %v9064_v37 = vld [vmem:[#allocation13 + $0x5e8] sm:$0xf]  ;;  %v10335_v32 = vld [vmem:[#allocation13 + $0x868] sm:$0xf0]  ;;  %v10220_v0 = vld [vmem:[#allocation13 + $0x4d4] sm:$0xf] }
 0x282   :  { %3739 = vmatpush.bf16.msrb.mxu3 %v8205_v40  ;;  %v8560_v40 = vld [vmem:[#allocation13 + $0x1f8] sm:$0xf] }
 0x283   :  { %v8561_v45 = vor.u32 %v10132_v43, %v8560_v40  ;;  %v3547_v3 = vpop.f32.mrf.mxu1 }
 0x285   :  { %5559 = vmatpush.bf16.msra.mxu1 %v8561_v45  ;;  %v10143_v45 = vld [vmem:[#allocation13 + $0x26c] sm:$0xf] }
 0x286   :  { %3740 = vmatpush.bf16.msrb.mxu3 %v8185_v46  ;;  %v8308_v46 = vld [vmem:[#allocation13] sm:$0xf] }
 0x287   :  { %v8309_v35 = vor.u32 %v10069_v48, %v8308_v46  ;;  %v8618_v46 = vld [vmem:[#allocation13 + $0x284] sm:$0xf0] }
 0x289   :  { %5546 = vmatpush.bf16.msra.mxu0 %v8309_v35  ;;  %v8621_v35 = vor.u32 %v10143_v45, %v8618_v46 }
 0x28a   :  { %3741 = vmatpush.bf16.msrb.mxu3 %v8165_v52  ;;  %v8532_v52 = vld [vmem:[#allocation13 + $0x1c0] sm:$0xf] }
 0x28b   :  { %v8533_v54 = vor.u32 %v10125_v53, %v8532_v52 }
 0x28d   :  { %3742 = vmatmul.bf16.vlgmr.msrb.gmra.mxu3 %v10995_v10  ;;  %v8869_v10 = vor.u32 %v10209_v8, %v8868_v63  ;;  %5560 = vmatpush.bf16.msra.mxu1 %v8533_v54  ;;  %v8674_v63 = vld [vmem:[#allocation13 + $0x2f4] sm:$0xf0] }
 0x28e   :  { %5581 = vmatpush.bf16.msra.mxu3 %v9177_v34  ;;  %v8677_v8 = vor.u32 %v10157_v18, %v8674_v63  ;;  %v10237_v18 = vld [vmem:[#allocation13 + $0x558] sm:$0xf0]  ;;  %v3535_v63 = vpop.f32.mrf.mxu0 }
 0x28f   :  { %5570 = vmatpush.bf16.msra.mxu2 %v8869_v10  ;;  %v11008_v10 = vld [vmem:[#allocation11] sm:$0x1f] }
 0x290   :  { %v2626_v25 = vperm.slane %v11008_v10, 0 }
 0x291   :  { %5609 = vmatpush.bf16.msrb.mxu1 %v8509_v59  ;;  %v9037_v59 = vor.u32 %v10251_v57, %v9036_v55  ;;  %v8898_v55 = vld [vmem:[#allocation13 + $0x4b4] sm:$0xf0] }
 0x292   :  { %5582 = vmatpush.bf16.msra.mxu3 %v9149_v4  ;;  %v3478_v48 = vadd.f32 %v11004_v12, %v2626_v25  ;;  %v3480_v52 = vadd.f32 %v3479_v11, %v2626_v25  ;;  %v8593_v12 = vor.u32 %v10136_v61, %v8590_v14  ;;  %v8562_v4 = vld [vmem:[#allocation13 + $0x214] sm:$0xf0]  ;;  %v9400_v11 = vld [vmem:[#allocation13 + $0x888] sm:$0xf]  ;;  %v3563_v25 = vpop.f32.mrf.mxu2  ;;  %v9316_v14 = vld [vmem:[#allocation13 + $0x7e0] sm:$0xf] }
 0x293   :  { %5571 = vmatpush.bf16.msra.mxu2 %v8841_v23  ;;  %v8646_v23 = vld [vmem:[#allocation13 + $0x2bc] sm:$0xf0]  ;;  %v9401_v20 = vor.u32 %v10342_v13, %v9400_v11  ;;  %v10307_v11 = vld [vmem:[#allocation13 + $0x788] sm:$0xf0]  ;;  %v10192_v13 = vld [vmem:[#allocation13 + $0x3f4] sm:$0xf] }
 0x294   :  { %v8649_v16 = vor.u32 %v10150_v47, %v8646_v23  ;;  %v3492_v53 = vadd.f32 %v3491_v60, %v3478_v48  ;;  %v3494_v36 = vadd.f32 %v3493_v31, %v3480_v52  ;;  %v10129_v60 = vld [vmem:[#allocation13 + $0x1fc] sm:$0xf]  ;;  %v8537_v47 = vor.u32 %v10122_v15, %v8534_v56  ;;  %v9372_v31 = vld [vmem:[#allocation13 + $0x850] sm:$0xf]  ;;  %v9346_v56 = vld [vmem:[#allocation13 + $0x834] sm:$0xf0] }
 0x295   :  { %5610 = vmatpush.bf16.msrb.mxu1 %v8481_v1  ;;  %v10244_v1 = vld [vmem:[#allocation13 + $0x590] sm:$0xf0]  ;;  %5595 = vmatpush.bf16.msrb.mxu0 %v9401_v20  ;;  %v10325_v20 = vld [vmem:[#allocation13 + $0x81c] sm:$0xf] }
 0x296   :  { %5583 = vmatpush.bf16.msra.mxu3 %v9121_v19  ;;  %v3508_v34 = vadd.f32 %v3507_v21, %v3494_v36  ;;  %v9009_v26 = vor.u32 %v10244_v1, %v9008_v24  ;;  %v8980_v19 = vld [vmem:[#allocation13 + $0x540] sm:$0xf]  ;;  %v10227_v21 = vld [vmem:[#allocation13 + $0x50c] sm:$0xf]  ;;  %v3589_v48 = vpop.f32.mrf.mxu0  ;;  %v10321_v36 = vld [vmem:[#allocation13 + $0x7f8] sm:$0xf0] }
 0x297   :  { %5572 = vmatpush.bf16.msra.mxu2 %v8813_v38  ;;  %v10258_v38 = vld [vmem:[#allocation13 + $0x600] sm:$0xf0]  ;;  %v2628_v1 = vperm.slane %v11008_v10, 2 }
 0x298   :  { %v9065_v43 = vor.u32 %v10258_v38, %v9064_v37  ;;  %v9373_v37 = vor.u32 %v10335_v32, %v9372_v31  ;;  %v8926_v38 = vld [vmem:[#allocation13 + $0x4ec] sm:$0xf0]  ;;  %v9349_v31 = vor.u32 %v10325_v20, %v9346_v56  ;;  %v9232_v32 = vld [vmem:[#allocation13 + $0x738] sm:$0xf]  ;;  %v10098_v20 = vld [vmem:[#allocation13 + $0x100] sm:$0xf0] }
 0x299   :  { %5611 = vmatpush.bf16.msrb.mxu1 %v8453_v7 }
 0x29a   :  { %5584 = vmatpush.bf16.msra.mxu3 %v9093_v22  ;;  %v8954_v22 = vld [vmem:[#allocation13 + $0x524] sm:$0xf0]  ;;  %5596 = vmatpush.bf16.msrb.mxu0 %v9373_v37  ;;  %v3617_v24 = vpop.f32.mrf.mxu2 }
 0x29b   :  { %5573 = vmatpush.bf16.msra.mxu2 %v8785_v51  ;;  %v8366_v51 = vld [vmem:[#allocation13 + $0x8c] sm:$0xf0]  ;;  %v8957_v23 = vor.u32 %v10227_v21, %v8954_v22 }
 0x29c   :  { %v8369_v54 = vor.u32 %v10080_v58, %v8366_v51  ;;  %v10328_v58 = vld [vmem:[#allocation13 + $0x830] sm:$0xf0]  ;;  %v10213_v51 = vld [vmem:[#allocation13 + $0x49c] sm:$0xf]  ;;  %v8814_v22 = vld [vmem:[#allocation13 + $0x40c] sm:$0xf0] }
 0x29d   :  { %5612 = vmatpush.bf16.msrb.mxu1 %v8425_v17  ;;  %v8901_v57 = vor.u32 %v10213_v51, %v8898_v55  ;;  %v8512_v51 = vld [vmem:[#allocation13 + $0x190] sm:$0xf]  ;;  %v9204_v55 = vld [vmem:[#allocation13 + $0x700] sm:$0xf] }
 0x29e   :  { %5585 = vmatpush.bf16.msra.mxu3 %v9065_v43  ;;  %v8929_v43 = vor.u32 %v10220_v0, %v8926_v38  ;;  %v10300_v0 = vld [vmem:[#allocation13 + $0x750] sm:$0xf0] }
 0x29f   :  { %5574 = vmatpush.bf16.msra.mxu2 %v8757_v62  ;;  %v3506_v62 = vadd.f32 %v11006_v2, %v3492_v53  ;;  %v8565_v2 = vor.u32 %v10129_v60, %v8562_v4  ;;  %v9288_v60 = vld [vmem:[#allocation13 + $0x7a8] sm:$0xf]  ;;  %v10314_v4 = vld [vmem:[#allocation13 + $0x7c0] sm:$0xf0] }
 0x2a0   :  { %v9289_v41 = vor.u32 %v10314_v4, %v9288_v60  ;;  %v9262_v60 = vld [vmem:[#allocation13 + $0x78c] sm:$0xf0]  ;;  %v10276_v4 = vld [vmem:[#allocation13 + $0x694] sm:$0xf] }
 0x2a1   :  { %5613 = vmatpush.bf16.msrb.mxu1 %v8397_v33 }
 0x2a2   :  { %5586 = vmatpush.bf16.msra.mxu3 %v9037_v59 }
 0x2a3   :  { %5623 = vmatpush.bf16.msrb.mxu2 %v8733_v44 }
 0x2a5   :  { %5614 = vmatpush.bf16.msrb.mxu1 %v8369_v54 }
 0x2a6   :  { %5587 = vmatpush.bf16.msra.mxu3 %v9009_v26  ;;  %v9405_v26 = vor.u32 %v10339_v9, %v9402_v28  ;;  %v10283_v9 = vld [vmem:[#allocation13 + $0x6cc] sm:$0xf]  ;;  %v9178_v28 = vld [vmem:[#allocation13 + $0x6e4] sm:$0xf0] }
 0x2a7   :  { %5624 = vmatpush.bf16.msrb.mxu2 %v8705_v5  ;;  %v2627_v5 = vperm.slane %v11008_v10, 1 }
 0x2a9   :  { %5615 = vmatpush.bf16.msrb.mxu1 %v8341_v29  ;;  %v3534_v33 = vadd.f32 %v11012_v39, %v2627_v5  ;;  %v3536_v46 = vadd.f32 %v3535_v63, %v2627_v5  ;;  %v10332_v5 = vld [vmem:[#allocation13 + $0x854] sm:$0xf] }
 0x2aa   :  { %v9377_v63 = vor.u32 %v10332_v5, %v9374_v6 }
 0x2ab   :  { %5625 = vmatpush.bf16.msrb.mxu2 %v8677_v8  ;;  %v8981_v8 = vor.u32 %v10237_v18, %v8980_v19  ;;  %v3548_v45 = vadd.f32 %v3547_v3, %v3534_v33  ;;  %v3590_v19 = vadd.f32 %v3589_v48, %v2628_v1  ;;  %v10185_v33 = vld [vmem:[#allocation13 + $0x3bc] sm:$0xf] }
 0x2ad   :  { %5616 = vmatpush.bf16.msrb.mxu1 %v8313_v30  ;;  %5588 = vmatpush.bf16.msra.mxu3 %v8981_v8  ;;  %v3562_v53 = vadd.f32 %v11015_v50, %v3548_v45  ;;  %v9260_v8 = vld [vmem:[#allocation13 + $0x770] sm:$0xf]  ;;  %v9233_v45 = vor.u32 %v10300_v0, %v9232_v32 }
 0x2ae   :  { %v9261_v21 = vor.u32 %v10307_v11, %v9260_v8  ;;  %v9122_v8 = vld [vmem:[#allocation13 + $0x674] sm:$0xf0] }
 0x2af   :  { %5626 = vmatpush.bf16.msrb.mxu2 %v8649_v16 }
 0x2b0   :  { %v3519_v40 = vpop.f32.mrf.mxu3 }
 0x2b1   :  { %v3520_v44 = vadd.f32 %v3519_v40, %v3506_v62  ;;  %5637 = vmatpush.bf16.msrb.mxu3 %v8957_v23  ;;  %v3549_v40 = vpop.f32.mrf.mxu1  ;;  %v10206_v62 = vld [vmem:[#allocation13 + $0x464] sm:$0xf] }
 0x2b2   :  { %v3550_v52 = vadd.f32 %v3549_v40, %v3536_v46  ;;  %v10318_v40 = vld [vmem:[#allocation13 + $0x7e4] sm:$0xf]  ;;  %v8786_v46 = vld [vmem:[#allocation13 + $0x3d4] sm:$0xf0] }
 0x2b3   :  { %5627 = vmatpush.bf16.msrb.mxu2 %v8621_v35  ;;  %v3748_v7 = vmax.f32 %v3520_v44, 0.0  ;;  %v9344_v35 = vld [vmem:[#allocation13 + $0x818] sm:$0xf]  ;;  %v8870_v44 = vld [vmem:[#allocation13 + $0x47c] sm:$0xf0]  ;;  %v8789_v48 = vor.u32 %v10185_v33, %v8786_v46  ;;  %v2629_v33 = vperm.slane %v11008_v10, 3 }
 0x2b4   :  { %v9345_v54 = vor.u32 %v10328_v58, %v9344_v35  ;;  %v3564_v39 = vadd.f32 %v3563_v25, %v3550_v52  ;;  %v8873_v50 = vor.u32 %v10206_v62, %v8870_v44  ;;  %v10119_v52 = vld [vmem:[#allocation13 + $0x1a8] sm:$0xf0]  ;;  %v8758_v62 = vld [vmem:[#allocation13 + $0x39c] sm:$0xf0]  ;;  %v9156_v46 = vld [vmem:[#allocation13 + $0x698] sm:$0xf] }
 0x2b5   :  { %5638 = vmatpush.bf16.msrb.mxu3 %v8929_v43  ;;  %v9318_v43 = vld [vmem:[#allocation13 + $0x7fc] sm:$0xf0] }
 0x2b6   :  { %5597 = vmatpush.bf16.msrb.mxu0 %v9345_v54  ;;  %v9321_v54 = vor.u32 %v10318_v40, %v9318_v43  ;;  %v8400_v40 = vld [vmem:[#allocation13 + $0xb0] sm:$0xf]  ;;  %v10091_v43 = vld [vmem:[#allocation13 + $0xc8] sm:$0xf0] }
 0x2b7   :  { %5628 = vmatpush.bf16.msrb.mxu2 %v8593_v12 }
 0x2b8   :  { %v3521_v49 = vpop.f32.mrf.mxu3 }
 0x2b9   :  { %v3522_v27 = vadd.f32 %v3521_v49, %v3508_v34  ;;  %5639 = vmatpush.bf16.msrb.mxu3 %v8901_v57  ;;  %v9317_v34 = vor.u32 %v10321_v36, %v9316_v14  ;;  %v3603_v29 = vpop.f32.mrf.mxu1  ;;  %v10293_v57 = vld [vmem:[#allocation13 + $0x718] sm:$0xf0]  ;;  %v9290_v14 = vld [vmem:[#allocation13 + $0x7c4] sm:$0xf0] }
 0x2ba   :  { %v3604_v23 = vadd.f32 %v3603_v29, %v3590_v19  ;;  %v9205_v36 = vor.u32 %v10293_v57, %v9204_v55  ;;  %v9181_v29 = vor.u32 %v10283_v9, %v9178_v28  ;;  %v8372_v55 = vld [vmem:[#allocation13 + $0x78] sm:$0xf] }
 0x2bb   :  { %v3753_v42 = vmax.f32 %v3522_v27, 0.0  ;;  %5629 = vmatpush.bf16.msrb.mxu2 %v8565_v2  ;;  %5598 = vmatpush.bf16.msrb.mxu0 %v9317_v34  ;;  %v10199_v27 = vld [vmem:[#allocation13 + $0x42c] sm:$0xf] }
 0x2bc   :  { %v3618_v38 = vadd.f32 %v3617_v24, %v3604_v23  ;;  %v8513_v24 = vor.u32 %v10119_v52, %v8512_v51  ;;  %v9094_v23 = vld [vmem:[#allocation13 + $0x63c] sm:$0xf0] }
 0x2bd   :  { %v11018_v17 = vpack.c.bf16 %v3753_v42, %v3748_v7  ;;  %5640 = vmatpush.bf16.msrb.mxu3 %v8873_v50  ;;  %v8842_v7 = vld [vmem:[#allocation13 + $0x444] sm:$0xf0]  ;;  %v3591_v42 = vpop.f32.mrf.mxu0  ;;  %v8484_v50 = vld [vmem:[#allocation13 + $0x158] sm:$0xf] }
 0x2be   :  { %v8845_v30 = vor.u32 %v10199_v27, %v8842_v7  ;;  %v3592_v15 = vadd.f32 %v3591_v42, %v2628_v1  ;;  %v10112_v1 = vld [vmem:[#allocation13 + $0x170] sm:$0xf0]  ;;  %v9150_v27 = vld [vmem:[#allocation13 + $0x6ac] sm:$0xf0]  ;;  %v10105_v7 = vld [vmem:[#allocation13 + $0x138] sm:$0xf0] }
 0x2bf   :  { %5547 = vmatmul.bf16.vlgmr.msra.gmra.mxu0 %v11018_v17  ;;  %5630 = vmatpush.bf16.msrb.mxu2 %v8537_v47  ;;  %v8817_v47 = vor.u32 %v10192_v13, %v8814_v22  ;;  %v9153_v5 = vor.u32 %v10276_v4, %v9150_v27  ;;  %v8485_v6 = vor.u32 %v10112_v1, %v8484_v50  ;;  %v9206_v22 = vld [vmem:[#allocation13 + $0x71c] sm:$0xf0]  ;;  %v10077_v50 = vld [vmem:[#allocation13 + $0x58] sm:$0xf0]  ;;  %v10266_v4 = vld [vmem:[#allocation13 + $0x640] sm:$0xf0] }
 0x2c0   :  { %v3575_v16 = vpop.f32.mrf.mxu3  ;;  %5599 = vmatpush.bf16.msrb.mxu0 %v9289_v41  ;;  %v8456_v41 = vld [vmem:[#allocation13 + $0x120] sm:$0xf]  ;;  %v10241_v27 = vld [vmem:[#allocation13 + $0x57c] sm:$0xf] }
 0x2c1   :  { %v3576_v59 = vadd.f32 %v3575_v16, %v3562_v53  ;;  %5641 = vmatpush.bf16.msrb.mxu3 %v8845_v30  ;;  %v3605_v25 = vpop.f32.mrf.mxu1  ;;  %v3619_v16 = vpop.f32.mrf.mxu2  ;;  %v10297_v30 = vld [vmem:[#allocation13 + $0x73c] sm:$0xf]  ;;  %v8457_v13 = vor.u32 %v10105_v7, %v8456_v41 }
 0x2c2   :  { %v3606_v37 = vadd.f32 %v3605_v25, %v3592_v15  ;;  %v8428_v15 = vld [vmem:[#allocation13 + $0xe8] sm:$0xf]  ;;  %v9184_v25 = vld [vmem:[#allocation13 + $0x6d0] sm:$0xf] }
 0x2c3   :  { %v3749_v3 = vmax.f32 %v3576_v59, 0.0 }
 0x2c4   :  { %5600 = vmatpush.bf16.msrb.mxu0 %v9261_v21  ;;  %v3620_v35 = vadd.f32 %v3619_v16, %v3606_v37  ;;  %v10290_v21 = vld [vmem:[#allocation13 + $0x704] sm:$0xf]  ;;  %v10287_v16 = vld [vmem:[#allocation13 + $0x6e8] sm:$0xf0]  ;;  %v8429_v37 = vor.u32 %v10098_v20, %v8428_v15 }
 0x2c5   :  { %5642 = vmatpush.bf16.msrb.mxu3 %v8817_v47  ;;  %v3645_v19 = vpop.f32.mrf.mxu0  ;;  %v10262_v47 = vld [vmem:[#allocation13 + $0x624] sm:$0xf]  ;;  %v10343_v20 = vld [vmem:[#allocation13 + $0x8a8] sm:$0xf0] }
 0x2c8   :  { %v3577_v61 = vpop.f32.mrf.mxu3  ;;  %5601 = vmatpush.bf16.msrb.mxu0 %v9233_v45  ;;  %v9185_v45 = vor.u32 %v10287_v16, %v9184_v25 }
 0x2c9   :  { %v3578_v12 = vadd.f32 %v3577_v61, %v3564_v39  ;;  %v10178_v39 = vld [vmem:[#allocation13 + $0x384] sm:$0xf]  ;;  %v10311_v61 = vld [vmem:[#allocation13 + $0x7ac] sm:$0xf]  ;;  %5643 = vmatpush.bf16.msrb.mxu3 %v8789_v48  ;;  %v3659_v32 = vpop.f32.mrf.mxu1  ;;  %v3673_v0 = vpop.f32.mrf.mxu2  ;;  %v10280_v48 = vld [vmem:[#allocation13 + $0x6b0] sm:$0xf0] }
 0x2cb   :  { %v3754_v49 = vmax.f32 %v3578_v12, 0.0  ;;  %v8761_v12 = vor.u32 %v10178_v39, %v8758_v62  ;;  %v10084_v39 = vld [vmem:[#allocation13 + $0x90] sm:$0xf0]  ;;  %v9128_v62 = vld [vmem:[#allocation13 + $0x660] sm:$0xf] }
 0x2cc   :  { %5602 = vmatpush.bf16.msrb.mxu0 %v9205_v36 }
 0x2cd   :  { %v11024_v2 = vpack.c.bf16 %v3754_v49, %v3749_v3  ;;  %v9293_v3 = vor.u32 %v10311_v61, %v9290_v14  ;;  %5644 = vmatpush.bf16.msrb.mxu3 %v8761_v12  ;;  %v3647_v51 = vpop.f32.mrf.mxu0  ;;  %v10248_v61 = vld [vmem:[#allocation13 + $0x5b4] sm:$0xf]  ;;  %v9038_v14 = vld [vmem:[#allocation13 + $0x5cc] sm:$0xf0]  ;;  %v10273_v12 = vld [vmem:[#allocation13 + $0x678] sm:$0xf0] }
 0x2ce   :  { %v3648_v36 = vadd.f32 %v3647_v51, %v2629_v33  ;;  %v9041_v9 = vor.u32 %v10248_v61, %v9038_v14  ;;  %v9129_v1 = vor.u32 %v10273_v12, %v9128_v62  ;;  %v10154_v62 = vld [vmem:[#allocation13 + $0x2c0] sm:$0xf0]  ;;  %v9324_v12 = vld [vmem:[#allocation13 + $0x7e8] sm:$0xf] }
 0x2cf   :  { %5561 = vmatmul.bf16.vlgmr.msra.gmra.mxu1 %v11024_v2 }
 0x2d0   :  { %v3631_v18 = vpop.f32.mrf.mxu3  ;;  %5665 = vmatpush.bf16.msra.mxu1 %v9405_v26  ;;  %v10304_v26 = vld [vmem:[#allocation13 + $0x774] sm:$0xf]  ;;  %5651 = vmatpush.bf16.msra.mxu0 %v9181_v29 }
 0x2d1   :  { %v3632_v58 = vadd.f32 %v3631_v18, %v3618_v38  ;;  %v9265_v42 = vor.u32 %v10304_v26, %v9262_v60  ;;  %v9234_v18 = vld [vmem:[#allocation13 + $0x754] sm:$0xf0]  ;;  %v9209_v38 = vor.u32 %v10290_v21, %v9206_v22  ;;  %v3675_v29 = vpop.f32.mrf.mxu2  ;;  %v8982_v21 = vld [vmem:[#allocation13 + $0x55c] sm:$0xf0]  ;;  %v9072_v22 = vld [vmem:[#allocation13 + $0x5f0] sm:$0xf] }
 0x2d2   :  { %v9237_v56 = vor.u32 %v10297_v30, %v9234_v18  ;;  %v8316_v30 = vld [vmem:[#allocation13 + $0x8] sm:$0xf] }
 0x2d3   :  { %v3750_v34 = vmax.f32 %v3632_v58, 0.0  ;;  %v9066_v58 = vld [vmem:[#allocation13 + $0x604] sm:$0xf0] }
 0x2d4   :  { %5666 = vmatpush.bf16.msra.mxu1 %v9377_v63  ;;  %5652 = vmatpush.bf16.msra.mxu0 %v9153_v5  ;;  %v10269_v63 = vld [vmem:[#allocation13 + $0x65c] sm:$0xf]  ;;  %v9010_v5 = vld [vmem:[#allocation13 + $0x594] sm:$0xf0] }
 0x2d5   :  { %v9125_v11 = vor.u32 %v10269_v63, %v9122_v8  ;;  %v8736_v63 = vld [vmem:[#allocation13 + $0x350] sm:$0xf]  ;;  %v10175_v8 = vld [vmem:[#allocation13 + $0x368] sm:$0xf0] }
 0x2d8   :  { %v3633_v53 = vpop.f32.mrf.mxu3  ;;  %5667 = vmatpush.bf16.msra.mxu1 %v9349_v31  ;;  %5653 = vmatpush.bf16.msra.mxu0 %v9125_v11  ;;  %v9097_v31 = vor.u32 %v10262_v47, %v9094_v23  ;;  %v9408_v11 = vld [vmem:[#allocation13 + $0x890] sm:$0xf]  ;;  %v10259_v47 = vld [vmem:[#allocation13 + $0x608] sm:$0xf0] }
 0x2d9   :  { %v3634_v59 = vadd.f32 %v3633_v53, %v3620_v35  ;;  %v10255_v35 = vld [vmem:[#allocation13 + $0x5ec] sm:$0xf]  ;;  %v3646_v53 = vadd.f32 %v3645_v19, %v2629_v33  ;;  %v10070_v19 = vld [vmem:[#allocation13 + $0x20] sm:$0xf0]  ;;  %v8708_v33 = vld [vmem:[#allocation13 + $0x318] sm:$0xf] }
 0x2da   :  { %v9069_v52 = vor.u32 %v10255_v35, %v9066_v58  ;;  %v3701_v35 = vpop.f32.mrf.mxu0 }
 0x2db   :  { %v3755_v44 = vmax.f32 %v3634_v59, 0.0  ;;  %v9157_v59 = vor.u32 %v10280_v48, %v9156_v46  ;;  %v3660_v28 = vadd.f32 %v3659_v32, %v3646_v53  ;;  %v8737_v32 = vor.u32 %v10175_v8, %v8736_v63  ;;  %v9044_v46 = vld [vmem:[#allocation13 + $0x5b8] sm:$0xf]  ;;  %v10252_v48 = vld [vmem:[#allocation13 + $0x5d0] sm:$0xf0] }
 0x2dc   :  { %5668 = vmatpush.bf16.msra.mxu1 %v9321_v54  ;;  %5654 = vmatpush.bf16.msra.mxu0 %v9097_v31  ;;  %v8401_v54 = vor.u32 %v10091_v43, %v8400_v40  ;;  %v8317_v31 = vor.u32 %v10070_v19, %v8316_v30  ;;  %v9380_v40 = vld [vmem:[#allocation13 + $0x858] sm:$0xf]  ;;  %v10336_v43 = vld [vmem:[#allocation13 + $0x870] sm:$0xf0]  ;;  %v10161_v53 = vld [vmem:[#allocation13 + $0x2f8] sm:$0xf0] }
 0x2dd   :  { %v11027_v49 = vpack.c.bf16 %v3755_v44, %v3750_v34  ;;  %v8373_v34 = vor.u32 %v10084_v39, %v8372_v55  ;;  %v3661_v44 = vpop.f32.mrf.mxu1  ;;  %v3674_v60 = vadd.f32 %v3673_v0, %v3660_v28  ;;  %v9409_v0 = vor.u32 %v10343_v20, %v9408_v11  ;;  %v10329_v55 = vld [vmem:[#allocation13 + $0x838] sm:$0xf0]  ;;  %v9016_v39 = vld [vmem:[#allocation13 + $0x580] sm:$0xf]  ;;  %v8596_v30 = vld [vmem:[#allocation13 + $0x238] sm:$0xf] }
 0x2de   :  { %v3662_v26 = vadd.f32 %v3661_v44, %v3648_v36  ;;  %v9381_v51 = vor.u32 %v10336_v43, %v9380_v40  ;;  %v8652_v36 = vld [vmem:[#allocation13 + $0x2a8] sm:$0xf]  ;;  %v3729_v44 = vpop.f32.mrf.mxu2  ;;  %v9268_v63 = vld [vmem:[#allocation13 + $0x778] sm:$0xf]  ;;  %v10308_v8 = vld [vmem:[#allocation13 + $0x790] sm:$0xf0] }
 0x2df   :  { %5575 = vmatmul.bf16.vlgmr.msra.gmra.mxu2 %v11027_v49  ;;  %5617 = vmatmul.bf16.vlgmr.msrb.gmra.mxu1 %v11018_v17  ;;  %v10126_v43 = vld [vmem:[#allocation13 + $0x1e0] sm:$0xf0] }
 0x2e0   :  { %5679 = vmatpush.bf16.msra.mxu2 %v8513_v24  ;;  %5669 = vmatpush.bf16.msra.mxu1 %v9293_v3  ;;  %v8344_v24 = vld [vmem:[#allocation13 + $0x40] sm:$0xf]  ;;  %v9100_v3 = vld [vmem:[#allocation13 + $0x628] sm:$0xf]  ;;  %v3676_v41 = vadd.f32 %v3675_v29, %v3662_v26  ;;  %v8624_v26 = vld [vmem:[#allocation13 + $0x270] sm:$0xf] }
 0x2e1   :  { %5655 = vmatpush.bf16.msra.mxu0 %v9069_v52  ;;  %v8680_v52 = vld [vmem:[#allocation13 + $0x2e0] sm:$0xf]  ;;  %v8988_v29 = vld [vmem:[#allocation13 + $0x548] sm:$0xf] }
 0x2e2   :  { %v8681_v61 = vor.u32 %v10161_v53, %v8680_v52  ;;  %v8514_v52 = vld [vmem:[#allocation13 + $0x1ac] sm:$0xf0]  ;;  %v10228_v53 = vld [vmem:[#allocation13 + $0x514] sm:$0xf] }
 0x2e4   :  { %5680 = vmatpush.bf16.msra.mxu2 %v8485_v6  ;;  %5670 = vmatpush.bf16.msra.mxu1 %v9265_v42  ;;  %v9013_v6 = vor.u32 %v10241_v27, %v9010_v5  ;;  %v8345_v42 = vor.u32 %v10077_v50, %v8344_v24  ;;  %v10238_v24 = vld [vmem:[#allocation13 + $0x560] sm:$0xf0]  ;;  %v2630_v50 = vperm.slane %v11008_v10, 4  ;;  %v10315_v27 = vld [vmem:[#allocation13 + $0x7c8] sm:$0xf0] }
 0x2e5   :  { %5656 = vmatpush.bf16.msra.mxu0 %v9041_v9  ;;  %v10322_v9 = vld [vmem:[#allocation13 + $0x800] sm:$0xf0]  ;;  %v8989_v5 = vor.u32 %v10238_v24, %v8988_v29  ;;  %v10140_v10 = vld [vmem:[#allocation13 + $0x250] sm:$0xf0]  ;;  %v10109_v29 = vld [vmem:[#allocation13 + $0x15c] sm:$0xf] }
 0x2e6   :  { %v8597_v20 = vor.u32 %v10140_v10, %v8596_v30  ;;  %v8486_v24 = vld [vmem:[#allocation13 + $0x174] sm:$0xf0]  ;;  %v10214_v30 = vld [vmem:[#allocation13 + $0x4a4] sm:$0xf]  ;;  %v9130_v10 = vld [vmem:[#allocation13 + $0x67c] sm:$0xf0] }
 0x2e8   :  { %5681 = vmatpush.bf16.msra.mxu2 %v8457_v13  ;;  %5671 = vmatpush.bf16.msra.mxu1 %v9237_v56  ;;  %v9101_v13 = vor.u32 %v10266_v4, %v9100_v3  ;;  %v10234_v56 = vld [vmem:[#allocation13 + $0x544] sm:$0xf]  ;;  %v9325_v3 = vor.u32 %v10322_v9, %v9324_v12  ;;  %v9296_v4 = vld [vmem:[#allocation13 + $0x7b0] sm:$0xf]  ;;  %v8932_v9 = vld [vmem:[#allocation13 + $0x4d8] sm:$0xf] }
 0x2e9   :  { %5657 = vmatpush.bf16.msra.mxu0 %v9013_v6  ;;  %v8985_v23 = vor.u32 %v10234_v56, %v8982_v21  ;;  %v3703_v6 = vpop.f32.mrf.mxu0  ;;  %v9269_v56 = vor.u32 %v10308_v8, %v9268_v63  ;;  %v8568_v21 = vld [vmem:[#allocation13 + $0x200] sm:$0xf] }
 0x2ea   :  { %v3704_v19 = vadd.f32 %v3703_v6, %v2630_v50 }
 0x2ec   :  { %5682 = vmatpush.bf16.msra.mxu2 %v8429_v37  ;;  %5672 = vmatpush.bf16.msra.mxu1 %v9209_v38  ;;  %v10168_v38 = vld [vmem:[#allocation13 + $0x330] sm:$0xf0] }
 0x2ed   :  { %5658 = vmatpush.bf16.msra.mxu0 %v8985_v23  ;;  %v8709_v58 = vor.u32 %v10168_v38, %v8708_v33  ;;  %v9240_v23 = vld [vmem:[#allocation13 + $0x740] sm:$0xf]  ;;  %v8540_v38 = vld [vmem:[#allocation13 + $0x1c8] sm:$0xf] }
 0x2ef   :  { %5631 = vmatmul.bf16.vlgmr.msrb.gmra.mxu2 %v11024_v2 }
 0x2f0   :  { %v3687_v57 = vpop.f32.mrf.mxu3  ;;  %5721 = vmatpush.bf16.msrb.mxu1 %v9185_v45  ;;  %5683 = vmatpush.bf16.msra.mxu2 %v8401_v54  ;;  %v9073_v45 = vor.u32 %v10259_v47, %v9072_v22  ;;  %v9352_v54 = vld [vmem:[#allocation13 + $0x820] sm:$0xf]  ;;  %v10133_v47 = vld [vmem:[#allocation13 + $0x218] sm:$0xf0] }
 0x2f1   :  { %v3688_v7 = vadd.f32 %v3687_v57, %v3674_v60  ;;  %v9045_v57 = vor.u32 %v10252_v48, %v9044_v46  ;;  %v9353_v14 = vor.u32 %v10329_v55, %v9352_v54  ;;  %v10147_v60 = vld [vmem:[#allocation13 + $0x288] sm:$0xf0]  ;;  %v8962_v54 = vld [vmem:[#allocation13 + $0x52c] sm:$0xf0] }
 0x2f2   :  { %v10231_v46 = vld [vmem:[#allocation13 + $0x528] sm:$0xf0] }
 0x2f3   :  { %v3751_v25 = vmax.f32 %v3688_v7, 0.0  ;;  %v8625_v7 = vor.u32 %v10147_v60, %v8624_v26  ;;  %v9158_v26 = vld [vmem:[#allocation13 + $0x6b4] sm:$0xf0] }
 0x2f4   :  { %5722 = vmatpush.bf16.msrb.mxu1 %v9157_v59  ;;  %5684 = vmatpush.bf16.msra.mxu2 %v8373_v34  ;;  %v10245_v59 = vld [vmem:[#allocation13 + $0x598] sm:$0xf0]  ;;  %v3715_v34 = vpop.f32.mrf.mxu1 }
 0x2f5   :  { %v9017_v28 = vor.u32 %v10245_v59, %v9016_v39  ;;  %v8541_v39 = vor.u32 %v10126_v43, %v8540_v38  ;;  %v10284_v59 = vld [vmem:[#allocation13 + $0x6d4] sm:$0xf]  ;;  %v8402_v43 = vld [vmem:[#allocation13 + $0xcc] sm:$0xf0] }
 0x2f8   :  { %v3689_v18 = vpop.f32.mrf.mxu3  ;;  %5723 = vmatpush.bf16.msrb.mxu1 %v9129_v1  ;;  %5685 = vmatpush.bf16.msra.mxu2 %v8345_v42  ;;  %v8653_v1 = vor.u32 %v10154_v62, %v8652_v36  ;;  %v9297_v42 = vor.u32 %v10315_v27, %v9296_v4  ;;  %v8489_v4 = vor.u32 %v10109_v29, %v8486_v24  ;;  %v8904_v27 = vld [vmem:[#allocation13 + $0x4a0] sm:$0xf]  ;;  %v10074_v24 = vld [vmem:[#allocation13 + $0x44] sm:$0xf] }
 0x2f9   :  { %v3690_v15 = vadd.f32 %v3689_v18, %v3676_v41  ;;  %v3702_v41 = vadd.f32 %v3701_v35, %v2630_v50  ;;  %v9212_v35 = vld [vmem:[#allocation13 + $0x708] sm:$0xf]  ;;  %v10221_v50 = vld [vmem:[#allocation13 + $0x4dc] sm:$0xf] }
 0x2fb   :  { %v3756_v16 = vmax.f32 %v3690_v15, 0.0  ;;  %v3716_v11 = vadd.f32 %v3715_v34, %v3702_v41  ;;  %v3731_v15 = vpop.f32.mrf.mxu2  ;;  %v8965_v34 = vor.u32 %v10228_v53, %v8962_v54  ;;  %v10196_v53 = vld [vmem:[#allocation13 + $0x410] sm:$0xf0] }
 0x2fc   :  { %5724 = vmatpush.bf16.msrb.mxu1 %v9101_v13  ;;  %5686 = vmatpush.bf16.msra.mxu2 %v8317_v31  ;;  %v3717_v13 = vpop.f32.mrf.mxu1 }
 0x2fd   :  { %v11033_v37 = vpack.c.bf16 %v3756_v16, %v3751_v25  ;;  %v3718_v22 = vadd.f32 %v3717_v13, %v3704_v19  ;;  %v10301_v25 = vld [vmem:[#allocation13 + $0x758] sm:$0xf0]  ;;  %v3730_v16 = vadd.f32 %v3729_v44, %v3716_v11  ;;  %v8906_v19 = vld [vmem:[#allocation13 + $0x4bc] sm:$0xf0]  ;;  %v8876_v11 = vld [vmem:[#allocation13 + $0x468] sm:$0xf] }
 0x2fe   :  { %v9241_v33 = vor.u32 %v10301_v25, %v9240_v23  ;;  %v10210_v13 = vld [vmem:[#allocation13 + $0x480] sm:$0xf0]  ;;  %v10263_v23 = vld [vmem:[#allocation13 + $0x62c] sm:$0xf]  ;;  %v9102_v25 = vld [vmem:[#allocation13 + $0x644] sm:$0xf0] }
 0x2ff   :  { %5589 = vmatmul.bf16.vlgmr.msra.gmra.mxu3 %v11033_v37  ;;  %5687 = vmatmul.bf16.vlgmr.msra.gmra.mxu2 %v11018_v17  ;;  %v3732_v31 = vadd.f32 %v3731_v15, %v3718_v22  ;;  %v8909_v15 = vor.u32 %v10214_v30, %v8906_v19  ;;  %v10207_v22 = vld [vmem:[#allocation13 + $0x46c] sm:$0xf]  ;;  %v9105_v38 = vor.u32 %v10263_v23, %v9102_v25  ;;  %v8968_v23 = vld [vmem:[#allocation13 + $0x518] sm:$0xf]  ;;  %v10232_v25 = vld [vmem:[#allocation13 + $0x530] sm:$0xf0] }
 0x300   :  { %5693 = vmatpush.bf16.msra.mxu3 %v8737_v32  ;;  %5735 = vmatpush.bf16.msrb.mxu2 %v9409_v0  ;;  %v8569_v0 = vor.u32 %v10133_v47, %v8568_v21  ;;  %v8430_v21 = vld [vmem:[#allocation13 + $0x104] sm:$0xf0] }
 0x301   :  { %5725 = vmatpush.bf16.msrb.mxu1 %v9073_v45  ;;  %v8960_v45 = vld [vmem:[#allocation13 + $0x510] sm:$0xf]  ;;  %v8878_v47 = vld [vmem:[#allocation13 + $0x484] sm:$0xf0] }
 0x304   :  { %5694 = vmatpush.bf16.msra.mxu3 %v8709_v58  ;;  %5736 = vmatpush.bf16.msrb.mxu2 %v9381_v51  ;;  %v10294_v58 = vld [vmem:[#allocation13 + $0x720] sm:$0xf0]  ;;  %v10116_v51 = vld [vmem:[#allocation13 + $0x194] sm:$0xf] }
 0x305   :  { %5726 = vmatpush.bf16.msrb.mxu1 %v9045_v57  ;;  %v9213_v62 = vor.u32 %v10294_v58, %v9212_v35  ;;  %v8517_v12 = vor.u32 %v10116_v51, %v8514_v52  ;;  %v9074_v35 = vld [vmem:[#allocation13 + $0x60c] sm:$0xf0]  ;;  %v8820_v52 = vld [vmem:[#allocation13 + $0x3f8] sm:$0xf] }
 0x308   :  { %5695 = vmatpush.bf16.msra.mxu3 %v8681_v61  ;;  %5737 = vmatpush.bf16.msrb.mxu2 %v9353_v14  ;;  %v9186_v61 = vld [vmem:[#allocation13 + $0x6ec] sm:$0xf0]  ;;  %v8961_v14 = vor.u32 %v10231_v46, %v8960_v45  ;;  %v10200_v45 = vld [vmem:[#allocation13 + $0x434] sm:$0xf] }
 0x309   :  { %5727 = vmatpush.bf16.msrb.mxu1 %v9017_v28  ;;  %v10224_v28 = vld [vmem:[#allocation13 + $0x4f0] sm:$0xf0]  ;;  %v9189_v44 = vor.u32 %v10284_v59, %v9186_v61  ;;  %v8850_v46 = vld [vmem:[#allocation13 + $0x44c] sm:$0xf0]  ;;  %v10193_v59 = vld [vmem:[#allocation13 + $0x3fc] sm:$0xf] }
 0x30a   :  { %v8933_v60 = vor.u32 %v10224_v28, %v8932_v9  ;;  %v8853_v54 = vor.u32 %v10200_v45, %v8850_v46  ;;  %v8822_v61 = vld [vmem:[#allocation13 + $0x414] sm:$0xf0]  ;;  %v8792_v28 = vld [vmem:[#allocation13 + $0x3c0] sm:$0xf] }
 0x30b   :  { %v9382_v45 = vld [vmem:[#allocation13 + $0x874] sm:$0xf0]  ;;  %v8716_v46 = vld [vmem:[#allocation13 + $0x320] sm:$0xf] }
 0x30c   :  { %5696 = vmatpush.bf16.msra.mxu3 %v8653_v1  ;;  %5738 = vmatpush.bf16.msrb.mxu2 %v9325_v3  ;;  %v8934_v1 = vld [vmem:[#allocation13 + $0x4f4] sm:$0xf0]  ;;  %v10277_v3 = vld [vmem:[#allocation13 + $0x69c] sm:$0xf] }
 0x30d   :  { %5728 = vmatpush.bf16.msrb.mxu1 %v8989_v5  ;;  %v10217_v5 = vld [vmem:[#allocation13 + $0x4b8] sm:$0xf0]  ;;  %v8937_v6 = vor.u32 %v10221_v50, %v8934_v1  ;;  %v9161_v41 = vor.u32 %v10277_v3, %v9158_v26  ;;  %v8346_v50 = vld [vmem:[#allocation13 + $0x5c] sm:$0xf0]  ;;  %v10186_v1 = vld [vmem:[#allocation13 + $0x3c4] sm:$0xf] }
 0x30e   :  { %v8905_v63 = vor.u32 %v10217_v5, %v8904_v27  ;;  %v8794_v3 = vld [vmem:[#allocation13 + $0x3dc] sm:$0xf0]  ;;  %v10242_v26 = vld [vmem:[#allocation13 + $0x584] sm:$0xf]  ;;  %v8764_v27 = vld [vmem:[#allocation13 + $0x388] sm:$0xf] }
 0x30f   :  { %5645 = vmatmul.bf16.vlgmr.msrb.gmra.mxu3 %v11027_v49  ;;  %v10182_v5 = vld [vmem:[#allocation13 + $0x3a0] sm:$0xf0]  ;;  %v8797_v30 = vor.u32 %v10186_v1, %v8794_v3  ;;  %v9326_v1 = vld [vmem:[#allocation13 + $0x804] sm:$0xf0]  ;;  %v8660_v3 = vld [vmem:[#allocation13 + $0x2b0] sm:$0xf] }
 0x310   :  { %v3743_v18 = vpop.f32.mrf.mxu3  ;;  %5697 = vmatpush.bf16.msra.mxu3 %v8625_v7  ;;  %5739 = vmatpush.bf16.msrb.mxu2 %v9297_v42  ;;  %v10102_v7 = vld [vmem:[#allocation13 + $0x124] sm:$0xf]  ;;  %v8458_v42 = vld [vmem:[#allocation13 + $0x13c] sm:$0xf0] }
 0x311   :  { %v3744_v32 = vadd.f32 %v3743_v18, %v3730_v16  ;;  %v10270_v18 = vld [vmem:[#allocation13 + $0x664] sm:$0xf]  ;;  %v8461_v8 = vor.u32 %v10102_v7, %v8458_v42  ;;  %v8877_v16 = vor.u32 %v10210_v13, %v8876_v11  ;;  %v8318_v7 = vld [vmem:[#allocation13 + $0x24] sm:$0xf0]  ;;  %v10179_v42 = vld [vmem:[#allocation13 + $0x38c] sm:$0xf] }
 0x312   :  { %v8990_v11 = vld [vmem:[#allocation13 + $0x564] sm:$0xf0]  ;;  %v10340_v13 = vld [vmem:[#allocation13 + $0x894] sm:$0xf] }
 0x313   :  { %v3752_v55 = vmax.f32 %v3744_v32, 0.0  ;;  %v8848_v32 = vld [vmem:[#allocation13 + $0x430] sm:$0xf] }
 0x314   :  { %5698 = vmatpush.bf16.msra.mxu3 %v8597_v20  ;;  %5740 = vmatpush.bf16.msrb.mxu2 %v9269_v56  ;;  %v9133_v20 = vor.u32 %v10270_v18, %v9130_v10  ;;  %v10095_v56 = vld [vmem:[#allocation13 + $0xec] sm:$0xf]  ;;  %v8766_v18 = vld [vmem:[#allocation13 + $0x3a4] sm:$0xf0]  ;;  %v10172_v10 = vld [vmem:[#allocation13 + $0x354] sm:$0xf] }
 0x318   :  { %v3745_v40 = vpop.f32.mrf.mxu3  ;;  %5699 = vmatpush.bf16.msra.mxu3 %v8569_v0  ;;  %5741 = vmatpush.bf16.msrb.mxu2 %v9241_v33  ;;  %v10203_v0 = vld [vmem:[#allocation13 + $0x448] sm:$0xf0]  ;;  %v8881_v33 = vor.u32 %v10207_v22, %v8878_v47 }
 0x319   :  { %v3746_v48 = vadd.f32 %v3745_v40, %v3732_v31  ;;  %v8433_v31 = vor.u32 %v10095_v56, %v8430_v21  ;;  %v10088_v40 = vld [vmem:[#allocation13 + $0xb4] sm:$0xf]  ;;  %v8849_v58 = vor.u32 %v10203_v0, %v8848_v32  ;;  %v8744_v56 = vld [vmem:[#allocation13 + $0x358] sm:$0xf] }
 0x31a   :  { %v8405_v51 = vor.u32 %v10088_v40, %v8402_v43  ;;  %v10176_v21 = vld [vmem:[#allocation13 + $0x370] sm:$0xf0]  ;;  %v10333_v40 = vld [vmem:[#allocation13 + $0x85c] sm:$0xf]  ;;  %v8969_v43 = vor.u32 %v10232_v25, %v8968_v23  ;;  %v8604_v23 = vld [vmem:[#allocation13 + $0x240] sm:$0xf] }
 0x31b   :  { %v3757_v57 = vmax.f32 %v3746_v48, 0.0  ;;  %v10256_v48 = vld [vmem:[#allocation13 + $0x5f4] sm:$0xf]  ;;  %v8745_v0 = vor.u32 %v10176_v21, %v8744_v56  ;;  %v8598_v56 = vld [vmem:[#allocation13 + $0x254] sm:$0xf0] }
 0x31c   :  { %5700 = vmatpush.bf16.msra.mxu3 %v8541_v39  ;;  %5742 = vmatpush.bf16.msrb.mxu2 %v9213_v62  ;;  %v8374_v39 = vld [vmem:[#allocation13 + $0x94] sm:$0xf0]  ;;  %v10305_v21 = vld [vmem:[#allocation13 + $0x77c] sm:$0xf] }
 0x31d   :  { %v11039_v36 = vpack.c.bf16 %v3757_v57, %v3752_v55  ;;  %v9077_v55 = vor.u32 %v10256_v48, %v9074_v35  ;;  %v10081_v57 = vld [vmem:[#allocation13 + $0x7c] sm:$0xf]  ;;  %v9046_v62 = vld [vmem:[#allocation13 + $0x5d4] sm:$0xf0]  ;;  %v8940_v35 = vld [vmem:[#allocation13 + $0x4e0] sm:$0xf] }
 0x31e   :  { %v8377_v9 = vor.u32 %v10081_v57, %v8374_v39  ;;  %v10169_v48 = vld [vmem:[#allocation13 + $0x338] sm:$0xf0]  ;;  %v10326_v57 = vld [vmem:[#allocation13 + $0x824] sm:$0xf] }
 0x31f   :  { %5603 = vmatmul.bf16.vlgmr.msrb.gmra.mxu0 %v11039_v36  ;;  %5673 = vmatmul.bf16.vlgmr.msra.gmra.mxu1 %v11039_v36  ;;  %v10141_v25 = vld [vmem:[#allocation13 + $0x258] sm:$0xf0] }
 0x320   :  { %5707 = vmatpush.bf16.msrb.mxu0 %v8961_v14  ;;  %5749 = vmatpush.bf16.msrb.mxu3 %v8517_v12  ;;  %v10249_v14 = vld [vmem:[#allocation13 + $0x5bc] sm:$0xf]  ;;  %v8821_v12 = vor.u32 %v10196_v53, %v8820_v52  ;;  %v9385_v52 = vor.u32 %v10333_v40, %v9382_v45  ;;  %v8717_v53 = vor.u32 %v10169_v48, %v8716_v46  ;;  %v8570_v40 = vld [vmem:[#allocation13 + $0x21c] sm:$0xf0]  ;;  %v8576_v48 = vld [vmem:[#allocation13 + $0x208] sm:$0xf] }
 0x321   :  { %5777 = vmatpush.bf16.msra.mxu1 %v8965_v34  ;;  %5791 = vmatpush.bf16.msra.mxu2 %v9189_v44  ;;  %v10189_v34 = vld [vmem:[#allocation13 + $0x3d8] sm:$0xf0]  ;;  %v8825_v44 = vor.u32 %v10193_v59, %v8822_v61  ;;  %v9049_v29 = vor.u32 %v10249_v14, %v9046_v62  ;;  %v9354_v59 = vld [vmem:[#allocation13 + $0x83c] sm:$0xf0]  ;;  %v8688_v61 = vld [vmem:[#allocation13 + $0x2e8] sm:$0xf] }
 0x322   :  { %5701 = vmatmul.bf16.vlgmr.msra.gmra.mxu3 %v11024_v2  ;;  %5743 = vmatmul.bf16.vlgmr.msrb.gmra.mxu2 %v11039_v36  ;;  %v10162_v14 = vld [vmem:[#allocation13 + $0x300] sm:$0xf0]  ;;  %v8912_v62 = vld [vmem:[#allocation13 + $0x4a8] sm:$0xf]  ;;  %v9242_v46 = vld [vmem:[#allocation13 + $0x75c] sm:$0xf0] }
 0x324   :  { %5708 = vmatpush.bf16.msrb.mxu0 %v8933_v60  ;;  %5750 = vmatpush.bf16.msrb.mxu3 %v8489_v4  ;;  %v9018_v60 = vld [vmem:[#allocation13 + $0x59c] sm:$0xf0]  ;;  %v8793_v4 = vor.u32 %v10189_v34, %v8792_v28  ;;  %v9357_v28 = vor.u32 %v10326_v57, %v9354_v59  ;;  %v8689_v34 = vor.u32 %v10162_v14, %v8688_v61  ;;  %v9214_v59 = vld [vmem:[#allocation13 + $0x724] sm:$0xf0]  ;;  %v8548_v61 = vld [vmem:[#allocation13 + $0x1d0] sm:$0xf] }
 0x325   :  { %5778 = vmatpush.bf16.msra.mxu1 %v8937_v6  ;;  %5792 = vmatpush.bf16.msra.mxu2 %v9161_v41  ;;  %v8349_v6 = vor.u32 %v10074_v24, %v8346_v50  ;;  %v10067_v41 = vld [vmem:[#allocation13 + $0xc] sm:$0xf]  ;;  %v9021_v19 = vor.u32 %v10242_v26, %v9018_v60  ;;  %v8884_v60 = vld [vmem:[#allocation13 + $0x470] sm:$0xf] }
 0x326   :  { %v8321_v22 = vor.u32 %v10067_v41, %v8318_v7  ;;  %v10319_v24 = vld [vmem:[#allocation13 + $0x7ec] sm:$0xf]  ;;  %v10144_v41 = vld [vmem:[#allocation13 + $0x274] sm:$0xf]  ;;  %v8626_v7 = vld [vmem:[#allocation13 + $0x28c] sm:$0xf0] }
 0x327   :  { %v10155_v26 = vld [vmem:[#allocation13 + $0x2c8] sm:$0xf0] }
 0x328   :  { %5709 = vmatpush.bf16.msrb.mxu0 %v8905_v63  ;;  %5751 = vmatpush.bf16.msrb.mxu3 %v8461_v8  ;;  %v8738_v63 = vld [vmem:[#allocation13 + $0x36c] sm:$0xf0]  ;;  %v10235_v8 = vld [vmem:[#allocation13 + $0x54c] sm:$0xf] }
 0x329   :  { %5779 = vmatpush.bf16.msra.mxu1 %v8909_v15  ;;  %5793 = vmatpush.bf16.msra.mxu2 %v9133_v20  ;;  %v8765_v15 = vor.u32 %v10182_v5, %v8764_v27  ;;  %v9410_v20 = vld [vmem:[#allocation13 + $0x8ac] sm:$0xf0]  ;;  %v8741_v47 = vor.u32 %v10172_v10, %v8738_v63  ;;  %v9329_v5 = vor.u32 %v10319_v24, %v9326_v1  ;;  %v10148_v10 = vld [vmem:[#allocation13 + $0x290] sm:$0xf0]  ;;  %v8856_v63 = vld [vmem:[#allocation13 + $0x438] sm:$0xf] }
 0x32a   :  { %v9413_v32 = vor.u32 %v10340_v13, %v9410_v20  ;;  %v10137_v20 = vld [vmem:[#allocation13 + $0x23c] sm:$0xf]  ;;  %v10288_v24 = vld [vmem:[#allocation13 + $0x6f0] sm:$0xf0]  ;;  %v8522_v1 = vld [vmem:[#allocation13 + $0x1b4] sm:$0xf0] }
 0x32c   :  { %5710 = vmatpush.bf16.msrb.mxu0 %v8877_v16  ;;  %5752 = vmatpush.bf16.msrb.mxu3 %v8433_v31  ;;  %v8769_v16 = vor.u32 %v10179_v42, %v8766_v18  ;;  %v8993_v31 = vor.u32 %v10235_v8, %v8990_v11  ;;  %v10312_v42 = vld [vmem:[#allocation13 + $0x7b4] sm:$0xf]  ;;  %v8632_v18 = vld [vmem:[#allocation13 + $0x278] sm:$0xf]  ;;  %v8629_v11 = vor.u32 %v10144_v41, %v8626_v7  ;;  %v8492_v7 = vld [vmem:[#allocation13 + $0x160] sm:$0xf] }
 0x32d   :  { %5780 = vmatpush.bf16.msra.mxu1 %v8881_v33  ;;  %5794 = vmatpush.bf16.msra.mxu2 %v9105_v38  ;;  %v10165_v33 = vld [vmem:[#allocation13 + $0x31c] sm:$0xf]  ;;  %v8710_v38 = vld [vmem:[#allocation13 + $0x334] sm:$0xf0]  ;;  %v10204_v8 = vld [vmem:[#allocation13 + $0x450] sm:$0xf0] }
 0x32f   :  { %5659 = vmatmul.bf16.vlgmr.msra.gmra.mxu0 %v11033_v37  ;;  %5729 = vmatmul.bf16.vlgmr.msrb.gmra.mxu1 %v11033_v37 }
 0x330   :  { %5711 = vmatpush.bf16.msrb.mxu0 %v8849_v58  ;;  %5753 = vmatpush.bf16.msrb.mxu3 %v8405_v51  ;;  %v10225_v58 = vld [vmem:[#allocation13 + $0x4f8] sm:$0xf0]  ;;  %v8713_v51 = vor.u32 %v10165_v33, %v8710_v38  ;;  %v8605_v33 = vor.u32 %v10141_v25, %v8604_v23  ;;  %v10130_v38 = vld [vmem:[#allocation13 + $0x204] sm:$0xf]  ;;  %v10103_v25 = vld [vmem:[#allocation13 + $0x12c] sm:$0xf] }
 0x331   :  { %5781 = vmatpush.bf16.msra.mxu1 %v8853_v54  ;;  %5795 = vmatpush.bf16.msra.mxu2 %v9077_v55  ;;  %v10158_v54 = vld [vmem:[#allocation13 + $0x2e4] sm:$0xf]  ;;  %v8682_v55 = vld [vmem:[#allocation13 + $0x2fc] sm:$0xf0]  ;;  %v8941_v39 = vor.u32 %v10225_v58, %v8940_v35  ;;  %v8800_v58 = vld [vmem:[#allocation13 + $0x3c8] sm:$0xf] }
 0x332   :  { %v10134_v35 = vld [vmem:[#allocation13 + $0x220] sm:$0xf0] }
 0x333   :  { %v8577_v57 = vor.u32 %v10134_v35, %v8576_v48  ;;  %v10274_v23 = vld [vmem:[#allocation13 + $0x680] sm:$0xf0]  ;;  %v10267_v48 = vld [vmem:[#allocation13 + $0x648] sm:$0xf0]  ;;  %v10096_v35 = vld [vmem:[#allocation13 + $0xf4] sm:$0xf] }
 0x334   :  { %5712 = vmatpush.bf16.msrb.mxu0 %v8821_v12  ;;  %5754 = vmatpush.bf16.msrb.mxu3 %v8377_v9  ;;  %v10218_v12 = vld [vmem:[#allocation13 + $0x4c0] sm:$0xf0]  ;;  %v8685_v9 = vor.u32 %v10158_v54, %v8682_v55  ;;  %v8542_v54 = vld [vmem:[#allocation13 + $0x1e4] sm:$0xf0] }
 0x335   :  { %5782 = vmatpush.bf16.msra.mxu1 %v8825_v44  ;;  %5796 = vmatpush.bf16.msra.mxu2 %v9049_v29  ;;  %v10151_v44 = vld [vmem:[#allocation13 + $0x2ac] sm:$0xf]  ;;  %v8654_v29 = vld [vmem:[#allocation13 + $0x2c4] sm:$0xf0]  ;;  %v8913_v50 = vor.u32 %v10218_v12, %v8912_v62  ;;  %v8520_v12 = vld [vmem:[#allocation13 + $0x198] sm:$0xf] }
 0x336   :  { %v8657_v27 = vor.u32 %v10151_v44, %v8654_v29  ;;  %v10127_v62 = vld [vmem:[#allocation13 + $0x1e8] sm:$0xf0]  ;;  %v9192_v44 = vld [vmem:[#allocation13 + $0x6d8] sm:$0xf] }
 0x338   :  { %5713 = vmatpush.bf16.msrb.mxu0 %v8793_v4  ;;  %5755 = vmatpush.bf16.msrb.mxu3 %v8349_v6  ;;  %v10211_v4 = vld [vmem:[#allocation13 + $0x488] sm:$0xf0]  ;;  %v8661_v6 = vor.u32 %v10155_v26, %v8660_v3  ;;  %v8549_v26 = vor.u32 %v10127_v62, %v8548_v61  ;;  %v10089_v62 = vld [vmem:[#allocation13 + $0xbc] sm:$0xf] }
 0x339   :  { %5783 = vmatpush.bf16.msra.mxu1 %v8797_v30  ;;  %5797 = vmatpush.bf16.msra.mxu2 %v9021_v19  ;;  %v8885_v30 = vor.u32 %v10211_v4, %v8884_v60  ;;  %v9298_v19 = vld [vmem:[#allocation13 + $0x7cc] sm:$0xf0]  ;;  %v10173_v60 = vld [vmem:[#allocation13 + $0x35c] sm:$0xf]  ;;  %v8746_v4 = vld [vmem:[#allocation13 + $0x374] sm:$0xf0] }
 0x33a   :  { %v9301_v13 = vor.u32 %v10312_v42, %v9298_v19  ;;  %v10113_v42 = vld [vmem:[#allocation13 + $0x178] sm:$0xf0]  ;;  %v8749_v19 = vor.u32 %v10173_v60, %v8746_v4  ;;  %v10082_v60 = vld [vmem:[#allocation13 + $0x84] sm:$0xf]  ;;  %v8382_v4 = vld [vmem:[#allocation13 + $0x9c] sm:$0xf0] }
 0x33c   :  { %5714 = vmatpush.bf16.msrb.mxu0 %v8765_v15  ;;  %5756 = vmatpush.bf16.msrb.mxu3 %v8321_v22  ;;  %v8633_v15 = vor.u32 %v10148_v10, %v8632_v18  ;;  %v8857_v22 = vor.u32 %v10204_v8, %v8856_v63  ;;  %v10281_v18 = vld [vmem:[#allocation13 + $0x6b8] sm:$0xf0]  ;;  %v10110_v10 = vld [vmem:[#allocation13 + $0x164] sm:$0xf]  ;;  %v8494_v63 = vld [vmem:[#allocation13 + $0x17c] sm:$0xf0] }
 0x33d   :  { %5784 = vmatpush.bf16.msra.mxu1 %v8769_v16  ;;  %5798 = vmatpush.bf16.msra.mxu2 %v8993_v31  ;;  %v8828_v16 = vld [vmem:[#allocation13 + $0x400] sm:$0xf]  ;;  %v10197_v31 = vld [vmem:[#allocation13 + $0x418] sm:$0xf0]  ;;  %v10166_v8 = vld [vmem:[#allocation13 + $0x324] sm:$0xf] }
 0x33e   :  { %v8829_v45 = vor.u32 %v10197_v31, %v8828_v16  ;;  %v8466_v16 = vld [vmem:[#allocation13 + $0x144] sm:$0xf0]  ;;  %v10159_v31 = vld [vmem:[#allocation13 + $0x2ec] sm:$0xf] }
 0x33f   :  { %5757 = vmatmul.bf16.vlgmr.msrb.gmra.mxu3 %v11018_v17  ;;  %5715 = vmatmul.bf16.vlgmr.msrb.gmra.mxu0 %v11027_v49 }
 0x340   :  { %5763 = vmatpush.bf16.msra.mxu0 %v8741_v47  ;;  %5805 = vmatpush.bf16.msra.mxu3 %v9413_v32  ;;  %v9270_v47 = vld [vmem:[#allocation13 + $0x794] sm:$0xf0]  ;;  %v8601_v32 = vor.u32 %v10137_v20, %v8598_v56  ;;  %v8497_v20 = vor.u32 %v10110_v10, %v8494_v63  ;;  %v8464_v56 = vld [vmem:[#allocation13 + $0x128] sm:$0xf]  ;;  %v10246_v10 = vld [vmem:[#allocation13 + $0x5a0] sm:$0xf0] }
 0x341   :  { %5833 = vmatpush.bf16.msrb.mxu1 %v8745_v0  ;;  %5847 = vmatpush.bf16.msrb.mxu2 %v8969_v43  ;;  %v9273_v0 = vor.u32 %v10305_v21, %v9270_v47  ;;  %v10298_v43 = vld [vmem:[#allocation13 + $0x744] sm:$0xf]  ;;  %v10075_v63 = vld [vmem:[#allocation13 + $0x4c] sm:$0xf] }
 0x342   :  { %5785 = vmatmul.bf16.vlgmr.msra.gmra.mxu1 %v11027_v49  ;;  %5799 = vmatmul.bf16.vlgmr.msra.gmra.mxu2 %v11033_v37  ;;  %v9245_v55 = vor.u32 %v10298_v43, %v9242_v46  ;;  %v10106_v21 = vld [vmem:[#allocation13 + $0x140] sm:$0xf0]  ;;  %v10099_v43 = vld [vmem:[#allocation13 + $0x108] sm:$0xf0] }
 0x344   :  { %5764 = vmatpush.bf16.msra.mxu0 %v8713_v51  ;;  %5806 = vmatpush.bf16.msra.mxu3 %v9385_v52  ;;  %v10190_v51 = vld [vmem:[#allocation13 + $0x3e0] sm:$0xf0]  ;;  %v8573_v52 = vor.u32 %v10130_v38, %v8570_v40  ;;  %v8469_v38 = vor.u32 %v10103_v25, %v8466_v16  ;;  %v8436_v40 = vld [vmem:[#allocation13 + $0xf0] sm:$0xf]  ;;  %v10068_v25 = vld [vmem:[#allocation13 + $0x14] sm:$0xf] }
 0x345   :  { %5834 = vmatpush.bf16.msrb.mxu1 %v8717_v53  ;;  %5848 = vmatpush.bf16.msrb.mxu2 %v8941_v39  ;;  %v10123_v53 = vld [vmem:[#allocation13 + $0x1cc] sm:$0xf]  ;;  %v8801_v14 = vor.u32 %v10190_v51, %v8800_v58  ;;  %v8438_v58 = vld [vmem:[#allocation13 + $0x10c] sm:$0xf0]  ;;  %v10152_v51 = vld [vmem:[#allocation13 + $0x2b4] sm:$0xf] }
 0x346   :  { %v10291_v39 = vld [vmem:[#allocation13 + $0x70c] sm:$0xf]  ;;  %v8545_v29 = vor.u32 %v10123_v53, %v8542_v54  ;;  %v8437_v53 = vor.u32 %v10099_v43, %v8436_v40  ;;  %v10229_v40 = vld [vmem:[#allocation13 + $0x51c] sm:$0xf] }
 0x347   :  { %v9217_v3 = vor.u32 %v10291_v39, %v9214_v59  ;;  %v10092_v39 = vld [vmem:[#allocation13 + $0xd0] sm:$0xf0]  ;;  %v9080_v59 = vld [vmem:[#allocation13 + $0x5f8] sm:$0xf] }
 0x348   :  { %5765 = vmatpush.bf16.msra.mxu0 %v8685_v9  ;;  %5807 = vmatpush.bf16.msra.mxu3 %v9357_v28  ;;  %v10120_v9 = vld [vmem:[#allocation13 + $0x1b0] sm:$0xf0]  ;;  %v8772_v28 = vld [vmem:[#allocation13 + $0x390] sm:$0xf] }
 0x349   :  { %5835 = vmatpush.bf16.msrb.mxu1 %v8689_v34  ;;  %5849 = vmatpush.bf16.msrb.mxu2 %v8913_v50  ;;  %v10183_v34 = vld [vmem:[#allocation13 + $0x3a8] sm:$0xf0]  ;;  %v10117_v50 = vld [vmem:[#allocation13 + $0x19c] sm:$0xf] }
 0x34a   :  { %v8525_v41 = vor.u32 %v10117_v50, %v8522_v1  ;;  %v10085_v50 = vld [vmem:[#allocation13 + $0x98] sm:$0xf0]  ;;  %v9052_v1 = vld [vmem:[#allocation13 + $0x5c0] sm:$0xf] }
 0x34c   :  { %5766 = vmatpush.bf16.msra.mxu0 %v8657_v27  ;;  %5808 = vmatpush.bf16.msra.mxu3 %v9329_v5  ;;  %v8521_v27 = vor.u32 %v10120_v9, %v8520_v12  ;;  %v8773_v5 = vor.u32 %v10183_v34, %v8772_v28  ;;  %v8410_v12 = vld [vmem:[#allocation13 + $0xd4] sm:$0xf0]  ;;  %v10145_v9 = vld [vmem:[#allocation13 + $0x27c] sm:$0xf] }
 0x34d   :  { %5836 = vmatpush.bf16.msrb.mxu1 %v8661_v6  ;;  %5850 = vmatpush.bf16.msrb.mxu2 %v8885_v30  ;;  %v9193_v6 = vor.u32 %v10288_v24, %v9192_v44  ;;  %v9164_v30 = vld [vmem:[#allocation13 + $0x6a0] sm:$0xf]  ;;  %v8634_v28 = vld [vmem:[#allocation13 + $0x294] sm:$0xf0] }
 0x34e   :  { %v8380_v24 = vld [vmem:[#allocation13 + $0x80] sm:$0xf] }
 0x350   :  { %5767 = vmatpush.bf16.msra.mxu0 %v8629_v11  ;;  %5809 = vmatpush.bf16.msra.mxu3 %v9301_v13  ;;  %v8718_v11 = vld [vmem:[#allocation13 + $0x33c] sm:$0xf0]  ;;  %v8493_v13 = vor.u32 %v10113_v42, %v8492_v7  ;;  %v8385_v7 = vor.u32 %v10082_v60, %v8382_v4  ;;  %v8352_v42 = vld [vmem:[#allocation13 + $0x48] sm:$0xf]  ;;  %v10327_v4 = vld [vmem:[#allocation13 + $0x82c] sm:$0xf] }
 0x351   :  { %5837 = vmatpush.bf16.msrb.mxu1 %v8633_v15  ;;  %5851 = vmatpush.bf16.msrb.mxu2 %v8857_v22  ;;  %v9165_v15 = vor.u32 %v10281_v18, %v9164_v30  ;;  %v9136_v22 = vld [vmem:[#allocation13 + $0x668] sm:$0xf]  ;;  %v8721_v47 = vor.u32 %v10166_v8, %v8718_v11  ;;  %v10078_v30 = vld [vmem:[#allocation13 + $0x60] sm:$0xf0]  ;;  %v10131_v11 = vld [vmem:[#allocation13 + $0x20c] sm:$0xf] }
 0x352   :  { %v8354_v8 = vld [vmem:[#allocation13 + $0x64] sm:$0xf0] }
 0x353   :  { %v8914_v60 = vld [vmem:[#allocation13 + $0x4c4] sm:$0xf0] }
 0x354   :  { %5768 = vmatpush.bf16.msra.mxu0 %v8601_v32  ;;  %5810 = vmatpush.bf16.msra.mxu3 %v9273_v0  ;;  %v8690_v32 = vld [vmem:[#allocation13 + $0x304] sm:$0xf0]  ;;  %v8465_v0 = vor.u32 %v10106_v21, %v8464_v56  ;;  %v10071_v56 = vld [vmem:[#allocation13 + $0x28] sm:$0xf0] }
 0x355   :  { %5838 = vmatpush.bf16.msrb.mxu1 %v8605_v33  ;;  %5852 = vmatpush.bf16.msrb.mxu2 %v8829_v45  ;;  %v9137_v33 = vor.u32 %v10274_v23, %v9136_v22  ;;  %v9108_v45 = vld [vmem:[#allocation13 + $0x630] sm:$0xf]  ;;  %v8693_v46 = vor.u32 %v10159_v31, %v8690_v32  ;;  %v8357_v22 = vor.u32 %v10075_v63, %v8354_v8  ;;  %v10239_v23 = vld [vmem:[#allocation13 + $0x568] sm:$0xf0]  ;;  %v9416_v32 = vld [vmem:[#allocation13 + $0x898] sm:$0xf] }
 0x356   :  { %v9109_v54 = vor.u32 %v10267_v48, %v9108_v45  ;;  %v8326_v31 = vld [vmem:[#allocation13 + $0x2c] sm:$0xf0]  ;;  %v8970_v45 = vld [vmem:[#allocation13 + $0x534] sm:$0xf0]  ;;  %v10320_v8 = vld [vmem:[#allocation13 + $0x7f4] sm:$0xf] }
 0x357   :  { %v9418_v48 = vld [vmem:[#allocation13 + $0x8b4] sm:$0xf0]  ;;  %v8886_v63 = vld [vmem:[#allocation13 + $0x48c] sm:$0xf0] }
 0x358   :  { %5769 = vmatpush.bf16.msra.mxu0 %v8573_v52  ;;  %5811 = vmatpush.bf16.msra.mxu3 %v9245_v55  ;;  %v8662_v52 = vld [vmem:[#allocation13 + $0x2cc] sm:$0xf0]  ;;  %v8441_v55 = vor.u32 %v10096_v35, %v8438_v58  ;;  %v8329_v58 = vor.u32 %v10068_v25, %v8326_v31  ;;  %v11059_v25 = vpop.f32.mrf.mxu1  ;;  %v8858_v31 = vld [vmem:[#allocation13 + $0x454] sm:$0xf0] }
 0x359   :  { %5839 = vmatpush.bf16.msrb.mxu1 %v8577_v57  ;;  %5853 = vmatpush.bf16.msrb.mxu2 %v8801_v14  ;;  %v8408_v57 = vld [vmem:[#allocation13 + $0xb8] sm:$0xf]  ;;  %v8665_v61 = vor.u32 %v10152_v51, %v8662_v52  ;;  %v10260_v14 = vld [vmem:[#allocation13 + $0x610] sm:$0xf0]  ;;  %v8528_v51 = vld [vmem:[#allocation13 + $0x1a0] sm:$0xf] }
 0x35a   :  { %v8409_v34 = vor.u32 %v10092_v39, %v8408_v57  ;;  %v9081_v44 = vor.u32 %v10260_v14, %v9080_v59  ;;  %v10121_v52 = vld [vmem:[#allocation13 + $0x1b8] sm:$0xf0]  ;;  %v9388_v39 = vld [vmem:[#allocation13 + $0x860] sm:$0xf] }
 0x35b   :  { %v10337_v59 = vld [vmem:[#allocation13 + $0x878] sm:$0xf0]  ;;  %v8529_v14 = vor.u32 %v10121_v52, %v8528_v51  ;;  %v8830_v52 = vld [vmem:[#allocation13 + $0x41c] sm:$0xf0] }
 0x35c   :  { %5770 = vmatpush.bf16.msra.mxu0 %v8545_v29  ;;  %5812 = vmatpush.bf16.msra.mxu3 %v9217_v3  ;;  %v8413_v29 = vor.u32 %v10089_v62, %v8410_v12  ;;  %v8637_v3 = vor.u32 %v10145_v9, %v8634_v28  ;;  %v8942_v62 = vld [vmem:[#allocation13 + $0x4fc] sm:$0xf0]  ;;  %v10334_v12 = vld [vmem:[#allocation13 + $0x864] sm:$0xf]  ;;  %v8500_v28 = vld [vmem:[#allocation13 + $0x168] sm:$0xf] }
 0x35d   :  { %5840 = vmatpush.bf16.msrb.mxu1 %v8549_v26  ;;  %5854 = vmatpush.bf16.msrb.mxu2 %v8773_v5  ;;  %v10253_v26 = vld [vmem:[#allocation13 + $0x5d8] sm:$0xf0]  ;;  %v8606_v5 = vld [vmem:[#allocation13 + $0x25c] sm:$0xf0] }
 0x35e   :  { %v9390_v9 = vld [vmem:[#allocation13 + $0x87c] sm:$0xf0] }
 0x35f   :  { %5771 = vmatmul.bf16.vlgmr.msra.gmra.mxu0 %v11024_v2  ;;  %5813 = vmatmul.bf16.vlgmr.msra.gmra.mxu3 %v11039_v36 }
 0x360   :  { %5819 = vmatpush.bf16.msrb.mxu0 %v8521_v27  ;;  %5861 = vmatpush.bf16.msrb.mxu3 %v9193_v6  ;;  %v10138_v27 = vld [vmem:[#allocation13 + $0x244] sm:$0xf]  ;;  %v8381_v6 = vor.u32 %v10085_v50, %v8380_v24  ;;  %v9393_v24 = vor.u32 %v10334_v12, %v9390_v9  ;;  %v9360_v50 = vld [vmem:[#allocation13 + $0x828] sm:$0xf]  ;;  %v10187_v9 = vld [vmem:[#allocation13 + $0x3cc] sm:$0xf] }
 0x361   :  { %5889 = vmatpush.bf16.msra.mxu1 %v8525_v41  ;;  %5903 = vmatpush.bf16.msra.mxu2 %v8749_v19  ;;  %v9053_v41 = vor.u32 %v10253_v26, %v9052_v1  ;;  %v9024_v19 = vld [vmem:[#allocation13 + $0x588] sm:$0xf]  ;;  %v8609_v18 = vor.u32 %v10138_v27, %v8606_v5  ;;  %v10330_v1 = vld [vmem:[#allocation13 + $0x840] sm:$0xf0]  ;;  %v8472_v5 = vld [vmem:[#allocation13 + $0x130] sm:$0xf] }
 0x362   :  { %5841 = vmatmul.bf16.vlgmr.msrb.gmra.mxu1 %v11024_v2  ;;  %5855 = vmatmul.bf16.vlgmr.msrb.gmra.mxu2 %v11027_v49  ;;  %v9025_v21 = vor.u32 %v10246_v10, %v9024_v19  ;;  %v9362_v27 = vld [vmem:[#allocation13 + $0x844] sm:$0xf0]  ;;  %v10323_v19 = vld [vmem:[#allocation13 + $0x808] sm:$0xf0]  ;;  %v10302_v12 = vld [vmem:[#allocation13 + $0x760] sm:$0xf0] }
 0x364   :  { %5820 = vmatpush.bf16.msrb.mxu0 %v8493_v13  ;;  %5862 = vmatpush.bf16.msrb.mxu3 %v9165_v15  ;;  %v8578_v13 = vld [vmem:[#allocation13 + $0x224] sm:$0xf0]  ;;  %v8353_v15 = vor.u32 %v10078_v30, %v8352_v42  ;;  %v9365_v42 = vor.u32 %v10327_v4, %v9362_v27  ;;  %v9332_v30 = vld [vmem:[#allocation13 + $0x7f0] sm:$0xf] }
 0x365   :  { %5890 = vmatpush.bf16.msra.mxu1 %v8497_v20  ;;  %5904 = vmatpush.bf16.msra.mxu2 %v8721_v47  ;;  %v8324_v20 = vld [vmem:[#allocation13 + $0x10] sm:$0xf]  ;;  %v8581_v16 = vor.u32 %v10131_v11, %v8578_v13  ;;  %v8444_v13 = vld [vmem:[#allocation13 + $0xf8] sm:$0xf] }
 0x366   :  { %v8996_v47 = vld [vmem:[#allocation13 + $0x550] sm:$0xf]  ;;  %v8325_v43 = vor.u32 %v10071_v56, %v8324_v20  ;;  %v9333_v20 = vor.u32 %v10323_v19, %v9332_v30 }
 0x367   :  { %v8997_v35 = vor.u32 %v10239_v23, %v8996_v47  ;;  %v9334_v11 = vld [vmem:[#allocation13 + $0x80c] sm:$0xf0]  ;;  %v10316_v47 = vld [vmem:[#allocation13 + $0x7d0] sm:$0xf0]  ;;  %v10201_v23 = vld [vmem:[#allocation13 + $0x43c] sm:$0xf] }
 0x368   :  { %5821 = vmatpush.bf16.msrb.mxu0 %v8465_v0  ;;  %5863 = vmatpush.bf16.msrb.mxu3 %v9137_v33  ;;  %v10344_v0 = vld [vmem:[#allocation13 + $0x8b0] sm:$0xf0]  ;;  %v9222_v19 = vld [vmem:[#allocation13 + $0x72c] sm:$0xf0] }
 0x369   :  { %5891 = vmatpush.bf16.msra.mxu1 %v8469_v38  ;;  %5905 = vmatpush.bf16.msra.mxu2 %v8693_v46  ;;  %v10124_v33 = vld [vmem:[#allocation13 + $0x1d4] sm:$0xf]  ;;  %v8550_v38 = vld [vmem:[#allocation13 + $0x1ec] sm:$0xf0]  ;;  %v10341_v46 = vld [vmem:[#allocation13 + $0x89c] sm:$0xf] }
 0x36a   :  { %v9421_v57 = vor.u32 %v10341_v46, %v9418_v48  ;;  %v9276_v48 = vld [vmem:[#allocation13 + $0x780] sm:$0xf] }
 0x36c   :  { %5822 = vmatpush.bf16.msrb.mxu0 %v8437_v53  ;;  %5864 = vmatpush.bf16.msrb.mxu3 %v9109_v54  ;;  %v9417_v53 = vor.u32 %v10344_v0, %v9416_v32  ;;  %v8553_v54 = vor.u32 %v10124_v33, %v8550_v38  ;;  %v10313_v32 = vld [vmem:[#allocation13 + $0x7bc] sm:$0xf]  ;;  %v9306_v0 = vld [vmem:[#allocation13 + $0x7d4] sm:$0xf0]  ;;  %v11061_v33 = vpop.f32.mrf.mxu2  ;;  %v8416_v38 = vld [vmem:[#allocation13 + $0xc0] sm:$0xf] }
 0x36d   :  { %5892 = vmatpush.bf16.msra.mxu1 %v8441_v55  ;;  %5906 = vmatpush.bf16.msra.mxu2 %v8665_v61  ;;  %v8973_v55 = vor.u32 %v10229_v40, %v8970_v45  ;;  %v10222_v61 = vld [vmem:[#allocation13 + $0x4e4] sm:$0xf]  ;;  %v10093_v40 = vld [vmem:[#allocation13 + $0xd8] sm:$0xf0]  ;;  %v8861_v45 = vor.u32 %v10201_v23, %v8858_v31  ;;  %v9309_v46 = vor.u32 %v10313_v32, %v9306_v0 }
 0x36e   :  { %v8417_v51 = vor.u32 %v10093_v40, %v8416_v38  ;;  %v10345_v23 = vld [vmem:[#allocation13 + $0x8b8] sm:$0xf0]  ;;  %v10278_v40 = vld [vmem:[#allocation13 + $0x6a4] sm:$0xf] }
 0x370   :  { %5823 = vmatpush.bf16.msrb.mxu0 %v8409_v34  ;;  %5865 = vmatpush.bf16.msrb.mxu3 %v9081_v44  ;;  %v10114_v34 = vld [vmem:[#allocation13 + $0x180] sm:$0xf0]  ;;  %v9389_v44 = vor.u32 %v10337_v59, %v9388_v39  ;;  %v11063_v39 = vpop.f32.mrf.mxu0 }
 0x371   :  { %5893 = vmatpush.bf16.msra.mxu1 %v8413_v29  ;;  %5907 = vmatpush.bf16.msra.mxu2 %v8637_v3  ;;  %v8945_v29 = vor.u32 %v10222_v61, %v8942_v62  ;;  %v10215_v3 = vld [vmem:[#allocation13 + $0x4ac] sm:$0xf]  ;;  %v8501_v26 = vor.u32 %v10114_v34, %v8500_v28  ;;  %v9248_v62 = vld [vmem:[#allocation13 + $0x748] sm:$0xf] }
 0x372   :  { %v8802_v34 = vld [vmem:[#allocation13 + $0x3e4] sm:$0xf0] }
 0x373   :  { %v8805_v27 = vor.u32 %v10187_v9, %v8802_v34  ;;  %v9144_v34 = vld [vmem:[#allocation13 + $0x670] sm:$0xf] }
 0x374   :  { %5824 = vmatpush.bf16.msrb.mxu0 %v8381_v6  ;;  %5866 = vmatpush.bf16.msrb.mxu3 %v9053_v41  ;;  %v10107_v6 = vld [vmem:[#allocation13 + $0x148] sm:$0xf0]  ;;  %v9361_v41 = vor.u32 %v10330_v1, %v9360_v50  ;;  %v11065_v1 = vpop.f32.mrf.mxu1  ;;  %v11067_v4 = vpop.f32.mrf.mxu2 }
 0x375   :  { %5894 = vmatpush.bf16.msra.mxu1 %v8385_v7  ;;  %5908 = vmatpush.bf16.msra.mxu2 %v8609_v18  ;;  %v8917_v7 = vor.u32 %v10215_v3, %v8914_v60  ;;  %v10208_v18 = vld [vmem:[#allocation13 + $0x474] sm:$0xf]  ;;  %v8473_v10 = vor.u32 %v10107_v6, %v8472_v5  ;;  %v10079_v50 = vld [vmem:[#allocation13 + $0x68] sm:$0xf0]  ;;  %v9249_v3 = vor.u32 %v10302_v12, %v9248_v62  ;;  %v8696_v62 = vld [vmem:[#allocation13 + $0x2f0] sm:$0xf] }
 0x376   :  { %v8889_v56 = vor.u32 %v10208_v18, %v8886_v63  ;;  %v10295_v60 = vld [vmem:[#allocation13 + $0x728] sm:$0xf0]  ;;  %v10180_v6 = vld [vmem:[#allocation13 + $0x394] sm:$0xf]  ;;  %v10285_v18 = vld [vmem:[#allocation13 + $0x6dc] sm:$0xf] }
 0x377   :  { %v8332_v63 = vld [vmem:[#allocation13 + $0x18] sm:$0xf] }
 0x378   :  { %5825 = vmatpush.bf16.msrb.mxu0 %v8353_v15  ;;  %5867 = vmatpush.bf16.msrb.mxu3 %v9025_v21  ;;  %v10100_v15 = vld [vmem:[#allocation13 + $0x110] sm:$0xf0]  ;;  %v9337_v21 = vor.u32 %v10320_v8, %v9334_v11  ;;  %v8752_v11 = vld [vmem:[#allocation13 + $0x360] sm:$0xf] }
 0x379   :  { %5895 = vmatpush.bf16.msra.mxu1 %v8357_v22  ;;  %5909 = vmatpush.bf16.msra.mxu2 %v8581_v16  ;;  %v9304_v22 = vld [vmem:[#allocation13 + $0x7b8] sm:$0xf]  ;;  %v8445_v16 = vor.u32 %v10100_v15, %v8444_v13  ;;  %v10072_v8 = vld [vmem:[#allocation13 + $0x30] sm:$0xf0]  ;;  %v10177_v15 = vld [vmem:[#allocation13 + $0x378] sm:$0xf0] }
 0x37a   :  { %v8333_v32 = vor.u32 %v10072_v8, %v8332_v63  ;;  %v8753_v0 = vor.u32 %v10177_v15, %v8752_v11  ;;  %v10257_v11 = vld [vmem:[#allocation13 + $0x5fc] sm:$0xf]  ;;  %v8640_v15 = vld [vmem:[#allocation13 + $0x280] sm:$0xf] }
 0x37c   :  { %5826 = vmatpush.bf16.msrb.mxu0 %v8325_v43  ;;  %5868 = vmatpush.bf16.msrb.mxu3 %v8997_v35  ;;  %v9305_v43 = vor.u32 %v10316_v47, %v9304_v22  ;;  %v10309_v35 = vld [vmem:[#allocation13 + $0x798] sm:$0xf0]  ;;  %v9424_v47 = vld [vmem:[#allocation13 + $0x8a0] sm:$0xf] }
 0x37d   :  { %5896 = vmatpush.bf16.msra.mxu1 %v8329_v58  ;;  %5910 = vmatpush.bf16.msra.mxu2 %v8553_v54  ;;  %v10194_v58 = vld [vmem:[#allocation13 + $0x404] sm:$0xf]  ;;  %v9278_v54 = vld [vmem:[#allocation13 + $0x79c] sm:$0xf0]  ;;  %v9277_v59 = vor.u32 %v10309_v35, %v9276_v48  ;;  %v9172_v35 = vld [vmem:[#allocation13 + $0x6a8] sm:$0xf] }
 0x37e   :  { %v8833_v61 = vor.u32 %v10194_v58, %v8830_v52  ;;  %v10170_v48 = vld [vmem:[#allocation13 + $0x340] sm:$0xf0] }
 0x37f   :  { %5827 = vmatmul.bf16.vlgmr.msrb.gmra.mxu0 %v11018_v17  ;;  %5869 = vmatmul.bf16.vlgmr.msrb.gmra.mxu3 %v11033_v37  ;;  %v10282_v58 = vld [vmem:[#allocation13 + $0x6c0] sm:$0xf0] }
 0x380   :  { %5875 = vmatpush.bf16.msra.mxu0 %v9417_v53  ;;  %5917 = vmatpush.bf16.msra.mxu3 %v8973_v55  ;;  %v10306_v53 = vld [vmem:[#allocation13 + $0x784] sm:$0xf]  ;;  %v8388_v55 = vld [vmem:[#allocation13 + $0x88] sm:$0xf] }
 0x381   :  { %5945 = vmatpush.bf16.msrb.mxu1 %v9421_v57  ;;  %5959 = vmatpush.bf16.msrb.mxu2 %v8529_v14  ;;  %v10086_v57 = vld [vmem:[#allocation13 + $0xa0] sm:$0xf0]  ;;  %v9281_v14 = vor.u32 %v10306_v53, %v9278_v54  ;;  %v11073_v53 = vpop.f32.mrf.mxu1 }
 0x382   :  { %5897 = vmatmul.bf16.vlgmr.msra.gmra.mxu1 %v11018_v17  ;;  %5911 = vmatmul.bf16.vlgmr.msra.gmra.mxu2 %v11024_v2  ;;  %v8389_v28 = vor.u32 %v10086_v57, %v8388_v55  ;;  %v10338_v52 = vld [vmem:[#allocation13 + $0x880] sm:$0xf0]  ;;  %v11075_v55 = vpop.f32.mrf.mxu2 }
 0x384   :  { %5876 = vmatpush.bf16.msra.mxu0 %v9389_v44  ;;  %5918 = vmatpush.bf16.msra.mxu3 %v8945_v29  ;;  %v10299_v44 = vld [vmem:[#allocation13 + $0x74c] sm:$0xf]  ;;  %v9250_v29 = vld [vmem:[#allocation13 + $0x764] sm:$0xf0] }
 0x385   :  { %5946 = vmatpush.bf16.msrb.mxu1 %v9393_v24  ;;  %5960 = vmatpush.bf16.msrb.mxu2 %v8501_v26  ;;  %v8360_v24 = vld [vmem:[#allocation13 + $0x50] sm:$0xf]  ;;  %v9253_v5 = vor.u32 %v10299_v44, %v9250_v29  ;;  %v10275_v44 = vld [vmem:[#allocation13 + $0x688] sm:$0xf0] }
 0x386   :  { %v9220_v26 = vld [vmem:[#allocation13 + $0x710] sm:$0xf]  ;;  %v8361_v30 = vor.u32 %v10079_v50, %v8360_v24  ;;  %v10331_v24 = vld [vmem:[#allocation13 + $0x848] sm:$0xf0] }
 0x387   :  { %v9221_v13 = vor.u32 %v10295_v60, %v9220_v26  ;;  %v9368_v29 = vld [vmem:[#allocation13 + $0x830] sm:$0xf]  ;;  %v9145_v60 = vor.u32 %v10275_v44, %v9144_v34 }
 0x388   :  { %5877 = vmatpush.bf16.msra.mxu0 %v9361_v41  ;;  %5919 = vmatpush.bf16.msra.mxu3 %v8917_v7  ;;  %v8774_v41 = vld [vmem:[#allocation13 + $0x3ac] sm:$0xf0]  ;;  %v10292_v7 = vld [vmem:[#allocation13 + $0x714] sm:$0xf] }
 0x389   :  { %5947 = vmatpush.bf16.msrb.mxu1 %v9365_v42  ;;  %5961 = vmatpush.bf16.msrb.mxu2 %v8473_v10  ;;  %v11069_v42 = vpop.f32.mrf.mxu3  ;;  %v9194_v10 = vld [vmem:[#allocation13 + $0x6f4] sm:$0xf0]  ;;  %v9225_v22 = vor.u32 %v10292_v7, %v9222_v19  ;;  %v10156_v7 = vld [vmem:[#allocation13 + $0x2d0] sm:$0xf0]  ;;  %v8584_v34 = vld [vmem:[#allocation13 + $0x210] sm:$0xf] }
 0x38a   :  { %v9197_v31 = vor.u32 %v10285_v18, %v9194_v10  ;;  %v10268_v19 = vld [vmem:[#allocation13 + $0x650] sm:$0xf0]  ;;  %v9340_v18 = vld [vmem:[#allocation13 + $0x7f8] sm:$0xf] }
 0x38b   :  { %v10324_v10 = vld [vmem:[#allocation13 + $0x810] sm:$0xf0] }
 0x38c   :  { %5878 = vmatpush.bf16.msra.mxu0 %v9333_v20  ;;  %5920 = vmatpush.bf16.msra.mxu3 %v8889_v56  ;;  %v9200_v20 = vld [vmem:[#allocation13 + $0x6e0] sm:$0xf]  ;;  %v10289_v56 = vld [vmem:[#allocation13 + $0x6f8] sm:$0xf0] }
 0x38d   :  { %5948 = vmatpush.bf16.msrb.mxu1 %v9337_v21  ;;  %5962 = vmatpush.bf16.msrb.mxu2 %v8445_v16  ;;  %v8777_v21 = vor.u32 %v10180_v6, %v8774_v41  ;;  %v11071_v16 = vpop.f32.mrf.mxu0  ;;  %v9201_v38 = vor.u32 %v10289_v56, %v9200_v20  ;;  %v8668_v6 = vld [vmem:[#allocation13 + $0x2b8] sm:$0xf]  ;;  %v9369_v41 = vor.u32 %v10331_v24, %v9368_v29  ;;  %v11085_v20 = vpop.f32.mrf.mxu1  ;;  %v10135_v24 = vld [vmem:[#allocation13 + $0x228] sm:$0xf0] }
 0x38e   :  { %v8669_v63 = vor.u32 %v10156_v7, %v8668_v6  ;;  %v9341_v56 = vor.u32 %v10324_v10, %v9340_v18  ;;  %v8585_v7 = vor.u32 %v10135_v24, %v8584_v34  ;;  %v8556_v18 = vld [vmem:[#allocation13 + $0x1d8] sm:$0xf]  ;;  %v10128_v10 = vld [vmem:[#allocation13 + $0x1f0] sm:$0xf0] }
 0x38f   :  { %v10376_v24 = vld [vmem:[#allocation16 + $0xf0] sm:$0xff] }
 0x390   :  { %5879 = vmatpush.bf16.msra.mxu0 %v9305_v43  ;;  %5921 = vmatpush.bf16.msra.mxu3 %v8861_v45  ;;  %v9166_v43 = vld [vmem:[#allocation13 + $0x6bc] sm:$0xf0]  ;;  %v8724_v45 = vld [vmem:[#allocation13 + $0x328] sm:$0xf] }
 0x391   :  { %5949 = vmatpush.bf16.msrb.mxu1 %v9309_v46  ;;  %5963 = vmatpush.bf16.msrb.mxu2 %v8417_v51  ;;  %v9425_v46 = vor.u32 %v10345_v23, %v9424_v47  ;;  %v9396_v51 = vld [vmem:[#allocation13 + $0x868] sm:$0xf]  ;;  %v9169_v54 = vor.u32 %v10278_v40, %v9166_v43  ;;  %v8725_v57 = vor.u32 %v10170_v48, %v8724_v45  ;;  %v11077_v12 = vpop.f32.mrf.mxu3  ;;  %v10261_v47 = vld [vmem:[#allocation13 + $0x618] sm:$0xf0]  ;;  %v11087_v23 = vpop.f32.mrf.mxu2  ;;  %v9054_v48 = vld [vmem:[#allocation13 + $0x5dc] sm:$0xf0] }
 0x392   :  { %v9397_v9 = vor.u32 %v10338_v52, %v9396_v51  ;;  %v10142_v51 = vld [vmem:[#allocation13 + $0x260] sm:$0xf0]  ;;  %v9060_v52 = vld [vmem:[#allocation13 + $0x5c8] sm:$0xf] }
 0x394   :  { %5880 = vmatpush.bf16.msra.mxu0 %v9277_v59  ;;  %5922 = vmatpush.bf16.msra.mxu3 %v8833_v61  ;;  %v9173_v59 = vor.u32 %v10282_v58, %v9172_v35  ;;  %v10271_v61 = vld [vmem:[#allocation13 + $0x66c] sm:$0xf]  ;;  %v8612_v35 = vld [vmem:[#allocation13 + $0x248] sm:$0xf] }
 0x395   :  { %5950 = vmatpush.bf16.msrb.mxu1 %v9281_v14  ;;  %5964 = vmatpush.bf16.msrb.mxu2 %v8389_v28  ;;  %v9138_v14 = vld [vmem:[#allocation13 + $0x684] sm:$0xf0]  ;;  %v10163_v28 = vld [vmem:[#allocation13 + $0x308] sm:$0xf0] }
 0x396   :  { %v9141_v50 = vor.u32 %v10271_v61, %v9138_v14  ;;  %v8697_v26 = vor.u32 %v10163_v28, %v8696_v62  ;;  %v8613_v14 = vor.u32 %v10142_v51, %v8612_v35  ;;  %v9026_v28 = vld [vmem:[#allocation13 + $0x5a4] sm:$0xf0]  ;;  %v10226_v35 = vld [vmem:[#allocation13 + $0x500] sm:$0xf0] }
 0x398   :  { %5881 = vmatpush.bf16.msra.mxu0 %v9249_v3  ;;  %5923 = vmatpush.bf16.msra.mxu3 %v8805_v27  ;;  %v10264_v27 = vld [vmem:[#allocation13 + $0x634] sm:$0xf] }
 0x399   :  { %5951 = vmatpush.bf16.msrb.mxu1 %v9253_v5  ;;  %5965 = vmatpush.bf16.msrb.mxu2 %v8361_v30  ;;  %v9110_v5 = vld [vmem:[#allocation13 + $0x64c] sm:$0xf0]  ;;  %v9116_v30 = vld [vmem:[#allocation13 + $0x638] sm:$0xf] }
 0x39a   :  { %v9117_v8 = vor.u32 %v10268_v19, %v9116_v30  ;;  %v8998_v19 = vld [vmem:[#allocation13 + $0x56c] sm:$0xf0] }
 0x39c   :  { %5882 = vmatpush.bf16.msra.mxu0 %v9221_v13  ;;  %5924 = vmatpush.bf16.msra.mxu3 %v8777_v21  ;;  %v11083_v3 = vpop.f32.mrf.mxu0  ;;  %v9082_v13 = vld [vmem:[#allocation13 + $0x614] sm:$0xf0]  ;;  %v10149_v21 = vld [vmem:[#allocation13 + $0x298] sm:$0xf0]  ;;  %v11093_v44 = vpop.f32.mrf.mxu1 }
 0x39d   :  { %5952 = vmatpush.bf16.msrb.mxu1 %v9225_v22  ;;  %5966 = vmatpush.bf16.msrb.mxu2 %v8333_v32  ;;  %v9088_v22 = vld [vmem:[#allocation13 + $0x600] sm:$0xf]  ;;  %v10317_v32 = vld [vmem:[#allocation13 + $0x7d8] sm:$0xf0]  ;;  %v8641_v43 = vor.u32 %v10149_v21, %v8640_v15  ;;  %v9228_v21 = vld [vmem:[#allocation13 + $0x718] sm:$0xf] }
 0x39e   :  { %v9089_v45 = vor.u32 %v10261_v47, %v9088_v22  ;;  %v8976_v15 = vld [vmem:[#allocation13 + $0x520] sm:$0xf]  ;;  %v10296_v22 = vld [vmem:[#allocation13 + $0x730] sm:$0xf0] }
 0x39f   :  { %5883 = vmatmul.bf16.vlgmr.msra.gmra.mxu0 %v11039_v36  ;;  %5925 = vmatmul.bf16.vlgmr.msra.gmra.mxu3 %v11027_v49 }
 0x3a0   :  { %5931 = vmatpush.bf16.msrb.mxu0 %v9197_v31  ;;  %5973 = vmatpush.bf16.msrb.mxu3 %v8753_v0  ;;  %v9312_v31 = vld [vmem:[#allocation13 + $0x7c0] sm:$0xf]  ;;  %v11089_v0 = vpop.f32.mrf.mxu3 }
 0x3a1   :  { %6001 = vmatpush.bf16.msra.mxu1 %v9201_v38  ;;  %6015 = vmatpush.bf16.msra.mxu2 %v9425_v46  ;;  %v9085_v38 = vor.u32 %v10257_v11, %v9082_v13  ;;  %v10250_v46 = vld [vmem:[#allocation13 + $0x5c4] sm:$0xf]  ;;  %v9313_v58 = vor.u32 %v10317_v32, %v9312_v31  ;;  %v9004_v11 = vld [vmem:[#allocation13 + $0x558] sm:$0xf]  ;;  %v10240_v13 = vld [vmem:[#allocation13 + $0x570] sm:$0xf0]  ;;  %v8557_v31 = vor.u32 %v10128_v10, %v8556_v18 }
 0x3a2   :  { %5953 = vmatmul.bf16.vlgmr.msrb.gmra.mxu1 %v11039_v36  ;;  %5967 = vmatmul.bf16.vlgmr.msrb.gmra.mxu2 %v11018_v17  ;;  %v9113_v17 = vor.u32 %v10264_v27, %v9110_v5  ;;  %v9057_v61 = vor.u32 %v10250_v46, %v9054_v48  ;;  %v10303_v27 = vld [vmem:[#allocation13 + $0x768] sm:$0xf0]  ;;  %v9005_v32 = vor.u32 %v10240_v13, %v9004_v11  ;;  %v10369_v46 = vld [vmem:[#allocation16 + $0xb8] sm:$0xff]  ;;  %v8948_v48 = vld [vmem:[#allocation13 + $0x4e8] sm:$0xf] }
 0x3a4   :  { %5932 = vmatpush.bf16.msrb.mxu0 %v9169_v54  ;;  %5974 = vmatpush.bf16.msrb.mxu3 %v8725_v57  ;;  %v11091_v40 = vpop.f32.mrf.mxu0  ;;  %v10254_v54 = vld [vmem:[#allocation13 + $0x5e0] sm:$0xf0]  ;;  %v9284_v57 = vld [vmem:[#allocation13 + $0x788] sm:$0xf] }
 0x3a5   :  { %6002 = vmatpush.bf16.msra.mxu1 %v9173_v59  ;;  %6016 = vmatpush.bf16.msra.mxu2 %v9397_v9  ;;  %v10310_v59 = vld [vmem:[#allocation13 + $0x7a0] sm:$0xf0]  ;;  %v9061_v62 = vor.u32 %v10254_v54, %v9060_v52  ;;  %v10243_v9 = vld [vmem:[#allocation13 + $0x58c] sm:$0xf]  ;;  %v8949_v52 = vor.u32 %v10226_v35, %v8948_v48  ;;  %v10352_v54 = vld [vmem:[#allocation16 + $0x30] sm:$0xff] }
 0x3a6   :  { %v9285_v29 = vor.u32 %v10310_v59, %v9284_v57  ;;  %v9029_v5 = vor.u32 %v10243_v9, %v9026_v28  ;;  %v10377_v57 = vld [vmem:[#allocation16 + $0xf8] sm:$0xff]  ;;  %v10368_v59 = vld [vmem:[#allocation16 + $0xb0] sm:$0xff] }
 0x3a7   :  { %v11109_v28 = vld [vmem:[#allocation14] sm:$0xff] }
 0x3a8   :  { %5933 = vmatpush.bf16.msrb.mxu0 %v9141_v50  ;;  %5975 = vmatpush.bf16.msrb.mxu3 %v8697_v26  ;;  %v9032_v50 = vld [vmem:[#allocation13 + $0x590] sm:$0xf]  ;;  %v10247_v26 = vld [vmem:[#allocation13 + $0x5a8] sm:$0xf0] }
 0x3a9   :  { %6003 = vmatpush.bf16.msra.mxu1 %v9145_v60  ;;  %6017 = vmatpush.bf16.msra.mxu2 %v9369_v41  ;;  %v9256_v60 = vld [vmem:[#allocation13 + $0x750] sm:$0xf]  ;;  %v10236_v41 = vld [vmem:[#allocation13 + $0x554] sm:$0xf]  ;;  %v9033_v30 = vor.u32 %v10247_v26, %v9032_v50  ;;  %v8892_v26 = vld [vmem:[#allocation13 + $0x478] sm:$0xf] }
 0x3aa   :  { %v9001_v47 = vor.u32 %v10236_v41, %v8998_v19  ;;  %v10367_v50 = vld [vmem:[#allocation16 + $0xa8] sm:$0xff]  ;;  %v10350_v41 = vld [vmem:[#allocation16 + $0x20] sm:$0xff]  ;;  %v10205_v19 = vld [vmem:[#allocation13 + $0x458] sm:$0xf0] }
 0x3ac   :  { %5934 = vmatpush.bf16.msrb.mxu0 %v9113_v17  ;;  %5976 = vmatpush.bf16.msrb.mxu3 %v8669_v63  ;;  %v11095_v6 = vpop.f32.mrf.mxu0  ;;  %v11097_v17 = vpop.f32.mrf.mxu2 }
 0x3ad   :  { %6004 = vmatpush.bf16.msra.mxu1 %v9117_v8  ;;  %6018 = vmatpush.bf16.msra.mxu2 %v9341_v56  ;;  %v11099_v63 = vpop.f32.mrf.mxu3  ;;  %v9257_v8 = vor.u32 %v10303_v27, %v9256_v60  ;;  %v10233_v56 = vld [vmem:[#allocation13 + $0x538] sm:$0xf0]  ;;  %v10212_v60 = vld [vmem:[#allocation13 + $0x490] sm:$0xf0]  ;;  %v4087_v27 = vperm.slane %v11109_v28, 2 }
 0x3af   :  { %v5689_v18 = vadd.f32 %v11097_v17, %v4087_v27 }
 0x3b0   :  { %5935 = vmatpush.bf16.msrb.mxu0 %v9085_v38  ;;  %5977 = vmatpush.bf16.msrb.mxu3 %v8641_v43  ;;  %v8977_v38 = vor.u32 %v10233_v56, %v8976_v15  ;;  %v9229_v43 = vor.u32 %v10296_v22, %v9228_v21  ;;  %v10349_v56 = vld [vmem:[#allocation16 + $0x18] sm:$0xff]  ;;  %v10374_v21 = vld [vmem:[#allocation16 + $0xe0] sm:$0xff] }
 0x3b1   :  { %6005 = vmatpush.bf16.msra.mxu1 %v9089_v45  ;;  %6019 = vmatpush.bf16.msra.mxu2 %v9313_v58  ;;  %v10353_v45 = vld [vmem:[#allocation16 + $0x38] sm:$0xff]  ;;  %v11101_v58 = vpop.f32.mrf.mxu1 }
 0x3b4   :  { %5936 = vmatpush.bf16.msrb.mxu0 %v9057_v61  ;;  %5978 = vmatpush.bf16.msrb.mxu3 %v8613_v14  ;;  %v11103_v51 = vpop.f32.mrf.mxu0  ;;  %v8920_v61 = vld [vmem:[#allocation13 + $0x4b0] sm:$0xf]  ;;  %v10219_v14 = vld [vmem:[#allocation13 + $0x4c8] sm:$0xf0] }
 0x3b5   :  { %6006 = vmatpush.bf16.msra.mxu1 %v9061_v62  ;;  %6020 = vmatpush.bf16.msra.mxu2 %v9285_v29  ;;  %v5690_v62 = vpop.f32.mrf.mxu2  ;;  %v5702_v9 = vpop.f32.mrf.mxu3  ;;  %v8921_v34 = vor.u32 %v10219_v14, %v8920_v61  ;;  %v10351_v29 = vld [vmem:[#allocation16 + $0x28] sm:$0xff]  ;;  %v10191_v14 = vld [vmem:[#allocation13 + $0x3e8] sm:$0xf0] }
 0x3b6   :  { %v5703_v11 = vadd.f32 %v5702_v9, %v5689_v18  ;;  %v5691_v22 = vadd.f32 %v5690_v62, %v4087_v27  ;;  %v8808_v61 = vld [vmem:[#allocation13 + $0x3d0] sm:$0xf] }
 0x3b8   :  { %5937 = vmatpush.bf16.msrb.mxu0 %v9029_v5  ;;  %5979 = vmatpush.bf16.msrb.mxu3 %v8585_v7  ;;  %v10366_v7 = vld [vmem:[#allocation16 + $0xa0] sm:$0xff] }
 0x3b9   :  { %6007 = vmatpush.bf16.msra.mxu1 %v9033_v30  ;;  %6021 = vmatpush.bf16.msra.mxu2 %v9257_v8  ;;  %v5730_v5 = vpop.f32.mrf.mxu1  ;;  %v8864_v30 = vld [vmem:[#allocation13 + $0x440] sm:$0xf]  ;;  %v4085_v8 = vperm.slane %v11109_v28, 0 }
 0x3ba   :  { %v8865_v15 = vor.u32 %v10205_v19, %v8864_v30  ;;  %v10346_v30 = vld [vmem:[#allocation16] sm:$0xff] }
 0x3bb   :  { %v10362_v19 = vld [vmem:[#allocation16 + $0x80] sm:$0xff] }
 0x3bc   :  { %5938 = vmatpush.bf16.msrb.mxu0 %v9001_v47  ;;  %5980 = vmatpush.bf16.msrb.mxu3 %v8557_v31  ;;  %v10365_v47 = vld [vmem:[#allocation16 + $0x98] sm:$0xff]  ;;  %v8836_v31 = vld [vmem:[#allocation13 + $0x408] sm:$0xf] }
 0x3bd   :  { %6008 = vmatpush.bf16.msra.mxu1 %v9005_v32  ;;  %6022 = vmatpush.bf16.msra.mxu2 %v9229_v43  ;;  %v5744_v10 = vpop.f32.mrf.mxu2  ;;  %v5704_v13 = vpop.f32.mrf.mxu3  ;;  %v10198_v32 = vld [vmem:[#allocation13 + $0x420] sm:$0xf0] }
 0x3be   :  { %v5705_v17 = vadd.f32 %v5704_v13, %v5691_v22  ;;  %v8837_v35 = vor.u32 %v10198_v32, %v8836_v31  ;;  %v10361_v13 = vld [vmem:[#allocation16 + $0x78] sm:$0xff] }
 0x3bf   :  { %5939 = vmatmul.bf16.vlgmr.msrb.gmra.mxu0 %v11033_v37  ;;  %5981 = vmatmul.bf16.vlgmr.msrb.gmra.mxu3 %v11024_v2  ;;  %v5716_v2 = vpop.f32.mrf.mxu0 }
 0x3c0   :  { %5987 = vmatpush.bf16.msra.mxu0 %v8977_v38  ;;  %6502 = vmatpush.bf16.msra.mxu3 %v10353_v45  ;;  %v5551_v38 = vadd.f32 %v11071_v16, %v4085_v8  ;;  %v5717_v43 = vadd.f32 %v5716_v2, %v5703_v11  ;;  %v5549_v45 = vadd.f32 %v11063_v39, %v4085_v8  ;;  %v10363_v2 = vld [vmem:[#allocation16 + $0x88] sm:$0xff] }
 0x3c1   :  { %6530 = vmatpush.bf16.msrb.mxu1 %v10369_v46  ;;  %6023 = vmatmul.bf16.vlgmr.msra.gmra.mxu2 %v11039_v36  ;;  %v10375_v36 = vld [vmem:[#allocation16 + $0xe8] sm:$0xff]  ;;  %v5732_v9 = vpop.f32.mrf.mxu1 }
 0x3c2   :  { %6009 = vmatmul.bf16.vlgmr.msra.gmra.mxu1 %v11033_v37  ;;  %6544 = vmatpush.bf16.msrb.mxu2 %v10377_v57  ;;  %v8893_v37 = vor.u32 %v10212_v60, %v8892_v26  ;;  %v5565_v46 = vadd.f32 %v11065_v1, %v5551_v38  ;;  %v5563_v16 = vadd.f32 %v11059_v25, %v5549_v45  ;;  %v10347_v26 = vld [vmem:[#allocation16 + $0x8] sm:$0xff]  ;;  %v10372_v60 = vld [vmem:[#allocation16 + $0xd0] sm:$0xff]  ;;  %v10358_v38 = vld [vmem:[#allocation16 + $0x60] sm:$0xff] }
 0x3c3   :  { %v5731_v39 = vadd.f32 %v5730_v5, %v5717_v43  ;;  %v8780_v25 = vld [vmem:[#allocation13 + $0x398] sm:$0xf]  ;;  %v4086_v43 = vperm.slane %v11109_v28, 1 }
 0x3c4   :  { %5988 = vmatpush.bf16.msra.mxu0 %v8949_v52  ;;  %6503 = vmatpush.bf16.msra.mxu3 %v10352_v54  ;;  %v10348_v52 = vld [vmem:[#allocation16 + $0x10] sm:$0xff]  ;;  %v10373_v54 = vld [vmem:[#allocation16 + $0xd8] sm:$0xff]  ;;  %v5579_v62 = vadd.f32 %v11067_v4, %v5565_v46  ;;  %v5577_v1 = vadd.f32 %v11061_v33, %v5563_v16 }
 0x3c5   :  { %6531 = vmatpush.bf16.msrb.mxu1 %v10368_v59  ;;  %v10364_v59 = vld [vmem:[#allocation16 + $0x90] sm:$0xff]  ;;  %v5758_v11 = vpop.f32.mrf.mxu3  ;;  %v5621_v46 = vadd.f32 %v11085_v20, %v4086_v43 }
 0x3c6   :  { %6545 = vmatpush.bf16.msrb.mxu2 %v10376_v24  ;;  %v5746_v24 = vpop.f32.mrf.mxu2  ;;  %v5591_v4 = vadd.f32 %v11069_v42, %v5577_v1 }
 0x3c7   :  { %v5718_v48 = vpop.f32.mrf.mxu0 }
 0x3c8   :  { %5989 = vmatpush.bf16.msra.mxu0 %v8921_v34  ;;  %6504 = vmatpush.bf16.msra.mxu3 %v10351_v29  ;;  %v5719_v57 = vadd.f32 %v5718_v48, %v5705_v17  ;;  %v5593_v29 = vadd.f32 %v11077_v12, %v5579_v62  ;;  %v5605_v33 = vadd.f32 %v11083_v3, %v5591_v4  ;;  %v10370_v3 = vld [vmem:[#allocation16 + $0xc0] sm:$0xff]  ;;  %v10356_v62 = vld [vmem:[#allocation16 + $0x50] sm:$0xff] }
 0x3c9   :  { %6532 = vmatpush.bf16.msrb.mxu1 %v10367_v50  ;;  %v8809_v50 = vor.u32 %v10191_v14, %v8808_v61  ;;  %v5619_v48 = vadd.f32 %v11073_v53, %v4086_v43 }
 0x3ca   :  { %6546 = vmatpush.bf16.msrb.mxu2 %v10375_v36  ;;  %v5733_v34 = vadd.f32 %v5732_v9, %v5719_v57  ;;  %v5607_v5 = vadd.f32 %v11091_v40, %v5593_v29  ;;  %v10385_v9 = vld [vmem:[#allocation16 + $0x138] sm:$0xff] }
 0x3cc   :  { %5990 = vmatpush.bf16.msra.mxu0 %v8893_v37  ;;  %6505 = vmatpush.bf16.msra.mxu3 %v10350_v41  ;;  %v5747_v27 = vadd.f32 %v5746_v24, %v5733_v34  ;;  %v10184_v37 = vld [vmem:[#allocation13 + $0x3b0] sm:$0xf0]  ;;  %v5745_v41 = vadd.f32 %v5744_v10, %v5731_v39  ;;  %v6036_v18 = vmax.f32 %v5607_v5, 0.0  ;;  %v10360_v10 = vld [vmem:[#allocation16 + $0x70] sm:$0xff] }
 0x3cd   :  { %6533 = vmatpush.bf16.msrb.mxu1 %v10366_v7  ;;  %v8781_v36 = vor.u32 %v10184_v37, %v8780_v25  ;;  %v10371_v7 = vld [vmem:[#allocation16 + $0xc8] sm:$0xff]  ;;  %v5760_v22 = vpop.f32.mrf.mxu3 }
 0x3ce   :  { %6547 = vmatpush.bf16.msrb.mxu2 %v10374_v21  ;;  %v6038_v12 = vmax.f32 %v5747_v27, 0.0  ;;  %v6031_v8 = vmax.f32 %v5745_v41, 0.0  ;;  %v10359_v21 = vld [vmem:[#allocation16 + $0x68] sm:$0xff]  ;;  %v5800_v17 = vpop.f32.mrf.mxu2  ;;  %v10382_v41 = vld [vmem:[#allocation16 + $0x120] sm:$0xff] }
 0x3d0   :  { %5991 = vmatpush.bf16.msra.mxu0 %v8865_v15  ;;  %6506 = vmatpush.bf16.msra.mxu3 %v10349_v56  ;;  %v6029_v15 = vmax.f32 %v5605_v33, 0.0  ;;  %v6045_v42 = vpack.c.bf16 %v6038_v12, %v6031_v8  ;;  %v4088_v56 = vperm.slane %v11109_v28, 3  ;;  %v10379_v12 = vld [vmem:[#allocation16 + $0x108] sm:$0xff]  ;;  %v4089_v8 = vperm.slane %v11109_v28, 4 }
 0x3d1   :  { %6534 = vmatpush.bf16.msrb.mxu1 %v10365_v47  ;;  %v5786_v47 = vpop.f32.mrf.mxu1 }
 0x3d2   :  { %6548 = vmatpush.bf16.msrb.mxu2 %v10373_v54  ;;  %v6043_v40 = vpack.c.bf16 %v6036_v18, %v6029_v15  ;;  %v5759_v31 = vadd.f32 %v5758_v11, %v4088_v56  ;;  %v5761_v54 = vadd.f32 %v5760_v22, %v4088_v56  ;;  %v10391_v11 = vld [vmem:[#allocation16 + $0x168] sm:$0xff] }
 0x3d4   :  { %5992 = vmatpush.bf16.msra.mxu0 %v8837_v35  ;;  %6507 = vmatpush.bf16.msra.mxu3 %v10348_v52  ;;  %v5635_v35 = vadd.f32 %v11087_v23, %v5621_v46 }
 0x3d5   :  { %6535 = vmatpush.bf16.msrb.mxu1 %v10364_v59  ;;  %v5633_v59 = vadd.f32 %v11075_v55, %v5619_v48  ;;  %v10355_v55 = vld [vmem:[#allocation16 + $0x48] sm:$0xff] }
 0x3d6   :  { %6549 = vmatpush.bf16.msrb.mxu2 %v10372_v60  ;;  %v5649_v61 = vadd.f32 %v11099_v63, %v5635_v35  ;;  %v5802_v29 = vpop.f32.mrf.mxu2  ;;  %v10384_v60 = vld [vmem:[#allocation16 + $0x130] sm:$0xff]  ;;  %v10387_v35 = vld [vmem:[#allocation16 + $0x148] sm:$0xff] }
 0x3d7   :  { %v5647_v20 = vadd.f32 %v11089_v0, %v5633_v59 }
 0x3d8   :  { %5993 = vmatpush.bf16.msra.mxu0 %v8809_v50  ;;  %6508 = vmatpush.bf16.msra.mxu3 %v10347_v26  ;;  %v5663_v39 = vadd.f32 %v11103_v51, %v5649_v61  ;;  %v10354_v51 = vld [vmem:[#allocation16 + $0x40] sm:$0xff] }
 0x3d9   :  { %6536 = vmatpush.bf16.msrb.mxu1 %v10363_v2  ;;  %v5788_v34 = vpop.f32.mrf.mxu1  ;;  %v5661_v23 = vadd.f32 %v11095_v6, %v5647_v20  ;;  %v10383_v2 = vld [vmem:[#allocation16 + $0x128] sm:$0xff]  ;;  %v10386_v61 = vld [vmem:[#allocation16 + $0x140] sm:$0xff] }
 0x3da   :  { %6550 = vmatpush.bf16.msrb.mxu2 %v10371_v7  ;;  %v5677_v63 = vadd.f32 %v11101_v58, %v5663_v39  ;;  %v10381_v58 = vld [vmem:[#allocation16 + $0x118] sm:$0xff]  ;;  %v10399_v20 = vld [vmem:[#allocation16 + $0x1a8] sm:$0xff] }
 0x3db   :  { %v5675_v27 = vadd.f32 %v11093_v44, %v5661_v23  ;;  %v10380_v44 = vld [vmem:[#allocation16 + $0x110] sm:$0xff]  ;;  %v10398_v23 = vld [vmem:[#allocation16 + $0x1a0] sm:$0xff] }
 0x3dc   :  { %5994 = vmatpush.bf16.msra.mxu0 %v8781_v36  ;;  %6509 = vmatpush.bf16.msra.mxu3 %v10346_v30  ;;  %v5772_v32 = vpop.f32.mrf.mxu0  ;;  %v6037_v25 = vmax.f32 %v5677_v63, 0.0  ;;  %v10378_v36 = vld [vmem:[#allocation16 + $0x100] sm:$0xff]  ;;  %v10393_v30 = vld [vmem:[#allocation16 + $0x178] sm:$0xff] }
 0x3dd   :  { %6537 = vmatpush.bf16.msrb.mxu1 %v10362_v19  ;;  %v5773_v45 = vadd.f32 %v5772_v32, %v5759_v31  ;;  %v6030_v6 = vmax.f32 %v5675_v27, 0.0  ;;  %v10392_v19 = vld [vmem:[#allocation16 + $0x170] sm:$0xff]  ;;  %v10397_v63 = vld [vmem:[#allocation16 + $0x198] sm:$0xff] }
 0x3de   :  { %6551 = vmatpush.bf16.msrb.mxu2 %v10370_v3  ;;  %v10390_v3 = vld [vmem:[#allocation16 + $0x160] sm:$0xff] }
 0x3df   :  { %5995 = vmatmul.bf16.vlgmr.msra.gmra.mxu0 %v11027_v49  ;;  %6510 = vmatmul.bf16.vlgmr.msra.gmra.mxu3 %v6043_v40  ;;  %v10357_v49 = vld [vmem:[#allocation16 + $0x58] sm:$0xff]  ;;  %v5787_v52 = vadd.f32 %v5786_v47, %v5773_v45  ;;  %v6044_v33 = vpack.c.bf16 %v6037_v25, %v6030_v6  ;;  %v10395_v6 = vld [vmem:[#allocation16 + $0x188] sm:$0xff] }
 0x3e0   :  { %6516 = vmatpush.bf16.msrb.mxu0 %v10361_v13  ;;  %6538 = vmatmul.bf16.vlgmr.msrb.gmra.mxu1 %v6045_v42  ;;  %v10389_v47 = vld [vmem:[#allocation16 + $0x158] sm:$0xff] }
 0x3e1   :  { %v5801_v53 = vadd.f32 %v5800_v17, %v5787_v52  ;;  %6558 = vmatpush.bf16.msrb.mxu3 %v10385_v9  ;;  %v5842_v18 = vpop.f32.mrf.mxu1  ;;  %v10388_v17 = vld [vmem:[#allocation16 + $0x150] sm:$0xff] }
 0x3e2   :  { %v5814_v57 = vpop.f32.mrf.mxu3  ;;  %v10400_v9 = vld [vmem:[#allocation16 + $0x1b0] sm:$0xff] }
 0x3e3   :  { %v5815_v50 = vadd.f32 %v5814_v57, %v5801_v53 }
 0x3e4   :  { %6517 = vmatpush.bf16.msrb.mxu0 %v10360_v10  ;;  %v5774_v14 = vpop.f32.mrf.mxu0 }
 0x3e5   :  { %v5775_v16 = vadd.f32 %v5774_v14, %v5761_v54  ;;  %6559 = vmatpush.bf16.msrb.mxu3 %v10384_v60  ;;  %v6032_v37 = vmax.f32 %v5815_v50, 0.0  ;;  %v5856_v13 = vpop.f32.mrf.mxu2 }
 0x3e7   :  { %v5789_v1 = vadd.f32 %v5788_v34, %v5775_v16 }
 0x3e8   :  { %6518 = vmatpush.bf16.msrb.mxu0 %v10359_v21 }
 0x3e9   :  { %v5803_v24 = vadd.f32 %v5802_v29, %v5789_v1  ;;  %6560 = vmatpush.bf16.msrb.mxu3 %v10383_v2  ;;  %v5844_v21 = vpop.f32.mrf.mxu1  ;;  %v4090_v1 = vperm.slane %v11109_v28, 5 }
 0x3ea   :  { %v5816_v26 = vpop.f32.mrf.mxu3 }
 0x3eb   :  { %v5817_v0 = vadd.f32 %v5816_v26, %v5803_v24 }
 0x3ec   :  { %6519 = vmatpush.bf16.msrb.mxu0 %v10358_v38 }
 0x3ed   :  { %v6039_v4 = vmax.f32 %v5817_v0, 0.0  ;;  %6561 = vmatpush.bf16.msrb.mxu3 %v10382_v41  ;;  %v5858_v38 = vpop.f32.mrf.mxu2 }
 0x3ef   :  { %v6046_v5 = vpack.c.bf16 %v6039_v4, %v6032_v37 }
 0x3f0   :  { %6520 = vmatpush.bf16.msrb.mxu0 %v10357_v49 }
 0x3f1   :  { %6552 = vmatmul.bf16.vlgmr.msrb.gmra.mxu2 %v6046_v5  ;;  %6562 = vmatpush.bf16.msrb.mxu3 %v10381_v58 }
 0x3f4   :  { %6521 = vmatpush.bf16.msrb.mxu0 %v10356_v62  ;;  %v10401_v62 = vld [vmem:[#allocation16 + $0x1b8] sm:$0xff] }
 0x3f5   :  { %6563 = vmatpush.bf16.msrb.mxu3 %v10380_v44  ;;  %6586 = vmatpush.bf16.msra.mxu1 %v10401_v62  ;;  %v10394_v44 = vld [vmem:[#allocation16 + $0x180] sm:$0xff] }
 0x3f8   :  { %6522 = vmatpush.bf16.msrb.mxu0 %v10355_v55 }
 0x3f9   :  { %6564 = vmatpush.bf16.msrb.mxu3 %v10379_v12  ;;  %6587 = vmatpush.bf16.msra.mxu1 %v10400_v9 }
 0x3fc   :  { %6523 = vmatpush.bf16.msrb.mxu0 %v10354_v51  ;;  %v5828_v7 = vpop.f32.mrf.mxu0  ;;  %v10396_v51 = vld [vmem:[#allocation16 + $0x190] sm:$0xff] }
 0x3fd   :  { %6565 = vmatpush.bf16.msrb.mxu3 %v10378_v36  ;;  %v5829_v42 = vadd.f32 %v5828_v7, %v4089_v8  ;;  %6588 = vmatpush.bf16.msra.mxu1 %v10399_v20 }
 0x3ff   :  { %6524 = vmatmul.bf16.vlgmr.msrb.gmra.mxu0 %v6044_v33  ;;  %v5843_v56 = vadd.f32 %v5842_v18, %v5829_v42  ;;  %v5898_v14 = vpop.f32.mrf.mxu1 }
 0x400   :  { %6572 = vmatpush.bf16.msra.mxu0 %v10393_v30  ;;  %v5899_v29 = vadd.f32 %v5898_v14, %v4090_v1 }
 0x401   :  { %v5857_v32 = vadd.f32 %v5856_v13, %v5843_v56  ;;  %6589 = vmatpush.bf16.msra.mxu1 %v10398_v23 }
 0x402   :  { %v5870_v40 = vpop.f32.mrf.mxu3 }
 0x403   :  { %v5871_v46 = vadd.f32 %v5870_v40, %v5857_v32 }
 0x404   :  { %6573 = vmatpush.bf16.msra.mxu0 %v10392_v19  ;;  %v5830_v15 = vpop.f32.mrf.mxu0 }
 0x405   :  { %v5831_v10 = vadd.f32 %v5830_v15, %v4089_v8  ;;  %v5912_v39 = vpop.f32.mrf.mxu2  ;;  %6590 = vmatpush.bf16.msra.mxu1 %v10397_v63  ;;  %v4091_v8 = vperm.slane %v11109_v28, 6 }
 0x406   :  { %v5913_v50 = vadd.f32 %v5912_v39, %v5899_v29 }
 0x407   :  { %v5845_v22 = vadd.f32 %v5844_v21, %v5831_v10  ;;  %v5900_v34 = vpop.f32.mrf.mxu1 }
 0x408   :  { %6574 = vmatpush.bf16.msra.mxu0 %v10391_v11  ;;  %v5901_v60 = vadd.f32 %v5900_v34, %v4090_v1 }
 0x409   :  { %v5859_v43 = vadd.f32 %v5858_v38, %v5845_v22  ;;  %6591 = vmatpush.bf16.msra.mxu1 %v10396_v51 }
 0x40a   :  { %v5872_v45 = vpop.f32.mrf.mxu3 }
 0x40b   :  { %v5873_v49 = vadd.f32 %v5872_v45, %v5859_v43 }
 0x40c   :  { %6575 = vmatpush.bf16.msra.mxu0 %v10390_v3 }
 0x40d   :  { %v5914_v26 = vpop.f32.mrf.mxu2  ;;  %6592 = vmatpush.bf16.msra.mxu1 %v10395_v6 }
 0x40e   :  { %v5915_v2 = vadd.f32 %v5914_v26, %v5901_v60 }
 0x410   :  { %6576 = vmatpush.bf16.msra.mxu0 %v10389_v47 }
 0x411   :  { %6593 = vmatpush.bf16.msra.mxu1 %v10394_v44 }
 0x414   :  { %6577 = vmatpush.bf16.msra.mxu0 %v10388_v17 }
 0x418   :  { %6578 = vmatpush.bf16.msra.mxu0 %v10387_v35 }
 0x41c   :  { %v5884_v31 = vpop.f32.mrf.mxu0  ;;  %6579 = vmatpush.bf16.msra.mxu0 %v10386_v61 }
 0x41d   :  { %v5885_v48 = vadd.f32 %v5884_v31, %v5871_v46 }
 0x41f   :  { %v6033_v57 = vmax.f32 %v5885_v48, 0.0  ;;  %v5954_v55 = vpop.f32.mrf.mxu1 }
 0x422   :  { %v5926_v53 = vpop.f32.mrf.mxu3 }
 0x423   :  { %v5927_v27 = vadd.f32 %v5926_v53, %v5913_v50 }
 0x424   :  { %v5886_v52 = vpop.f32.mrf.mxu0 }
 0x425   :  { %v5887_v54 = vadd.f32 %v5886_v52, %v5873_v49  ;;  %v5968_v12 = vpop.f32.mrf.mxu2 }
 0x426   :  { %v5969_v11 = vadd.f32 %v5968_v12, %v4091_v8 }
 0x427   :  { %v6040_v59 = vmax.f32 %v5887_v54, 0.0  ;;  %v5956_v33 = vpop.f32.mrf.mxu1  ;;  %v10423_v54 = vld [vmem:[#allocation17] ss:$0 sm:$0xff] }
 0x429   :  { %v6047_v16 = vpack.c.bf16 %v6040_v59, %v6033_v57 }
 0x42a   :  { %v5928_v0 = vpop.f32.mrf.mxu3 }
 0x42b   :  { %6566 = vmatmul.bf16.vlgmr.msrb.gmra.mxu3 %v6047_v16  ;;  %v5929_v37 = vadd.f32 %v5928_v0, %v5915_v2 }
 0x42d   :  { %v5970_v19 = vpop.f32.mrf.mxu2 }
 0x42e   :  { %v5971_v56 = vadd.f32 %v5970_v19, %v4091_v8 }
 0x43c   :  { %v5940_v24 = vpop.f32.mrf.mxu0 }
 0x43d   :  { %v5941_v25 = vadd.f32 %v5940_v24, %v5927_v27 }
 0x43f   :  { %v5955_v5 = vadd.f32 %v5954_v55, %v5941_v25  ;;  %v6010_v13 = vpop.f32.mrf.mxu1 }
 0x441   :  { %v6034_v36 = vmax.f32 %v5955_v5, 0.0 }
 0x442   :  { %v5982_v18 = vpop.f32.mrf.mxu3 }
 0x443   :  { %v5983_v42 = vadd.f32 %v5982_v18, %v5969_v11 }
 0x444   :  { %v5942_v4 = vpop.f32.mrf.mxu0  ;;  %v6024_v3 = vpop.f32.mrf.mxu2 }
 0x445   :  { %v5943_v41 = vadd.f32 %v5942_v4, %v5929_v37 }
 0x447   :  { %v5957_v58 = vadd.f32 %v5956_v33, %v5943_v41  ;;  %v6012_v32 = vpop.f32.mrf.mxu1 }
 0x449   :  { %v6041_v7 = vmax.f32 %v5957_v58, 0.0 }
 0x44a   :  { %v5984_v10 = vpop.f32.mrf.mxu3 }
 0x44b   :  { %v6048_v30 = vpack.c.bf16 %v6041_v7, %v6034_v36  ;;  %v5985_v21 = vadd.f32 %v5984_v10, %v5971_v56 }
 0x44c   :  { %v6026_v17 = vpop.f32.mrf.mxu2 }
 0x44d   :  { %6580 = vmatmul.bf16.vlgmr.msra.gmra.mxu0 %v6048_v30 }
 0x45c   :  { %v5996_v15 = vpop.f32.mrf.mxu0 }
 0x45d   :  { %v5997_v40 = vadd.f32 %v5996_v15, %v5983_v42  ;;  %v6539_v52 = vpop.f32.mrf.mxu1 }
 0x45f   :  { %v6011_v22 = vadd.f32 %v6010_v13, %v5997_v40 }
 0x461   :  { %v6025_v38 = vadd.f32 %v6024_v3, %v6011_v22 }
 0x462   :  { %v6511_v48 = vpop.f32.mrf.mxu3 }
 0x463   :  { %v6035_v46 = vmax.f32 %v6025_v38, 0.0  ;;  %v6512_v61 = vadd.f32 %v10423_v54, %v6511_v48 }
 0x464   :  { %v5998_v47 = vpop.f32.mrf.mxu0 }
 0x465   :  { %v5999_v31 = vadd.f32 %v5998_v47, %v5985_v21  ;;  %v6541_v62 = vpop.f32.mrf.mxu1 }
 0x467   :  { %v6013_v43 = vadd.f32 %v6012_v32, %v5999_v31 }
 0x469   :  { %v6027_v45 = vadd.f32 %v6026_v17, %v6013_v43 }
 0x46a   :  { %v6513_v57 = vpop.f32.mrf.mxu3 }
 0x46b   :  { %v6042_v49 = vmax.f32 %v6027_v45, 0.0  ;;  %v6514_v34 = vadd.f32 %v10423_v54, %v6513_v57 }
 0x46d   :  { %v6049_v28 = vpack.c.bf16 %v6042_v49, %v6035_v46 }
 0x46f   :  { %6594 = vmatmul.bf16.vlgmr.msra.gmra.mxu1 %v6049_v28 }
 0x474   :  { %v6553_v16 = vpop.f32.mrf.mxu2 }
 0x47c   :  { %v6525_v35 = vpop.f32.mrf.mxu0  ;;  %v6555_v55 = vpop.f32.mrf.mxu2 }
 0x47d   :  { %v6526_v14 = vadd.f32 %v6525_v35, %v6512_v61 }
 0x47f   :  { %v6540_v20 = vadd.f32 %v6539_v52, %v6526_v14 }
 0x481   :  { %v6554_v53 = vadd.f32 %v6553_v16, %v6540_v20 }
 0x484   :  { %v6527_v59 = vpop.f32.mrf.mxu0 }
 0x485   :  { %v6528_v1 = vadd.f32 %v6527_v59, %v6514_v34 }
 0x487   :  { %v6542_v63 = vadd.f32 %v6541_v62, %v6528_v1 }
 0x489   :  { %v6556_v60 = vadd.f32 %v6555_v55, %v6542_v63 }
 0x4ae   :  { %v6567_v9 = vpop.f32.mrf.mxu3 }
 0x4af   :  { %v6568_v23 = vadd.f32 %v6567_v9, %v6554_v53 }
 0x4b6   :  { %v6569_v26 = vpop.f32.mrf.mxu3 }
 0x4b7   :  { %v6570_v0 = vadd.f32 %v6569_v26, %v6556_v60 }
 0x4ca   :  { %v6581_v39 = vpop.f32.mrf.mxu0 }
 0x4cb   :  { %v6582_v29 = vadd.f32 %v6581_v39, %v6568_v23 }
 0x4d2   :  { %v6583_v27 = vpop.f32.mrf.mxu0 }
 0x4d3   :  { %v6584_v51 = vadd.f32 %v6583_v27, %v6570_v0 }
 0x4ec   :  { %v6595_v24 = vpop.f32.mrf.mxu1 }
 0x4ed   :  { %v6596_v50 = vadd.f32 %v6595_v24, %v6582_v29 }
 0x4ef   :  { %6600 = vst [vmem:[#allocation19] sm:$0xff] %v6596_v50 }
 0x4f4   :  { %v6597_v2 = vpop.f32.mrf.mxu1 }
 0x4f5   :  { %v6598_v25 = vadd.f32 %v6597_v2, %v6584_v51 }
 0x4f7   :  { %6601 = vst [vmem:[#allocation19 + $0x8] sm:$0xff] %v6598_v25 }
 0x4f8   :  { %6614 = dma.vmem_to_hbm [thread:$0]  %s6607_s1, 256, %s6609_s29, [#allocation4], %s10722_s3, %s10722_s3, %s10723_s2  }
 0x4f9   :  { %10701 = dma.done.wait [#allocation4], 256  }
 0x4fa   :  { %10702 = vsyncadd [#allocation4], 4294967040 }
 0x4fb   :  { %6619 = vsyncpa [#allocation3], 1 }
 0x4fc   :  { %6620 = vsyncpa [#allocation6], 1 }
 0x4fd   :  { %6621 = vsyncpa [#allocation9], 1 }
 0x4fe   :  { %6622 = vsyncpa [#allocation12], 1 }
 0x4ff   :  { %6623 = vsyncpa [#allocation15], 1 }
 0x500   :  { %6624 = vsyncpa [#allocation18], 1 }
 0x501   :  { %6625 = vsyncpa [#allocation4], 1 }

</bundles_post_ra>
